<compile_context>
chip_gen: v5e
topology: v5e:2x2
jax: 0.10.0
libtpu: 0.0.40
codegen_flags: <defaults>
</compile_context>

<pallas_src>
import jax
import jax.numpy as jnp
from jax import lax
from jax.experimental import pallas as pl
from jax.experimental.pallas import tpu as pltpu

CPAD = 128  # lane-dense channel padding


# ----------------------------------------------------------------------------
# Fused kernel: 3x3 conv + BN + ReLU, then t2(t1(.)) + p2(p1(.)), BN, ReLU
# ----------------------------------------------------------------------------
def fused_aggregation_kernel(xp_ref, w1_ref, s1_ref, b1_ref,
                             wt1_ref, bt1_ref, wt2_ref, bt2_ref,
                             wp1_ref, bp1_ref, wp2_ref, bp2_ref,
                             s2_ref, b2_ref,
                             o_ref,
                             ypad_ref, wpad_ref, hpad_ref):
    # xp_ref : (H+2, W+2, Cin)  spatially pre-padded NHWC input (3x3 halo)
    # w1_ref : (9, Cin, Cp)     3x3 conv weight, tap-major
    # s1/b1  : (1, Cp)          folded BN1 affine (conv bias folded into b1)
    # wt*/wp*: (K, Cp)          depthwise tap weights;  bt*/bp*: (1, Cp) biases
    # s2/b2  : (1, Cp)          folded BN2 affine
    # o_ref  : (H, W, Cp)
    # ypad_ref: (H+2P, W+2P, Cp) f32 scratch  (stage-1 output with zero halo)
    # wpad_ref: (H,    W+2P, Cp) f32 scratch  (t1 output, zero W-halo)
    # hpad_ref: (H+2P, W,    Cp) f32 scratch  (p1 output, zero H-halo)
    H, W, Cp = o_ref.shape
    Cin = xp_ref.shape[-1]
    K = wt1_ref.shape[0]
    P = K // 2
    HW = H * W

    xp = xp_ref[...].astype(jnp.float32)

    # ---- stage 1: 3x3 conv as 9 shifted MXU matmuls (no HBM im2col) ----
    acc = jnp.dot(xp[0:H, 0:W, :].reshape(HW, Cin), w1_ref[0],
                  preferred_element_type=jnp.float32)
    for t in range(1, 9):
        kh, kw = t // 3, t % 3
        tap = xp[kh:kh + H, kw:kw + W, :].reshape(HW, Cin)
        acc = acc + jnp.dot(tap, w1_ref[t], preferred_element_type=jnp.float32)
    y = jnp.maximum(acc * s1_ref[...] + b1_ref[...], 0.0)       # (HW, Cp)
    y = y.reshape(H, W, Cp)

    # ---- stage 2: four depthwise convs + BN + ReLU, all resident in VMEM ----
    # write y once into a padded scratch; only the halo is memset to zero
    ypad_ref[0:P, :, :] = jnp.zeros((P, W + 2 * P, Cp), jnp.float32)
    ypad_ref[P + H:2 * P + H, :, :] = jnp.zeros((P, W + 2 * P, Cp), jnp.float32)
    ypad_ref[:, 0:P, :] = jnp.zeros((H + 2 * P, P, Cp), jnp.float32)
    ypad_ref[:, P + W:2 * P + W, :] = jnp.zeros((H + 2 * P, P, Cp), jnp.float32)
    ypad_ref[P:P + H, P:P + W, :] = y

    # t1: depthwise (K,1) conv along H (accumulator init = first tap + bias)
    t1 = (ypad_ref[0:H, P:P + W, :] * wt1_ref[0][None, None, :]
          + bt1_ref[0][None, None, :])
    for k in range(1, K):
        t1 = t1 + ypad_ref[k:k + H, P:P + W, :] * wt1_ref[k][None, None, :]

    # p1: depthwise (1,K) conv along W
    p1 = (ypad_ref[P:P + H, 0:W, :] * wp1_ref[0][None, None, :]
          + bp1_ref[0][None, None, :])
    for k in range(1, K):
        p1 = p1 + ypad_ref[P:P + H, k:k + W, :] * wp1_ref[k][None, None, :]

    # t2(t1): depthwise (1,K) conv along W
    wpad_ref[:, 0:P, :] = jnp.zeros((H, P, Cp), jnp.float32)
    wpad_ref[:, P + W:2 * P + W, :] = jnp.zeros((H, P, Cp), jnp.float32)
    wpad_ref[:, P:P + W, :] = t1
    x1 = (wpad_ref[:, 0:W, :] * wt2_ref[0][None, None, :]
          + bt2_ref[0][None, None, :])
    for k in range(1, K):
        x1 = x1 + wpad_ref[:, k:k + W, :] * wt2_ref[k][None, None, :]

    # p2(p1): depthwise (K,1) conv along H
    hpad_ref[0:P, :, :] = jnp.zeros((P, W, Cp), jnp.float32)
    hpad_ref[P + H:2 * P + H, :, :] = jnp.zeros((P, W, Cp), jnp.float32)
    hpad_ref[P:P + H, :, :] = p1
    x2 = (hpad_ref[0:H, :, :] * wp2_ref[0][None, None, :]
          + bp2_ref[0][None, None, :])
    for k in range(1, K):
        x2 = x2 + hpad_ref[k:k + H, :, :] * wp2_ref[k][None, None, :]

    out = (x1 + x2) * s2_ref[0][None, None, :] + b2_ref[0][None, None, :]
    o_ref[...] = jnp.maximum(out, 0.0).astype(o_ref.dtype)


# ----------------------------------------------------------------------------
# Wrapper
# ----------------------------------------------------------------------------
def aggregation_module_forward(x_nchw, params):
    x = jnp.transpose(x_nchw, (0, 2, 3, 1)).astype(jnp.float32)   # NCHW -> NHWC
    B, H, W, Cin = x.shape
    Cout = params["w_conv"].shape[-1]
    K = params["wt1"].shape[0]
    P = K // 2
    Cp = ((Cout + CPAD - 1) // CPAD) * CPAD

    # only glue-side prep: tiny 1-px spatial halo for the 3x3 conv (no im2col)
    xp = jnp.pad(x, ((0, 0), (1, 1), (1, 1), (0, 0)))

    def padc(a):  # zero-pad the channel (last) axis to Cp (lane-dense)
        return jnp.pad(a, [(0, 0)] * (a.ndim - 1) + [(0, Cp - a.shape[-1])])

    w1 = padc(params["w_conv"]).reshape(9, Cin, Cp)       # tap-major weight slab
    s1, b1 = padc(params["scale1"]), padc(params["shift1"])
    wt1, bt1 = padc(params["wt1"]), padc(params["bt1"])
    wt2, bt2 = padc(params["wt2"]), padc(params["bt2"])
    wp1, bp1 = padc(params["wp1"]), padc(params["bp1"])
    wp2, bp2 = padc(params["wp2"]), padc(params["bp2"])
    s2, b2 = padc(params["scale2"]), padc(params["shift2"])

    vec = pl.BlockSpec((1, Cp), lambda b: (0, 0))
    ker = pl.BlockSpec((K, Cp), lambda b: (0, 0))

    out = pl.pallas_call(
        fused_aggregation_kernel,
        out_shape=jax.ShapeDtypeStruct((B, H, W, Cp), jnp.float32),
        grid=(B,),
        in_specs=[
            pl.BlockSpec((None, H + 2, W + 2, Cin), lambda b: (b, 0, 0, 0)),
            pl.BlockSpec((9, Cin, Cp), lambda b: (0, 0, 0)),
            vec, vec,            # BN1 scale / shift (conv bias folded in)
            ker, vec,            # t1
            ker, vec,            # t2
            ker, vec,            # p1
            ker, vec,            # p2
            vec, vec,            # BN2 scale / shift
        ],
        out_specs=pl.BlockSpec((None, H, W, Cp), lambda b: (b, 0, 0, 0)),
        scratch_shapes=[
            pltpu.VMEM((H + 2 * P, W + 2 * P, Cp), jnp.float32),
            pltpu.VMEM((H, W + 2 * P, Cp), jnp.float32),
            pltpu.VMEM((H + 2 * P, W, Cp), jnp.float32),
        ],
        compiler_params=pltpu.CompilerParams(
            dimension_semantics=("parallel",)),
    )(xp, w1, s1, b1, wt1, bt1, wt2, bt2, wp1, bp1, wp2, bp2, s2, b2)

    out = out[..., :Cout]                       # drop lane padding
    return jnp.transpose(out, (0, 3, 1, 2))     # back to NCHW to match PyTorch


# ----------------------------------------------------------------------------
# Deterministic synthetic parameters (inference-mode BN folded to scale/shift)
# ----------------------------------------------------------------------------
def init_params(key, Cin, Cout, K):
    eps = 1e-5
    ks = jax.random.split(key, 20)
    p = {}
    p["w_conv"] = 0.2 * jax.random.normal(ks[0], (3, 3, Cin, Cout), jnp.float32)
    b_conv = 0.1 * jax.random.normal(ks[1], (Cout,), jnp.float32)

    gamma1 = 1.0 + 0.1 * jax.random.normal(ks[2], (Cout,), jnp.float32)
    beta1 = 0.1 * jax.random.normal(ks[3], (Cout,), jnp.float32)
    mean1 = 0.1 * jax.random.normal(ks[4], (Cout,), jnp.float32)
    var1 = 1.0 + 0.1 * jnp.abs(jax.random.normal(ks[5], (Cout,), jnp.float32))
    scale1 = gamma1 / jnp.sqrt(var1 + eps)
    shift1 = beta1 - mean1 * scale1 + scale1 * b_conv   # fold conv bias into BN
    p["scale1"] = scale1.reshape(1, Cout)
    p["shift1"] = shift1.reshape(1, Cout)

    p["wt1"] = 0.2 * jax.random.normal(ks[6], (K, Cout), jnp.float32)
    p["bt1"] = (0.1 * jax.random.normal(ks[7], (Cout,), jnp.float32)).reshape(1, Cout)
    p["wt2"] = 0.2 * jax.random.normal(ks[8], (K, Cout), jnp.float32)
    p["bt2"] = (0.1 * jax.random.normal(ks[9], (Cout,), jnp.float32)).reshape(1, Cout)
    p["wp1"] = 0.2 * jax.random.normal(ks[10], (K, Cout), jnp.float32)
    p["bp1"] = (0.1 * jax.random.normal(ks[11], (Cout,), jnp.float32)).reshape(1, Cout)
    p["wp2"] = 0.2 * jax.random.normal(ks[12], (K, Cout), jnp.float32)
    p["bp2"] = (0.1 * jax.random.normal(ks[13], (Cout,), jnp.float32)).reshape(1, Cout)

    gamma2 = 1.0 + 0.1 * jax.random.normal(ks[14], (Cout,), jnp.float32)
    beta2 = 0.1 * jax.random.normal(ks[15], (Cout,), jnp.float32)
    mean2 = 0.1 * jax.random.normal(ks[16], (Cout,), jnp.float32)
    var2 = 1.0 + 0.1 * jnp.abs(jax.random.normal(ks[17], (Cout,), jnp.float32))
    scale2 = gamma2 / jnp.sqrt(var2 + eps)
    shift2 = beta2 - mean2 * scale2
    p["scale2"] = scale2.reshape(1, Cout)
    p["shift2"] = shift2.reshape(1, Cout)
    return p


# ----------------------------------------------------------------------------
# Pure-JAX reference (lax.conv), used as a correctness check
# ----------------------------------------------------------------------------
def reference_forward(x_nchw, p):
    x = jnp.transpose(x_nchw, (0, 2, 3, 1)).astype(jnp.float32)
    C = p["w_conv"].shape[-1]
    y = lax.conv_general_dilated(
        x, p["w_conv"], (1, 1), ((1, 1), (1, 1)),
        dimension_numbers=("NHWC", "HWIO", "NHWC"),
        precision=lax.Precision.HIGHEST)
    y = jnp.maximum(y * p["scale1"].reshape(1, 1, 1, -1)
                    + p["shift1"].reshape(1, 1, 1, -1), 0.0)

    def dw(v, w_kc, b, axis):
        K = w_kc.shape[0]
        P = K // 2
        if axis == 0:
            rhs = w_kc.reshape(K, 1, 1, C)
            pad = ((P, P), (0, 0))
        else:
            rhs = w_kc.reshape(1, K, 1, C)
            pad = ((0, 0), (P, P))
        out = lax.conv_general_dilated(
            v, rhs, (1, 1), pad,
            dimension_numbers=("NHWC", "HWIO", "NHWC"),
            feature_group_count=C, precision=lax.Precision.HIGHEST)
        return out + b.reshape(1, 1, 1, C)

    x1 = dw(dw(y, p["wt1"], p["bt1"], 0), p["wt2"], p["bt2"], 1)
    x2 = dw(dw(y, p["wp1"], p["bp1"], 1), p["wp2"], p["bp2"], 0)
    out = jnp.maximum((x1 + x2) * p["scale2"].reshape(1, 1, 1, -1)
                      + p["shift2"].reshape(1, 1, 1, -1), 0.0)
    return jnp.transpose(out, (0, 3, 1, 2))


if __name__ == "__main__":
    B, Cin, H, W = 2, 4, 16, 16
    Cout, K = 8, 5

    key = jax.random.PRNGKey(0)
    kx, kp = jax.random.split(key)
    x = jax.random.normal(kx, (B, Cin, H, W), jnp.float32)   # NCHW, like PyTorch
    params = init_params(kp, Cin, Cout, K)

    out = aggregation_module_forward(x, params)
    out = jax.block_until_ready(out)

    ref = jax.block_until_ready(reference_forward(x, params))
    assert out.shape == (B, Cout, H, W)
    assert jnp.allclose(out, ref, atol=1e-2, rtol=1e-2), (
        float(jnp.max(jnp.abs(out - ref))))

    print("KERNEL_OK")
</pallas_src>

<mosaic_0001>
module attributes {stable_mosaic.version = 11 : i64} {
  func.func @fused_aggregation_kernel(%arg0: i32, %arg1: memref<1x18x18x4xf32, #tpu.memory_space<vmem>>, %arg2: memref<9x4x128xf32, #tpu.memory_space<vmem>>, %arg3: memref<1x128xf32, #tpu.memory_space<vmem>>, %arg4: memref<1x128xf32, #tpu.memory_space<vmem>>, %arg5: memref<5x128xf32, #tpu.memory_space<vmem>>, %arg6: memref<1x128xf32, #tpu.memory_space<vmem>>, %arg7: memref<5x128xf32, #tpu.memory_space<vmem>>, %arg8: memref<1x128xf32, #tpu.memory_space<vmem>>, %arg9: memref<5x128xf32, #tpu.memory_space<vmem>>, %arg10: memref<1x128xf32, #tpu.memory_space<vmem>>, %arg11: memref<5x128xf32, #tpu.memory_space<vmem>>, %arg12: memref<1x128xf32, #tpu.memory_space<vmem>>, %arg13: memref<1x128xf32, #tpu.memory_space<vmem>>, %arg14: memref<1x128xf32, #tpu.memory_space<vmem>>, %arg15: memref<1x16x16x128xf32, #tpu.memory_space<vmem>>, %arg16: memref<20x20x128xf32, #tpu.memory_space<vmem>>, %arg17: memref<16x20x128xf32, #tpu.memory_space<vmem>>, %arg18: memref<20x16x128xf32, #tpu.memory_space<vmem>>) attributes {dimension_semantics = [#tpu.dimension_semantics<parallel>], iteration_bounds = array<i64: 2>, scalar_prefetch = 0 : i64, scratch_operands = 3 : i64, tpu.core_type = #tpu.core_type<tc>, window_params = [{transform_indices = @transform_0, window_bounds = array<i64: 1, 18, 18, 4>}, {pipeline_mode = #tpu.pipeline_mode<synchronous>, transform_indices = @transform_1, window_bounds = array<i64: 9, 4, 128>}, {pipeline_mode = #tpu.pipeline_mode<synchronous>, transform_indices = @transform_2, window_bounds = array<i64: 1, 128>}, {pipeline_mode = #tpu.pipeline_mode<synchronous>, transform_indices = @transform_3, window_bounds = array<i64: 1, 128>}, {pipeline_mode = #tpu.pipeline_mode<synchronous>, transform_indices = @transform_4, window_bounds = array<i64: 5, 128>}, {pipeline_mode = #tpu.pipeline_mode<synchronous>, transform_indices = @transform_5, window_bounds = array<i64: 1, 128>}, {pipeline_mode = #tpu.pipeline_mode<synchronous>, transform_indices = @transform_6, window_bounds = array<i64: 5, 128>}, {pipeline_mode = #tpu.pipeline_mode<synchronous>, transform_indices = @transform_7, window_bounds = array<i64: 1, 128>}, {pipeline_mode = #tpu.pipeline_mode<synchronous>, transform_indices = @transform_8, window_bounds = array<i64: 5, 128>}, {pipeline_mode = #tpu.pipeline_mode<synchronous>, transform_indices = @transform_9, window_bounds = array<i64: 1, 128>}, {pipeline_mode = #tpu.pipeline_mode<synchronous>, transform_indices = @transform_10, window_bounds = array<i64: 5, 128>}, {pipeline_mode = #tpu.pipeline_mode<synchronous>, transform_indices = @transform_11, window_bounds = array<i64: 1, 128>}, {pipeline_mode = #tpu.pipeline_mode<synchronous>, transform_indices = @transform_12, window_bounds = array<i64: 1, 128>}, {pipeline_mode = #tpu.pipeline_mode<synchronous>, transform_indices = @transform_13, window_bounds = array<i64: 1, 128>}, {transform_indices = @transform_14, window_bounds = array<i64: 1, 16, 16, 128>}]} {
    %c0 = arith.constant 0 : index
    %c0_0 = arith.constant 0 : index
    %c0_1 = arith.constant 0 : index
    %c0_2 = arith.constant 0 : index
    %0 = vector.load %arg1[%c0, %c0_0, %c0_1, %c0_2] : memref<1x18x18x4xf32, #tpu.memory_space<vmem>>, vector<1x18x18x4xf32>
    %1 = vector.shape_cast %0 : vector<1x18x18x4xf32> to vector<18x18x4xf32>
    %2 = vector.extract_strided_slice %1 {offsets = [0, 0, 0], sizes = [16, 16, 4], strides = [1, 1, 1]} : vector<18x18x4xf32> to vector<16x16x4xf32>
    %3 = vector.shape_cast %2 : vector<16x16x4xf32> to vector<256x4xf32>
    %c0_3 = arith.constant 0 : index
    %c0_4 = arith.constant 0 : index
    %c0_5 = arith.constant 0 : index
    %4 = vector.load %arg2[%c0_3, %c0_4, %c0_5] : memref<9x4x128xf32, #tpu.memory_space<vmem>>, vector<1x4x128xf32>
    %5 = vector.shape_cast %4 : vector<1x4x128xf32> to vector<4x128xf32>
    %cst = arith.constant dense<0.000000e+00> : vector<256x128xf32>
    %6 = tpu.matmul %3, %5, %cst {dimension_numbers = #tpu.dot_dimension_numbers<[1], [0], [0], [1], [0, 0, 1, 1], [], []>} : vector<256x4xf32>, vector<4x128xf32>, vector<256x128xf32> -> vector<256x128xf32>
    %7 = vector.extract_strided_slice %1 {offsets = [0, 1, 0], sizes = [16, 16, 4], strides = [1, 1, 1]} : vector<18x18x4xf32> to vector<16x16x4xf32>
    %8 = vector.shape_cast %7 : vector<16x16x4xf32> to vector<256x4xf32>
    %c1 = arith.constant 1 : index
    %c0_6 = arith.constant 0 : index
    %c0_7 = arith.constant 0 : index
    %9 = vector.load %arg2[%c1, %c0_6, %c0_7] : memref<9x4x128xf32, #tpu.memory_space<vmem>>, vector<1x4x128xf32>
    %10 = vector.shape_cast %9 : vector<1x4x128xf32> to vector<4x128xf32>
    %cst_8 = arith.constant dense<0.000000e+00> : vector<256x128xf32>
    %11 = tpu.matmul %8, %10, %cst_8 {dimension_numbers = #tpu.dot_dimension_numbers<[1], [0], [0], [1], [0, 0, 1, 1], [], []>} : vector<256x4xf32>, vector<4x128xf32>, vector<256x128xf32> -> vector<256x128xf32>
    %12 = arith.addf %6, %11 : vector<256x128xf32>
    %13 = vector.extract_strided_slice %1 {offsets = [0, 2, 0], sizes = [16, 16, 4], strides = [1, 1, 1]} : vector<18x18x4xf32> to vector<16x16x4xf32>
    %14 = vector.shape_cast %13 : vector<16x16x4xf32> to vector<256x4xf32>
    %c2 = arith.constant 2 : index
    %c0_9 = arith.constant 0 : index
    %c0_10 = arith.constant 0 : index
    %15 = vector.load %arg2[%c2, %c0_9, %c0_10] : memref<9x4x128xf32, #tpu.memory_space<vmem>>, vector<1x4x128xf32>
    %16 = vector.shape_cast %15 : vector<1x4x128xf32> to vector<4x128xf32>
    %cst_11 = arith.constant dense<0.000000e+00> : vector<256x128xf32>
    %17 = tpu.matmul %14, %16, %cst_11 {dimension_numbers = #tpu.dot_dimension_numbers<[1], [0], [0], [1], [0, 0, 1, 1], [], []>} : vector<256x4xf32>, vector<4x128xf32>, vector<256x128xf32> -> vector<256x128xf32>
    %18 = arith.addf %12, %17 : vector<256x128xf32>
    %19 = vector.extract_strided_slice %1 {offsets = [1, 0, 0], sizes = [16, 16, 4], strides = [1, 1, 1]} : vector<18x18x4xf32> to vector<16x16x4xf32>
    %20 = vector.shape_cast %19 : vector<16x16x4xf32> to vector<256x4xf32>
    %c3 = arith.constant 3 : index
    %c0_12 = arith.constant 0 : index
    %c0_13 = arith.constant 0 : index
    %21 = vector.load %arg2[%c3, %c0_12, %c0_13] : memref<9x4x128xf32, #tpu.memory_space<vmem>>, vector<1x4x128xf32>
    %22 = vector.shape_cast %21 : vector<1x4x128xf32> to vector<4x128xf32>
    %cst_14 = arith.constant dense<0.000000e+00> : vector<256x128xf32>
    %23 = tpu.matmul %20, %22, %cst_14 {dimension_numbers = #tpu.dot_dimension_numbers<[1], [0], [0], [1], [0, 0, 1, 1], [], []>} : vector<256x4xf32>, vector<4x128xf32>, vector<256x128xf32> -> vector<256x128xf32>
    %24 = arith.addf %18, %23 : vector<256x128xf32>
    %25 = vector.extract_strided_slice %1 {offsets = [1, 1, 0], sizes = [16, 16, 4], strides = [1, 1, 1]} : vector<18x18x4xf32> to vector<16x16x4xf32>
    %26 = vector.shape_cast %25 : vector<16x16x4xf32> to vector<256x4xf32>
    %c4 = arith.constant 4 : index
    %c0_15 = arith.constant 0 : index
    %c0_16 = arith.constant 0 : index
    %27 = vector.load %arg2[%c4, %c0_15, %c0_16] : memref<9x4x128xf32, #tpu.memory_space<vmem>>, vector<1x4x128xf32>
    %28 = vector.shape_cast %27 : vector<1x4x128xf32> to vector<4x128xf32>
    %cst_17 = arith.constant dense<0.000000e+00> : vector<256x128xf32>
    %29 = tpu.matmul %26, %28, %cst_17 {dimension_numbers = #tpu.dot_dimension_numbers<[1], [0], [0], [1], [0, 0, 1, 1], [], []>} : vector<256x4xf32>, vector<4x128xf32>, vector<256x128xf32> -> vector<256x128xf32>
    %30 = arith.addf %24, %29 : vector<256x128xf32>
    %31 = vector.extract_strided_slice %1 {offsets = [1, 2, 0], sizes = [16, 16, 4], strides = [1, 1, 1]} : vector<18x18x4xf32> to vector<16x16x4xf32>
    %32 = vector.shape_cast %31 : vector<16x16x4xf32> to vector<256x4xf32>
    %c5 = arith.constant 5 : index
    %c0_18 = arith.constant 0 : index
    %c0_19 = arith.constant 0 : index
    %33 = vector.load %arg2[%c5, %c0_18, %c0_19] : memref<9x4x128xf32, #tpu.memory_space<vmem>>, vector<1x4x128xf32>
    %34 = vector.shape_cast %33 : vector<1x4x128xf32> to vector<4x128xf32>
    %cst_20 = arith.constant dense<0.000000e+00> : vector<256x128xf32>
    %35 = tpu.matmul %32, %34, %cst_20 {dimension_numbers = #tpu.dot_dimension_numbers<[1], [0], [0], [1], [0, 0, 1, 1], [], []>} : vector<256x4xf32>, vector<4x128xf32>, vector<256x128xf32> -> vector<256x128xf32>
    %36 = arith.addf %30, %35 : vector<256x128xf32>
    %37 = vector.extract_strided_slice %1 {offsets = [2, 0, 0], sizes = [16, 16, 4], strides = [1, 1, 1]} : vector<18x18x4xf32> to vector<16x16x4xf32>
    %38 = vector.shape_cast %37 : vector<16x16x4xf32> to vector<256x4xf32>
    %c6 = arith.constant 6 : index
    %c0_21 = arith.constant 0 : index
    %c0_22 = arith.constant 0 : index
    %39 = vector.load %arg2[%c6, %c0_21, %c0_22] : memref<9x4x128xf32, #tpu.memory_space<vmem>>, vector<1x4x128xf32>
    %40 = vector.shape_cast %39 : vector<1x4x128xf32> to vector<4x128xf32>
    %cst_23 = arith.constant dense<0.000000e+00> : vector<256x128xf32>
    %41 = tpu.matmul %38, %40, %cst_23 {dimension_numbers = #tpu.dot_dimension_numbers<[1], [0], [0], [1], [0, 0, 1, 1], [], []>} : vector<256x4xf32>, vector<4x128xf32>, vector<256x128xf32> -> vector<256x128xf32>
    %42 = arith.addf %36, %41 : vector<256x128xf32>
    %43 = vector.extract_strided_slice %1 {offsets = [2, 1, 0], sizes = [16, 16, 4], strides = [1, 1, 1]} : vector<18x18x4xf32> to vector<16x16x4xf32>
    %44 = vector.shape_cast %43 : vector<16x16x4xf32> to vector<256x4xf32>
    %c7 = arith.constant 7 : index
    %c0_24 = arith.constant 0 : index
    %c0_25 = arith.constant 0 : index
    %45 = vector.load %arg2[%c7, %c0_24, %c0_25] : memref<9x4x128xf32, #tpu.memory_space<vmem>>, vector<1x4x128xf32>
    %46 = vector.shape_cast %45 : vector<1x4x128xf32> to vector<4x128xf32>
    %cst_26 = arith.constant dense<0.000000e+00> : vector<256x128xf32>
    %47 = tpu.matmul %44, %46, %cst_26 {dimension_numbers = #tpu.dot_dimension_numbers<[1], [0], [0], [1], [0, 0, 1, 1], [], []>} : vector<256x4xf32>, vector<4x128xf32>, vector<256x128xf32> -> vector<256x128xf32>
    %48 = arith.addf %42, %47 : vector<256x128xf32>
    %49 = vector.extract_strided_slice %1 {offsets = [2, 2, 0], sizes = [16, 16, 4], strides = [1, 1, 1]} : vector<18x18x4xf32> to vector<16x16x4xf32>
    %50 = vector.shape_cast %49 : vector<16x16x4xf32> to vector<256x4xf32>
    %c8 = arith.constant 8 : index
    %c0_27 = arith.constant 0 : index
    %c0_28 = arith.constant 0 : index
    %51 = vector.load %arg2[%c8, %c0_27, %c0_28] : memref<9x4x128xf32, #tpu.memory_space<vmem>>, vector<1x4x128xf32>
    %52 = vector.shape_cast %51 : vector<1x4x128xf32> to vector<4x128xf32>
    %cst_29 = arith.constant dense<0.000000e+00> : vector<256x128xf32>
    %53 = tpu.matmul %50, %52, %cst_29 {dimension_numbers = #tpu.dot_dimension_numbers<[1], [0], [0], [1], [0, 0, 1, 1], [], []>} : vector<256x4xf32>, vector<4x128xf32>, vector<256x128xf32> -> vector<256x128xf32>
    %54 = arith.addf %48, %53 : vector<256x128xf32>
    %c0_30 = arith.constant 0 : index
    %c0_31 = arith.constant 0 : index
    %55 = vector.load %arg3[%c0_30, %c0_31] : memref<1x128xf32, #tpu.memory_space<vmem>>, vector<1x128xf32>
    %56 = vector.broadcast %55 : vector<1x128xf32> to vector<256x128xf32>
    %57 = arith.mulf %54, %56 : vector<256x128xf32>
    %c0_32 = arith.constant 0 : index
    %c0_33 = arith.constant 0 : index
    %58 = vector.load %arg4[%c0_32, %c0_33] : memref<1x128xf32, #tpu.memory_space<vmem>>, vector<1x128xf32>
    %59 = vector.broadcast %58 : vector<1x128xf32> to vector<256x128xf32>
    %60 = arith.addf %57, %59 : vector<256x128xf32>
    %cst_34 = arith.constant 0.000000e+00 : f32
    %61 = vector.broadcast %cst_34 : f32 to vector<256x128xf32>
    %62 = arith.maximumf %60, %61 : vector<256x128xf32>
    %63 = vector.shape_cast %62 : vector<256x128xf32> to vector<16x16x128xf32>
    %cst_35 = arith.constant 0.000000e+00 : f32
    %64 = vector.broadcast %cst_35 : f32 to vector<2x20x128xf32>
    %c0_36 = arith.constant 0 : index
    %c0_37 = arith.constant 0 : index
    %c0_38 = arith.constant 0 : index
    %65 = vector.load %arg16[%c0_36, %c0_37, %c0_38] : memref<20x20x128xf32, #tpu.memory_space<vmem>>, vector<2x20x128xf32>
    tpu.vector_store %arg16[%c0_36, %c0_37, %c0_38], %64 {strides = array<i32>} : memref<20x20x128xf32, #tpu.memory_space<vmem>>, vector<2x20x128xf32>,
    %cst_39 = arith.constant 0.000000e+00 : f32
    %66 = vector.broadcast %cst_39 : f32 to vector<2x20x128xf32>
    %c18 = arith.constant 18 : index
    %c0_40 = arith.constant 0 : index
    %c0_41 = arith.constant 0 : index
    %67 = vector.load %arg16[%c18, %c0_40, %c0_41] : memref<20x20x128xf32, #tpu.memory_space<vmem>>, vector<2x20x128xf32>
    tpu.vector_store %arg16[%c18, %c0_40, %c0_41], %66 {strides = array<i32>} : memref<20x20x128xf32, #tpu.memory_space<vmem>>, vector<2x20x128xf32>,
    %cst_42 = arith.constant 0.000000e+00 : f32
    %68 = vector.broadcast %cst_42 : f32 to vector<20x2x128xf32>
    %c0_43 = arith.constant 0 : index
    %c0_44 = arith.constant 0 : index
    %c0_45 = arith.constant 0 : index
    %69 = vector.load %arg16[%c0_43, %c0_44, %c0_45] : memref<20x20x128xf32, #tpu.memory_space<vmem>>, vector<20x2x128xf32>
    tpu.vector_store %arg16[%c0_43, %c0_44, %c0_45], %68 {strides = array<i32>} : memref<20x20x128xf32, #tpu.memory_space<vmem>>, vector<20x2x128xf32>,
    %cst_46 = arith.constant 0.000000e+00 : f32
    %70 = vector.broadcast %cst_46 : f32 to vector<20x2x128xf32>
    %c0_47 = arith.constant 0 : index
    %c18_48 = arith.constant 18 : index
    %c0_49 = arith.constant 0 : index
    %71 = vector.load %arg16[%c0_47, %c18_48, %c0_49] : memref<20x20x128xf32, #tpu.memory_space<vmem>>, vector<20x2x128xf32>
    tpu.vector_store %arg16[%c0_47, %c18_48, %c0_49], %70 {strides = array<i32>} : memref<20x20x128xf32, #tpu.memory_space<vmem>>, vector<20x2x128xf32>,
    %c2_50 = arith.constant 2 : index
    %c2_51 = arith.constant 2 : index
    %c0_52 = arith.constant 0 : index
    %72 = vector.load %arg16[%c2_50, %c2_51, %c0_52] : memref<20x20x128xf32, #tpu.memory_space<vmem>>, vector<16x16x128xf32>
    tpu.vector_store %arg16[%c2_50, %c2_51, %c0_52], %63 {strides = array<i32>} : memref<20x20x128xf32, #tpu.memory_space<vmem>>, vector<16x16x128xf32>,
    %c0_53 = arith.constant 0 : index
    %c2_54 = arith.constant 2 : index
    %c0_55 = arith.constant 0 : index
    %73 = vector.load %arg16[%c0_53, %c2_54, %c0_55] : memref<20x20x128xf32, #tpu.memory_space<vmem>>, vector<16x16x128xf32>
    %c0_56 = arith.constant 0 : index
    %c0_57 = arith.constant 0 : index
    %74 = vector.load %arg5[%c0_56, %c0_57] : memref<5x128xf32, #tpu.memory_space<vmem>>, vector<1x128xf32>
    %75 = vector.shape_cast %74 : vector<1x128xf32> to vector<128xf32>
    %76 = vector.shape_cast %75 : vector<128xf32> to vector<1x1x128xf32>
    %77 = vector.broadcast %76 : vector<1x1x128xf32> to vector<16x16x128xf32>
    %78 = arith.mulf %73, %77 : vector<16x16x128xf32>
    %c0_58 = arith.constant 0 : index
    %c0_59 = arith.constant 0 : index
    %79 = vector.load %arg6[%c0_58, %c0_59] : memref<1x128xf32, #tpu.memory_space<vmem>>, vector<1x128xf32>
    %80 = vector.shape_cast %79 : vector<1x128xf32> to vector<128xf32>
    %81 = vector.shape_cast %80 : vector<128xf32> to vector<1x1x128xf32>
    %82 = vector.broadcast %81 : vector<1x1x128xf32> to vector<16x16x128xf32>
    %83 = arith.addf %78, %82 : vector<16x16x128xf32>
    %c1_60 = arith.constant 1 : index
    %c2_61 = arith.constant 2 : index
    %c0_62 = arith.constant 0 : index
    %84 = vector.load %arg16[%c1_60, %c2_61, %c0_62] : memref<20x20x128xf32, #tpu.memory_space<vmem>>, vector<16x16x128xf32>
    %c1_63 = arith.constant 1 : index
    %c0_64 = arith.constant 0 : index
    %85 = vector.load %arg5[%c1_63, %c0_64] : memref<5x128xf32, #tpu.memory_space<vmem>>, vector<1x128xf32>
    %86 = vector.shape_cast %85 : vector<1x128xf32> to vector<128xf32>
    %87 = vector.shape_cast %86 : vector<128xf32> to vector<1x1x128xf32>
    %88 = vector.broadcast %87 : vector<1x1x128xf32> to vector<16x16x128xf32>
    %89 = arith.mulf %84, %88 : vector<16x16x128xf32>
    %90 = arith.addf %83, %89 : vector<16x16x128xf32>
    %c2_65 = arith.constant 2 : index
    %c2_66 = arith.constant 2 : index
    %c0_67 = arith.constant 0 : index
    %91 = vector.load %arg16[%c2_65, %c2_66, %c0_67] : memref<20x20x128xf32, #tpu.memory_space<vmem>>, vector<16x16x128xf32>
    %c2_68 = arith.constant 2 : index
    %c0_69 = arith.constant 0 : index
    %92 = vector.load %arg5[%c2_68, %c0_69] : memref<5x128xf32, #tpu.memory_space<vmem>>, vector<1x128xf32>
    %93 = vector.shape_cast %92 : vector<1x128xf32> to vector<128xf32>
    %94 = vector.shape_cast %93 : vector<128xf32> to vector<1x1x128xf32>
    %95 = vector.broadcast %94 : vector<1x1x128xf32> to vector<16x16x128xf32>
    %96 = arith.mulf %91, %95 : vector<16x16x128xf32>
    %97 = arith.addf %90, %96 : vector<16x16x128xf32>
    %c3_70 = arith.constant 3 : index
    %c2_71 = arith.constant 2 : index
    %c0_72 = arith.constant 0 : index
    %98 = vector.load %arg16[%c3_70, %c2_71, %c0_72] : memref<20x20x128xf32, #tpu.memory_space<vmem>>, vector<16x16x128xf32>
    %c3_73 = arith.constant 3 : index
    %c0_74 = arith.constant 0 : index
    %99 = vector.load %arg5[%c3_73, %c0_74] : memref<5x128xf32, #tpu.memory_space<vmem>>, vector<1x128xf32>
    %100 = vector.shape_cast %99 : vector<1x128xf32> to vector<128xf32>
    %101 = vector.shape_cast %100 : vector<128xf32> to vector<1x1x128xf32>
    %102 = vector.broadcast %101 : vector<1x1x128xf32> to vector<16x16x128xf32>
    %103 = arith.mulf %98, %102 : vector<16x16x128xf32>
    %104 = arith.addf %97, %103 : vector<16x16x128xf32>
    %c4_75 = arith.constant 4 : index
    %c2_76 = arith.constant 2 : index
    %c0_77 = arith.constant 0 : index
    %105 = vector.load %arg16[%c4_75, %c2_76, %c0_77] : memref<20x20x128xf32, #tpu.memory_space<vmem>>, vector<16x16x128xf32>
    %c4_78 = arith.constant 4 : index
    %c0_79 = arith.constant 0 : index
    %106 = vector.load %arg5[%c4_78, %c0_79] : memref<5x128xf32, #tpu.memory_space<vmem>>, vector<1x128xf32>
    %107 = vector.shape_cast %106 : vector<1x128xf32> to vector<128xf32>
    %108 = vector.shape_cast %107 : vector<128xf32> to vector<1x1x128xf32>
    %109 = vector.broadcast %108 : vector<1x1x128xf32> to vector<16x16x128xf32>
    %110 = arith.mulf %105, %109 : vector<16x16x128xf32>
    %111 = arith.addf %104, %110 : vector<16x16x128xf32>
    %c2_80 = arith.constant 2 : index
    %c0_81 = arith.constant 0 : index
    %c0_82 = arith.constant 0 : index
    %112 = vector.load %arg16[%c2_80, %c0_81, %c0_82] : memref<20x20x128xf32, #tpu.memory_space<vmem>>, vector<16x16x128xf32>
    %c0_83 = arith.constant 0 : index
    %c0_84 = arith.constant 0 : index
    %113 = vector.load %arg9[%c0_83, %c0_84] : memref<5x128xf32, #tpu.memory_space<vmem>>, vector<1x128xf32>
    %114 = vector.shape_cast %113 : vector<1x128xf32> to vector<128xf32>
    %115 = vector.shape_cast %114 : vector<128xf32> to vector<1x1x128xf32>
    %116 = vector.broadcast %115 : vector<1x1x128xf32> to vector<16x16x128xf32>
    %117 = arith.mulf %112, %116 : vector<16x16x128xf32>
    %c0_85 = arith.constant 0 : index
    %c0_86 = arith.constant 0 : index
    %118 = vector.load %arg10[%c0_85, %c0_86] : memref<1x128xf32, #tpu.memory_space<vmem>>, vector<1x128xf32>
    %119 = vector.shape_cast %118 : vector<1x128xf32> to vector<128xf32>
    %120 = vector.shape_cast %119 : vector<128xf32> to vector<1x1x128xf32>
    %121 = vector.broadcast %120 : vector<1x1x128xf32> to vector<16x16x128xf32>
    %122 = arith.addf %117, %121 : vector<16x16x128xf32>
    %c2_87 = arith.constant 2 : index
    %c1_88 = arith.constant 1 : index
    %c0_89 = arith.constant 0 : index
    %123 = vector.load %arg16[%c2_87, %c1_88, %c0_89] : memref<20x20x128xf32, #tpu.memory_space<vmem>>, vector<16x16x128xf32>
    %c1_90 = arith.constant 1 : index
    %c0_91 = arith.constant 0 : index
    %124 = vector.load %arg9[%c1_90, %c0_91] : memref<5x128xf32, #tpu.memory_space<vmem>>, vector<1x128xf32>
    %125 = vector.shape_cast %124 : vector<1x128xf32> to vector<128xf32>
    %126 = vector.shape_cast %125 : vector<128xf32> to vector<1x1x128xf32>
    %127 = vector.broadcast %126 : vector<1x1x128xf32> to vector<16x16x128xf32>
    %128 = arith.mulf %123, %127 : vector<16x16x128xf32>
    %129 = arith.addf %122, %128 : vector<16x16x128xf32>
    %c2_92 = arith.constant 2 : index
    %c2_93 = arith.constant 2 : index
    %c0_94 = arith.constant 0 : index
    %130 = vector.load %arg16[%c2_92, %c2_93, %c0_94] : memref<20x20x128xf32, #tpu.memory_space<vmem>>, vector<16x16x128xf32>
    %c2_95 = arith.constant 2 : index
    %c0_96 = arith.constant 0 : index
    %131 = vector.load %arg9[%c2_95, %c0_96] : memref<5x128xf32, #tpu.memory_space<vmem>>, vector<1x128xf32>
    %132 = vector.shape_cast %131 : vector<1x128xf32> to vector<128xf32>
    %133 = vector.shape_cast %132 : vector<128xf32> to vector<1x1x128xf32>
    %134 = vector.broadcast %133 : vector<1x1x128xf32> to vector<16x16x128xf32>
    %135 = arith.mulf %130, %134 : vector<16x16x128xf32>
    %136 = arith.addf %129, %135 : vector<16x16x128xf32>
    %c2_97 = arith.constant 2 : index
    %c3_98 = arith.constant 3 : index
    %c0_99 = arith.constant 0 : index
    %137 = vector.load %arg16[%c2_97, %c3_98, %c0_99] : memref<20x20x128xf32, #tpu.memory_space<vmem>>, vector<16x16x128xf32>
    %c3_100 = arith.constant 3 : index
    %c0_101 = arith.constant 0 : index
    %138 = vector.load %arg9[%c3_100, %c0_101] : memref<5x128xf32, #tpu.memory_space<vmem>>, vector<1x128xf32>
    %139 = vector.shape_cast %138 : vector<1x128xf32> to vector<128xf32>
    %140 = vector.shape_cast %139 : vector<128xf32> to vector<1x1x128xf32>
    %141 = vector.broadcast %140 : vector<1x1x128xf32> to vector<16x16x128xf32>
    %142 = arith.mulf %137, %141 : vector<16x16x128xf32>
    %143 = arith.addf %136, %142 : vector<16x16x128xf32>
    %c2_102 = arith.constant 2 : index
    %c4_103 = arith.constant 4 : index
    %c0_104 = arith.constant 0 : index
    %144 = vector.load %arg16[%c2_102, %c4_103, %c0_104] : memref<20x20x128xf32, #tpu.memory_space<vmem>>, vector<16x16x128xf32>
    %c4_105 = arith.constant 4 : index
    %c0_106 = arith.constant 0 : index
    %145 = vector.load %arg9[%c4_105, %c0_106] : memref<5x128xf32, #tpu.memory_space<vmem>>, vector<1x128xf32>
    %146 = vector.shape_cast %145 : vector<1x128xf32> to vector<128xf32>
    %147 = vector.shape_cast %146 : vector<128xf32> to vector<1x1x128xf32>
    %148 = vector.broadcast %147 : vector<1x1x128xf32> to vector<16x16x128xf32>
    %149 = arith.mulf %144, %148 : vector<16x16x128xf32>
    %150 = arith.addf %143, %149 : vector<16x16x128xf32>
    %cst_107 = arith.constant 0.000000e+00 : f32
    %151 = vector.broadcast %cst_107 : f32 to vector<16x2x128xf32>
    %c0_108 = arith.constant 0 : index
    %c0_109 = arith.constant 0 : index
    %c0_110 = arith.constant 0 : index
    %152 = vector.load %arg17[%c0_108, %c0_109, %c0_110] : memref<16x20x128xf32, #tpu.memory_space<vmem>>, vector<16x2x128xf32>
    tpu.vector_store %arg17[%c0_108, %c0_109, %c0_110], %151 {strides = array<i32>} : memref<16x20x128xf32, #tpu.memory_space<vmem>>, vector<16x2x128xf32>,
    %cst_111 = arith.constant 0.000000e+00 : f32
    %153 = vector.broadcast %cst_111 : f32 to vector<16x2x128xf32>
    %c0_112 = arith.constant 0 : index
    %c18_113 = arith.constant 18 : index
    %c0_114 = arith.constant 0 : index
    %154 = vector.load %arg17[%c0_112, %c18_113, %c0_114] : memref<16x20x128xf32, #tpu.memory_space<vmem>>, vector<16x2x128xf32>
    tpu.vector_store %arg17[%c0_112, %c18_113, %c0_114], %153 {strides = array<i32>} : memref<16x20x128xf32, #tpu.memory_space<vmem>>, vector<16x2x128xf32>,
    %c0_115 = arith.constant 0 : index
    %c2_116 = arith.constant 2 : index
    %c0_117 = arith.constant 0 : index
    %155 = vector.load %arg17[%c0_115, %c2_116, %c0_117] : memref<16x20x128xf32, #tpu.memory_space<vmem>>, vector<16x16x128xf32>
    tpu.vector_store %arg17[%c0_115, %c2_116, %c0_117], %111 {strides = array<i32>} : memref<16x20x128xf32, #tpu.memory_space<vmem>>, vector<16x16x128xf32>,
    %c0_118 = arith.constant 0 : index
    %c0_119 = arith.constant 0 : index
    %c0_120 = arith.constant 0 : index
    %156 = vector.load %arg17[%c0_118, %c0_119, %c0_120] : memref<16x20x128xf32, #tpu.memory_space<vmem>>, vector<16x16x128xf32>
    %c0_121 = arith.constant 0 : index
    %c0_122 = arith.constant 0 : index
    %157 = vector.load %arg7[%c0_121, %c0_122] : memref<5x128xf32, #tpu.memory_space<vmem>>, vector<1x128xf32>
    %158 = vector.shape_cast %157 : vector<1x128xf32> to vector<128xf32>
    %159 = vector.shape_cast %158 : vector<128xf32> to vector<1x1x128xf32>
    %160 = vector.broadcast %159 : vector<1x1x128xf32> to vector<16x16x128xf32>
    %161 = arith.mulf %156, %160 : vector<16x16x128xf32>
    %c0_123 = arith.constant 0 : index
    %c0_124 = arith.constant 0 : index
    %162 = vector.load %arg8[%c0_123, %c0_124] : memref<1x128xf32, #tpu.memory_space<vmem>>, vector<1x128xf32>
    %163 = vector.shape_cast %162 : vector<1x128xf32> to vector<128xf32>
    %164 = vector.shape_cast %163 : vector<128xf32> to vector<1x1x128xf32>
    %165 = vector.broadcast %164 : vector<1x1x128xf32> to vector<16x16x128xf32>
    %166 = arith.addf %161, %165 : vector<16x16x128xf32>
    %c0_125 = arith.constant 0 : index
    %c1_126 = arith.constant 1 : index
    %c0_127 = arith.constant 0 : index
    %167 = vector.load %arg17[%c0_125, %c1_126, %c0_127] : memref<16x20x128xf32, #tpu.memory_space<vmem>>, vector<16x16x128xf32>
    %c1_128 = arith.constant 1 : index
    %c0_129 = arith.constant 0 : index
    %168 = vector.load %arg7[%c1_128, %c0_129] : memref<5x128xf32, #tpu.memory_space<vmem>>, vector<1x128xf32>
    %169 = vector.shape_cast %168 : vector<1x128xf32> to vector<128xf32>
    %170 = vector.shape_cast %169 : vector<128xf32> to vector<1x1x128xf32>
    %171 = vector.broadcast %170 : vector<1x1x128xf32> to vector<16x16x128xf32>
    %172 = arith.mulf %167, %171 : vector<16x16x128xf32>
    %173 = arith.addf %166, %172 : vector<16x16x128xf32>
    %c0_130 = arith.constant 0 : index
    %c2_131 = arith.constant 2 : index
    %c0_132 = arith.constant 0 : index
    %174 = vector.load %arg17[%c0_130, %c2_131, %c0_132] : memref<16x20x128xf32, #tpu.memory_space<vmem>>, vector<16x16x128xf32>
    %c2_133 = arith.constant 2 : index
    %c0_134 = arith.constant 0 : index
    %175 = vector.load %arg7[%c2_133, %c0_134] : memref<5x128xf32, #tpu.memory_space<vmem>>, vector<1x128xf32>
    %176 = vector.shape_cast %175 : vector<1x128xf32> to vector<128xf32>
    %177 = vector.shape_cast %176 : vector<128xf32> to vector<1x1x128xf32>
    %178 = vector.broadcast %177 : vector<1x1x128xf32> to vector<16x16x128xf32>
    %179 = arith.mulf %174, %178 : vector<16x16x128xf32>
    %180 = arith.addf %173, %179 : vector<16x16x128xf32>
    %c0_135 = arith.constant 0 : index
    %c3_136 = arith.constant 3 : index
    %c0_137 = arith.constant 0 : index
    %181 = vector.load %arg17[%c0_135, %c3_136, %c0_137] : memref<16x20x128xf32, #tpu.memory_space<vmem>>, vector<16x16x128xf32>
    %c3_138 = arith.constant 3 : index
    %c0_139 = arith.constant 0 : index
    %182 = vector.load %arg7[%c3_138, %c0_139] : memref<5x128xf32, #tpu.memory_space<vmem>>, vector<1x128xf32>
    %183 = vector.shape_cast %182 : vector<1x128xf32> to vector<128xf32>
    %184 = vector.shape_cast %183 : vector<128xf32> to vector<1x1x128xf32>
    %185 = vector.broadcast %184 : vector<1x1x128xf32> to vector<16x16x128xf32>
    %186 = arith.mulf %181, %185 : vector<16x16x128xf32>
    %187 = arith.addf %180, %186 : vector<16x16x128xf32>
    %c0_140 = arith.constant 0 : index
    %c4_141 = arith.constant 4 : index
    %c0_142 = arith.constant 0 : index
    %188 = vector.load %arg17[%c0_140, %c4_141, %c0_142] : memref<16x20x128xf32, #tpu.memory_space<vmem>>, vector<16x16x128xf32>
    %c4_143 = arith.constant 4 : index
    %c0_144 = arith.constant 0 : index
    %189 = vector.load %arg7[%c4_143, %c0_144] : memref<5x128xf32, #tpu.memory_space<vmem>>, vector<1x128xf32>
    %190 = vector.shape_cast %189 : vector<1x128xf32> to vector<128xf32>
    %191 = vector.shape_cast %190 : vector<128xf32> to vector<1x1x128xf32>
    %192 = vector.broadcast %191 : vector<1x1x128xf32> to vector<16x16x128xf32>
    %193 = arith.mulf %188, %192 : vector<16x16x128xf32>
    %194 = arith.addf %187, %193 : vector<16x16x128xf32>
    %cst_145 = arith.constant 0.000000e+00 : f32
    %195 = vector.broadcast %cst_145 : f32 to vector<2x16x128xf32>
    %c0_146 = arith.constant 0 : index
    %c0_147 = arith.constant 0 : index
    %c0_148 = arith.constant 0 : index
    %196 = vector.load %arg18[%c0_146, %c0_147, %c0_148] : memref<20x16x128xf32, #tpu.memory_space<vmem>>, vector<2x16x128xf32>
    tpu.vector_store %arg18[%c0_146, %c0_147, %c0_148], %195 {strides = array<i32>} : memref<20x16x128xf32, #tpu.memory_space<vmem>>, vector<2x16x128xf32>,
    %cst_149 = arith.constant 0.000000e+00 : f32
    %197 = vector.broadcast %cst_149 : f32 to vector<2x16x128xf32>
    %c18_150 = arith.constant 18 : index
    %c0_151 = arith.constant 0 : index
    %c0_152 = arith.constant 0 : index
    %198 = vector.load %arg18[%c18_150, %c0_151, %c0_152] : memref<20x16x128xf32, #tpu.memory_space<vmem>>, vector<2x16x128xf32>
    tpu.vector_store %arg18[%c18_150, %c0_151, %c0_152], %197 {strides = array<i32>} : memref<20x16x128xf32, #tpu.memory_space<vmem>>, vector<2x16x128xf32>,
    %c2_153 = arith.constant 2 : index
    %c0_154 = arith.constant 0 : index
    %c0_155 = arith.constant 0 : index
    %199 = vector.load %arg18[%c2_153, %c0_154, %c0_155] : memref<20x16x128xf32, #tpu.memory_space<vmem>>, vector<16x16x128xf32>
    tpu.vector_store %arg18[%c2_153, %c0_154, %c0_155], %150 {strides = array<i32>} : memref<20x16x128xf32, #tpu.memory_space<vmem>>, vector<16x16x128xf32>,
    %c0_156 = arith.constant 0 : index
    %c0_157 = arith.constant 0 : index
    %c0_158 = arith.constant 0 : index
    %200 = vector.load %arg18[%c0_156, %c0_157, %c0_158] : memref<20x16x128xf32, #tpu.memory_space<vmem>>, vector<16x16x128xf32>
    %c0_159 = arith.constant 0 : index
    %c0_160 = arith.constant 0 : index
    %201 = vector.load %arg11[%c0_159, %c0_160] : memref<5x128xf32, #tpu.memory_space<vmem>>, vector<1x128xf32>
    %202 = vector.shape_cast %201 : vector<1x128xf32> to vector<128xf32>
    %203 = vector.shape_cast %202 : vector<128xf32> to vector<1x1x128xf32>
    %204 = vector.broadcast %203 : vector<1x1x128xf32> to vector<16x16x128xf32>
    %205 = arith.mulf %200, %204 : vector<16x16x128xf32>
    %c0_161 = arith.constant 0 : index
    %c0_162 = arith.constant 0 : index
    %206 = vector.load %arg12[%c0_161, %c0_162] : memref<1x128xf32, #tpu.memory_space<vmem>>, vector<1x128xf32>
    %207 = vector.shape_cast %206 : vector<1x128xf32> to vector<128xf32>
    %208 = vector.shape_cast %207 : vector<128xf32> to vector<1x1x128xf32>
    %209 = vector.broadcast %208 : vector<1x1x128xf32> to vector<16x16x128xf32>
    %210 = arith.addf %205, %209 : vector<16x16x128xf32>
    %c1_163 = arith.constant 1 : index
    %c0_164 = arith.constant 0 : index
    %c0_165 = arith.constant 0 : index
    %211 = vector.load %arg18[%c1_163, %c0_164, %c0_165] : memref<20x16x128xf32, #tpu.memory_space<vmem>>, vector<16x16x128xf32>
    %c1_166 = arith.constant 1 : index
    %c0_167 = arith.constant 0 : index
    %212 = vector.load %arg11[%c1_166, %c0_167] : memref<5x128xf32, #tpu.memory_space<vmem>>, vector<1x128xf32>
    %213 = vector.shape_cast %212 : vector<1x128xf32> to vector<128xf32>
    %214 = vector.shape_cast %213 : vector<128xf32> to vector<1x1x128xf32>
    %215 = vector.broadcast %214 : vector<1x1x128xf32> to vector<16x16x128xf32>
    %216 = arith.mulf %211, %215 : vector<16x16x128xf32>
    %217 = arith.addf %210, %216 : vector<16x16x128xf32>
    %c2_168 = arith.constant 2 : index
    %c0_169 = arith.constant 0 : index
    %c0_170 = arith.constant 0 : index
    %218 = vector.load %arg18[%c2_168, %c0_169, %c0_170] : memref<20x16x128xf32, #tpu.memory_space<vmem>>, vector<16x16x128xf32>
    %c2_171 = arith.constant 2 : index
    %c0_172 = arith.constant 0 : index
    %219 = vector.load %arg11[%c2_171, %c0_172] : memref<5x128xf32, #tpu.memory_space<vmem>>, vector<1x128xf32>
    %220 = vector.shape_cast %219 : vector<1x128xf32> to vector<128xf32>
    %221 = vector.shape_cast %220 : vector<128xf32> to vector<1x1x128xf32>
    %222 = vector.broadcast %221 : vector<1x1x128xf32> to vector<16x16x128xf32>
    %223 = arith.mulf %218, %222 : vector<16x16x128xf32>
    %224 = arith.addf %217, %223 : vector<16x16x128xf32>
    %c3_173 = arith.constant 3 : index
    %c0_174 = arith.constant 0 : index
    %c0_175 = arith.constant 0 : index
    %225 = vector.load %arg18[%c3_173, %c0_174, %c0_175] : memref<20x16x128xf32, #tpu.memory_space<vmem>>, vector<16x16x128xf32>
    %c3_176 = arith.constant 3 : index
    %c0_177 = arith.constant 0 : index
    %226 = vector.load %arg11[%c3_176, %c0_177] : memref<5x128xf32, #tpu.memory_space<vmem>>, vector<1x128xf32>
    %227 = vector.shape_cast %226 : vector<1x128xf32> to vector<128xf32>
    %228 = vector.shape_cast %227 : vector<128xf32> to vector<1x1x128xf32>
    %229 = vector.broadcast %228 : vector<1x1x128xf32> to vector<16x16x128xf32>
    %230 = arith.mulf %225, %229 : vector<16x16x128xf32>
    %231 = arith.addf %224, %230 : vector<16x16x128xf32>
    %c4_178 = arith.constant 4 : index
    %c0_179 = arith.constant 0 : index
    %c0_180 = arith.constant 0 : index
    %232 = vector.load %arg18[%c4_178, %c0_179, %c0_180] : memref<20x16x128xf32, #tpu.memory_space<vmem>>, vector<16x16x128xf32>
    %c4_181 = arith.constant 4 : index
    %c0_182 = arith.constant 0 : index
    %233 = vector.load %arg11[%c4_181, %c0_182] : memref<5x128xf32, #tpu.memory_space<vmem>>, vector<1x128xf32>
    %234 = vector.shape_cast %233 : vector<1x128xf32> to vector<128xf32>
    %235 = vector.shape_cast %234 : vector<128xf32> to vector<1x1x128xf32>
    %236 = vector.broadcast %235 : vector<1x1x128xf32> to vector<16x16x128xf32>
    %237 = arith.mulf %232, %236 : vector<16x16x128xf32>
    %238 = arith.addf %231, %237 : vector<16x16x128xf32>
    %239 = arith.addf %194, %238 : vector<16x16x128xf32>
    %c0_183 = arith.constant 0 : index
    %c0_184 = arith.constant 0 : index
    %240 = vector.load %arg13[%c0_183, %c0_184] : memref<1x128xf32, #tpu.memory_space<vmem>>, vector<1x128xf32>
    %241 = vector.shape_cast %240 : vector<1x128xf32> to vector<128xf32>
    %242 = vector.shape_cast %241 : vector<128xf32> to vector<1x1x128xf32>
    %243 = vector.broadcast %242 : vector<1x1x128xf32> to vector<16x16x128xf32>
    %244 = arith.mulf %239, %243 : vector<16x16x128xf32>
    %c0_185 = arith.constant 0 : index
    %c0_186 = arith.constant 0 : index
    %245 = vector.load %arg14[%c0_185, %c0_186] : memref<1x128xf32, #tpu.memory_space<vmem>>, vector<1x128xf32>
    %246 = vector.shape_cast %245 : vector<1x128xf32> to vector<128xf32>
    %247 = vector.shape_cast %246 : vector<128xf32> to vector<1x1x128xf32>
    %248 = vector.broadcast %247 : vector<1x1x128xf32> to vector<16x16x128xf32>
    %249 = arith.addf %244, %248 : vector<16x16x128xf32>
    %cst_187 = arith.constant 0.000000e+00 : f32
    %250 = vector.broadcast %cst_187 : f32 to vector<16x16x128xf32>
    %251 = arith.maximumf %249, %250 : vector<16x16x128xf32>
    %c0_188 = arith.constant 0 : index
    %c0_189 = arith.constant 0 : index
    %c0_190 = arith.constant 0 : index
    %c0_191 = arith.constant 0 : index
    %252 = vector.load %arg15[%c0_188, %c0_189, %c0_190, %c0_191] : memref<1x16x16x128xf32, #tpu.memory_space<vmem>>, vector<1x16x16x128xf32>
    %253 = vector.shape_cast %252 : vector<1x16x16x128xf32> to vector<16x16x128xf32>
    %254 = vector.shape_cast %251 : vector<16x16x128xf32> to vector<1x16x16x128xf32>
    tpu.vector_store %arg15[%c0_188, %c0_189, %c0_190, %c0_191], %254 {strides = array<i32>} : memref<1x16x16x128xf32, #tpu.memory_space<vmem>>, vector<1x16x16x128xf32>,
    return
  }
  func.func @transform_0(%arg0: i32) -> (i32, i32, i32, i32) {
    %c0_i32 = arith.constant 0 : i32
    %c0_i32_0 = arith.constant 0 : i32
    %c0_i32_1 = arith.constant 0 : i32
    %c0_i32_2 = arith.constant 0 : i32
    return %arg0, %c0_i32, %c0_i32_0, %c0_i32_1 : i32, i32, i32, i32
  }
  func.func @transform_1(%arg0: i32) -> (i32, i32, i32) {
    %c0_i32 = arith.constant 0 : i32
    %c0_i32_0 = arith.constant 0 : i32
    %c0_i32_1 = arith.constant 0 : i32
    %c0_i32_2 = arith.constant 0 : i32
    return %c0_i32, %c0_i32_0, %c0_i32_1 : i32, i32, i32
  }
  func.func @transform_2(%arg0: i32) -> (i32, i32) {
    %c0_i32 = arith.constant 0 : i32
    %c0_i32_0 = arith.constant 0 : i32
    %c0_i32_1 = arith.constant 0 : i32
    return %c0_i32, %c0_i32_0 : i32, i32
  }
  func.func @transform_3(%arg0: i32) -> (i32, i32) {
    %c0_i32 = arith.constant 0 : i32
    %c0_i32_0 = arith.constant 0 : i32
    %c0_i32_1 = arith.constant 0 : i32
    return %c0_i32, %c0_i32_0 : i32, i32
  }
  func.func @transform_4(%arg0: i32) -> (i32, i32) {
    %c0_i32 = arith.constant 0 : i32
    %c0_i32_0 = arith.constant 0 : i32
    %c0_i32_1 = arith.constant 0 : i32
    return %c0_i32, %c0_i32_0 : i32, i32
  }
  func.func @transform_5(%arg0: i32) -> (i32, i32) {
    %c0_i32 = arith.constant 0 : i32
    %c0_i32_0 = arith.constant 0 : i32
    %c0_i32_1 = arith.constant 0 : i32
    return %c0_i32, %c0_i32_0 : i32, i32
  }
  func.func @transform_6(%arg0: i32) -> (i32, i32) {
    %c0_i32 = arith.constant 0 : i32
    %c0_i32_0 = arith.constant 0 : i32
    %c0_i32_1 = arith.constant 0 : i32
    return %c0_i32, %c0_i32_0 : i32, i32
  }
  func.func @transform_7(%arg0: i32) -> (i32, i32) {
    %c0_i32 = arith.constant 0 : i32
    %c0_i32_0 = arith.constant 0 : i32
    %c0_i32_1 = arith.constant 0 : i32
    return %c0_i32, %c0_i32_0 : i32, i32
  }
  func.func @transform_8(%arg0: i32) -> (i32, i32) {
    %c0_i32 = arith.constant 0 : i32
    %c0_i32_0 = arith.constant 0 : i32
    %c0_i32_1 = arith.constant 0 : i32
    return %c0_i32, %c0_i32_0 : i32, i32
  }
  func.func @transform_9(%arg0: i32) -> (i32, i32) {
    %c0_i32 = arith.constant 0 : i32
    %c0_i32_0 = arith.constant 0 : i32
    %c0_i32_1 = arith.constant 0 : i32
    return %c0_i32, %c0_i32_0 : i32, i32
  }
  func.func @transform_10(%arg0: i32) -> (i32, i32) {
    %c0_i32 = arith.constant 0 : i32
    %c0_i32_0 = arith.constant 0 : i32
    %c0_i32_1 = arith.constant 0 : i32
    return %c0_i32, %c0_i32_0 : i32, i32
  }
  func.func @transform_11(%arg0: i32) -> (i32, i32) {
    %c0_i32 = arith.constant 0 : i32
    %c0_i32_0 = arith.constant 0 : i32
    %c0_i32_1 = arith.constant 0 : i32
    return %c0_i32, %c0_i32_0 : i32, i32
  }
  func.func @transform_12(%arg0: i32) -> (i32, i32) {
    %c0_i32 = arith.constant 0 : i32
    %c0_i32_0 = arith.constant 0 : i32
    %c0_i32_1 = arith.constant 0 : i32
    return %c0_i32, %c0_i32_0 : i32, i32
  }
  func.func @transform_13(%arg0: i32) -> (i32, i32) {
    %c0_i32 = arith.constant 0 : i32
    %c0_i32_0 = arith.constant 0 : i32
    %c0_i32_1 = arith.constant 0 : i32
    return %c0_i32, %c0_i32_0 : i32, i32
  }
  func.func @transform_14(%arg0: i32) -> (i32, i32, i32, i32) {
    %c0_i32 = arith.constant 0 : i32
    %c0_i32_0 = arith.constant 0 : i32
    %c0_i32_1 = arith.constant 0 : i32
    %c0_i32_2 = arith.constant 0 : i32
    return %arg0, %c0_i32, %c0_i32_0, %c0_i32_1 : i32, i32, i32, i32
  }
}

</mosaic_0001>

<bundles_post_ra>
// kernel: tpu_custom_call.1
= control target key start
LH: loop header
LB: loop body
LE: loop exit
PB: predicated region body
PF: predicated region fallthrough
CT: control target
= control target key end

     0   :  { %s9395_s0 = inlined_call_operand.vmem [shape: f32[2,18,18,4], index: 0, kind: input, shape index: {}]   ;;  %s9396_s1 = inlined_call_operand.vmem [shape: f32[9,4,128], index: 1, kind: input, shape index: {}]   ;;  %s9397_s2 = inlined_call_operand.vmem [shape: f32[1,128], index: 2, kind: input, shape index: {}]   ;;  %s9398_s3 = inlined_call_operand.vmem [shape: f32[1,128], index: 3, kind: input, shape index: {}]   ;;  %s9399_s4 = inlined_call_operand.vmem [shape: f32[5,128], index: 4, kind: input, shape index: {}]   ;;  %s9400_s5 = inlined_call_operand.vmem [shape: f32[1,128], index: 5, kind: input, shape index: {}]   ;;  %s9401_s6 = inlined_call_operand.vmem [shape: f32[5,128], index: 6, kind: input, shape index: {}]   ;;  %s9402_s7 = inlined_call_operand.vmem [shape: f32[1,128], index: 7, kind: input, shape index: {}]   ;;  %s9403_s8 = inlined_call_operand.vmem [shape: f32[5,128], index: 8, kind: input, shape index: {}]   ;;  %s9404_s9 = inlined_call_operand.vmem [shape: f32[1,128], index: 9, kind: input, shape index: {}]   ;;  %s9405_s10 = inlined_call_operand.vmem [shape: f32[5,128], index: 10, kind: input, shape index: {}]   ;;  %s9406_s11 = inlined_call_operand.vmem [shape: f32[1,128], index: 11, kind: input, shape index: {}]   ;;  %s9407_s12 = inlined_call_operand.vmem [shape: f32[1,128], index: 12, kind: input, shape index: {}]   ;;  %s9408_s13 = inlined_call_operand.vmem [shape: f32[1,128], index: 13, kind: input, shape index: {}]   ;;  %s9409_s14 = inlined_call_operand.hbm [shape: f32[2,16,16,128], index: 14, kind: output, shape index: {}]  }
   0x1   :  { %9545 = sst [smem:[#allocation67_spill]] %s9395_s0 }
   0x2   :  { %9546 = sst [smem:[#allocation68_spill]] %s9396_s1 }
   0x3   :  { %19 = vsyncpa [#allocation6], 0 }
   0x4   :  { %21 = vsyncpa [#allocation6 + $0x1], 0  ;;  %s5395_s29 = smov 0   ;;  %s5397_s30 = smov 0  }
   0x5   :  { %s5399_s15 = smov 0   ;;  %s5401_s16 = smov 0  }
   0x6 LB: > { %9547 = sst [smem:[#allocation8_spill]] %s5311_s15  ;;  %s5416_s17 = sadd.s32 4294967295, %s5315_s16   ;;  %s5315_s16 = sphi %s5401_s16, %s9883_s16   ;;  %s5311_s15 = sphi %s5399_s15, %s9880_s15   ;;  %s5307_s30 = sphi %s5397_s30, %s9882_s30   ;;  %s5303_s29 = sphi %s5395_s29, %s9881_s29  }
   0x7   : > { %s4751_s18 = sadd.s32 4294967294, %s5315_s16   ;;  %s5420_s19 = sadd.s32 1, %s5315_s16  }
   0x8   : > { %s333_s20 = sadd.s32 1, %s5311_s15  ;;  %s330_s21 = ssub.s32 %s5315_s16, %s5420_s19 }
   0x9   : > { %p343_p0 = scmp.ne.s32.totalorder %s5311_s15, %s5307_s30  ;;  %p331_p1 = scmp.eq.s32.totalorder %s330_s21, 0 }
   0xa   : > { %p344_p2 = scmp.eq.s32.totalorder %s5416_s17, 1  ;;  %p349_p3 = scmp.ne.s32.totalorder %s5307_s30, %s5303_s29 }
   0xb   : > { %p350_p4 = scmp.eq.s32.totalorder %s4751_s18, 1  ;;  %p4754_p7 = scmp.ge.s32.totalorder %s5315_s16, 1 }
   0xc   : > { %s5431_s22 = scalar_select %p331_p1, %s5311_s15, %s333_s20  }
   0xd   : > { %p5433_p5 = por %p344_p2, %p343_p0  ;;  %p5437_p6 = por %p350_p4, %p349_p3 }
   0xe   : > { %9548 = sst [smem:[#allocation9_spill]] %s5431_s22  ;;  %p415_p8 = scmp.lt.s32.totalorder %s5315_s16, 3 }
  0x10   : > { %p416_p9 = pnand %p4754_p7, %p415_p8 }
  0x12   : > { %419 = sbr.rel (%p416_p9) target bundleno = 954 (0x3ba), region = 76 }
  0x17   : > { %s9551_s1 = sld [smem:[#allocation68_spill]]  ;;  %vm717_vm0 = vcmask 1043456   ;;  %p461_p10 = scmp.lt.s32.totalorder %s5416_s17, 1  ;;  %vm569_vm1 = vcmask 1046528   ;;  %vm652_vm2 = vcmask 31744   ;;  %vm1014_vm3 = vcmask 1045504  }
  0x18   : > { %s9552_s0 = sld [smem:[#allocation67_spill]]  ;;  %s458_s22 = sand.u32 1, %s5307_s30  }
  0x19   : > { %s462_s25 = scalar_select %p461_p10, %s5416_s17, 1 }
  0x1a   : > { %s7143_s20 = sshll.u32 %s458_s22, 8  ;;  %s5067_s15 = sshll.u32 %s5416_s17, 8 }
  0x1b   : > { %s5071_s27 = smul.u32 432, %s462_s25  ;;  %s7170_s21 = scalar_lea.vmem [#allocation5], %s7143_s20 }
  0x1c   : > { %s4686_s25 = sshll.u32 %s7170_s21, 4  ;;  %s4687_s25 = int_to_ptr.vmem [resolvable:$true] %s4686_s25 }
  0x1d   : > { %v4757_v0 = vld [vmem:[%s9551_s1 + $0x4] sm:$0xf]  ;;  %v4824_v1 = vld [vmem:[%s9551_s1 + $0x8] sm:$0xf]  ;;  %v4858_v2 = vld [vmem:[%s9551_s1 + $0xc] sm:$0xf] }
  0x1e   : > { %5068 = vmatpush.msk.msra.mxu1 %vm717_vm0, %v4757_v0  ;;  %5069 = vmatpush.msk.msra.mxu2 %vm717_vm0, %v4757_v0  ;;  %v520_v3 = vld [vmem:[%s9551_s1] sm:$0xf]  ;;  %v4892_v4 = vld [vmem:[%s9551_s1 + $0x10] sm:$0xf]  ;;  %s5471_s18 = scalar_lea.vmem %s9552_s0, %s5071_s27  ;;  %s4674_s27 = scalar_lea.sflag [#allocation6], %s458_s22 }
  0x1f   : > { %5070 = vmatpush.msk.msra.mxu3 %vm717_vm0, %v4757_v0  ;;  %4758 = vmatpush.msk.msra.mxu0 %vm717_vm0, %v4757_v0  ;;  %v5474_v5 = vld [vmem:[%s5471_s18 + $0x60] sm:$0xff]  ;;  %v5477_v6 = vld [vmem:[%s5471_s18 + $0x68] sm:$0xff]  ;;  %v5498_v17 = vld [vmem:[%s5471_s18 + $0x70] sm:$0x3] }
  0x20   : > { %4825 = vmatpush.msk.msrb.mxu2 %vm717_vm0, %v4824_v1  ;;  %4791 = vmatpush.msk.msrb.mxu1 %vm717_vm0, %v520_v3  ;;  %v5480_v7 = vld [vmem:[%s5471_s18 + $0xc0] sm:$0xff]  ;;  %v590_v8 = vrot.slane %v5474_v5, 1  ;;  %v591_v9 = vrot.slane %v5477_v6, 1  ;;  %v5485_v10 = vld [vmem:[%s5471_s18 + $0xc8] sm:$0xff]  ;;  %v5507_v20 = vld [vmem:[%s5471_s18 + $0xd0] sm:$0x3] }
  0x21   : > { %4859 = vmatpush.msk.msrb.mxu3 %vm717_vm0, %v4858_v2  ;;  %4893 = vmatpush.msk.msrb.mxu0 %vm717_vm0, %v4892_v4  ;;  %v610_v11 = vrot.slane %v5480_v7, 1  ;;  %v5489_v12 = vld [vmem:[%s5471_s18 + $0x120] sm:$0xff]  ;;  %v5492_v13 = vld [vmem:[%s5471_s18 + $0x128] sm:$0xff]  ;;  %v611_v14 = vrot.slane %v5485_v10, 1  ;;  %v5523_v26 = vld [vmem:[%s5471_s18 + $0x130] sm:$0x3] }
  0x22   : > { %9553 = vst [vmem:[#allocation10_spill] sm:$0xff] %v5489_v12  ;;  %v630_v15 = vrot.slane %v5489_v12, 1  ;;  %v631_v16 = vrot.slane %v5492_v13, 1  ;;  %v5501_v18 = vld [vmem:[%s5471_s18] sm:$0xff]  ;;  %v5504_v19 = vsel %vm569_vm1, %v590_v8, %v591_v9  ;;  %v5510_v21 = vld [vmem:[%s5471_s18 + $0x8] sm:$0xff]  ;;  %v593_v27 = vrot.slane %v5498_v17, 1 }
  0x23   : > { %9554 = vst [vmem:[#allocation11_spill] sm:$0xff] %v5492_v13  ;;  %v570_v22 = vrot.slane %v5501_v18, 1  ;;  %4767 = vmatmul.msk.f32.vlgmr.msra.gmra.mxu1 %vm652_vm2, %v5504_v19  ;;  %v5516_v23 = vsel %vm569_vm1, %v610_v11, %v611_v14  ;;  %v571_v25 = vrot.slane %v5510_v21, 1  ;;  %v5531_v28 = vld [vmem:[%s5471_s18 + $0x10] sm:$0x3]  ;;  %v613_v29 = vrot.slane %v5507_v20, 1 }
  0x24   : > { %9555 = vst [vmem:[#allocation12_spill] sm:$0xff] %v5516_v23  ;;  %v5519_v24 = vsel %vm569_vm1, %v630_v15, %v631_v16  ;;  %4775 = vmatmul.msk.f32.vlgmr.msra.gmra.mxu2 %vm652_vm2, %v5516_v23  ;;  %v633_v31 = vrot.slane %v5523_v26, 1  ;;  %v573_v32 = vrot.slane %v5531_v28, 1  ;;  %v5539_v33 = vsel %vm569_vm1, %v591_v9, %v593_v27  ;;  %v5542_v34 = vld [vmem:[%s5471_s18 + $0x78] sm:$0xff]  ;;  %v5551_v37 = vld [vmem:[%s5471_s18 + $0x80] sm:$0xff]  ;;  %v5633_v4 = vld [vmem:[%s5471_s18 + $0x90] sm:$0xff] }
  0x25   : > { %9556 = vst [vmem:[#allocation13_spill] sm:$0xff] %v5519_v24  ;;  %4783 = vmatmul.msk.f32.vlgmr.msra.gmra.mxu3 %vm652_vm2, %v5519_v24  ;;  %v572_v30 = vsel %vm569_vm1, %v570_v22, %v571_v25  ;;  %v5545_v35 = vsel %vm569_vm1, %v611_v14, %v613_v29  ;;  %v5554_v38 = vld [vmem:[%s5471_s18 + $0xd8] sm:$0xff]  ;;  %v5557_v39 = vld [vmem:[%s5471_s18 + $0xe0] sm:$0xff]  ;;  %v595_v43 = vrot.slane %v5542_v34, 1  ;;  %v596_v44 = vrot.slane %v5551_v37, 1  ;;  %v5639_v9 = vld [vmem:[%s5471_s18 + $0xf0] sm:$0xff] }
  0x26   : > { %9557 = vst [vmem:[#allocation14_spill] sm:$0xff] %v5523_v26  ;;  %4759 = vmatmul.msk.f32.vlgmr.msra.gmra.mxu0 %vm652_vm2, %v572_v30  ;;  %v5548_v36 = vsel %vm569_vm1, %v631_v16, %v633_v31  ;;  %v5560_v40 = vld [vmem:[%s5471_s18 + $0x138] sm:$0xff]  ;;  %v5563_v41 = vld [vmem:[%s5471_s18 + $0x140] sm:$0xff]  ;;  %v574_v42 = vsel %vm569_vm1, %v571_v25, %v573_v32  ;;  %v615_v45 = vrot.slane %v5554_v38, 1  ;;  %v616_v46 = vrot.slane %v5557_v39, 1  ;;  %v5645_v14 = vld [vmem:[%s5471_s18 + $0x150] sm:$0xff] }
  0x27   : > { %9558 = vst [vmem:[#allocation15_spill] sm:$0xff] %v5539_v33  ;;  %v5577_v47 = vld [vmem:[%s5471_s18 + $0x18] sm:$0xff]  ;;  %v5580_v48 = vld [vmem:[%s5471_s18 + $0x20] sm:$0xff]  ;;  %v635_v49 = vrot.slane %v5560_v40, 1  ;;  %v636_v50 = vrot.slane %v5563_v41, 1  ;;  %v5588_v53 = vsel %vm569_vm1, %v595_v43, %v596_v44  ;;  %v600_v22 = vrot.slane %v5633_v4, 1 }
  0x28   : > { %9559 = vst [vmem:[#allocation16_spill] sm:$0xff] %v5545_v35  ;;  %v575_v51 = vrot.slane %v5577_v47, 1  ;;  %v576_v52 = vrot.slane %v5580_v48, 1  ;;  %v5591_v54 = vld [vmem:[%s5471_s18 + $0x88] sm:$0x3]  ;;  %v5594_v55 = vsel %vm569_vm1, %v615_v45, %v616_v46  ;;  %v5636_v8 = vld [vmem:[%s5471_s18 + $0x98] sm:$0xff] }
  0x29   : > { %9560 = vst [vmem:[#allocation17_spill] sm:$0xff] %v5548_v36  ;;  %v5597_v56 = vsel %vm569_vm1, %v635_v49, %v636_v50  ;;  %v5600_v57 = vld [vmem:[%s5471_s18 + $0xe8] sm:$0x3]  ;;  %v598_v59 = vrot.slane %v5591_v54, 1  ;;  %v5642_v11 = vld [vmem:[%s5471_s18 + $0xf8] sm:$0xff]  ;;  %v601_v25 = vrot.slane %v5636_v8, 1 }
  0x2a   : > { %9561 = vst [vmem:[#allocation18_spill] sm:$0xff] %v5560_v40  ;;  %v5603_v58 = vld [vmem:[%s5471_s18 + $0x148] sm:$0x3]  ;;  %v5609_v60 = vsel %vm569_vm1, %v575_v51, %v576_v52  ;;  %v618_v62 = vrot.slane %v5600_v57, 1  ;;  %v5648_v15 = vld [vmem:[%s5471_s18 + $0x158] sm:$0xff]  ;;  %v5662_v27 = vld [vmem:[%s5471_s18 + $0x30] sm:$0xff] }
  0x2b   : > { %9562 = vst [vmem:[#allocation19_spill] sm:$0xff] %v5563_v41  ;;  %4768 = vmatmul.msk.f32.gmra.mxu1 %vm652_vm2, %v5539_v33  ;;  %v5616_v61 = vld [vmem:[%s5471_s18 + $0x28] sm:$0x3]  ;;  %v638_v63 = vrot.slane %v5603_v58, 1  ;;  %v5624_v1 = vsel %vm569_vm1, %v596_v44, %v598_v59  ;;  %v5665_v29 = vld [vmem:[%s5471_s18 + $0x38] sm:$0xff]  ;;  %v620_v30 = vrot.slane %v5639_v9, 1  ;;  %v5676_v45 = vsel %vm569_vm1, %v600_v22, %v601_v25 }
  0x2c   : > { %4776 = vmatmul.msk.f32.gmra.mxu2 %vm652_vm2, %v5545_v35  ;;  %9563 = vst [vmem:[#allocation20_spill] sm:$0xff] %v5588_v53  ;;  %v578_v0 = vrot.slane %v5616_v61, 1  ;;  %v5627_v2 = vsel %vm569_vm1, %v616_v46, %v618_v62  ;;  %v621_v31 = vrot.slane %v5642_v11, 1  ;;  %v640_v32 = vrot.slane %v5645_v14, 1  ;;  %v5679_v46 = vld [vmem:[%s5471_s18 + $0xa0] sm:$0x3] }
  0x2d   : > { %4784 = vmatmul.msk.f32.gmra.mxu3 %vm652_vm2, %v5548_v36  ;;  %9564 = vst [vmem:[#allocation21_spill] sm:$0xff] %v5597_v56  ;;  %v5630_v3 = vsel %vm569_vm1, %v636_v50, %v638_v63  ;;  %v580_v43 = vrot.slane %v5662_v27, 1  ;;  %v581_v44 = vrot.slane %v5665_v29, 1  ;;  %v5688_v51 = vld [vmem:[%s5471_s18 + $0x100] sm:$0x3]  ;;  %v603_v59 = vrot.slane %v5679_v46, 1 }
  0x2e   : > { %4760 = vmatmul.msk.f32.gmra.mxu0 %vm652_vm2, %v574_v42  ;;  %9565 = vst [vmem:[#allocation22_spill] sm:$0xff] %v5603_v58  ;;  %v5653_v16 = vsel %vm569_vm1, %v576_v52, %v578_v0  ;;  %v641_v42 = vrot.slane %v5648_v15, 1  ;;  %v5682_v49 = vsel %vm569_vm1, %v620_v30, %v621_v31  ;;  %v5691_v52 = vld [vmem:[%s5471_s18 + $0x160] sm:$0x3]  ;;  %v4960_v0 = vld [vmem:[%s9551_s1 + $0x18] sm:$0xf] }
  0x2f   : > { %9566 = vst [vmem:[#allocation23_spill] sm:$0xff] %v5624_v1  ;;  %v5697_v62 = vsel %vm569_vm1, %v580_v43, %v581_v44  ;;  %v5700_v63 = vld [vmem:[%s5471_s18 + $0x40] sm:$0x3]  ;;  %v4994_v22 = vld [vmem:[%s9551_s1 + $0x1c] sm:$0xf]  ;;  %v643_v43 = vrot.slane %v5691_v52, 1  ;;  %4961 = vmatpush.msk.msra.mxu2 %vm717_vm0, %v4960_v0 }
  0x30   : > { %9567 = vst [vmem:[#allocation24_spill] sm:$0xff] %v5630_v3  ;;  %v5685_v50 = vsel %vm569_vm1, %v640_v32, %v641_v42  ;;  %v4926_v30 = vld [vmem:[%s9551_s1 + $0x14] sm:$0xf]  ;;  %v623_v32 = vrot.slane %v5688_v51, 1  ;;  %4995 = vmatpush.msk.msra.mxu3 %vm717_vm0, %v4994_v22  ;;  %v5733_v0 = vld [vmem:[%s5471_s18 + $0xa8] sm:$0xff] }
  0x31   : > { %9568 = vst [vmem:[#allocation25_spill] sm:$0xff] %v5645_v14  ;;  %4927 = vmatpush.msk.msra.mxu1 %vm717_vm0, %v4926_v30  ;;  %v5736_v22 = vld [vmem:[%s5471_s18 + $0xb0] sm:$0xff]  ;;  %v5739_v14 = vld [vmem:[%s5471_s18 + $0x108] sm:$0xff]  ;;  %v5792_v24 = vld [vmem:[%s5471_s18 + $0x118] sm:$0x3] }
  0x32   : > { %9569 = vst [vmem:[#allocation26_spill] sm:$0xff] %v5648_v15  ;;  %v583_v15 = vrot.slane %v5700_v63, 1  ;;  %v5727_v58 = vsel %vm569_vm1, %v621_v31, %v623_v32  ;;  %v5742_v30 = vld [vmem:[%s5471_s18 + $0x110] sm:$0xff]  ;;  %v605_v31 = vrot.slane %v5733_v0, 1 }
  0x33   : > { %4769 = vmatmul.msk.f32.gmra.mxu1 %vm652_vm2, %v5588_v53  ;;  %9570 = vst [vmem:[#allocation27_spill] sm:$0xff] %v5676_v45  ;;  %v5748_v41 = vld [vmem:[%s5471_s18 + $0x170] sm:$0xff] }
  0x34   : > { %4777 = vmatmul.msk.f32.gmra.mxu2 %vm652_vm2, %v5594_v55  ;;  %9571 = vst [vmem:[#allocation28_spill] sm:$0xff] %v5685_v50  ;;  %v5765_v32 = vld [vmem:[%s5471_s18 + $0x50] sm:$0xff] }
  0x35   : > { %4785 = vmatmul.msk.f32.gmra.mxu3 %vm652_vm2, %v5597_v56  ;;  %9572 = vst [vmem:[#allocation29_spill] sm:$0xff] %v5688_v51  ;;  %v646_v56 = vrot.slane %v5748_v41, 1  ;;  %v586_v40 = vrot.slane %v5765_v32, 1 }
  0x36   : > { %4761 = vmatmul.msk.f32.gmra.mxu0 %vm652_vm2, %v5609_v60  ;;  %9573 = vst [vmem:[#allocation30_spill] sm:$0xff] %v5691_v52  ;;  %v5730_v52 = vsel %vm569_vm1, %v641_v42, %v643_v43  ;;  %v606_v42 = vrot.slane %v5736_v22, 1  ;;  %v626_v43 = vrot.slane %v5742_v30, 1 }
  0x37   : > { %9575 = vst [vmem:[#allocation32_spill] sm:$0xff] %v5730_v52 }
  0x38   : > { %9576 = vst [vmem:[#allocation33_spill] sm:$0xff] %v5742_v30  ;;  %v5780_v36 = vsel %vm569_vm1, %v605_v31, %v606_v42  ;;  %v5808_v31 = vld [vmem:[%s5471_s18 + $0x58] sm:$0x3] }
  0x39   : > { %9578 = vst [vmem:[#allocation35_spill] sm:$0xff] %v5748_v41  ;;  %v5789_v41 = vld [vmem:[%s5471_s18 + $0xb8] sm:$0x3] }
  0x3a   : > { %9579 = vst [vmem:[#allocation36_spill] sm:$0xff] %v5780_v36 }
  0x3b   : > { %4770 = vmatmul.msk.f32.gmra.mxu1 %vm652_vm2, %v5624_v1  ;;  %9582 = vst [vmem:[#allocation39_spill] sm:$0xff] %v5792_v24 }
  0x3c   : > { %4778 = vmatmul.msk.f32.gmra.mxu2 %vm652_vm2, %v5627_v2 }
  0x3d   : > { %4786 = vmatmul.msk.f32.gmra.mxu3 %vm652_vm2, %v5630_v3  ;;  %v5745_v3 = vld [vmem:[%s5471_s18 + $0x168] sm:$0xff] }
  0x3e   : > { %4762 = vmatmul.msk.f32.gmra.mxu0 %vm652_vm2, %v5653_v16  ;;  %9577 = vst [vmem:[#allocation34_spill] sm:$0xff] %v5745_v3 }
  0x43   : > { %4771 = vmatmul.msk.f32.gmra.mxu1 %vm652_vm2, %v5676_v45 }
  0x44   : > { %4779 = vmatmul.msk.f32.gmra.mxu2 %vm652_vm2, %v5682_v49 }
  0x45   : > { %4787 = vmatmul.msk.f32.gmra.mxu3 %vm652_vm2, %v5685_v50  ;;  %v5724_v50 = vsel %vm569_vm1, %v601_v25, %v603_v59  ;;  %v5753_v25 = vsel %vm569_vm1, %v581_v44, %v583_v15  ;;  %v5762_v59 = vld [vmem:[%s5471_s18 + $0x48] sm:$0xff]  ;;  %v5028_v15 = vld [vmem:[%s9551_s1 + $0x20] sm:$0xf]  ;;  %v625_v44 = vrot.slane %v5739_v14, 1 }
  0x46   : > { %4763 = vmatmul.msk.f32.gmra.mxu0 %vm652_vm2, %v5697_v62  ;;  %9574 = vst [vmem:[#allocation31_spill] sm:$0xff] %v5724_v50  ;;  %v585_v26 = vrot.slane %v5762_v59, 1 }
  0x47   : > { %5029 = vmatpush.msk.msra.mxu0 %vm717_vm0, %v5028_v15  ;;  %v5783_v13 = vsel %vm569_vm1, %v625_v44, %v626_v43  ;;  %v5795_v15 = vld [vmem:[%s5471_s18 + $0x178] sm:$0x3]  ;;  %v628_v44 = vrot.slane %v5792_v24, 1 }
  0x48   : > { %9580 = vst [vmem:[#allocation37_spill] sm:$0xff] %v5783_v13  ;;  %v5800_v12 = vsel %vm569_vm1, %v585_v26, %v586_v40  ;;  %v648_v30 = vrot.slane %v5795_v15, 1  ;;  %v588_v26 = vrot.slane %v5808_v31, 1 }
  0x4a   : > { %v5827_v24 = vsel %vm569_vm1, %v586_v40, %v588_v26  ;;  %v1018_v40 = vrot.slane %v5531_v28, 2  ;;  %v1030_v26 = vrot.slane %v5762_v59, 2 }
  0x4b   : > { %4772 = vmatmul.msk.f32.gmra.mxu1 %vm652_vm2, %v5724_v50 }
  0x4c   : > { %4780 = vmatmul.msk.f32.gmra.mxu2 %vm652_vm2, %v5727_v58 }
  0x4d   : > { %4788 = vmatmul.msk.f32.gmra.mxu3 %vm652_vm2, %v5730_v52  ;;  %v645_v52 = vrot.slane %v5745_v3, 1 }
  0x4e   : > { %4764 = vmatmul.msk.f32.gmra.mxu0 %vm652_vm2, %v5753_v25 }
  0x4f   : > { %v5786_v3 = vsel %vm569_vm1, %v645_v52, %v646_v56  ;;  %v608_v52 = vrot.slane %v5789_v41, 1 }
  0x50   : > { %9581 = vst [vmem:[#allocation38_spill] sm:$0xff] %v5786_v3 }
  0x51   : > { %v5816_v51 = vsel %vm569_vm1, %v606_v42, %v608_v52  ;;  %v1015_v42 = vrot.slane %v5501_v18, 2  ;;  %v1021_v52 = vrot.slane %v5580_v48, 2 }
  0x52   : > { %9583 = vst [vmem:[#allocation40_spill] sm:$0xff] %v5816_v51 }
  0x53   : > { %4773 = vmatmul.msk.f32.gmra.mxu1 %vm652_vm2, %v5780_v36 }
  0x54   : > { %4781 = vmatmul.msk.f32.gmra.mxu2 %vm652_vm2, %v5783_v13  ;;  %v5819_v13 = vsel %vm569_vm1, %v626_v43, %v628_v44  ;;  %v1016_v43 = vrot.slane %v5510_v21, 2 }
  0x55   : > { %4789 = vmatmul.msk.f32.gmra.mxu3 %vm652_vm2, %v5786_v3  ;;  %v5822_v3 = vsel %vm569_vm1, %v646_v56, %v648_v30 }
  0x56   : > { %4765 = vmatmul.msk.f32.gmra.mxu0 %vm652_vm2, %v5800_v12  ;;  %9584 = vst [vmem:[#allocation41_spill] sm:$0xff] %v5822_v3  ;;  %v1017_v56 = vsel %vm1014_vm3, %v1015_v42, %v1016_v43  ;;  %v1019_v30 = vsel %vm1014_vm3, %v1016_v43, %v1018_v40  ;;  %v1031_v42 = vrot.slane %v5765_v32, 2  ;;  %v1033_v43 = vrot.slane %v5808_v31, 2 }
  0x57   : > { %v1035_v40 = vrot.slane %v5474_v5, 2 }
  0x5b   : > { %4774 = vmatmul.msk.f32.gmra.mxu1 %vm652_vm2, %v5816_v51 }
  0x5c   : > { %4782 = vmatmul.msk.f32.gmra.mxu2 %vm652_vm2, %v5819_v13 }
  0x5d   : > { %4790 = vmatmul.msk.f32.gmra.mxu3 %vm652_vm2, %v5822_v3 }
  0x5e   : > { %4766 = vmatmul.msk.f32.gmra.mxu0 %vm652_vm2, %v5827_v24 }
  0x63   : > { %4792 = vmatmul.msk.f32.vlgmr.msrb.gmra.mxu1 %vm652_vm2, %v5501_v18  ;;  %v1020_v18 = vrot.slane %v5577_v47, 2 }
  0x64   : > { %4826 = vmatmul.msk.f32.vlgmr.msrb.gmra.mxu2 %vm652_vm2, %v1017_v56  ;;  %v5919_v56 = vsel %vm1014_vm3, %v1031_v42, %v1033_v43 }
  0x65   : > { %4860 = vmatmul.msk.f32.vlgmr.msrb.gmra.mxu3 %vm652_vm2, %v5577_v47  ;;  %v5857_v28 = vsel %vm1014_vm3, %v1020_v18, %v1021_v52 }
  0x66   : > { %4894 = vmatmul.msk.f32.vlgmr.msrb.gmra.mxu0 %vm652_vm2, %v5609_v60 }
  0x6b   : > { %4793 = vmatmul.msk.f32.gmra.mxu1 %vm652_vm2, %v5510_v21  ;;  %v1023_v21 = vrot.slane %v5616_v61, 2 }
  0x6c   : > { %4827 = vmatmul.msk.f32.gmra.mxu2 %vm652_vm2, %v1019_v30  ;;  %v1036_v30 = vrot.slane %v5477_v6, 2 }
  0x6d   : > { %4861 = vmatmul.msk.f32.gmra.mxu3 %vm652_vm2, %v5580_v48  ;;  %v5869_v60 = vsel %vm1014_vm3, %v1021_v52, %v1023_v21  ;;  %v1038_v21 = vrot.slane %v5498_v17, 2  ;;  %v1040_v17 = vrot.slane %v5542_v34, 2 }
  0x6e   : > { %4895 = vmatmul.msk.f32.gmra.mxu0 %vm652_vm2, %v5653_v16  ;;  %v1026_v16 = vrot.slane %v5665_v29, 2  ;;  %v5934_v18 = vsel %vm1014_vm3, %v1035_v40, %v1036_v30 }
  0x6f   : > { %9585 = vst [vmem:[#allocation42_spill] sm:$0xff] %v5934_v18 }
  0x73   : > { %4794 = vmatmul.msk.f32.gmra.mxu1 %vm652_vm2, %v5577_v47  ;;  %v1025_v47 = vrot.slane %v5662_v27, 2 }
  0x74   : > { %4828 = vmatmul.msk.f32.gmra.mxu2 %vm652_vm2, %v5857_v28 }
  0x75   : > { %4862 = vmatmul.msk.f32.gmra.mxu3 %vm652_vm2, %v5662_v27  ;;  %v5882_v61 = vsel %vm1014_vm3, %v1025_v47, %v1026_v16 }
  0x76   : > { %4896 = vmatmul.msk.f32.gmra.mxu0 %vm652_vm2, %v5697_v62 }
  0x7b   : > { %4795 = vmatmul.msk.f32.gmra.mxu1 %vm652_vm2, %v5580_v48  ;;  %v1028_v48 = vrot.slane %v5700_v63, 2  ;;  %v5907_v63 = vsel %vm1014_vm3, %v1030_v26, %v1031_v42  ;;  %v1041_v42 = vrot.slane %v5551_v37, 2 }
  0x7c   : > { %4829 = vmatmul.msk.f32.gmra.mxu2 %vm652_vm2, %v5869_v60 }
  0x7d   : > { %4863 = vmatmul.msk.f32.gmra.mxu3 %vm652_vm2, %v5665_v29  ;;  %v5894_v44 = vsel %vm1014_vm3, %v1026_v16, %v1028_v48 }
  0x7e   : > { %4897 = vmatmul.msk.f32.gmra.mxu0 %vm652_vm2, %v5753_v25 }
  0x83   : > { %4796 = vmatmul.msk.f32.gmra.mxu1 %vm652_vm2, %v5662_v27 }
  0x84   : > { %4830 = vmatmul.msk.f32.gmra.mxu2 %vm652_vm2, %v5882_v61 }
  0x85   : > { %4864 = vmatmul.msk.f32.gmra.mxu3 %vm652_vm2, %v5762_v59 }
  0x86   : > { %4898 = vmatmul.msk.f32.gmra.mxu0 %vm652_vm2, %v5800_v12 }
  0x8b   : > { %4797 = vmatmul.msk.f32.gmra.mxu1 %vm652_vm2, %v5665_v29 }
  0x8c   : > { %4831 = vmatmul.msk.f32.gmra.mxu2 %vm652_vm2, %v5894_v44 }
  0x8d   : > { %4865 = vmatmul.msk.f32.gmra.mxu3 %vm652_vm2, %v5765_v32 }
  0x8e   : > { %4899 = vmatmul.msk.f32.gmra.mxu0 %vm652_vm2, %v5827_v24 }
  0x93   : > { %4798 = vmatmul.msk.f32.gmra.mxu1 %vm652_vm2, %v5762_v59 }
  0x94   : > { %4832 = vmatmul.msk.f32.gmra.mxu2 %vm652_vm2, %v5907_v63 }
  0x95   : > { %4866 = vmatmul.msk.f32.gmra.mxu3 %vm652_vm2, %v5474_v5 }
  0x96   : > { %4900 = vmatmul.msk.f32.gmra.mxu0 %vm652_vm2, %v5504_v19 }
  0x9b   : > { %4799 = vmatmul.msk.f32.gmra.mxu1 %vm652_vm2, %v5765_v32 }
  0x9c   : > { %4833 = vmatmul.msk.f32.gmra.mxu2 %vm652_vm2, %v5919_v56 }
  0x9d   : > { %4867 = vmatmul.msk.f32.gmra.mxu3 %vm652_vm2, %v5477_v6 }
  0x9e   : > { %4901 = vmatmul.msk.f32.gmra.mxu0 %vm652_vm2, %v5539_v33 }
  0xa0   : > { %v5931_v31 = vpop.f32.mrf.mxu1 }
  0xa3   : > { %4800 = vmatmul.msk.f32.gmra.mxu1 %vm652_vm2, %v5474_v5  ;;  %v5938_v52 = vpop.f32.mrf.mxu0  ;;  %v5954_v5 = vsel %vm1014_vm3, %v1036_v30, %v1038_v21  ;;  %v5975_v30 = vsel %vm1014_vm3, %v1040_v17, %v1041_v42 }
  0xa4   : > { %4834 = vmatmul.msk.f32.gmra.mxu2 %vm652_vm2, %v5934_v18  ;;  %9587 = vst [vmem:[#allocation44_spill] sm:$0xff] %v5954_v5 }
  0xa5   : > { %4868 = vmatmul.msk.f32.gmra.mxu3 %vm652_vm2, %v5542_v34  ;;  %9589 = vst [vmem:[#allocation46_spill] sm:$0xff] %v5975_v30 }
  0xa6   : > { %4902 = vmatmul.msk.f32.gmra.mxu0 %vm652_vm2, %v5588_v53 }
  0xa7   : > { %v5947_v47 = vpop.f32.mrf.mxu2 }
  0xa8   : > { %v5949_v16 = vpop.f32.mrf.mxu3  ;;  %v5951_v48 = vpop.f32.mrf.mxu1 }
  0xa9   : > { %9586 = vst [vmem:[#allocation43_spill] sm:$0xff] %v5949_v16  ;;  %v1043_v16 = vrot.slane %v5591_v54, 2  ;;  %v1045_v54 = vrot.slane %v5633_v4, 2 }
  0xab   : > { %4801 = vmatmul.msk.f32.gmra.mxu1 %vm652_vm2, %v5477_v6  ;;  %v5958_v26 = vpop.f32.mrf.mxu0 }
  0xac   : > { %4835 = vmatmul.msk.f32.gmra.mxu2 %vm652_vm2, %v5954_v5 }
  0xad   : > { %4869 = vmatmul.msk.f32.gmra.mxu3 %vm652_vm2, %v5551_v37 }
  0xae   : > { %4903 = vmatmul.msk.f32.gmra.mxu0 %vm652_vm2, %v5624_v1 }
  0xaf   : > { %v5968_v43 = vpop.f32.mrf.mxu2 }
  0xb0   : > { %v5970_v40 = vpop.f32.mrf.mxu3  ;;  %v5972_v6 = vpop.f32.mrf.mxu1 }
  0xb1   : > { %9588 = vst [vmem:[#allocation45_spill] sm:$0xff] %v5970_v40 }
  0xb3   : > { %4802 = vmatmul.msk.f32.gmra.mxu1 %vm652_vm2, %v5542_v34  ;;  %v5979_v21 = vpop.f32.mrf.mxu0  ;;  %v5995_v34 = vsel %vm1014_vm3, %v1041_v42, %v1043_v16 }
  0xb4   : > { %4836 = vmatmul.msk.f32.gmra.mxu2 %vm652_vm2, %v5975_v30  ;;  %9591 = vst [vmem:[#allocation48_spill] sm:$0xff] %v5995_v34 }
  0xb5   : > { %4870 = vmatmul.msk.f32.gmra.mxu3 %vm652_vm2, %v5633_v4 }
  0xb6   : > { %4904 = vmatmul.msk.f32.gmra.mxu0 %vm652_vm2, %v5676_v45 }
  0xb7   : > { %v5988_v40 = vpop.f32.mrf.mxu2 }
  0xb8   : > { %v5990_v17 = vpop.f32.mrf.mxu3  ;;  %v5992_v1 = vpop.f32.mrf.mxu1 }
  0xb9   : > { %9590 = vst [vmem:[#allocation47_spill] sm:$0xff] %v5990_v17  ;;  %v1046_v17 = vrot.slane %v5636_v8, 2 }
  0xbb   : > { %4803 = vmatmul.msk.f32.gmra.mxu1 %vm652_vm2, %v5551_v37  ;;  %v5999_v30 = vpop.f32.mrf.mxu0  ;;  %v6016_v45 = vsel %vm1014_vm3, %v1045_v54, %v1046_v17 }
  0xbc   : > { %4837 = vmatmul.msk.f32.gmra.mxu2 %vm652_vm2, %v5995_v34  ;;  %9593 = vst [vmem:[#allocation50_spill] sm:$0xff] %v6016_v45 }
  0xbd   : > { %4871 = vmatmul.msk.f32.gmra.mxu3 %vm652_vm2, %v5636_v8 }
  0xbe   : > { %4905 = vmatmul.msk.f32.gmra.mxu0 %vm652_vm2, %v5724_v50  ;;  %v1048_v50 = vrot.slane %v5679_v46, 2  ;;  %v1050_v46 = vrot.slane %v5733_v0, 2 }
  0xbf   : > { %v6009_v16 = vpop.f32.mrf.mxu2 }
  0xc0   : > { %v6011_v42 = vpop.f32.mrf.mxu3  ;;  %v6013_v37 = vpop.f32.mrf.mxu1 }
  0xc1   : > { %9592 = vst [vmem:[#allocation49_spill] sm:$0xff] %v6011_v42 }
  0xc3   : > { %4804 = vmatmul.msk.f32.gmra.mxu1 %vm652_vm2, %v5633_v4  ;;  %v6020_v34 = vpop.f32.mrf.mxu0  ;;  %v6036_v4 = vsel %vm1014_vm3, %v1046_v17, %v1048_v50 }
  0xc4   : > { %4838 = vmatmul.msk.f32.gmra.mxu2 %vm652_vm2, %v6016_v45  ;;  %9595 = vst [vmem:[#allocation52_spill] sm:$0xff] %v6036_v4 }
  0xc5   : > { %4872 = vmatmul.msk.f32.gmra.mxu3 %vm652_vm2, %v5733_v0 }
  0xc6   : > { %4906 = vmatmul.msk.f32.gmra.mxu0 %vm652_vm2, %v5780_v36 }
  0xc7   : > { %v6029_v42 = vpop.f32.mrf.mxu2 }
  0xc8   : > { %v6031_v54 = vpop.f32.mrf.mxu3  ;;  %v6033_v53 = vpop.f32.mrf.mxu1 }
  0xc9   : > { %9594 = vst [vmem:[#allocation51_spill] sm:$0xff] %v6031_v54  ;;  %v1051_v54 = vrot.slane %v5736_v22, 2 }
  0xcb   : > { %4805 = vmatmul.msk.f32.gmra.mxu1 %vm652_vm2, %v5636_v8  ;;  %v6040_v45 = vpop.f32.mrf.mxu0  ;;  %v6057_v36 = vsel %vm1014_vm3, %v1050_v46, %v1051_v54 }
  0xcc   : > { %4839 = vmatmul.msk.f32.gmra.mxu2 %vm652_vm2, %v6036_v4  ;;  %9598 = vst [vmem:[#allocation55_spill] sm:$0xff] %v6057_v36 }
  0xcd   : > { %4873 = vmatmul.msk.f32.gmra.mxu3 %vm652_vm2, %v5736_v22 }
  0xce   : > { %4907 = vmatmul.msk.f32.gmra.mxu0 %vm652_vm2, %v5816_v51  ;;  %v1053_v51 = vrot.slane %v5789_v41, 2  ;;  %v1055_v41 = vrot.slane %v5480_v7, 2 }
  0xcf   : > { %v6050_v50 = vpop.f32.mrf.mxu2 }
  0xd0   : > { %9596 = vst [vmem:[#allocation53_spill] sm:$0xff] %v6050_v50  ;;  %v6052_v17 = vpop.f32.mrf.mxu3  ;;  %v6054_v8 = vpop.f32.mrf.mxu1 }
  0xd1   : > { %9597 = vst [vmem:[#allocation54_spill] sm:$0xff] %v6052_v17 }
  0xd3   : > { %4806 = vmatmul.msk.f32.gmra.mxu1 %vm652_vm2, %v5733_v0  ;;  %v6061_v4 = vpop.f32.mrf.mxu0  ;;  %v6077_v0 = vsel %vm1014_vm3, %v1051_v54, %v1053_v51 }
  0xd4   : > { %4840 = vmatmul.msk.f32.gmra.mxu2 %vm652_vm2, %v6057_v36  ;;  %9601 = vst [vmem:[#allocation58_spill] sm:$0xff] %v6077_v0 }
  0xd5   : > { %4874 = vmatmul.msk.f32.gmra.mxu3 %vm652_vm2, %v5480_v7 }
  0xd6   : > { %4908 = vmatmul.msk.f32.gmra.mxu0 %vm652_vm2, %v5516_v23 }
  0xd7   : > { %v6070_v17 = vpop.f32.mrf.mxu2 }
  0xd8   : > { %9599 = vst [vmem:[#allocation56_spill] sm:$0xff] %v6070_v17  ;;  %v6072_v46 = vpop.f32.mrf.mxu3  ;;  %v6074_v5 = vpop.f32.mrf.mxu1 }
  0xd9   : > { %9600 = vst [vmem:[#allocation57_spill] sm:$0xff] %v6072_v46  ;;  %v1056_v46 = vrot.slane %v5485_v10, 2 }
  0xdb   : > { %4807 = vmatmul.msk.f32.gmra.mxu1 %vm652_vm2, %v5736_v22  ;;  %v6081_v36 = vpop.f32.mrf.mxu0  ;;  %v6096_v23 = vsel %vm1014_vm3, %v1055_v41, %v1056_v46 }
  0xdc   : > { %4841 = vmatmul.msk.f32.gmra.mxu2 %vm652_vm2, %v6077_v0  ;;  %9604 = vst [vmem:[#allocation61_spill] sm:$0xff] %v6096_v23 }
  0xdd   : > { %4875 = vmatmul.msk.f32.gmra.mxu3 %vm652_vm2, %v5485_v10 }
  0xde   : > { %4909 = vmatmul.msk.f32.gmra.mxu0 %vm652_vm2, %v5545_v35  ;;  %v1058_v35 = vrot.slane %v5507_v20, 2  ;;  %v1060_v20 = vrot.slane %v5554_v38, 2 }
  0xdf   : > { %v6091_v51 = vpop.f32.mrf.mxu2 }
  0xe0   : > { %9602 = vst [vmem:[#allocation59_spill] sm:$0xff] %v6091_v51  ;;  %v6093_v54 = vpop.f32.mrf.mxu3  ;;  %v918_v22 = vpop.f32.mrf.mxu1 }
  0xe1   : > { %9603 = vst [vmem:[#allocation60_spill] sm:$0xff] %v6093_v54  ;;  %v919_v51 = vadd.f32 %v918_v22, %v5938_v52  ;;  %v1061_v52 = vrot.slane %v5557_v39, 2 }
  0xe3   : > { %4808 = vmatmul.msk.f32.gmra.mxu1 %vm652_vm2, %v5480_v7  ;;  %v1497_v0 = vpop.f32.mrf.mxu0  ;;  %v6109_v7 = vsel %vm1014_vm3, %v1056_v46, %v1058_v35 }
  0xe4   : > { %4842 = vmatmul.msk.f32.gmra.mxu2 %vm652_vm2, %v6096_v23 }
  0xe5   : > { %4876 = vmatmul.msk.f32.gmra.mxu3 %vm652_vm2, %v5554_v38 }
  0xe6   : > { %4910 = vmatmul.msk.f32.gmra.mxu0 %vm652_vm2, %v5594_v55 }
  0xe7   : > { %v1181_v54 = vpop.f32.mrf.mxu2 }
  0xe8   : > { %v1337_v41 = vpop.f32.mrf.mxu3  ;;  %v1277_v17 = vadd.f32 %v1181_v54, %v919_v51  ;;  %v921_v50 = vpop.f32.mrf.mxu1 }
  0xe9   : > { %v922_v35 = vadd.f32 %v921_v50, %v5958_v26  ;;  %v1063_v26 = vrot.slane %v5600_v57, 2  ;;  %v1065_v57 = vrot.slane %v5639_v9, 2 }
  0xea   : > { %v1433_v33 = vadd.f32 %v1337_v41, %v1277_v17 }
  0xeb   : > { %4809 = vmatmul.msk.f32.gmra.mxu1 %vm652_vm2, %v5485_v10  ;;  %v1500_v23 = vpop.f32.mrf.mxu0 }
  0xec   : > { %v6113_v18 = vadd.f32 %v1497_v0, %v1433_v33  ;;  %4843 = vmatmul.msk.f32.gmra.mxu2 %vm652_vm2, %v6109_v7  ;;  %v6125_v0 = vsel %vm1014_vm3, %v1060_v20, %v1061_v52 }
  0xed   : > { %4877 = vmatmul.msk.f32.gmra.mxu3 %vm652_vm2, %v5557_v39 }
  0xee   : > { %4911 = vmatmul.msk.f32.gmra.mxu0 %vm652_vm2, %v5627_v2 }
  0xef   : > { %v1184_v17 = vpop.f32.mrf.mxu2 }
  0xf0   : > { %v1340_v10 = vpop.f32.mrf.mxu3  ;;  %v1278_v46 = vadd.f32 %v1184_v17, %v922_v35  ;;  %v924_v33 = vpop.f32.mrf.mxu1 }
  0xf1   : > { %v925_v50 = vadd.f32 %v924_v33, %v5979_v21  ;;  %v1066_v21 = vrot.slane %v5642_v11, 2 }
  0xf2   : > { %v1434_v51 = vadd.f32 %v1340_v10, %v1278_v46 }
  0xf3   : > { %4810 = vmatmul.msk.f32.gmra.mxu1 %vm652_vm2, %v5554_v38  ;;  %v1503_v54 = vpop.f32.mrf.mxu0 }
  0xf4   : > { %v6129_v22 = vadd.f32 %v1500_v23, %v1434_v51  ;;  %4844 = vmatmul.msk.f32.gmra.mxu2 %vm652_vm2, %v6125_v0  ;;  %v6140_v23 = vsel %vm1014_vm3, %v1061_v52, %v1063_v26  ;;  %v6156_v26 = vsel %vm1014_vm3, %v1065_v57, %v1066_v21 }
  0xf5   : > { %4878 = vmatmul.msk.f32.gmra.mxu3 %vm652_vm2, %v5639_v9 }
  0xf6   : > { %4912 = vmatmul.msk.f32.gmra.mxu0 %vm652_vm2, %v5682_v49 }
  0xf7   : > { %v1187_v41 = vpop.f32.mrf.mxu2 }
  0xf8   : > { %v1343_v20 = vpop.f32.mrf.mxu3  ;;  %v1279_v35 = vadd.f32 %v1187_v41, %v925_v50  ;;  %v927_v38 = vpop.f32.mrf.mxu1 }
  0xf9   : > { %v928_v52 = vadd.f32 %v927_v38, %v5999_v30  ;;  %v9606_v30 = vld [vmem:[#allocation29_spill] sm:$0xff] }
  0xfa   : > { %v1435_v17 = vadd.f32 %v1343_v20, %v1279_v35  ;;  %v1068_v35 = vrot.slane %v9606_v30, 2 }
  0xfb   : > { %4811 = vmatmul.msk.f32.gmra.mxu1 %vm652_vm2, %v5557_v39  ;;  %v1506_v10 = vpop.f32.mrf.mxu0 }
  0xfc   : > { %v6144_v46 = vadd.f32 %v1503_v54, %v1435_v17  ;;  %4845 = vmatmul.msk.f32.gmra.mxu2 %vm652_vm2, %v6140_v23  ;;  %v9607_v17 = vld [vmem:[#allocation37_spill] sm:$0xff] }
  0xfd   : > { %4879 = vmatmul.msk.f32.gmra.mxu3 %vm652_vm2, %v5642_v11 }
  0xfe   : > { %4913 = vmatmul.msk.f32.gmra.mxu0 %vm652_vm2, %v5727_v58 }
  0xff   : > { %v1190_v33 = vpop.f32.mrf.mxu2 }
 0x100   : > { %v1346_v39 = vpop.f32.mrf.mxu3  ;;  %v1280_v51 = vadd.f32 %v1190_v33, %v928_v52  ;;  %v930_v54 = vpop.f32.mrf.mxu1 }
 0x101   : > { %v931_v38 = vadd.f32 %v930_v54, %v6020_v34  ;;  %v9609_v34 = vld [vmem:[#allocation33_spill] sm:$0xff]  ;;  %v1070_v54 = vrot.slane %v5739_v14, 2 }
 0x102   : > { %v1436_v50 = vadd.f32 %v1346_v39, %v1280_v51  ;;  %v1071_v30 = vrot.slane %v9609_v34, 2 }
 0x103   : > { %4812 = vmatmul.msk.f32.gmra.mxu1 %vm652_vm2, %v5639_v9  ;;  %v1509_v41 = vpop.f32.mrf.mxu0 }
 0x104   : > { %v6160_v20 = vadd.f32 %v1506_v10, %v1436_v50  ;;  %4846 = vmatmul.msk.f32.gmra.mxu2 %vm652_vm2, %v6156_v26  ;;  %v6171_v10 = vsel %vm1014_vm3, %v1066_v21, %v1068_v35 }
 0x105   : > { %4880 = vmatmul.msk.f32.gmra.mxu3 %vm652_vm2, %v5739_v14 }
 0x106   : > { %9605 = vst [vmem:[#allocation62_spill] sm:$0xff] %v6160_v20  ;;  %4914 = vmatmul.msk.f32.gmra.mxu0 %vm652_vm2, %v9607_v17 }
 0x107   : > { %v1193_v57 = vpop.f32.mrf.mxu2 }
 0x108   : > { %v1349_v52 = vpop.f32.mrf.mxu3  ;;  %v1281_v33 = vadd.f32 %v1193_v57, %v931_v38  ;;  %v933_v9 = vpop.f32.mrf.mxu1  ;;  %v6187_v57 = vsel %vm1014_vm3, %v1070_v54, %v1071_v30 }
 0x109   : > { %v934_v21 = vadd.f32 %v933_v9, %v6040_v45  ;;  %v9611_v45 = vld [vmem:[#allocation10_spill] sm:$0xff]  ;;  %v9612_v9 = vld [vmem:[#allocation39_spill] sm:$0xff] }
 0x10a   : > { %v1437_v39 = vadd.f32 %v1349_v52, %v1281_v33 }
 0x10b   : > { %4813 = vmatmul.msk.f32.gmra.mxu1 %vm652_vm2, %v5642_v11  ;;  %v1512_v51 = vpop.f32.mrf.mxu0 }
 0x10c   : > { %v6175_v50 = vadd.f32 %v1509_v41, %v1437_v39  ;;  %4847 = vmatmul.msk.f32.gmra.mxu2 %vm652_vm2, %v6171_v10 }
 0x10d   : > { %4881 = vmatmul.msk.f32.gmra.mxu3 %vm652_vm2, %v9609_v34 }
 0x10e   : > { %9608 = vst [vmem:[#allocation29_spill] sm:$0xff] %v6175_v50  ;;  %4915 = vmatmul.msk.f32.gmra.mxu0 %vm652_vm2, %v5819_v13  ;;  %v1073_v50 = vrot.slane %v9612_v9, 2 }
 0x10f   : > { %v1196_v35 = vpop.f32.mrf.mxu2 }
 0x110   : > { %v1352_v11 = vpop.f32.mrf.mxu3  ;;  %v1282_v38 = vadd.f32 %v1196_v35, %v934_v21  ;;  %v936_v41 = vpop.f32.mrf.mxu1  ;;  %v9613_v35 = vld [vmem:[#allocation13_spill] sm:$0xff] }
 0x111   : > { %v937_v21 = vadd.f32 %v936_v41, %v6061_v4  ;;  %v9615_v4 = vld [vmem:[#allocation11_spill] sm:$0xff]  ;;  %v1075_v41 = vrot.slane %v9611_v45, 2 }
 0x112   : > { %v1438_v52 = vadd.f32 %v1352_v11, %v1282_v38  ;;  %v1076_v9 = vrot.slane %v9615_v4, 2 }
 0x113   : > { %4814 = vmatmul.msk.f32.gmra.mxu1 %vm652_vm2, %v5739_v14  ;;  %v1515_v33 = vpop.f32.mrf.mxu0 }
 0x114   : > { %v6191_v39 = vadd.f32 %v1512_v51, %v1438_v52  ;;  %4848 = vmatmul.msk.f32.gmra.mxu2 %vm652_vm2, %v6187_v57  ;;  %v6202_v51 = vsel %vm1014_vm3, %v1071_v30, %v1073_v50  ;;  %v9616_v30 = vld [vmem:[#allocation17_spill] sm:$0xff] }
 0x115   : > { %4882 = vmatmul.msk.f32.gmra.mxu3 %vm652_vm2, %v9611_v45 }
 0x116   : > { %9610 = vst [vmem:[#allocation37_spill] sm:$0xff] %v6191_v39  ;;  %4916 = vmatmul.msk.f32.gmra.mxu0 %vm652_vm2, %v9613_v35 }
 0x117   : > { %v1199_v54 = vpop.f32.mrf.mxu2 }
 0x118   : > { %v1355_v11 = vpop.f32.mrf.mxu3  ;;  %v1283_v38 = vadd.f32 %v1199_v54, %v937_v21  ;;  %v939_v14 = vpop.f32.mrf.mxu1 }
 0x119   : > { %v940_v50 = vadd.f32 %v939_v14, %v6081_v36  ;;  %v9619_v36 = vld [vmem:[#allocation18_spill] sm:$0xff] }
 0x11a   : > { %v1439_v52 = vadd.f32 %v1355_v11, %v1283_v38  ;;  %v6218_v11 = vsel %vm1014_vm3, %v1075_v41, %v1076_v9  ;;  %v9620_v14 = vld [vmem:[#allocation14_spill] sm:$0xff] }
 0x11b   : > { %4815 = vmatmul.msk.f32.gmra.mxu1 %vm652_vm2, %v9609_v34  ;;  %v1518_v39 = vpop.f32.mrf.mxu0  ;;  %9617 = vst [vmem:[#allocation10_spill] sm:$0xff] %v6218_v11 }
 0x11c   : > { %v6206_v20 = vadd.f32 %v1515_v33, %v1439_v52  ;;  %4849 = vmatmul.msk.f32.gmra.mxu2 %vm652_vm2, %v6202_v51 }
 0x11d   : > { %4883 = vmatmul.msk.f32.gmra.mxu3 %vm652_vm2, %v9615_v4 }
 0x11e   : > { %9614 = vst [vmem:[#allocation33_spill] sm:$0xff] %v6206_v20  ;;  %4917 = vmatmul.msk.f32.gmra.mxu0 %vm652_vm2, %v9616_v30  ;;  %v1078_v30 = vrot.slane %v9620_v14, 2 }
 0x11f   : > { %v1202_v21 = vpop.f32.mrf.mxu2 }
 0x120   : > { %v1358_v34 = vpop.f32.mrf.mxu3  ;;  %v1284_v54 = vadd.f32 %v1202_v21, %v940_v50  ;;  %v942_v33 = vpop.f32.mrf.mxu1  ;;  %v9621_v21 = vld [vmem:[#allocation21_spill] sm:$0xff] }
 0x121   : > { %v943_v50 = vadd.f32 %v942_v33, %v5931_v31  ;;  %v9623_v31 = vld [vmem:[#allocation19_spill] sm:$0xff]  ;;  %v1080_v33 = vrot.slane %v9619_v36, 2 }
 0x122   : > { %v1440_v38 = vadd.f32 %v1358_v34, %v1284_v54  ;;  %v1081_v14 = vrot.slane %v9623_v31, 2 }
 0x123   : > { %4816 = vmatmul.msk.f32.gmra.mxu1 %vm652_vm2, %v9611_v45  ;;  %v1521_v52 = vpop.f32.mrf.mxu0 }
 0x124   : > { %v6222_v20 = vadd.f32 %v1518_v39, %v1440_v38  ;;  %4850 = vmatmul.msk.f32.gmra.mxu2 %vm652_vm2, %v6218_v11  ;;  %v6233_v39 = vsel %vm1014_vm3, %v1076_v9, %v1078_v30  ;;  %v9624_v30 = vld [vmem:[#allocation24_spill] sm:$0xff] }
 0x125   : > { %4884 = vmatmul.msk.f32.gmra.mxu3 %vm652_vm2, %v9619_v36 }
 0x126   : > { %9618 = vst [vmem:[#allocation39_spill] sm:$0xff] %v6222_v20  ;;  %4918 = vmatmul.msk.f32.gmra.mxu0 %vm652_vm2, %v9621_v21 }
 0x127   : > { %v1205_v41 = vpop.f32.mrf.mxu2 }
 0x128   : > { %v1361_v34 = vpop.f32.mrf.mxu3  ;;  %v1285_v54 = vadd.f32 %v1205_v41, %v943_v50  ;;  %v945_v45 = vpop.f32.mrf.mxu1 }
 0x129   : > { %v946_v9 = vadd.f32 %v945_v45, %v5951_v48  ;;  %v9627_v48 = vld [vmem:[#allocation25_spill] sm:$0xff]  ;;  %v9628_v45 = vld [vmem:[#allocation22_spill] sm:$0xff] }
 0x12a   : > { %v1441_v38 = vadd.f32 %v1361_v34, %v1285_v54  ;;  %v6249_v34 = vsel %vm1014_vm3, %v1080_v33, %v1081_v14 }
 0x12b   : > { %4817 = vmatmul.msk.f32.gmra.mxu1 %vm652_vm2, %v9615_v4  ;;  %v1524_v20 = vpop.f32.mrf.mxu0  ;;  %9625 = vst [vmem:[#allocation11_spill] sm:$0xff] %v6249_v34 }
 0x12c   : > { %v6237_v11 = vadd.f32 %v1521_v52, %v1441_v38  ;;  %4851 = vmatmul.msk.f32.gmra.mxu2 %vm652_vm2, %v6233_v39 }
 0x12d   : > { %4885 = vmatmul.msk.f32.gmra.mxu3 %vm652_vm2, %v9623_v31 }
 0x12e   : > { %9622 = vst [vmem:[#allocation13_spill] sm:$0xff] %v6237_v11  ;;  %4919 = vmatmul.msk.f32.gmra.mxu0 %vm652_vm2, %v9624_v30  ;;  %v1083_v30 = vrot.slane %v9628_v45, 2 }
 0x12f   : > { %v1208_v50 = vpop.f32.mrf.mxu2 }
 0x130   : > { %v1364_v4 = vpop.f32.mrf.mxu3  ;;  %v1286_v41 = vadd.f32 %v1208_v50, %v946_v9  ;;  %v948_v52 = vpop.f32.mrf.mxu1  ;;  %v9629_v50 = vld [vmem:[#allocation28_spill] sm:$0xff] }
 0x131   : > { %v949_v9 = vadd.f32 %v948_v52, %v5972_v6  ;;  %v9631_v6 = vld [vmem:[#allocation26_spill] sm:$0xff]  ;;  %v1085_v52 = vrot.slane %v9627_v48, 2 }
 0x132   : > { %v1442_v54 = vadd.f32 %v1364_v4, %v1286_v41  ;;  %v1086_v45 = vrot.slane %v9631_v6, 2 }
 0x133   : > { %4818 = vmatmul.msk.f32.gmra.mxu1 %vm652_vm2, %v9619_v36  ;;  %v1527_v38 = vpop.f32.mrf.mxu0 }
 0x134   : > { %v6253_v11 = vadd.f32 %v1524_v20, %v1442_v54  ;;  %4852 = vmatmul.msk.f32.gmra.mxu2 %vm652_vm2, %v6249_v34  ;;  %v6264_v20 = vsel %vm1014_vm3, %v1081_v14, %v1083_v30  ;;  %v9632_v30 = vld [vmem:[#allocation32_spill] sm:$0xff] }
 0x135   : > { %4886 = vmatmul.msk.f32.gmra.mxu3 %vm652_vm2, %v9627_v48 }
 0x136   : > { %9626 = vst [vmem:[#allocation18_spill] sm:$0xff] %v6253_v11  ;;  %4920 = vmatmul.msk.f32.gmra.mxu0 %vm652_vm2, %v9629_v50 }
 0x137   : > { %v1211_v33 = vpop.f32.mrf.mxu2 }
 0x138   : > { %v1367_v4 = vpop.f32.mrf.mxu3  ;;  %v1287_v41 = vadd.f32 %v1211_v33, %v949_v9  ;;  %v951_v36 = vpop.f32.mrf.mxu1 }
 0x139   : > { %v952_v14 = vadd.f32 %v951_v36, %v5992_v1  ;;  %v9635_v1 = vld [vmem:[#allocation34_spill] sm:$0xff] }
 0x13a   : > { %v1443_v54 = vadd.f32 %v1367_v4, %v1287_v41  ;;  %v6280_v4 = vsel %vm1014_vm3, %v1085_v52, %v1086_v45  ;;  %v9636_v36 = vld [vmem:[#allocation30_spill] sm:$0xff] }
 0x13b   : > { %4819 = vmatmul.msk.f32.gmra.mxu1 %vm652_vm2, %v9623_v31  ;;  %v1530_v11 = vpop.f32.mrf.mxu0  ;;  %9633 = vst [vmem:[#allocation21_spill] sm:$0xff] %v6280_v4  ;;  %v9637_v52 = vld [vmem:[#allocation38_spill] sm:$0xff] }
 0x13c   : > { %v6268_v34 = vadd.f32 %v1527_v38, %v1443_v54  ;;  %4853 = vmatmul.msk.f32.gmra.mxu2 %vm652_vm2, %v6264_v20 }
 0x13d   : > { %4887 = vmatmul.msk.f32.gmra.mxu3 %vm652_vm2, %v9631_v6 }
 0x13e   : > { %9630 = vst [vmem:[#allocation14_spill] sm:$0xff] %v6268_v34  ;;  %4921 = vmatmul.msk.f32.gmra.mxu0 %vm652_vm2, %v9632_v30 }
 0x13f   : > { %v1214_v9 = vpop.f32.mrf.mxu2 }
 0x140   : > { %v1370_v31 = vpop.f32.mrf.mxu3  ;;  %v1288_v33 = vadd.f32 %v1214_v9, %v952_v14  ;;  %v954_v38 = vpop.f32.mrf.mxu1  ;;  %v1088_v14 = vrot.slane %v9636_v36, 2  ;;  %v1090_v36 = vrot.slane %v9635_v1, 2 }
 0x141   : > { %v955_v9 = vadd.f32 %v954_v38, %v6013_v37  ;;  %v9640_v37 = vld [vmem:[#allocation35_spill] sm:$0xff] }
 0x142   : > { %v1444_v41 = vadd.f32 %v1370_v31, %v1288_v33  ;;  %v515_v38 = vld [vmem:[%s5471_s18 + $0x188] sm:$0xff] }
 0x143   : > { %4820 = vmatmul.msk.f32.gmra.mxu1 %vm652_vm2, %v9627_v48  ;;  %v1533_v54 = vpop.f32.mrf.mxu0 }
 0x144   : > { %v6284_v34 = vadd.f32 %v1530_v11, %v1444_v41  ;;  %4854 = vmatmul.msk.f32.gmra.mxu2 %vm652_vm2, %v6280_v4  ;;  %v6295_v41 = vsel %vm1014_vm3, %v1086_v45, %v1088_v14  ;;  %v514_v14 = vld [vmem:[%s5471_s18 + $0x180] sm:$0xff] }
 0x145   : > { %4888 = vmatmul.msk.f32.gmra.mxu3 %vm652_vm2, %v9635_v1  ;;  %9638 = vst [vmem:[#allocation25_spill] sm:$0xff] %v6295_v41 }
 0x146   : > { %9634 = vst [vmem:[#allocation19_spill] sm:$0xff] %v6284_v34  ;;  %4922 = vmatmul.msk.f32.gmra.mxu0 %vm652_vm2, %v9637_v52 }
 0x147   : > { %v1217_v31 = vpop.f32.mrf.mxu2 }
 0x148   : > { %v1373_v48 = vpop.f32.mrf.mxu3  ;;  %v1289_v33 = vadd.f32 %v1217_v31, %v955_v9  ;;  %v957_v11 = vpop.f32.mrf.mxu1  ;;  %v1091_v9 = vrot.slane %v9640_v37, 2  ;;  %v1467_v31 = vrot.slane %v515_v38, 1 }
 0x149   : > { %v958_v45 = vadd.f32 %v957_v11, %v6033_v53 }
 0x14a   : > { %v1445_v34 = vadd.f32 %v1373_v48, %v1289_v33 }
 0x14b   : > { %4821 = vmatmul.msk.f32.gmra.mxu1 %vm652_vm2, %v9631_v6  ;;  %v1536_v30 = vpop.f32.mrf.mxu0 }
 0x14c   : > { %v6299_v4 = vadd.f32 %v1533_v54, %v1445_v34  ;;  %4855 = vmatmul.msk.f32.gmra.mxu2 %vm652_vm2, %v6295_v41  ;;  %v1466_v54 = vrot.slane %v514_v14, 1 }
 0x14d   : > { %4889 = vmatmul.msk.f32.gmra.mxu3 %vm652_vm2, %v9640_v37 }
 0x14e   : > { %9639 = vst [vmem:[#allocation22_spill] sm:$0xff] %v6299_v4  ;;  %4923 = vmatmul.msk.f32.gmra.mxu0 %vm652_vm2, %v5822_v3  ;;  %v6313_v4 = vsel %vm1014_vm3, %v1090_v36, %v1091_v9  ;;  %v6318_v53 = vsel %vm569_vm1, %v1466_v54, %v1467_v31 }
 0x14f   : > { %v1220_v34 = vpop.f32.mrf.mxu2  ;;  %9641 = vst [vmem:[#allocation28_spill] sm:$0xff] %v6318_v53 }
 0x150   : > { %v1376_v6 = vpop.f32.mrf.mxu3  ;;  %v1290_v48 = vadd.f32 %v1220_v34, %v958_v45  ;;  %v960_v33 = vpop.f32.mrf.mxu1  ;;  %v516_v45 = vld [vmem:[%s5471_s18 + $0x190] sm:$0x3]  ;;  %v1093_v34 = vrot.slane %v5795_v15, 2 }
 0x151   : > { %v961_v36 = vadd.f32 %v960_v33, %v6054_v8 }
 0x152   : > { %v1446_v52 = vadd.f32 %v1376_v6, %v1290_v48  ;;  %v1469_v48 = vrot.slane %v516_v45, 1 }
 0x153   : > { %4822 = vmatmul.msk.f32.gmra.mxu1 %vm652_vm2, %v9635_v1  ;;  %v1539_v41 = vpop.f32.mrf.mxu0 }
 0x154   : > { %v6320_v11 = vadd.f32 %v1536_v30, %v1446_v52  ;;  %4856 = vmatmul.msk.f32.gmra.mxu2 %vm652_vm2, %v6313_v4  ;;  %v6331_v30 = vsel %vm1014_vm3, %v1091_v9, %v1093_v34  ;;  %v6336_v15 = vsel %vm569_vm1, %v1467_v31, %v1469_v48 }
 0x155   : > { %4890 = vmatmul.msk.f32.gmra.mxu3 %vm652_vm2, %v514_v14  ;;  %9643 = vst [vmem:[#allocation34_spill] sm:$0xff] %v6336_v15 }
 0x156   : > { %9642 = vst [vmem:[#allocation26_spill] sm:$0xff] %v6320_v11  ;;  %4924 = vmatmul.msk.f32.gmra.mxu0 %vm652_vm2, %v6318_v53  ;;  %v9709_v53 = vld [vmem:[#allocation21_spill] sm:$0xff] }
 0x157   : > { %v1223_v1 = vpop.f32.mrf.mxu2 }
 0x158   : > { %v1379_v6 = vpop.f32.mrf.mxu3  ;;  %v1291_v54 = vadd.f32 %v1223_v1, %v961_v36  ;;  %v963_v3 = vpop.f32.mrf.mxu1 }
 0x159   : > { %v964_v33 = vadd.f32 %v963_v3, %v6074_v5 }
 0x15a   : > { %v1447_v52 = vadd.f32 %v1379_v6, %v1291_v54 }
 0x15b   : > { %4823 = vmatmul.msk.f32.gmra.mxu1 %vm652_vm2, %v9640_v37  ;;  %v1542_v14 = vpop.f32.mrf.mxu0 }
 0x15c   : > { %v6338_v8 = vadd.f32 %v1539_v41, %v1447_v52  ;;  %4857 = vmatmul.msk.f32.gmra.mxu2 %vm652_vm2, %v6331_v30 }
 0x15d   : > { %4891 = vmatmul.msk.f32.gmra.mxu3 %vm652_vm2, %v515_v38 }
 0x15e   : > { %9644 = vst [vmem:[#allocation30_spill] sm:$0xff] %v6338_v8  ;;  %4925 = vmatmul.msk.f32.gmra.mxu0 %vm652_vm2, %v6336_v15 }
 0x15f   : > { %v1226_v9 = vpop.f32.mrf.mxu2 }
 0x160   : > { %v1382_v45 = vpop.f32.mrf.mxu3  ;;  %v1292_v34 = vadd.f32 %v1226_v9, %v964_v33  ;;  %v966_v37 = vpop.f32.mrf.mxu1 }
 0x161   : > { %v967_v3 = vadd.f32 %v966_v37, %v5947_v47 }
 0x162   : > { %v1448_v36 = vadd.f32 %v1382_v45, %v1292_v34 }
 0x163   : > { %4928 = vmatmul.msk.f32.vlgmr.msra.gmra.mxu1 %vm652_vm2, %v5857_v28  ;;  %v1545_v41 = vpop.f32.mrf.mxu0 }
 0x164   : > { %v6348_v31 = vadd.f32 %v1542_v14, %v1448_v36  ;;  %4962 = vmatmul.msk.f32.vlgmr.msra.gmra.mxu2 %vm652_vm2, %v5662_v27 }
 0x165   : > { %4996 = vmatmul.msk.f32.vlgmr.msra.gmra.mxu3 %vm652_vm2, %v5697_v62 }
 0x166   : > { %9645 = vst [vmem:[#allocation35_spill] sm:$0xff] %v6348_v31  ;;  %5030 = vmatmul.msk.f32.vlgmr.msra.gmra.mxu0 %vm652_vm2, %v5882_v61 }
 0x167   : > { %v1229_v5 = vpop.f32.mrf.mxu2 }
 0x168   : > { %v1385_v38 = vpop.f32.mrf.mxu3  ;;  %v1293_v1 = vadd.f32 %v1229_v5, %v967_v3  ;;  %v969_v6 = vpop.f32.mrf.mxu1 }
 0x169   : > { %v970_v27 = vadd.f32 %v969_v6, %v5968_v43 }
 0x16a   : > { %v1449_v48 = vadd.f32 %v1385_v38, %v1293_v1 }
 0x16b   : > { %4929 = vmatmul.msk.f32.gmra.mxu1 %vm652_vm2, %v5869_v60  ;;  %v1548_v28 = vpop.f32.mrf.mxu0 }
 0x16c   : > { %v6359_v54 = vadd.f32 %v1545_v41, %v1449_v48  ;;  %4963 = vmatmul.msk.f32.gmra.mxu2 %vm652_vm2, %v5665_v29 }
 0x16d   : > { %4997 = vmatmul.msk.f32.gmra.mxu3 %vm652_vm2, %v5753_v25 }
 0x16e   : > { %9646 = vst [vmem:[#allocation63_spill] sm:$0xff] %v6359_v54  ;;  %5031 = vmatmul.msk.f32.gmra.mxu0 %vm652_vm2, %v5894_v44 }
 0x16f   : > { %v1232_v62 = vpop.f32.mrf.mxu2 }
 0x170   : > { %v1388_v47 = vpop.f32.mrf.mxu3  ;;  %v1294_v52 = vadd.f32 %v1232_v62, %v970_v27  ;;  %v972_v14 = vpop.f32.mrf.mxu1 }
 0x171   : > { %v973_v29 = vadd.f32 %v972_v14, %v5988_v40  ;;  %v9654_v14 = vld [vmem:[#allocation44_spill] sm:$0xff] }
 0x172   : > { %v1450_v33 = vadd.f32 %v1388_v47, %v1294_v52  ;;  %v5143_v47 = vld [vmem:[%s5471_s18 + $0x68] sm:$0xff] }
 0x173   : > { %4930 = vmatmul.msk.f32.gmra.mxu1 %vm652_vm2, %v5882_v61  ;;  %v1551_v60 = vpop.f32.mrf.mxu0 }
 0x174   : > { %v6370_v9 = vadd.f32 %v1548_v28, %v1450_v33  ;;  %4964 = vmatmul.msk.f32.gmra.mxu2 %vm652_vm2, %v5762_v59 }
 0x175   : > { %4998 = vmatmul.msk.f32.gmra.mxu3 %vm652_vm2, %v5800_v12 }
 0x176   : > { %9647 = vst [vmem:[#allocation64_spill] sm:$0xff] %v6370_v9  ;;  %5032 = vmatmul.msk.f32.gmra.mxu0 %vm652_vm2, %v5907_v63 }
 0x177   : > { %v1235_v25 = vpop.f32.mrf.mxu2 }
 0x178   : > { %v1391_v43 = vpop.f32.mrf.mxu3  ;;  %v1295_v45 = vadd.f32 %v1235_v25, %v973_v29  ;;  %v975_v34 = vpop.f32.mrf.mxu1 }
 0x179   : > { %v976_v12 = vadd.f32 %v975_v34, %v6009_v16  ;;  %v9650_v16 = vld [vmem:[#allocation42_spill] sm:$0xff]  ;;  %v5144_v34 = vld [vmem:[%s5471_s18 + $0x78] sm:$0xff] }
 0x17a   : > { %v1451_v37 = vadd.f32 %v1391_v43, %v1295_v45 }
 0x17b   : > { %4931 = vmatmul.msk.f32.gmra.mxu1 %vm652_vm2, %v5894_v44  ;;  %v1554_v61 = vpop.f32.mrf.mxu0 }
 0x17c   : > { %v6381_v36 = vadd.f32 %v1551_v60, %v1451_v37  ;;  %4965 = vmatmul.msk.f32.gmra.mxu2 %vm652_vm2, %v5765_v32  ;;  %v5142_v32 = vld [vmem:[%s5471_s18 + $0x60] sm:$0xff]  ;;  %v9656_v37 = vld [vmem:[#allocation20_spill] sm:$0xff] }
 0x17d   : > { %4999 = vmatmul.msk.f32.gmra.mxu3 %vm652_vm2, %v5827_v24 }
 0x17e   : > { %9648 = vst [vmem:[#allocation65_spill] sm:$0xff] %v6381_v36  ;;  %5033 = vmatmul.msk.f32.gmra.mxu0 %vm652_vm2, %v5919_v56 }
 0x17f   : > { %v1238_v59 = vpop.f32.mrf.mxu2 }
 0x180   : > { %v1394_v40 = vpop.f32.mrf.mxu3  ;;  %v1296_v41 = vadd.f32 %v1238_v59, %v976_v12  ;;  %v978_v3 = vpop.f32.mrf.mxu1  ;;  %v9658_v59 = vld [vmem:[#allocation46_spill] sm:$0xff] }
 0x181   : > { %v979_v24 = vadd.f32 %v978_v3, %v6029_v42  ;;  %v9653_v42 = vld [vmem:[#allocation53_spill] sm:$0xff] }
 0x182   : > { %v1452_v5 = vadd.f32 %v1394_v40, %v1296_v41 }
 0x183   : > { %4932 = vmatmul.msk.f32.gmra.mxu1 %vm652_vm2, %v5907_v63  ;;  %v1557_v44 = vpop.f32.mrf.mxu0 }
 0x184   : > { %v6392_v38 = vadd.f32 %v1554_v61, %v1452_v5  ;;  %4966 = vmatmul.msk.f32.gmra.mxu2 %vm652_vm2, %v5142_v32  ;;  %v9657_v61 = vld [vmem:[#allocation56_spill] sm:$0xff] }
 0x185   : > { %5000 = vmatmul.msk.f32.gmra.mxu3 %vm652_vm2, %v5504_v19  ;;  %v9652_v19 = vld [vmem:[#allocation15_spill] sm:$0xff] }
 0x186   : > { %9649 = vst [vmem:[#allocation66_spill] sm:$0xff] %v6392_v38  ;;  %5034 = vmatmul.msk.f32.gmra.mxu0 %vm652_vm2, %v9650_v16 }
 0x187   : > { %v1241_v1 = vpop.f32.mrf.mxu2 }
 0x188   : > { %v1397_v6 = vpop.f32.mrf.mxu3  ;;  %v1297_v48 = vadd.f32 %v1241_v1, %v979_v24  ;;  %v981_v28 = vpop.f32.mrf.mxu1  ;;  %v9660_v1 = vld [vmem:[#allocation23_spill] sm:$0xff] }
 0x189   : > { %v982_v52 = vadd.f32 %v981_v28, %v9653_v42  ;;  %v9662_v28 = vld [vmem:[#allocation48_spill] sm:$0xff] }
 0x18a   : > { %v1453_v63 = vadd.f32 %v1397_v6, %v1297_v48  ;;  %v9661_v6 = vld [vmem:[#allocation59_spill] sm:$0xff] }
 0x18b   : > { %4933 = vmatmul.msk.f32.gmra.mxu1 %vm652_vm2, %v5919_v56  ;;  %v1560_v27 = vpop.f32.mrf.mxu0 }
 0x18c   : > { %v6403_v62 = vadd.f32 %v1557_v44, %v1453_v63  ;;  %4967 = vmatmul.msk.f32.gmra.mxu2 %vm652_vm2, %v5143_v47 }
 0x18d   : > { %5001 = vmatmul.msk.f32.gmra.mxu3 %vm652_vm2, %v9652_v19 }
 0x18e   : > { %9651 = vst [vmem:[#allocation42_spill] sm:$0xff] %v6403_v62  ;;  %5035 = vmatmul.msk.f32.gmra.mxu0 %vm652_vm2, %v9654_v14 }
 0x18f   : > { %v1244_v33 = vpop.f32.mrf.mxu2 }
 0x190   : > { %v1400_v60 = vpop.f32.mrf.mxu3  ;;  %v1298_v29 = vadd.f32 %v1244_v33, %v982_v52  ;;  %v984_v25 = vpop.f32.mrf.mxu1  ;;  %v5146_v33 = vld [vmem:[%s5471_s18 + $0x90] sm:$0xff] }
 0x191   : > { %v985_v12 = vadd.f32 %v984_v25, %v9657_v61 }
 0x192   : > { %v1454_v56 = vadd.f32 %v1400_v60, %v1298_v29  ;;  %v9664_v60 = vld [vmem:[#allocation27_spill] sm:$0xff] }
 0x193   : > { %4934 = vmatmul.msk.f32.gmra.mxu1 %vm652_vm2, %v9650_v16  ;;  %v1563_v43 = vpop.f32.mrf.mxu0  ;;  %v5145_v16 = vld [vmem:[%s5471_s18 + $0x80] sm:$0xff]  ;;  %v9665_v29 = vld [vmem:[#allocation43_spill] sm:$0xff] }
 0x194   : > { %v6414_v45 = vadd.f32 %v1560_v27, %v1454_v56  ;;  %4968 = vmatmul.msk.f32.gmra.mxu2 %vm652_vm2, %v5144_v34  ;;  %v9666_v56 = vld [vmem:[#allocation50_spill] sm:$0xff] }
 0x195   : > { %5002 = vmatmul.msk.f32.gmra.mxu3 %vm652_vm2, %v9656_v37 }
 0x196   : > { %9655 = vst [vmem:[#allocation15_spill] sm:$0xff] %v6414_v45  ;;  %5036 = vmatmul.msk.f32.gmra.mxu0 %vm652_vm2, %v9658_v59 }
 0x197   : > { %v1247_v40 = vpop.f32.mrf.mxu2 }
 0x198   : > { %v1403_v41 = vpop.f32.mrf.mxu3  ;;  %v1299_v3 = vadd.f32 %v1247_v40, %v985_v12  ;;  %v987_v5 = vpop.f32.mrf.mxu1 }
 0x199   : > { %v988_v48 = vadd.f32 %v987_v5, %v9661_v6  ;;  %v9669_v5 = vld [vmem:[#allocation45_spill] sm:$0xff] }
 0x19a   : > { %v1455_v44 = vadd.f32 %v1403_v41, %v1299_v3  ;;  %v5147_v41 = vld [vmem:[%s5471_s18 + $0x98] sm:$0xff]  ;;  %v9668_v3 = vld [vmem:[#allocation31_spill] sm:$0xff] }
 0x19b   : > { %4935 = vmatmul.msk.f32.gmra.mxu1 %vm652_vm2, %v9654_v14  ;;  %v1566_v32 = vpop.f32.mrf.mxu0 }
 0x19c   : > { %v6425_v24 = vadd.f32 %v1563_v43, %v1455_v44  ;;  %4969 = vmatmul.msk.f32.gmra.mxu2 %vm652_vm2, %v5145_v16 }
 0x19d   : > { %5003 = vmatmul.msk.f32.gmra.mxu3 %vm652_vm2, %v9660_v1 }
 0x19e   : > { %9659 = vst [vmem:[#allocation53_spill] sm:$0xff] %v6425_v24  ;;  %5037 = vmatmul.msk.f32.gmra.mxu0 %vm652_vm2, %v9662_v28 }
 0x19f   : > { %v1250_v63 = vpop.f32.mrf.mxu2 }
 0x1a0   : > { %v1406_v27 = vpop.f32.mrf.mxu3  ;;  %v1300_v47 = vadd.f32 %v1250_v63, %v988_v48  ;;  %v990_v19 = vpop.f32.mrf.mxu1 }
 0x1a1   : > { %v991_v25 = vadd.f32 %v990_v19, %v9665_v29  ;;  %v9672_v19 = vld [vmem:[#allocation36_spill] sm:$0xff] }
 0x1a2   : > { %v1456_v42 = vadd.f32 %v1406_v27, %v1300_v47  ;;  %v5148_v47 = vld [vmem:[%s5471_s18 + $0xa8] sm:$0xff] }
 0x1a3   : > { %4936 = vmatmul.msk.f32.gmra.mxu1 %vm652_vm2, %v9658_v59  ;;  %v1569_v52 = vpop.f32.mrf.mxu0 }
 0x1a4   : > { %v6436_v14 = vadd.f32 %v1566_v32, %v1456_v42  ;;  %4970 = vmatmul.msk.f32.gmra.mxu2 %vm652_vm2, %v5146_v33  ;;  %v9670_v32 = vld [vmem:[#allocation52_spill] sm:$0xff]  ;;  %v9673_v42 = vld [vmem:[#allocation47_spill] sm:$0xff] }
 0x1a5   : > { %5004 = vmatmul.msk.f32.gmra.mxu3 %vm652_vm2, %v9664_v60  ;;  %v9674_v33 = vld [vmem:[#allocation55_spill] sm:$0xff] }
 0x1a6   : > { %9663 = vst [vmem:[#allocation44_spill] sm:$0xff] %v6436_v14  ;;  %5038 = vmatmul.msk.f32.gmra.mxu0 %vm652_vm2, %v9666_v56 }
 0x1a7   : > { %v1253_v43 = vpop.f32.mrf.mxu2 }
 0x1a8   : > { %v1409_v34 = vpop.f32.mrf.mxu3  ;;  %v1301_v37 = vadd.f32 %v1253_v43, %v991_v25  ;;  %v993_v61 = vpop.f32.mrf.mxu1 }
 0x1a9   : > { %v994_v44 = vadd.f32 %v993_v61, %v9669_v5  ;;  %v5149_v61 = vld [vmem:[%s5471_s18 + $0xb0] sm:$0xff] }
 0x1aa   : > { %v1457_v12 = vadd.f32 %v1409_v34, %v1301_v37 }
 0x1ab   : > { %4937 = vmatmul.msk.f32.gmra.mxu1 %vm652_vm2, %v9662_v28  ;;  %v1572_v59 = vpop.f32.mrf.mxu0 }
 0x1ac   : > { %v6447_v40 = vadd.f32 %v1569_v52, %v1457_v12  ;;  %4971 = vmatmul.msk.f32.gmra.mxu2 %vm652_vm2, %v5147_v41  ;;  %v9676_v12 = vld [vmem:[#allocation40_spill] sm:$0xff] }
 0x1ad   : > { %5005 = vmatmul.msk.f32.gmra.mxu3 %vm652_vm2, %v9668_v3  ;;  %v9678_v3 = vld [vmem:[#allocation58_spill] sm:$0xff] }
 0x1ae   : > { %9667 = vst [vmem:[#allocation20_spill] sm:$0xff] %v6447_v40  ;;  %5039 = vmatmul.msk.f32.gmra.mxu0 %vm652_vm2, %v9670_v32 }
 0x1af   : > { %v1256_v16 = vpop.f32.mrf.mxu2 }
 0x1b0   : > { %v1412_v1 = vpop.f32.mrf.mxu3  ;;  %v1302_v6 = vadd.f32 %v1256_v16, %v994_v44  ;;  %v996_v48 = vpop.f32.mrf.mxu1 }
 0x1b1   : > { %v997_v52 = vadd.f32 %v996_v48, %v9673_v42  ;;  %v9682_v42 = vld [vmem:[#allocation61_spill] sm:$0xff] }
 0x1b2   : > { %v1458_v28 = vadd.f32 %v1412_v1, %v1302_v6 }
 0x1b3   : > { %4938 = vmatmul.msk.f32.gmra.mxu1 %vm652_vm2, %v9666_v56  ;;  %v1575_v63 = vpop.f32.mrf.mxu0 }
 0x1b4   : > { %v6458_v27 = vadd.f32 %v1572_v59, %v1458_v28  ;;  %4972 = vmatmul.msk.f32.gmra.mxu2 %vm652_vm2, %v5148_v47  ;;  %v9677_v59 = vld [vmem:[#allocation49_spill] sm:$0xff]  ;;  %v5150_v28 = vld [vmem:[%s5471_s18 + $0xc0] sm:$0xff]  ;;  %v9681_v47 = vld [vmem:[#allocation51_spill] sm:$0xff] }
 0x1b5   : > { %5006 = vmatmul.msk.f32.gmra.mxu3 %vm652_vm2, %v9672_v19 }
 0x1b6   : > { %9671 = vst [vmem:[#allocation56_spill] sm:$0xff] %v6458_v27  ;;  %5040 = vmatmul.msk.f32.gmra.mxu0 %vm652_vm2, %v9674_v33 }
 0x1b7   : > { %v1259_v60 = vpop.f32.mrf.mxu2 }
 0x1b8   : > { %v1415_v29 = vpop.f32.mrf.mxu3  ;;  %v1303_v25 = vadd.f32 %v1259_v60, %v997_v52  ;;  %v999_v43 = vpop.f32.mrf.mxu1 }
 0x1b9   : > { %v1000_v41 = vadd.f32 %v999_v43, %v9677_v59  ;;  %v9685_v59 = vld [vmem:[#allocation54_spill] sm:$0xff] }
 0x1ba   : > { %v1459_v56 = vadd.f32 %v1415_v29, %v1303_v25 }
 0x1bb   : > { %4939 = vmatmul.msk.f32.gmra.mxu1 %vm652_vm2, %v9670_v32  ;;  %v1578_v34 = vpop.f32.mrf.mxu0 }
 0x1bc   : > { %v6469_v37 = vadd.f32 %v1575_v63, %v1459_v56  ;;  %4973 = vmatmul.msk.f32.gmra.mxu2 %vm652_vm2, %v5149_v61  ;;  %v9680_v63 = vld [vmem:[#allocation12_spill] sm:$0xff]  ;;  %v5151_v61 = vld [vmem:[%s5471_s18 + $0xc8] sm:$0xff] }
 0x1bd   : > { %5007 = vmatmul.msk.f32.gmra.mxu3 %vm652_vm2, %v9676_v12  ;;  %v9684_v12 = vld [vmem:[#allocation16_spill] sm:$0xff] }
 0x1be   : > { %9675 = vst [vmem:[#allocation46_spill] sm:$0xff] %v6469_v37  ;;  %5041 = vmatmul.msk.f32.gmra.mxu0 %vm652_vm2, %v9678_v3 }
 0x1bf   : > { %v1262_v5 = vpop.f32.mrf.mxu2 }
 0x1c0   : > { %v1418_v44 = vpop.f32.mrf.mxu3  ;;  %v1304_v16 = vadd.f32 %v1262_v5, %v1000_v41  ;;  %v1002_v1 = vpop.f32.mrf.mxu1 }
 0x1c1   : > { %v1003_v19 = vadd.f32 %v1002_v1, %v9681_v47 }
 0x1c2   : > { %v1460_v32 = vadd.f32 %v1418_v44, %v1304_v16 }
 0x1c3   : > { %4940 = vmatmul.msk.f32.gmra.mxu1 %vm652_vm2, %v9674_v33  ;;  %v1581_v6 = vpop.f32.mrf.mxu0  ;;  %v5317_v33 = vmov 0.0  }
 0x1c4   : > { %v6480_v48 = vadd.f32 %v1578_v34, %v1460_v32  ;;  %4974 = vmatmul.msk.f32.gmra.mxu2 %vm652_vm2, %v5150_v28  ;;  %2363 = vst [vmem:[#allocation2] sm:$0xff] %v5317_v33 }
 0x1c5   : > { %5008 = vmatmul.msk.f32.gmra.mxu3 %vm652_vm2, %v9680_v63  ;;  %2364 = vst [vmem:[#allocation2 + $0x8] sm:$0xff] %v5317_v33  ;;  %v9687_v63 = vld [vmem:[#allocation57_spill] sm:$0xff] }
 0x1c6   : > { %9679 = vst [vmem:[#allocation23_spill] sm:$0xff] %v6480_v48  ;;  %5042 = vmatmul.msk.f32.gmra.mxu0 %vm652_vm2, %v9682_v42 }
 0x1c7   : > { %v1265_v52 = vpop.f32.mrf.mxu2  ;;  %2366 = vst [vmem:[#allocation2 + $0x18] sm:$0xff] %v5317_v33 }
 0x1c8   : > { %v1421_v60 = vpop.f32.mrf.mxu3  ;;  %v1305_v29 = vadd.f32 %v1265_v52, %v1003_v19  ;;  %v1005_v25 = vpop.f32.mrf.mxu1  ;;  %2367 = vst [vmem:[#allocation2 + $0x20] sm:$0xff] %v5317_v33 }
 0x1c9   : > { %v1006_v41 = vadd.f32 %v1005_v25, %v9685_v59  ;;  %2378 = vst [vmem:[#allocation2 + $0x30] sm:$0x3] %v5317_v33  ;;  %v5153_v25 = vld [vmem:[%s5471_s18 + $0xe0] sm:$0xff] }
 0x1ca   : > { %v1461_v43 = vadd.f32 %v1421_v60, %v1305_v29  ;;  %2365 = vst [vmem:[#allocation2 + $0x10] sm:$0xf] %v5317_v33 }
 0x1cb   : > { %4941 = vmatmul.msk.f32.gmra.mxu1 %vm652_vm2, %v9678_v3  ;;  %v1584_v56 = vpop.f32.mrf.mxu0  ;;  %2370 = vst [vmem:[#allocation2 + $0x1b0] sm:$0xff] %v5317_v33 }
 0x1cc   : > { %v6495_v34 = vadd.f32 %v1581_v6, %v1461_v43  ;;  %4975 = vmatmul.msk.f32.gmra.mxu2 %vm652_vm2, %v5151_v61  ;;  %2368 = vst [vmem:[#allocation2 + $0x28] sm:$0xf] %v5317_v33  ;;  %v5152_v6 = vld [vmem:[%s5471_s18 + $0xd8] sm:$0xff]  ;;  %v9689_v43 = vld [vmem:[#allocation60_spill] sm:$0xff] }
 0x1cd   : > { %5009 = vmatmul.msk.f32.gmra.mxu3 %vm652_vm2, %v9684_v12  ;;  %2371 = vst [vmem:[#allocation2 + $0x1b8] sm:$0xff] %v5317_v33 }
 0x1ce   : > { %9683 = vst [vmem:[#allocation59_spill] sm:$0xff] %v6495_v34  ;;  %5043 = vmatmul.msk.f32.gmra.mxu0 %vm652_vm2, %v6109_v7 }
 0x1cf   : > { %v1268_v3 = vpop.f32.mrf.mxu2  ;;  %2372 = vst [vmem:[#allocation2 + $0x1c0] sm:$0xf] %v5317_v33 }
 0x1d0   : > { %v1424_v5 = vpop.f32.mrf.mxu3  ;;  %v1306_v44 = vadd.f32 %v1268_v3, %v1006_v41  ;;  %v1008_v16 = vpop.f32.mrf.mxu1  ;;  %2373 = vst [vmem:[#allocation2 + $0x1c8] sm:$0xff] %v5317_v33 }
 0x1d1   : > { %2374 = vst [vmem:[#allocation2 + $0x1d0] sm:$0xff] %v5317_v33  ;;  %v1009_v47 = vadd.f32 %v1008_v16, %v9687_v63 }
 0x1d2   : > { %v1462_v1 = vadd.f32 %v1424_v5, %v1306_v44  ;;  %2375 = vst [vmem:[#allocation2 + $0x1d8] sm:$0xf] %v5317_v33  ;;  %v5154_v5 = vld [vmem:[%s5471_s18 + $0xf0] sm:$0xff] }
 0x1d3   : > { %4942 = vmatmul.msk.f32.gmra.mxu1 %vm652_vm2, %v9682_v42  ;;  %v1587_v28 = vpop.f32.mrf.mxu0  ;;  %2379 = vst [vmem:[#allocation2 + $0x48] sm:$0x3] %v5317_v33 }
 0x1d4   : > { %v6512_v32 = vadd.f32 %v1584_v56, %v1462_v1  ;;  %4976 = vmatmul.msk.f32.gmra.mxu2 %vm652_vm2, %v5152_v6  ;;  %2380 = vst [vmem:[#allocation2 + $0x60] sm:$0x3] %v5317_v33 }
 0x1d5   : > { %5010 = vmatmul.msk.f32.gmra.mxu3 %vm652_vm2, %v5594_v55  ;;  %2381 = vst [vmem:[#allocation2 + $0x78] sm:$0x3] %v5317_v33 }
 0x1d6   : > { %9686 = vst [vmem:[#allocation48_spill] sm:$0xff] %v6512_v32  ;;  %5044 = vmatmul.msk.f32.gmra.mxu0 %vm652_vm2, %v6125_v0  ;;  %v5160_v32 = vld [vmem:[%s5471_s18 + $0x138] sm:$0xff] }
 0x1d7   : > { %v1271_v19 = vpop.f32.mrf.mxu2  ;;  %2382 = vst [vmem:[#allocation2 + $0x90] sm:$0x3] %v5317_v33 }
 0x1d8   : > { %v1427_v42 = vpop.f32.mrf.mxu3  ;;  %v1307_v52 = vadd.f32 %v1271_v19, %v1009_v47  ;;  %v1011_v60 = vpop.f32.mrf.mxu1  ;;  %2383 = vst [vmem:[#allocation2 + $0xa8] sm:$0x3] %v5317_v33  ;;  %v6577_v47 = vld [vmem:[%s9398_s3] ss:$0 sm:$0xff]  ;;  %v5155_v19 = vld [vmem:[%s5471_s18 + $0xf8] sm:$0xff] }
 0x1d9   : > { %2384 = vst [vmem:[#allocation2 + $0xc0] sm:$0x3] %v5317_v33  ;;  %v1012_v56 = vadd.f32 %v1011_v60, %v9689_v43 }
 0x1da   : > { %v1463_v55 = vadd.f32 %v1427_v42, %v1307_v52  ;;  %2385 = vst [vmem:[#allocation2 + $0xd8] sm:$0x3] %v5317_v33 }
 0x1db   : > { %4943 = vmatmul.msk.f32.gmra.mxu1 %vm652_vm2, %v6109_v7  ;;  %v1590_v61 = vpop.f32.mrf.mxu0  ;;  %2386 = vst [vmem:[#allocation2 + $0xf0] sm:$0x3] %v5317_v33 }
 0x1dc   : > { %v6531_v29 = vadd.f32 %v1587_v28, %v1463_v55  ;;  %4977 = vmatmul.msk.f32.gmra.mxu2 %vm652_vm2, %v5153_v25  ;;  %2387 = vst [vmem:[#allocation2 + $0x108] sm:$0x3] %v5317_v33 }
 0x1dd   : > { %5011 = vmatmul.msk.f32.gmra.mxu3 %vm652_vm2, %v5627_v2  ;;  %2388 = vst [vmem:[#allocation2 + $0x120] sm:$0x3] %v5317_v33 }
 0x1de   : > { %9688 = vst [vmem:[#allocation27_spill] sm:$0xff] %v6531_v29  ;;  %5045 = vmatmul.msk.f32.gmra.mxu0 %vm652_vm2, %v6140_v23 }
 0x1df   : > { %v1274_v7 = vpop.f32.mrf.mxu2  ;;  %2389 = vst [vmem:[#allocation2 + $0x138] sm:$0x3] %v5317_v33 }
 0x1e0   : > { %v1430_v12 = vpop.f32.mrf.mxu3  ;;  %v1308_v59 = vadd.f32 %v1274_v7, %v1012_v56  ;;  %v1656_v41 = vpop.f32.mrf.mxu1  ;;  %2390 = vst [vmem:[#allocation2 + $0x150] sm:$0x3] %v5317_v33  ;;  %v5156_v7 = vld [vmem:[%s5471_s18 + $0x108] sm:$0xff] }
 0x1e1   : > { %2391 = vst [vmem:[#allocation2 + $0x168] sm:$0x3] %v5317_v33  ;;  %v1752_v44 = vadd.f32 %v1656_v41, %v6113_v18  ;;  %v6568_v18 = vld [vmem:[%s9397_s2] ss:$0 sm:$0xff] }
 0x1e2   : > { %v1464_v2 = vadd.f32 %v1430_v12, %v1308_v59  ;;  %2392 = vst [vmem:[#allocation2 + $0x180] sm:$0x3] %v5317_v33  ;;  %v2449_v12 = vld [vmem:[#allocation2 + $0x2] sm:$0xff] }
 0x1e3   : > { %4944 = vmatmul.msk.f32.gmra.mxu1 %vm652_vm2, %v6125_v0  ;;  %2393 = vst [vmem:[#allocation2 + $0x198] sm:$0x3] %v5317_v33 }
 0x1e4   : > { %v6550_v3 = vadd.f32 %v1590_v61, %v1464_v2  ;;  %4978 = vmatmul.msk.f32.gmra.mxu2 %vm652_vm2, %v5154_v5  ;;  %2398 = vst [vmem:[#allocation2 + $0x42] sm:$0x3] %v5317_v33  ;;  %v6604_v61 = vld [vmem:[%s9399_s4] ss:$0 sm:$0xff]  ;;  %v6626_v5 = vld [vmem:[%s9399_s4 + $0x1] ss:$0 sm:$0xff] }
 0x1e5   : > { %5012 = vmatmul.msk.f32.gmra.mxu3 %vm652_vm2, %v5682_v49  ;;  %2399 = vst [vmem:[#allocation2 + $0x5a] sm:$0x3] %v5317_v33  ;;  %v2131_v49 = vpop.f32.mrf.mxu0  ;;  %v2451_v2 = vld [vmem:[#allocation2 + $0x1a] sm:$0xff] }
 0x1e6   : > { %9690 = vst [vmem:[#allocation43_spill] sm:$0xff] %v6550_v3  ;;  %5046 = vmatmul.msk.f32.gmra.mxu0 %vm652_vm2, %v6156_v26 }
 0x1e7   : > { %v1812_v0 = vpop.f32.mrf.mxu2  ;;  %2400 = vst [vmem:[#allocation2 + $0x72] sm:$0x3] %v5317_v33 }
 0x1e8   : > { %v1972_v16 = vpop.f32.mrf.mxu3  ;;  %v1908_v1 = vadd.f32 %v1812_v0, %v1752_v44  ;;  %v1659_v6 = vpop.f32.mrf.mxu1  ;;  %2401 = vst [vmem:[#allocation2 + $0x8a] sm:$0x3] %v5317_v33 }
 0x1e9   : > { %2402 = vst [vmem:[#allocation2 + $0xa2] sm:$0x3] %v5317_v33  ;;  %v1753_v42 = vadd.f32 %v1659_v6, %v6129_v22  ;;  %v2485_v6 = vmul.f32 %v6604_v61, %v2451_v2 }
 0x1ea   : > { %v2068_v28 = vadd.f32 %v1972_v16, %v1908_v1  ;;  %2403 = vst [vmem:[#allocation2 + $0xba] sm:$0x3] %v5317_v33 }
 0x1eb   : > { %4945 = vmatmul.msk.f32.gmra.mxu1 %vm652_vm2, %v6140_v23  ;;  %2404 = vst [vmem:[#allocation2 + $0xd2] sm:$0x3] %v5317_v33 }
 0x1ec   : > { %v2227_v63 = vadd.f32 %v2131_v49, %v2068_v28  ;;  %4979 = vmatmul.msk.f32.gmra.mxu2 %vm652_vm2, %v5155_v19  ;;  %2405 = vst [vmem:[#allocation2 + $0xea] sm:$0x3] %v5317_v33 }
 0x1ed   : > { %5013 = vmatmul.msk.f32.gmra.mxu3 %vm652_vm2, %v5727_v58  ;;  %2406 = vst [vmem:[#allocation2 + $0x102] sm:$0x3] %v5317_v33  ;;  %v2134_v56 = vpop.f32.mrf.mxu0 }
 0x1ee   : > { %v2263_v23 = vmul.f32 %v6568_v18, %v2227_v63  ;;  %5047 = vmatmul.msk.f32.gmra.mxu0 %vm652_vm2, %v6171_v10  ;;  %2407 = vst [vmem:[#allocation2 + $0x11a] sm:$0x3] %v5317_v33  ;;  %v2586_v63 = vmul.f32 %v6626_v5, %v2451_v2 }
 0x1ef   : > { %v1815_v52 = vpop.f32.mrf.mxu2  ;;  %2408 = vst [vmem:[#allocation2 + $0x132] sm:$0x3] %v5317_v33 }
 0x1f0   : > { %v1975_v60 = vpop.f32.mrf.mxu3  ;;  %v2299_v55 = vadd.f32 %v6577_v47, %v2263_v23  ;;  %v1909_v58 = vadd.f32 %v1815_v52, %v1753_v42  ;;  %2409 = vst [vmem:[#allocation2 + $0x14a] sm:$0x3] %v5317_v33  ;;  %v1662_v22 = vpop.f32.mrf.mxu1  ;;  %v6642_v42 = vld [vmem:[%s9399_s4 + $0x2] ss:$0 sm:$0xff]  ;;  %v2450_v23 = vld [vmem:[#allocation2 + $0xa] sm:$0xff] }
 0x1f1   : > { %2410 = vst [vmem:[#allocation2 + $0x162] sm:$0x3] %v5317_v33  ;;  %v1754_v41 = vadd.f32 %v1662_v22, %v6144_v46  ;;  %v9691_v22 = vld [vmem:[#allocation62_spill] sm:$0xff] }
 0x1f2   : > { %v6594_v25 = vmax.f32 %v2299_v55, 0.0  ;;  %v2069_v43 = vadd.f32 %v1975_v60, %v1909_v58  ;;  %2411 = vst [vmem:[#allocation2 + $0x17a] sm:$0x3] %v5317_v33  ;;  %v5157_v60 = vld [vmem:[%s5471_s18 + $0x110] sm:$0xff]  ;;  %v2452_v58 = vld [vmem:[#allocation2 + $0x22] sm:$0xff] }
 0x1f3   : > { %4946 = vmatmul.msk.f32.gmra.mxu1 %vm652_vm2, %v6156_v26  ;;  %2412 = vst [vmem:[#allocation2 + $0x192] sm:$0x3] %v5317_v33  ;;  %v6618_v26 = vld [vmem:[%s9400_s5] ss:$0 sm:$0xff] }
 0x1f4   : > { %2417 = vst [vmem:[#allocation2 + $0x32] sm:$0xff] %v6594_v25  ;;  %4980 = vmatmul.msk.f32.gmra.mxu2 %vm652_vm2, %v5156_v7  ;;  %v2228_v59 = vadd.f32 %v2134_v56, %v2069_v43  ;;  %v2521_v55 = vadd.f32 %v6618_v26, %v2485_v6  ;;  %v2487_v7 = vmul.f32 %v6604_v61, %v6594_v25 }
 0x1f5   : > { %5014 = vmatmul.msk.f32.gmra.mxu3 %vm652_vm2, %v9607_v17  ;;  %2413 = vst [vmem:[#allocation2 + $0x1aa] sm:$0x3] %v5317_v33  ;;  %v2483_v17 = vmul.f32 %v6604_v61, %v2449_v12  ;;  %v2137_v19 = vpop.f32.mrf.mxu0  ;;  %v2588_v12 = vmul.f32 %v6626_v5, %v6594_v25  ;;  %v2684_v2 = vmul.f32 %v6642_v42, %v6594_v25 }
 0x1f6   : > { %5048 = vmatmul.msk.f32.gmra.mxu0 %vm652_vm2, %v6187_v57  ;;  %3408 = vst [vmem:[#allocation3] sm:$0x3] %v5317_v33  ;;  %v2264_v0 = vmul.f32 %v6568_v18, %v2228_v59 }
 0x1f7   : > { %3409 = vst [vmem:[#allocation3 + $0x18] sm:$0x3] %v5317_v33  ;;  %v1818_v44 = vpop.f32.mrf.mxu2  ;;  %v2519_v28 = vadd.f32 %v6618_v26, %v2483_v17 }
 0x1f8   : > { %3410 = vst [vmem:[#allocation3 + $0x30] sm:$0x3] %v5317_v33  ;;  %v1910_v16 = vadd.f32 %v1818_v44, %v1754_v41  ;;  %v1665_v1 = vpop.f32.mrf.mxu1  ;;  %v1978_v46 = vpop.f32.mrf.mxu3 }
 0x1f9   : > { %3411 = vst [vmem:[#allocation3 + $0x48] sm:$0x3] %v5317_v33  ;;  %v1755_v43 = vadd.f32 %v1665_v1, %v9691_v22  ;;  %v2618_v59 = vadd.f32 %v2586_v63, %v2519_v28  ;;  %v2587_v63 = vmul.f32 %v6626_v5, %v2452_v58 }
 0x1fa   : > { %3412 = vst [vmem:[#allocation3 + $0x60] sm:$0x3] %v5317_v33  ;;  %v2070_v49 = vadd.f32 %v1978_v46, %v1910_v16  ;;  %v2486_v16 = vmul.f32 %v6604_v61, %v2452_v58 }
 0x1fb   : > { %4947 = vmatmul.msk.f32.gmra.mxu1 %vm652_vm2, %v6171_v10  ;;  %3413 = vst [vmem:[#allocation3 + $0x78] sm:$0x3] %v5317_v33  ;;  %v2300_v10 = vadd.f32 %v6577_v47, %v2264_v0 }
 0x1fc   : > { %3414 = vst [vmem:[#allocation3 + $0x90] sm:$0x3] %v5317_v33  ;;  %v2229_v52 = vadd.f32 %v2137_v19, %v2070_v49  ;;  %4981 = vmatmul.msk.f32.gmra.mxu2 %vm652_vm2, %v5157_v60  ;;  %v2523_v49 = vadd.f32 %v6618_v26, %v2487_v7  ;;  %v2522_v58 = vadd.f32 %v6618_v26, %v2486_v16 }
 0x1fd   : > { %3415 = vst [vmem:[#allocation3 + $0xa8] sm:$0x3] %v5317_v33  ;;  %5015 = vmatmul.msk.f32.gmra.mxu3 %vm652_vm2, %v5819_v13  ;;  %v2484_v13 = vmul.f32 %v6604_v61, %v2450_v23  ;;  %v6666_v17 = vmax.f32 %v2300_v10, 0.0  ;;  %v6683_v10 = vld [vmem:[%s9399_s4 + $0x3] ss:$0 sm:$0xff]  ;;  %v2620_v23 = vadd.f32 %v2588_v12, %v2521_v55  ;;  %v9692_v12 = vld [vmem:[#allocation29_spill] sm:$0xff] }
 0x1fe   : > { %3416 = vst [vmem:[#allocation3 + $0xc0] sm:$0x3] %v5317_v33  ;;  %v2265_v56 = vmul.f32 %v6568_v18, %v2229_v52  ;;  %5049 = vmatmul.msk.f32.gmra.mxu0 %vm652_vm2, %v6202_v51  ;;  %v2716_v52 = vadd.f32 %v2684_v2, %v2618_v59 }
 0x1ff   : > { %3417 = vst [vmem:[#allocation3 + $0xd8] sm:$0x3] %v5317_v33  ;;  %v1821_v41 = vpop.f32.mrf.mxu2  ;;  %v2520_v28 = vadd.f32 %v6618_v26, %v2484_v13  ;;  %v2488_v60 = vmul.f32 %v6604_v61, %v6666_v17  ;;  %v2589_v7 = vmul.f32 %v6626_v5, %v6666_v17 }
 0x200   : > { %3418 = vst [vmem:[#allocation3 + $0xf0] sm:$0x3] %v5317_v33  ;;  %v2301_v44 = vadd.f32 %v6577_v47, %v2265_v56  ;;  %v1911_v0 = vadd.f32 %v1821_v41, %v1755_v43  ;;  %v1668_v1 = vpop.f32.mrf.mxu1  ;;  %v1981_v46 = vpop.f32.mrf.mxu3  ;;  %v5158_v41 = vld [vmem:[%s5471_s18 + $0x120] sm:$0xff] }
 0x201   : > { %3419 = vst [vmem:[#allocation3 + $0x108] sm:$0x3] %v5317_v33  ;;  %v1756_v59 = vadd.f32 %v1668_v1, %v9692_v12  ;;  %v2619_v2 = vadd.f32 %v2587_v63, %v2520_v28  ;;  %v2685_v1 = vmul.f32 %v6642_v42, %v6666_v17 }
 0x202   : > { %3420 = vst [vmem:[#allocation3 + $0x120] sm:$0x3] %v5317_v33  ;;  %v2071_v6 = vadd.f32 %v1981_v46, %v1911_v0  ;;  %v6678_v19 = vmax.f32 %v2301_v44, 0.0 }
 0x203   : > { %4948 = vmatmul.msk.f32.gmra.mxu1 %vm652_vm2, %v6187_v57  ;;  %3421 = vst [vmem:[#allocation3 + $0x138] sm:$0x3] %v5317_v33  ;;  %v2140_v57 = vpop.f32.mrf.mxu0 }
 0x204   : > { %3422 = vst [vmem:[#allocation3 + $0x150] sm:$0x3] %v5317_v33  ;;  %v2230_v22 = vadd.f32 %v2140_v57, %v2071_v6  ;;  %v2590_v43 = vmul.f32 %v6626_v5, %v6678_v19  ;;  %v2686_v56 = vmul.f32 %v6642_v42, %v6678_v19  ;;  %v2783_v55 = vmul.f32 %v6683_v10, %v6678_v19 }
 0x205   : > { %3423 = vst [vmem:[#allocation3 + $0x168] sm:$0x3] %v5317_v33  ;;  %4982 = vmatmul.msk.f32.gmra.mxu2 %vm652_vm2, %v5158_v41  ;;  %5016 = vmatmul.msk.f32.gmra.mxu3 %vm652_vm2, %v9613_v35 }
 0x206   : > { %3424 = vst [vmem:[#allocation3 + $0x12] sm:$0x3] %v5317_v33  ;;  %v2266_v13 = vmul.f32 %v6568_v18, %v2230_v22  ;;  %v6706_v44 = vadd.f32 %v2590_v43, %v2523_v49  ;;  %v6708_v0 = vadd.f32 %v2686_v56, %v2620_v23  ;;  %v6710_v16 = vadd.f32 %v2783_v55, %v2716_v52  ;;  %v9693_v22 = vld [vmem:[#allocation10_spill] sm:$0xff] }
 0x207   : > { %3425 = vst [vmem:[#allocation3 + $0x2a] sm:$0x3] %v5317_v33  ;;  %v1824_v46 = vpop.f32.mrf.mxu2  ;;  %5050 = vmatmul.msk.f32.gmra.mxu0 %vm652_vm2, %v9693_v22  ;;  %v2524_v23 = vadd.f32 %v6618_v26, %v2488_v60  ;;  %v2621_v52 = vadd.f32 %v2589_v7, %v2522_v58  ;;  %v2717_v56 = vadd.f32 %v2685_v1, %v2619_v2  ;;  %v9695_v1 = vld [vmem:[#allocation17_spill] sm:$0xff] }
 0x208   : > { %3426 = vst [vmem:[#allocation3 + $0x42] sm:$0x3] %v5317_v33  ;;  %v2302_v6 = vadd.f32 %v6577_v47, %v2266_v13  ;;  %v1912_v57 = vadd.f32 %v1824_v46, %v1756_v59  ;;  %v1671_v35 = vpop.f32.mrf.mxu1  ;;  %v1984_v49 = vpop.f32.mrf.mxu3  ;;  %v9694_v13 = vld [vmem:[#allocation37_spill] sm:$0xff]  ;;  %v5159_v46 = vld [vmem:[%s5471_s18 + $0x128] sm:$0xff] }
 0x209   : > { %3427 = vst [vmem:[#allocation3 + $0x5a] sm:$0x3] %v5317_v33  ;;  %v1757_v41 = vadd.f32 %v1671_v35, %v9694_v13  ;;  %v2946_v35 = vld [vmem:[#allocation2 + $0x30] sm:$0xff] }
 0x20a   : > { %3428 = vst [vmem:[#allocation3 + $0x72] sm:$0x3] %v5317_v33  ;;  %v6722_v28 = vmax.f32 %v2302_v6, 0.0  ;;  %v2072_v63 = vadd.f32 %v1984_v49, %v1912_v57  ;;  %v6751_v57 = vld [vmem:[%s9403_s8] ss:$0 sm:$0xff] }
 0x20b   : > { %4949 = vmatmul.msk.f32.gmra.mxu1 %vm652_vm2, %v6202_v51  ;;  %3429 = vst [vmem:[#allocation3 + $0x8a] sm:$0x3] %v5317_v33  ;;  %v2143_v43 = vpop.f32.mrf.mxu0 }
 0x20c   : > { %3430 = vst [vmem:[#allocation3 + $0xa2] sm:$0x3] %v5317_v33  ;;  %v2591_v55 = vmul.f32 %v6626_v5, %v6722_v28  ;;  %v2687_v51 = vmul.f32 %v6642_v42, %v6722_v28  ;;  %v2784_v12 = vmul.f32 %v6683_v10, %v6722_v28  ;;  %v2231_v59 = vadd.f32 %v2143_v43, %v2072_v63  ;;  %v6766_v43 = vld [vmem:[%s9399_s4 + $0x4] ss:$0 sm:$0xff] }
 0x20d   : > { %3431 = vst [vmem:[#allocation3 + $0xba] sm:$0x3] %v5317_v33  ;;  %4983 = vmatmul.msk.f32.gmra.mxu2 %vm652_vm2, %v5159_v46  ;;  %5017 = vmatmul.msk.f32.gmra.mxu3 %vm652_vm2, %v9695_v1  ;;  %v2489_v63 = vmul.f32 %v6604_v61, %v6678_v19 }
 0x20e   : > { %3432 = vst [vmem:[#allocation3 + $0xd2] sm:$0x3] %v5317_v33  ;;  %v6735_v60 = vadd.f32 %v2591_v55, %v2524_v23  ;;  %v6737_v58 = vadd.f32 %v2687_v51, %v2621_v52  ;;  %v6739_v7 = vadd.f32 %v2784_v12, %v2717_v56  ;;  %v2267_v2 = vmul.f32 %v6568_v18, %v2231_v59 }
 0x20f   : > { %3433 = vst [vmem:[#allocation3 + $0xea] sm:$0x3] %v5317_v33  ;;  %v1827_v6 = vpop.f32.mrf.mxu2  ;;  %5051 = vmatmul.msk.f32.gmra.mxu0 %vm652_vm2, %v6233_v39  ;;  %v2980_v59 = vmul.f32 %v6751_v57, %v2946_v35 }
 0x210   : > { %3434 = vst [vmem:[#allocation3 + $0x102] sm:$0x3] %v5317_v33  ;;  %v1913_v49 = vadd.f32 %v1827_v6, %v1757_v41  ;;  %v2303_v23 = vadd.f32 %v6577_v47, %v2267_v2  ;;  %v1987_v52 = vpop.f32.mrf.mxu3  ;;  %v1674_v51 = vpop.f32.mrf.mxu1  ;;  %v6781_v41 = vld [vmem:[%s9405_s10] ss:$0 sm:$0xff]  ;;  %v2525_v2 = vadd.f32 %v6618_v26, %v2489_v63  ;;  %v6797_v63 = vld [vmem:[%s9403_s8 + $0x1] ss:$0 sm:$0xff] }
 0x211   : > { %3435 = vst [vmem:[#allocation3 + $0x11a] sm:$0x3] %v5317_v33 }
 0x212   : > { %3436 = vst [vmem:[#allocation3 + $0x132] sm:$0x3] %v5317_v33  ;;  %v2073_v56 = vadd.f32 %v1987_v52, %v1913_v49  ;;  %v6769_v55 = vmax.f32 %v2303_v23, 0.0  ;;  %v9697_v49 = vld [vmem:[#allocation33_spill] sm:$0xff]  ;;  %v2490_v52 = vmul.f32 %v6604_v61, %v6722_v28 }
 0x213   : > { %4950 = vmatmul.msk.f32.gmra.mxu1 %vm652_vm2, %v9693_v22  ;;  %3437 = vst [vmem:[#allocation3 + $0x14a] sm:$0x3] %v5317_v33  ;;  %v2146_v12 = vpop.f32.mrf.mxu0  ;;  %v6776_v22 = vld [vmem:[%s9404_s9] ss:$0 sm:$0xff]  ;;  %v1758_v35 = vadd.f32 %v1674_v51, %v9697_v49  ;;  %v3048_v51 = vld [vmem:[#allocation2 + $0x31] sm:$0xff] }
 0x214   : > { %3438 = vst [vmem:[#allocation3 + $0x162] sm:$0x3] %v5317_v33  ;;  %v2232_v13 = vadd.f32 %v2146_v12, %v2073_v56  ;;  %v2592_v46 = vmul.f32 %v6626_v5, %v6769_v55  ;;  %v2785_v1 = vmul.f32 %v6683_v10, %v6769_v55  ;;  %v2882_v6 = vmul.f32 %v6766_v43, %v6769_v55 }
 0x215   : > { %3439 = vst [vmem:[#allocation3 + $0x17a] sm:$0x3] %v5317_v33  ;;  %v2688_v33 = vmul.f32 %v6642_v42, %v6769_v55  ;;  %4984 = vmatmul.msk.f32.gmra.mxu2 %vm652_vm2, %v5160_v32  ;;  %5018 = vmatmul.msk.f32.gmra.mxu3 %vm652_vm2, %v9621_v21  ;;  %v6831_v21 = vld [vmem:[%s9405_s10 + $0x1] ss:$0 sm:$0xff] }
 0x216   : > { %9696 = vst [vmem:[#allocation50_spill] sm:$0xff] %v6776_v22  ;;  %v2268_v23 = vmul.f32 %v6568_v18, %v2232_v13  ;;  %v6801_v56 = vadd.f32 %v2592_v46, %v2525_v2  ;;  %v6807_v3 = vadd.f32 %v2785_v1, %v6708_v0  ;;  %v6810_v13 = vadd.f32 %v2882_v6, %v6710_v16  ;;  %v6822_v0 = vld [vmem:[%s9406_s11] ss:$0 sm:$0xff]  ;;  %v6839_v1 = vld [vmem:[%s9403_s8 + $0x2] ss:$0 sm:$0xff] }
 0x217   : > { %9698 = vst [vmem:[#allocation31_spill] sm:$0xff] %v6797_v63  ;;  %v6804_v12 = vadd.f32 %v2688_v33, %v6706_v44  ;;  %v1830_v29 = vpop.f32.mrf.mxu2  ;;  %v3016_v44 = vadd.f32 %v6776_v22, %v2980_v59  ;;  %v4042_v46 = vmul.f32 0.0, %v6781_v41  ;;  %v9700_v33 = vld [vmem:[#allocation11_spill] sm:$0xff]  ;;  %v3082_v59 = vmul.f32 %v6797_v63, %v3048_v51 }
 0x218   : > { %v2304_v49 = vadd.f32 %v6577_v47, %v2268_v23  ;;  %v1914_v2 = vadd.f32 %v1830_v29, %v1758_v35  ;;  %9699 = vst [vmem:[#allocation45_spill] sm:$0xff] %v6822_v0  ;;  %v1990_v16 = vpop.f32.mrf.mxu3  ;;  %5052 = vmatmul.msk.f32.gmra.mxu0 %vm652_vm2, %v9700_v33  ;;  %v2526_v6 = vadd.f32 %v6618_v26, %v2490_v52  ;;  %v4145_v34 = vmul.f32 0.0, %v6831_v21 }
 0x219   : > { %9701 = vst [vmem:[#allocation52_spill] sm:$0xff] %v6839_v1 }
 0x21a   : > { %v6833_v32 = vmax.f32 %v2304_v49, 0.0  ;;  %v2074_v29 = vadd.f32 %v1990_v16, %v1914_v2  ;;  %2418 = vst [vmem:[#allocation2 + $0x3a] sm:$0xff] %v6666_v17  ;;  %v3114_v49 = vadd.f32 %v3082_v59, %v3016_v44  ;;  %v6851_v2 = vadd.f32 %v6822_v0, %v4042_v46  ;;  %v6871_v59 = vld [vmem:[%s9403_s8 + $0x3] ss:$0 sm:$0xff] }
 0x21b   : > { %4951 = vmatmul.msk.f32.gmra.mxu1 %vm652_vm2, %v6233_v39  ;;  %v2149_v39 = vpop.f32.mrf.mxu0  ;;  %2419 = vst [vmem:[#allocation2 + $0x4a] sm:$0xff] %v6678_v19  ;;  %v3148_v46 = vmul.f32 %v6839_v1, %v6594_v25  ;;  %v5161_v25 = vld [vmem:[%s5471_s18 + $0x140] sm:$0xff] }
 0x21c   : > { %v2593_v35 = vmul.f32 %v6626_v5, %v6833_v32  ;;  %v2689_v23 = vmul.f32 %v6642_v42, %v6833_v32  ;;  %v2786_v51 = vmul.f32 %v6683_v10, %v6833_v32  ;;  %2420 = vst [vmem:[#allocation2 + $0x52] sm:$0xff] %v6722_v28  ;;  %v2883_v16 = vmul.f32 %v6766_v43, %v6833_v32 }
 0x21d   : > { %v2233_v52 = vadd.f32 %v2149_v39, %v2074_v29  ;;  %2421 = vst [vmem:[#allocation2 + $0x62] sm:$0xff] %v6769_v55  ;;  %v2491_v29 = vmul.f32 %v6604_v61, %v6769_v55  ;;  %4985 = vmatmul.msk.f32.gmra.mxu2 %vm652_vm2, %v5161_v25  ;;  %v6903_v25 = vadd.f32 %v4145_v34, %v6851_v2  ;;  %v6919_v34 = vld [vmem:[%s9405_s10 + $0x2] ss:$0 sm:$0xff] }
 0x21e   : > { %v6858_v48 = vadd.f32 %v2593_v35, %v2526_v6  ;;  %v6861_v37 = vadd.f32 %v2689_v23, %v6735_v60  ;;  %v6864_v44 = vadd.f32 %v2786_v51, %v6737_v58  ;;  %9705 = vst [vmem:[#allocation40_spill] sm:$0xff] %v6871_v59  ;;  %v6877_v39 = vadd.f32 %v2883_v16, %v6739_v7  ;;  %v1677_v60 = vpop.f32.mrf.mxu1  ;;  %v9706_v35 = vld [vmem:[#allocation24_spill] sm:$0xff]  ;;  %v6890_v7 = vld [vmem:[%s9403_s8 + $0x4] ss:$0 sm:$0xff] }
 0x21f   : > { %3440 = vst [vmem:[#allocation3 + $0x2] sm:$0xff] %v6810_v13  ;;  %v2269_v58 = vmul.f32 %v6568_v18, %v2233_v52  ;;  %v3149_v6 = vmul.f32 %v6839_v1, %v6666_v17  ;;  %5019 = vmatmul.msk.f32.gmra.mxu3 %vm652_vm2, %v9706_v35  ;;  %v3180_v23 = vadd.f32 %v3148_v46, %v3114_v49  ;;  %v1833_v16 = vpop.f32.mrf.mxu2  ;;  %v9708_v35 = vld [vmem:[#allocation39_spill] sm:$0xff] }
 0x220   : > { %9702 = vst [vmem:[#allocation36_spill] sm:$0xff] %v6858_v48  ;;  %v6894_v51 = vmul.f32 %v6839_v1, %v6678_v19  ;;  %5053 = vmatmul.msk.f32.gmra.mxu0 %vm652_vm2, %v6264_v20  ;;  %v6907_v19 = vmul.f32 %v6839_v1, %v6722_v28  ;;  %v1759_v27 = vadd.f32 %v1677_v60, %v9708_v35 }
 0x221   : > { %9703 = vst [vmem:[#allocation47_spill] sm:$0xff] %v6861_v37  ;;  %v2305_v17 = vadd.f32 %v6577_v47, %v2269_v58  ;;  %v2947_v49 = vld [vmem:[#allocation2 + $0x38] sm:$0xff]  ;;  %v6911_v58 = vmul.f32 %v6839_v1, %v6769_v55  ;;  %v6922_v28 = vadd.f32 %v6618_v26, %v2491_v29 }
 0x222   : > { %9704 = vst [vmem:[#allocation55_spill] sm:$0xff] %v6864_v44  ;;  %v3049_v52 = vld [vmem:[#allocation2 + $0x39] sm:$0xff]  ;;  %v3050_v35 = vld [vmem:[#allocation2 + $0x49] sm:$0xff]  ;;  %v6932_v36 = vadd.f32 %v1833_v16, %v1759_v27 }
 0x223   : > { %2422 = vst [vmem:[#allocation2 + $0x6a] sm:$0xff] %v6833_v32  ;;  %4952 = vmatmul.msk.f32.gmra.mxu1 %vm652_vm2, %v9700_v33  ;;  %v3212_v46 = vld [vmem:[#allocation2 + $0x33] sm:$0xff]  ;;  %v2981_v33 = vmul.f32 %v6751_v57, %v2947_v49  ;;  %v3213_v40 = vld [vmem:[#allocation2 + $0x3b] sm:$0xff]  ;;  %v6924_v62 = vmax.f32 %v2305_v17, 0.0  ;;  %v3083_v55 = vmul.f32 %v6797_v63, %v3049_v52  ;;  %v2948_v49 = vld [vmem:[#allocation2 + $0x48] sm:$0xff]  ;;  %v3084_v11 = vmul.f32 %v6797_v63, %v3050_v35 }
 0x224   : > { %9707 = vst [vmem:[#allocation49_spill] sm:$0xff] %v6890_v7  ;;  %v3246_v14 = vmul.f32 %v6871_v59, %v3212_v46  ;;  %v3310_v24 = vld [vmem:[#allocation2 + $0x34] sm:$0xff]  ;;  %v3311_v45 = vld [vmem:[#allocation2 + $0x3c] sm:$0xff]  ;;  %v3247_v60 = vmul.f32 %v6871_v59, %v3213_v40  ;;  %v6930_v46 = vmul.f32 %v6839_v1, %v6833_v32  ;;  %v2982_v17 = vmul.f32 %v6751_v57, %v2948_v49  ;;  %v3214_v52 = vld [vmem:[#allocation2 + $0x4b] sm:$0xff] }
 0x225   : > { %3441 = vst [vmem:[#allocation3 + $0xa] sm:$0xff] %v6877_v39  ;;  %v2949_v38 = vld [vmem:[#allocation2 + $0x50] sm:$0xff]  ;;  %v3017_v9 = vadd.f32 %v6776_v22, %v2981_v33  ;;  %v3344_v29 = vmul.f32 %v6890_v7, %v3310_v24  ;;  %v3345_v40 = vmul.f32 %v6890_v7, %v3311_v45  ;;  %v2950_v33 = vld [vmem:[#allocation2 + $0x60] sm:$0xff]  ;;  %v3248_v49 = vmul.f32 %v6871_v59, %v3214_v52 }
 0x226   : > { %v3278_v54 = vadd.f32 %v3246_v14, %v3180_v23  ;;  %v3051_v31 = vld [vmem:[#allocation2 + $0x51] sm:$0xff]  ;;  %2423 = vst [vmem:[#allocation2 + $0x7a] sm:$0xff] %v6924_v62  ;;  %v2983_v27 = vmul.f32 %v6751_v57, %v2949_v38  ;;  %v3018_v24 = vadd.f32 %v6776_v22, %v2982_v17  ;;  %v3052_v15 = vld [vmem:[#allocation2 + $0x61] sm:$0xff]  ;;  %v2984_v48 = vmul.f32 %v6751_v57, %v2950_v33 }
 0x227   : > { %v3215_v8 = vld [vmem:[#allocation2 + $0x53] sm:$0xff]  ;;  %v3085_v16 = vmul.f32 %v6797_v63, %v3051_v31  ;;  %v3115_v14 = vadd.f32 %v3083_v55, %v3017_v9  ;;  %v3086_v38 = vmul.f32 %v6797_v63, %v3052_v15  ;;  %5020 = vmatmul.msk.f32.gmra.mxu3 %vm652_vm2, %v9629_v50 }
 0x228   : > { %v3376_v23 = vadd.f32 %v3344_v29, %v3278_v54  ;;  %v3019_v44 = vadd.f32 %v6776_v22, %v2983_v27  ;;  %v3249_v45 = vmul.f32 %v6871_v59, %v3215_v8  ;;  %v3312_v37 = vld [vmem:[#allocation2 + $0x4c] sm:$0xff]  ;;  %v3313_v35 = vld [vmem:[#allocation2 + $0x54] sm:$0xff]  ;;  %v3116_v8 = vadd.f32 %v3084_v11, %v3018_v24  ;;  %5054 = vmatmul.msk.f32.gmra.mxu0 %vm652_vm2, %v9709_v53 }
 0x229   : > { %v5162_v31 = vld [vmem:[%s5471_s18 + $0x150] sm:$0xff]  ;;  %v3181_v54 = vadd.f32 %v3149_v6, %v3115_v14  ;;  %v3020_v52 = vadd.f32 %v6776_v22, %v2984_v48 }
 0x22a   : > { %v2951_v1 = vld [vmem:[#allocation2 + $0x68] sm:$0xff]  ;;  %4986 = vmatmul.msk.f32.gmra.mxu2 %vm652_vm2, %v5162_v31  ;;  %v4046_v9 = vmul.f32 %v6781_v41, %v3376_v23  ;;  %v4147_v55 = vmul.f32 %v6831_v21, %v3376_v23  ;;  %v4243_v29 = vmul.f32 %v6919_v34, %v3376_v23  ;;  %v3117_v17 = vadd.f32 %v3085_v16, %v3019_v44 }
 0x22b   : > { %v2985_v27 = vmul.f32 %v6751_v57, %v2951_v1  ;;  %v3053_v15 = vld [vmem:[#allocation2 + $0x69] sm:$0xff]  ;;  %4953 = vmatmul.msk.f32.gmra.mxu1 %vm652_vm2, %v6264_v20  ;;  %v3279_v6 = vadd.f32 %v3247_v60, %v3181_v54  ;;  %v3346_v31 = vmul.f32 %v6890_v7, %v3312_v37  ;;  %v3347_v23 = vmul.f32 %v6890_v7, %v3313_v35 }
 0x22c   : > { %v3216_v33 = vld [vmem:[#allocation2 + $0x63] sm:$0xff]  ;;  %v4082_v14 = vadd.f32 %v6822_v0, %v4046_v9  ;;  %v3182_v50 = vadd.f32 %v6894_v51, %v3116_v8  ;;  %v3183_v11 = vadd.f32 %v6907_v19, %v3117_v17  ;;  %v3118_v48 = vadd.f32 %v3086_v38, %v3020_v52  ;;  %v3217_v16 = vld [vmem:[#allocation2 + $0x6b] sm:$0xff] }
 0x22d   : > { %v3021_v1 = vadd.f32 %v6776_v22, %v2985_v27  ;;  %v3377_v44 = vadd.f32 %v3345_v40, %v3279_v6  ;;  %v4179_v20 = vadd.f32 %v4147_v55, %v6851_v2  ;;  %v3087_v60 = vmul.f32 %v6797_v63, %v3053_v15  ;;  %v3314_v24 = vld [vmem:[#allocation2 + $0x64] sm:$0xff]  ;;  %v3315_v19 = vld [vmem:[#allocation2 + $0x6c] sm:$0xff]  ;;  %v6978_v8 = vld [vmem:[%s9405_s10 + $0x3] ss:$0 sm:$0xff] }
 0x22e   : > { %v3250_v37 = vmul.f32 %v6871_v59, %v3216_v33  ;;  %v4275_v35 = vadd.f32 %v4243_v29, %v6903_v25  ;;  %v3280_v54 = vadd.f32 %v3248_v49, %v3182_v50  ;;  %v3281_v9 = vadd.f32 %v3249_v45, %v3183_v11  ;;  %v9710_v50 = vld [vmem:[#allocation32_spill] sm:$0xff] }
 0x22f   : > { %v3184_v51 = vadd.f32 %v6911_v58, %v3118_v48  ;;  %v4047_v38 = vmul.f32 %v6781_v41, %v3377_v44  ;;  %v4148_v40 = vmul.f32 %v6831_v21, %v3377_v44  ;;  %v4244_v55 = vmul.f32 %v6919_v34, %v3377_v44  ;;  %v5163_v58 = vld [vmem:[%s5471_s18 + $0x158] sm:$0xff]  ;;  %5021 = vmatmul.msk.f32.gmra.mxu3 %vm652_vm2, %v9710_v50  ;;  %v1993_v44 = vpop.f32.mrf.mxu3  ;;  %v3575_v22 = vld [vmem:[#allocation3 + $0x9] sm:$0xff] }
 0x230   : > { %v3119_v17 = vadd.f32 %v3087_v60, %v3021_v1  ;;  %v3378_v52 = vadd.f32 %v3346_v31, %v3280_v54  ;;  %v3379_v27 = vadd.f32 %v3347_v23, %v3281_v9  ;;  %v3251_v49 = vmul.f32 %v6871_v59, %v3217_v16  ;;  %v6996_v1 = vld [vmem:[%s9401_s6] ss:$0 sm:$0xff]  ;;  %v7012_v54 = vld [vmem:[%s9401_s6 + $0x1] ss:$0 sm:$0xff]  ;;  %v9711_v9 = vld [vmem:[#allocation25_spill] sm:$0xff] }
 0x231   : > { %v3348_v45 = vmul.f32 %v6890_v7, %v3314_v24  ;;  %v4083_v29 = vadd.f32 %v6822_v0, %v4047_v38  ;;  %v4180_v15 = vadd.f32 %v4148_v40, %v6851_v2  ;;  %v3282_v33 = vadd.f32 %v3250_v37, %v3184_v51  ;;  %v7001_v2 = vld [vmem:[%s9401_s6 + $0x2] ss:$0 sm:$0xff]  ;;  %v3473_v24 = vld [vmem:[#allocation3 + $0x8] sm:$0xff]  ;;  %5055 = vmatmul.msk.f32.gmra.mxu0 %vm652_vm2, %v9711_v9  ;;  %v7021_v40 = vld [vmem:[%s9402_s7] ss:$0 sm:$0xff] }
 0x232   : > { %4987 = vmatmul.msk.f32.gmra.mxu2 %vm652_vm2, %v5163_v58  ;;  %v3349_v6 = vmul.f32 %v6890_v7, %v3315_v19  ;;  %v4276_v31 = vadd.f32 %v4244_v55, %v6903_v25  ;;  %v4149_v23 = vmul.f32 %v6831_v21, %v3378_v52  ;;  %v4150_v11 = vmul.f32 %v6831_v21, %v3379_v27  ;;  %v3472_v37 = vld [vmem:[#allocation3] sm:$0xff]  ;;  %v7025_v58 = vpop.f32.mrf.mxu0 }
 0x233   : > { %v3185_v48 = vadd.f32 %v6930_v46, %v3119_v17  ;;  %4954 = vmatmul.msk.f32.gmra.mxu1 %vm652_vm2, %v9709_v53  ;;  %v4245_v25 = vmul.f32 %v6919_v34, %v3378_v52  ;;  %v4246_v60 = vmul.f32 %v6919_v34, %v3379_v27  ;;  %v4342_v46 = vmul.f32 %v6978_v8, %v3378_v52  ;;  %v3574_v55 = vld [vmem:[#allocation3 + $0x1] sm:$0xff]  ;;  %v7023_v17 = vpop.f32.mrf.mxu1 }
 0x234   : > { %v4343_v16 = vmul.f32 %v6978_v8, %v3379_v27  ;;  %v4048_v53 = vmul.f32 %v6781_v41, %v3378_v52  ;;  %v4049_v51 = vmul.f32 %v6781_v41, %v3379_v27  ;;  %v4181_v19 = vadd.f32 %v4149_v23, %v4082_v14  ;;  %v7034_v23 = vld [vmem:[%s9401_s6 + $0x3] ss:$0 sm:$0xff] }
 0x235   : > { %v4182_v38 = vadd.f32 %v4150_v11, %v4083_v29  ;;  %v4277_v50 = vadd.f32 %v4245_v25, %v4179_v20  ;;  %v4278_v7 = vadd.f32 %v4246_v60, %v4180_v15  ;;  %v4374_v59 = vadd.f32 %v4342_v46, %v4275_v35  ;;  %v3771_v25 = vld [vmem:[#allocation3 + $0xb] sm:$0xff]  ;;  %v7050_v60 = vld [vmem:[%s9401_s6 + $0x4] ss:$0 sm:$0xff] }
 0x236   : > { %v4375_v63 = vadd.f32 %v4343_v16, %v4276_v31  ;;  %v3283_v52 = vadd.f32 %v3251_v49, %v3185_v48  ;;  %v7027_v27 = vadd.f32 %v3348_v45, %v3282_v33  ;;  %v3506_v14 = vmul.f32 %v6996_v1, %v3472_v37  ;;  %v3770_v49 = vld [vmem:[#allocation3 + $0x3] sm:$0xff] }
 0x237   : > { %v3507_v29 = vmul.f32 %v6996_v1, %v3473_v24  ;;  %v3608_v11 = vmul.f32 %v7012_v54, %v3574_v55  ;;  %v3706_v20 = vmul.f32 %v7001_v2, %v6810_v13  ;;  %v3707_v35 = vmul.f32 %v7001_v2, %v6877_v39  ;;  %v5164_v13 = vld [vmem:[%s5471_s18 + $0x168] sm:$0xff]  ;;  %v7063_v46 = vld [vmem:[%s9405_s10 + $0x4] ss:$0 sm:$0xff]  ;;  %v1836_v55 = vpop.f32.mrf.mxu2 }
 0x238   : > { %v2075_v45 = vadd.f32 %v1993_v44, %v6932_v36  ;;  %v7042_v15 = vadd.f32 %v3349_v6, %v3283_v52  ;;  %v3542_v33 = vadd.f32 %v7021_v40, %v3506_v14  ;;  %v3609_v48 = vmul.f32 %v7012_v54, %v3575_v22  ;;  %v3868_v6 = vld [vmem:[#allocation3 + $0x4] sm:$0xff]  ;;  %v3869_v14 = vld [vmem:[#allocation3 + $0xc] sm:$0xff] }
 0x239   : > { %v3543_v31 = vadd.f32 %v7021_v40, %v3507_v29  ;;  %v4084_v39 = vadd.f32 %v6822_v0, %v4048_v53  ;;  %v4085_v36 = vadd.f32 %v6822_v0, %v4049_v51  ;;  %v4151_v44 = vmul.f32 %v6831_v21, %v7027_v27  ;;  %v9712_v16 = vld [vmem:[#allocation38_spill] sm:$0xff]  ;;  %5056 = vmatmul.msk.f32.gmra.mxu0 %vm652_vm2, %v6313_v4 }
 0x23a   : > { %4988 = vmatmul.msk.f32.gmra.mxu2 %vm652_vm2, %v5164_v13  ;;  %v4247_v22 = vmul.f32 %v6919_v34, %v7027_v27  ;;  %5022 = vmatmul.msk.f32.gmra.mxu3 %vm652_vm2, %v9712_v16  ;;  %v3640_v37 = vadd.f32 %v3608_v11, %v3542_v33  ;;  %v3804_v53 = vmul.f32 %v7034_v23, %v3770_v49 }
 0x23b   : > { %v3641_v24 = vadd.f32 %v3609_v48, %v3543_v31  ;;  %v4152_v51 = vmul.f32 %v6831_v21, %v7042_v15  ;;  %4955 = vmatmul.msk.f32.gmra.mxu1 %vm652_vm2, %v9711_v9  ;;  %v3805_v52 = vmul.f32 %v7034_v23, %v3771_v25  ;;  %v7073_v29 = vadd.f32 %v4151_v44, %v4084_v39  ;;  %v1996_v9 = vpop.f32.mrf.mxu3 }
 0x23c   : > { %v4248_v13 = vmul.f32 %v6919_v34, %v7042_v15  ;;  %v7077_v16 = vadd.f32 %v4247_v22, %v4181_v19  ;;  %v3738_v11 = vadd.f32 %v3706_v20, %v3640_v37  ;;  %v3902_v33 = vmul.f32 %v7050_v60, %v3868_v6  ;;  %v2155_v6 = vpop.f32.mrf.mxu0 }
 0x23d   : > { %v3739_v49 = vadd.f32 %v3707_v35, %v3641_v24  ;;  %v7082_v31 = vadd.f32 %v4152_v51, %v4085_v36  ;;  %v4344_v25 = vmul.f32 %v6978_v8, %v7027_v27  ;;  %v4345_v39 = vmul.f32 %v6978_v8, %v7042_v15 }
 0x23e   : > { %v7084_v48 = vadd.f32 %v4248_v13, %v4182_v38  ;;  %v4441_v19 = vmul.f32 %v7063_v46, %v7027_v27  ;;  %v3836_v44 = vadd.f32 %v3804_v53, %v3738_v11  ;;  %v3903_v35 = vmul.f32 %v7050_v60, %v3869_v14  ;;  %v1683_v38 = vpop.f32.mrf.mxu1  ;;  %v5165_v11 = vld [vmem:[%s5471_s18 + $0x170] sm:$0xff] }
 0x23f   : > { %v3837_v20 = vadd.f32 %v3805_v52, %v3739_v49  ;;  %v4442_v36 = vmul.f32 %v7063_v46, %v7042_v15  ;;  %v7095_v22 = vadd.f32 %v4344_v25, %v4277_v50  ;;  %v7097_v37 = vadd.f32 %v4345_v39, %v4278_v7  ;;  %v7104_v52 = vld [vmem:[%s9407_s12] ss:$0 sm:$0xff]  ;;  %v9714_v49 = vld [vmem:[#allocation41_spill] sm:$0xff] }
 0x240   : > { %9713 = vst [vmem:[#allocation58_spill] sm:$0xff] %v7084_v48  ;;  %v4473_v24 = vadd.f32 %v4441_v19, %v4374_v59  ;;  %v2594_v51 = vmul.f32 %v6626_v5, %v6924_v62  ;;  %v3934_v13 = vadd.f32 %v3902_v33, %v3836_v44  ;;  %v2234_v14 = vadd.f32 %v7025_v58, %v2075_v45  ;;  %v7124_v33 = vld [vmem:[%s9408_s13] ss:$0 sm:$0xff]  ;;  %v2952_v19 = vld [vmem:[#allocation2 + $0x78] sm:$0xff] }
 0x241   : > { %v3935_v48 = vadd.f32 %v3903_v35, %v3837_v20  ;;  %v4474_v53 = vadd.f32 %v4442_v36, %v4375_v63  ;;  %v2690_v7 = vmul.f32 %v6642_v42, %v6924_v62  ;;  %v2787_v63 = vmul.f32 %v6683_v10, %v6924_v62  ;;  %v9715_v44 = vld [vmem:[#allocation13_spill] sm:$0xff]  ;;  %5057 = vmatmul.msk.f32.gmra.mxu0 %vm652_vm2, %v6331_v30  ;;  %v1839_v20 = vpop.f32.mrf.mxu2  ;;  %v9716_v35 = vld [vmem:[#allocation18_spill] sm:$0xff] }
 0x242   : > { %4989 = vmatmul.msk.f32.gmra.mxu2 %vm652_vm2, %v5165_v11  ;;  %v7111_v59 = vadd.f32 %v2594_v51, %v6922_v28  ;;  %v2884_v50 = vmul.f32 %v6766_v43, %v6924_v62  ;;  %5023 = vmatmul.msk.f32.gmra.mxu3 %vm652_vm2, %v9714_v49  ;;  %v4505_v58 = vadd.f32 %v4473_v24, %v3934_v13  ;;  %v7157_v11 = vld [vmem:[%s5471_s18 + $0x180] sm:$0xff] }
 0x243   : > { %v4506_v45 = vadd.f32 %v4474_v53, %v3935_v48  ;;  %4956 = vmatmul.msk.f32.gmra.mxu1 %vm652_vm2, %v6313_v4  ;;  %v7129_v28 = vadd.f32 %v2690_v7, %v6801_v56  ;;  %v7132_v25 = vadd.f32 %v2787_v63, %v6804_v12  ;;  %v1760_v48 = vadd.f32 %v7023_v17, %v9715_v44  ;;  %v1999_v53 = vpop.f32.mrf.mxu3 }
 0x244   : > { %v7135_v39 = vadd.f32 %v2884_v50, %v6807_v3  ;;  %v2492_v4 = vmul.f32 %v6604_v61, %v6833_v32  ;;  %v4541_v56 = vmul.f32 %v7104_v52, %v4505_v58  ;;  %v2270_v3 = vmul.f32 %v6568_v18, %v2234_v14  ;;  %9717 = vst [vmem:[#allocation12_spill] sm:$0xff] %v7157_v11 }
 0x245   : > { %v4542_v12 = vmul.f32 %v7104_v52, %v4506_v45  ;;  %v1916_v17 = vadd.f32 %v1836_v55, %v1760_v48  ;;  %v1761_v36 = vadd.f32 %v1683_v38, %v9716_v35  ;;  %v2986_v13 = vmul.f32 %v6751_v57, %v2952_v19  ;;  %v2158_v45 = vpop.f32.mrf.mxu0  ;;  %v3054_v48 = vld [vmem:[#allocation2 + $0x79] sm:$0xff] }
 0x246   : > { %3442 = vst [vmem:[#allocation3 + $0x1a] sm:$0xff] %v7135_v39  ;;  %v4577_v24 = vadd.f32 %v7124_v33, %v4541_v56  ;;  %v2306_v32 = vadd.f32 %v6577_v47, %v2270_v3  ;;  %v2528_v55 = vadd.f32 %v6618_v26, %v2492_v4  ;;  %v1686_v58 = vpop.f32.mrf.mxu1  ;;  %v4050_v19 = vmul.f32 %v6781_v41, %v7027_v27  ;;  %v9719_v4 = vld [vmem:[#allocation50_spill] sm:$0xff] }
 0x247   : > { %v4578_v51 = vadd.f32 %v7124_v33, %v4542_v12  ;;  %v2076_v14 = vadd.f32 %v1996_v9, %v1916_v17  ;;  %v1917_v63 = vadd.f32 %v1839_v20, %v1761_v36  ;;  %v4051_v44 = vmul.f32 %v6781_v41, %v7042_v15  ;;  %v9718_v12 = vld [vmem:[#allocation28_spill] sm:$0xff] }
 0x248   : > { %v4609_v50 = vmax.f32 %v4577_v24, 0.0  ;;  %v2338_v49 = vmax.f32 %v2306_v32, 0.0  ;;  %v3022_v3 = vadd.f32 %v9719_v4, %v2986_v13  ;;  %v9720_v24 = vld [vmem:[#allocation31_spill] sm:$0xff]  ;;  %v9721_v32 = vld [vmem:[#allocation36_spill] sm:$0xff] }
 0x249   : > { %v4610_v38 = vmax.f32 %v4578_v51, 0.0  ;;  %v2235_v56 = vadd.f32 %v2155_v6, %v2076_v14  ;;  %v2077_v9 = vadd.f32 %v1999_v53, %v1917_v63  ;;  %v2493_v6 = vmul.f32 %v6604_v61, %v6924_v62  ;;  %v9722_v14 = vld [vmem:[#allocation47_spill] sm:$0xff] }
 0x24a   : > { %4990 = vmatmul.msk.f32.gmra.mxu2 %vm652_vm2, %v7157_v11  ;;  %5024 = vmatmul.msk.f32.gmra.mxu3 %vm652_vm2, %v9718_v12  ;;  %4641 = vst [vmem:[%s7170_s21] sm:$0xff] %v4609_v50  ;;  %v2595_v20 = vmul.f32 %v6626_v5, %v2338_v49  ;;  %v2691_v27 = vmul.f32 %v6642_v42, %v2338_v49  ;;  %v7192_v12 = vld [vmem:[%s5471_s18 + $0x188] sm:$0xff] }
 0x24b   : > { %v2788_v15 = vmul.f32 %v6683_v10, %v2338_v49  ;;  %4642 = vst [vmem:[%s7170_s21 + $0x8] sm:$0xff] %v4610_v38  ;;  %v2885_v17 = vmul.f32 %v6766_v43, %v2338_v49  ;;  %v2271_v35 = vmul.f32 %v6568_v18, %v2235_v56  ;;  %v2236_v36 = vadd.f32 %v2158_v45, %v2077_v9  ;;  %v9724_v11 = vld [vmem:[#allocation55_spill] sm:$0xff] }
 0x24c   : > { %v3088_v51 = vmul.f32 %v9720_v24, %v3054_v48  ;;  %2424 = vst [vmem:[#allocation2 + $0x82] sm:$0xff] %v2338_v49  ;;  %v7183_v13 = vadd.f32 %v2595_v20, %v2528_v55  ;;  %v7186_v53 = vadd.f32 %v2691_v27, %v9721_v32  ;;  %4957 = vmatmul.msk.f32.gmra.mxu1 %vm652_vm2, %v6331_v30  ;;  %v9725_v30 = vld [vmem:[#allocation52_spill] sm:$0xff] }
 0x24d   : > { %v7189_v63 = vadd.f32 %v2788_v15, %v9722_v14  ;;  %v3474_v50 = vld [vmem:[#allocation3 + $0x18] sm:$0xff]  ;;  %9723 = vst [vmem:[#allocation51_spill] sm:$0xff] %v7192_v12  ;;  %v2917_v56 = vadd.f32 %v2885_v17, %v9724_v11  ;;  %v2307_v48 = vadd.f32 %v6577_v47, %v2271_v35  ;;  %v7201_v55 = vadd.f32 %v6822_v0, %v4050_v19 }
 0x24e   : > { %v3576_v38 = vld [vmem:[#allocation3 + $0x19] sm:$0xff]  ;;  %v3508_v45 = vmul.f32 %v6996_v1, %v3474_v50  ;;  %v7204_v9 = vadd.f32 %v6822_v0, %v4051_v44  ;;  %v3120_v20 = vadd.f32 %v3088_v51, %v3022_v3  ;;  %v2272_v27 = vmul.f32 %v6568_v18, %v2236_v36  ;;  %v1842_v18 = vpop.f32.mrf.mxu2 }
 0x24f   : > { %v2529_v15 = vadd.f32 %v6618_v26, %v2493_v6  ;;  %3443 = vst [vmem:[#allocation3 + $0x22] sm:$0xff] %v2917_v56  ;;  %v3610_v17 = vmul.f32 %v7012_v54, %v3576_v38  ;;  %v7210_v35 = vmax.f32 %v2307_v48, 0.0  ;;  %v3154_v32 = vmul.f32 %v9725_v30, %v6924_v62  ;;  %v9726_v51 = vld [vmem:[#allocation14_spill] sm:$0xff]  ;;  %v1689_v38 = vpop.f32.mrf.mxu1 }
 0x250   : > { %v3544_v11 = vadd.f32 %v7021_v40, %v3508_v45  ;;  %v2494_v19 = vmul.f32 %v6604_v61, %v2338_v49  ;;  %v3708_v44 = vmul.f32 %v7001_v2, %v7135_v39  ;;  %v2308_v3 = vadd.f32 %v6577_v47, %v2272_v27  ;;  %v9727_v45 = vld [vmem:[#allocation34_spill] sm:$0xff] }
 0x251   : > { %2425 = vst [vmem:[#allocation2 + $0x92] sm:$0xff] %v7210_v35  ;;  %v2596_v36 = vmul.f32 %v6626_v5, %v7210_v35  ;;  %v2692_v62 = vmul.f32 %v6642_v42, %v7210_v35  ;;  %v1762_v61 = vadd.f32 %v1686_v58, %v9726_v51  ;;  %v3186_v14 = vadd.f32 %v3154_v32, %v3120_v20  ;;  %v9730_v51 = vld [vmem:[#allocation40_spill] sm:$0xff] }
 0x252   : > { %4991 = vmatmul.msk.f32.gmra.mxu2 %vm652_vm2, %v7192_v12  ;;  %v3642_v6 = vadd.f32 %v3610_v17, %v3544_v11  ;;  %v2789_v39 = vmul.f32 %v6683_v10, %v7210_v35  ;;  %v2886_v47 = vmul.f32 %v6766_v43, %v7210_v35  ;;  %v7230_v50 = vmax.f32 %v2308_v3, 0.0  ;;  %5025 = vmatmul.msk.f32.gmra.mxu3 %vm652_vm2, %v9727_v45 }
 0x253   : > { %v2953_v48 = vld [vmem:[#allocation2 + $0x80] sm:$0xff]  ;;  %v3155_v27 = vmul.f32 %v9725_v30, %v2338_v49  ;;  %v7235_v11 = vadd.f32 %v2596_v36, %v2529_v15  ;;  %v7238_v58 = vadd.f32 %v2692_v62, %v7111_v59  ;;  %v7240_v20 = vadd.f32 %v1842_v18, %v1762_v61  ;;  %v9732_v18 = vld [vmem:[#allocation19_spill] sm:$0xff]  ;;  %v9734_v61 = vld [vmem:[#allocation49_spill] sm:$0xff] }
 0x254   : > { %v3055_v5 = vld [vmem:[#allocation2 + $0x81] sm:$0xff]  ;;  %v2530_v17 = vadd.f32 %v6618_v26, %v2494_v19  ;;  %v2987_v32 = vmul.f32 %v6751_v57, %v2953_v48  ;;  %v7246_v0 = vadd.f32 %v2789_v39, %v7129_v28  ;;  %2426 = vst [vmem:[#allocation2 + $0x9a] sm:$0xff] %v7230_v50  ;;  %v3709_v49 = vmul.f32 %v7001_v2, %v2917_v56 }
 0x255   : > { %v3218_v42 = vld [vmem:[#allocation2 + $0x7b] sm:$0xff]  ;;  %9728 = vst [vmem:[#allocation61_spill] sm:$0xff] %v7235_v11  ;;  %v3219_v3 = vld [vmem:[#allocation2 + $0x83] sm:$0xff]  ;;  %v3740_v59 = vadd.f32 %v3708_v44, %v3642_v6  ;;  %v7251_v15 = vadd.f32 %v2886_v47, %v7132_v25  ;;  %v7254_v26 = vadd.f32 %v1689_v38, %v9732_v18  ;;  %v3089_v36 = vmul.f32 %v9720_v24, %v3055_v5 }
 0x256   : > { %9729 = vst [vmem:[#allocation16_spill] sm:$0xff] %v7238_v58  ;;  %v3252_v7 = vmul.f32 %v9730_v51, %v3218_v42  ;;  %v3316_v45 = vld [vmem:[#allocation2 + $0x7c] sm:$0xff]  ;;  %v3317_v12 = vld [vmem:[#allocation2 + $0x84] sm:$0xff]  ;;  %v3023_v19 = vadd.f32 %v9719_v4, %v2987_v32 }
 0x257   : > { %9731 = vst [vmem:[#allocation54_spill] sm:$0xff] %v7246_v0  ;;  %v3350_v48 = vmul.f32 %v9734_v61, %v3316_v45  ;;  %v3475_v28 = vld [vmem:[#allocation3 + $0x20] sm:$0xff]  ;;  %v3253_v0 = vmul.f32 %v9730_v51, %v3219_v3  ;;  %v3351_v56 = vmul.f32 %v9734_v61, %v3317_v12 }
 0x258   : > { %9733 = vst [vmem:[#allocation57_spill] sm:$0xff] %v7254_v26  ;;  %v3284_v62 = vadd.f32 %v3252_v7, %v3186_v14  ;;  %v3577_v39 = vld [vmem:[#allocation3 + $0x21] sm:$0xff]  ;;  %v3509_v25 = vmul.f32 %v6996_v1, %v3475_v28  ;;  %v3121_v47 = vadd.f32 %v3089_v36, %v3023_v19  ;;  %v2954_v14 = vld [vmem:[#allocation2 + $0x90] sm:$0xff]  ;;  %v2161_v26 = vpop.f32.mrf.mxu0 }
 0x259   : > { %v3772_v42 = vld [vmem:[#allocation3 + $0x1b] sm:$0xff]  ;;  %3444 = vst [vmem:[#allocation3 + $0x32] sm:$0xff] %v7251_v15  ;;  %v3611_v7 = vmul.f32 %v7012_v54, %v3577_v39  ;;  %v3773_v3 = vld [vmem:[#allocation3 + $0x23] sm:$0xff]  ;;  %v2988_v19 = vmul.f32 %v6751_v57, %v2954_v14 }
 0x25a   : > { %v3806_v44 = vmul.f32 %v7034_v23, %v3772_v42  ;;  %v3870_v6 = vld [vmem:[#allocation3 + $0x1c] sm:$0xff]  ;;  %v3382_v38 = vadd.f32 %v3350_v48, %v3284_v62  ;;  %v3545_v32 = vadd.f32 %v7021_v40, %v3509_v25  ;;  %v3187_v36 = vadd.f32 %v3155_v27, %v3121_v47  ;;  %v2002_v42 = vpop.f32.mrf.mxu3  ;;  %v3056_v47 = vld [vmem:[#allocation2 + $0x91] sm:$0xff] }
 0x25b   : > { %v7268_v5 = vld [vmem:[%s9399_s4 + $0x1] ss:$0 sm:$0xff]  ;;  %v3904_v18 = vmul.f32 %v7050_v60, %v3870_v6  ;;  %v7280_v28 = vld [vmem:[%s9399_s4 + $0x2] ss:$0 sm:$0xff]  ;;  %v3807_v58 = vmul.f32 %v7034_v23, %v3773_v3  ;;  %v3090_v3 = vmul.f32 %v9720_v24, %v3056_v47  ;;  %v3057_v47 = vld [vmem:[#allocation2 + $0x99] sm:$0xff] }
 0x25c   : > { %9735 = vst [vmem:[#allocation60_spill] sm:$0xff] %v7268_v5  ;;  %v2597_v12 = vmul.f32 %v7268_v5, %v7230_v50  ;;  %v3838_v45 = vadd.f32 %v3806_v44, %v3740_v59  ;;  %v4153_v62 = vmul.f32 %v6831_v21, %v3382_v38  ;;  %v4249_v48 = vmul.f32 %v6919_v34, %v3382_v38  ;;  %v3871_v59 = vld [vmem:[#allocation3 + $0x24] sm:$0xff] }
 0x25d   : > { %9736 = vst [vmem:[#allocation62_spill] sm:$0xff] %v7280_v28  ;;  %v2693_v39 = vmul.f32 %v7280_v28, %v7230_v50  ;;  %v3643_v25 = vadd.f32 %v3611_v7, %v3545_v32  ;;  %v4346_v6 = vmul.f32 %v6978_v8, %v3382_v38  ;;  %v4443_v27 = vmul.f32 %v7063_v46, %v3382_v38 }
 0x25e   : > { %v3936_v44 = vadd.f32 %v3904_v18, %v3838_v45  ;;  %v3285_v14 = vadd.f32 %v3253_v0, %v3187_v36  ;;  %v7288_v11 = vadd.f32 %v4153_v62, %v7201_v55  ;;  %v7291_v5 = vadd.f32 %v4249_v48, %v7073_v29  ;;  %v2955_v48 = vld [vmem:[#allocation2 + $0x98] sm:$0xff] }
 0x25f   : > { %v3741_v28 = vadd.f32 %v3709_v49, %v3643_v25  ;;  %v7294_v7 = vadd.f32 %v4346_v6, %v7077_v16  ;;  %v4475_v32 = vadd.f32 %v4443_v27, %v7095_v22  ;;  %v3024_v45 = vadd.f32 %v9719_v4, %v2988_v19  ;;  %v9737_v25 = vld [vmem:[#allocation58_spill] sm:$0xff] }
 0x260   : > { %v7298_v18 = vadd.f32 %v3351_v56, %v3285_v14  ;;  %v3905_v0 = vmul.f32 %v7050_v60, %v3871_v59  ;;  %v7302_v55 = vadd.f32 %v2597_v12, %v2530_v17  ;;  %v7305_v62 = vadd.f32 %v2693_v39, %v7183_v13 }
 0x261   : > { %v3839_v36 = vadd.f32 %v3807_v58, %v3741_v28  ;;  %v4507_v29 = vadd.f32 %v4475_v32, %v3936_v44  ;;  %v2790_v16 = vmul.f32 %v6683_v10, %v7230_v50  ;;  %v2078_v17 = vadd.f32 %v2002_v42, %v7240_v20  ;;  %v7319_v10 = vpop.f32.mrf.mxu2  ;;  %v7333_v20 = vld [vmem:[%s9399_s4] ss:$0 sm:$0xff]  ;;  %v3220_v44 = vld [vmem:[#allocation2 + $0x93] sm:$0xff] }
 0x262   : > { %v4154_v22 = vmul.f32 %v6831_v21, %v7298_v18  ;;  %v4250_v49 = vmul.f32 %v6919_v34, %v7298_v18  ;;  %v4347_v56 = vmul.f32 %v6978_v8, %v7298_v18  ;;  %v4444_v58 = vmul.f32 %v7063_v46, %v7298_v18 }
 0x263   : > { %v3937_v12 = vadd.f32 %v3905_v0, %v3839_v36  ;;  %v4543_v13 = vmul.f32 %v7104_v52, %v4507_v29  ;;  %v3122_v19 = vadd.f32 %v3090_v3, %v3024_v45  ;;  %v2495_v42 = vmul.f32 %v7333_v20, %v7210_v35  ;;  %v3318_v0 = vld [vmem:[#allocation2 + $0x94] sm:$0xff]  ;;  %v7348_v36 = vpop.f32.mrf.mxu3 }
 0x264   : > { %v7322_v28 = vadd.f32 %v4154_v22, %v7204_v9  ;;  %v7325_v39 = vadd.f32 %v4250_v49, %v7082_v31  ;;  %v7328_v59 = vadd.f32 %v4347_v56, %v9737_v25  ;;  %v4476_v6 = vadd.f32 %v4444_v58, %v7097_v37  ;;  %v3476_v3 = vld [vmem:[#allocation3 + $0x30] sm:$0xff]  ;;  %v3221_v58 = vld [vmem:[#allocation2 + $0x9b] sm:$0xff] }
 0x265   : > { %v4579_v9 = vadd.f32 %v7124_v33, %v4543_v13  ;;  %v3156_v31 = vmul.f32 %v9725_v30, %v7210_v35  ;;  %v7342_v27 = vadd.f32 %v2790_v16, %v7186_v53  ;;  %v4052_v14 = vmul.f32 %v6781_v41, %v3382_v38  ;;  %v1692_v16 = vpop.f32.mrf.mxu1  ;;  %v7354_v38 = vld [vmem:[%s9400_s5] ss:$0 sm:$0xff]  ;;  %v3578_v56 = vld [vmem:[#allocation3 + $0x31] sm:$0xff] }
 0x266   : > { %v2887_v32 = vmul.f32 %v6766_v43, %v7230_v50  ;;  %v2989_v45 = vmul.f32 %v6751_v57, %v2955_v48  ;;  %v2237_v37 = vadd.f32 %v2161_v26, %v2078_v17  ;;  %v4508_v29 = vadd.f32 %v4476_v6, %v3937_v12  ;;  %v7362_v17 = vpop.f32.mrf.mxu0  ;;  %v9738_v25 = vld [vmem:[#allocation45_spill] sm:$0xff] }
 0x267   : > { %v4611_v22 = vmax.f32 %v4579_v9, 0.0  ;;  %v3188_v35 = vadd.f32 %v3156_v31, %v3122_v19  ;;  %v3254_v53 = vmul.f32 %v9730_v51, %v3220_v44  ;;  %v7357_v43 = vadd.f32 %v7354_v38, %v2495_v42 }
 0x268   : > { %v2919_v57 = vadd.f32 %v2887_v32, %v7189_v63  ;;  %v3025_v26 = vadd.f32 %v9719_v4, %v2989_v45  ;;  %v3091_v49 = vmul.f32 %v9720_v24, %v3057_v47  ;;  %v4544_v12 = vmul.f32 %v7104_v52, %v4508_v29  ;;  %v3319_v63 = vld [vmem:[#allocation2 + $0x9c] sm:$0xff] }
 0x269   : > { %4643 = vst [vmem:[%s7170_s21 + $0x10] sm:$0xff] %v4611_v22  ;;  %v3286_v13 = vadd.f32 %v3254_v53, %v3188_v35  ;;  %v3352_v19 = vmul.f32 %v9734_v61, %v3318_v0  ;;  %v3510_v48 = vmul.f32 %v6996_v1, %v3476_v3  ;;  %v4088_v42 = vadd.f32 %v9738_v25, %v4052_v14  ;;  %v7374_v24 = vld [vmem:[%s9397_s2] ss:$0 sm:$0xff]  ;;  %v7394_v53 = vpop.f32.mrf.mxu2 }
 0x26a   : > { %v3123_v44 = vadd.f32 %v3091_v49, %v3025_v26  ;;  %v3157_v4 = vmul.f32 %v9725_v30, %v7230_v50  ;;  %3445 = vst [vmem:[#allocation3 + $0x3a] sm:$0xff] %v2919_v57  ;;  %v2273_v6 = vmul.f32 %v7374_v24, %v2237_v37  ;;  %v4580_v9 = vadd.f32 %v7124_v33, %v4544_v12  ;;  %v7388_v0 = vld [vmem:[%s9398_s3] ss:$0 sm:$0xff] }
 0x26b   : > { %9739 = vst [vmem:[#allocation29_spill] sm:$0xff] %v7374_v24  ;;  %v7378_v31 = vadd.f32 %v3352_v19, %v3286_v13  ;;  %v3546_v47 = vadd.f32 %v7021_v40, %v3510_v48  ;;  %v3612_v14 = vmul.f32 %v7012_v54, %v3578_v56  ;;  %v4053_v30 = vmul.f32 %v6781_v41, %v7298_v18 }
 0x26c   : > { %v3189_v32 = vadd.f32 %v3157_v4, %v3123_v44  ;;  %v3255_v45 = vmul.f32 %v9730_v51, %v3221_v58  ;;  %9740 = vst [vmem:[#allocation10_spill] sm:$0xff] %v7388_v0  ;;  %v2309_v3 = vadd.f32 %v7388_v0, %v2273_v6  ;;  %v4612_v37 = vmax.f32 %v4580_v9, 0.0  ;;  %v2008_v44 = vpop.f32.mrf.mxu3  ;;  %v9741_v6 = vld [vmem:[#allocation57_spill] sm:$0xff] }
 0x26d   : > { %v3353_v29 = vmul.f32 %v9734_v61, %v3319_v63  ;;  %v3644_v22 = vadd.f32 %v3612_v14, %v3546_v47  ;;  %v4155_v35 = vmul.f32 %v6831_v21, %v7378_v31  ;;  %v4251_v51 = vmul.f32 %v6919_v34, %v7378_v31  ;;  %v1695_v14 = vpop.f32.mrf.mxu1 }
 0x26e   : > { %v3287_v41 = vadd.f32 %v3255_v45, %v3189_v32  ;;  %v4348_v18 = vmul.f32 %v6978_v8, %v7378_v31  ;;  %v4445_v26 = vmul.f32 %v7063_v46, %v7378_v31  ;;  %4644 = vst [vmem:[%s7170_s21 + $0x18] sm:$0xff] %v4612_v37  ;;  %v7405_v61 = vmul.f32 %v7333_v20, %v7230_v50 }
 0x26f   : > { %v3710_v49 = vmul.f32 %v7001_v2, %v7251_v15  ;;  %v7409_v56 = vadd.f32 %v4155_v35, %v4088_v42  ;;  %v7411_v12 = vmax.f32 %v2309_v3, 0.0  ;;  %v7416_v13 = vadd.f32 %v4251_v51, %v7288_v11  ;;  %v9742_v11 = vld [vmem:[#allocation22_spill] sm:$0xff]  ;;  %v2167_v3 = vpop.f32.mrf.mxu0 }
 0x270   : > { %v7413_v58 = vadd.f32 %v3353_v29, %v3287_v41  ;;  %v7419_v19 = vadd.f32 %v4348_v18, %v7291_v5  ;;  %v4477_v48 = vadd.f32 %v4445_v26, %v7294_v7  ;;  %v4089_v50 = vadd.f32 %v9738_v25, %v4053_v30  ;;  %v9743_v25 = vld [vmem:[#allocation60_spill] sm:$0xff] }
 0x271   : > { %v3477_v4 = vld [vmem:[#allocation3 + $0x38] sm:$0xff]  ;;  %v3711_v15 = vmul.f32 %v7001_v2, %v2919_v57  ;;  %2427 = vst [vmem:[#allocation2 + $0xaa] sm:$0xff] %v7411_v12  ;;  %v1919_v9 = vadd.f32 %v7319_v10, %v9741_v6  ;;  %v1764_v47 = vadd.f32 %v1692_v16, %v9742_v11  ;;  %v3742_v32 = vadd.f32 %v3710_v49, %v3644_v22  ;;  %v9744_v10 = vld [vmem:[#allocation62_spill] sm:$0xff] }
 0x272   : > { %v3579_v63 = vld [vmem:[#allocation3 + $0x39] sm:$0xff]  ;;  %v3511_v5 = vmul.f32 %v6996_v1, %v3477_v4  ;;  %v2598_v30 = vmul.f32 %v9743_v25, %v7411_v12  ;;  %v4156_v37 = vmul.f32 %v6831_v21, %v7413_v58  ;;  %v2694_v29 = vmul.f32 %v9744_v10, %v7411_v12  ;;  %v7440_v16 = vld [vmem:[%s9399_s4 + $0x3] ss:$0 sm:$0xff] }
 0x273   : > { %v3774_v42 = vld [vmem:[#allocation3 + $0x33] sm:$0xff]  ;;  %v3613_v57 = vmul.f32 %v7012_v54, %v3579_v63  ;;  %9745 = vst [vmem:[#allocation37_spill] sm:$0xff] %v7440_v16  ;;  %v2791_v22 = vmul.f32 %v7440_v16, %v7411_v12  ;;  %v4252_v18 = vmul.f32 %v6919_v34, %v7413_v58  ;;  %v3775_v21 = vld [vmem:[#allocation3 + $0x3b] sm:$0xff]  ;;  %v4349_v49 = vmul.f32 %v6978_v8, %v7413_v58 }
 0x274   : > { %v3808_v7 = vmul.f32 %v7034_v23, %v3774_v42  ;;  %v3872_v45 = vld [vmem:[#allocation3 + $0x34] sm:$0xff]  ;;  %v3547_v35 = vadd.f32 %v7021_v40, %v3511_v5  ;;  %v7448_v26 = vadd.f32 %v4156_v37, %v4089_v50  ;;  %v4446_v4 = vmul.f32 %v7063_v46, %v7413_v58  ;;  %v9746_v63 = vld [vmem:[#allocation26_spill] sm:$0xff] }
 0x275   : > { %v3906_v51 = vmul.f32 %v7050_v60, %v3872_v45  ;;  %v1765_v42 = vadd.f32 %v1695_v14, %v9746_v63  ;;  %v3873_v11 = vld [vmem:[#allocation3 + $0x3c] sm:$0xff]  ;;  %v7462_v34 = vadd.f32 %v4349_v49, %v7325_v39  ;;  %v9748_v37 = vld [vmem:[#allocation16_spill] sm:$0xff]  ;;  %v9752_v63 = vld [vmem:[#allocation51_spill] sm:$0xff] }
 0x276   : > { %v3840_v41 = vadd.f32 %v3808_v7, %v3742_v32  ;;  %v3645_v6 = vadd.f32 %v3613_v57, %v3547_v35  ;;  %v7456_v32 = vadd.f32 %v4252_v18, %v7322_v28  ;;  %v7459_v7 = vadd.f32 %v2598_v30, %v7357_v43  ;;  %v9747_v50 = vld [vmem:[#allocation61_spill] sm:$0xff]  ;;  %v1851_v57 = vpop.f32.mrf.mxu2  ;;  %v7475_v43 = vld [vmem:[%s9399_s4 + $0x4] ss:$0 sm:$0xff] }
 0x277   : > { %v4478_v8 = vadd.f32 %v4446_v4, %v7328_v59  ;;  %v7466_v45 = vadd.f32 %v2694_v29, %v9747_v50  ;;  %v7469_v14 = vadd.f32 %v2791_v22, %v9748_v37  ;;  %v3809_v28 = vmul.f32 %v7034_v23, %v3775_v21  ;;  %9749 = vst [vmem:[#allocation17_spill] sm:$0xff] %v7475_v43  ;;  %v7483_v29 = vld [vmem:[%s9403_s8] ss:$0 sm:$0xff]  ;;  %v2011_v37 = vpop.f32.mrf.mxu3 }
 0x278   : > { %v3938_v5 = vadd.f32 %v3906_v51, %v3840_v41  ;;  %v3743_v35 = vadd.f32 %v3711_v15, %v3645_v6  ;;  %v2888_v39 = vmul.f32 %v7475_v43, %v7411_v12  ;;  %v2956_v59 = vld [vmem:[#allocation2 + $0xa8] sm:$0xff]  ;;  %v3907_v30 = vmul.f32 %v7050_v60, %v3873_v11  ;;  %v7489_v51 = vld [vmem:[%s5471_s18 + $0x198] sm:$0xff]  ;;  %v9751_v49 = vld [vmem:[#allocation54_spill] sm:$0xff] }
 0x279   : > { %v2990_v15 = vmul.f32 %v7483_v29, %v2956_v59  ;;  %v1920_v22 = vadd.f32 %v7394_v53, %v1764_v47  ;;  %9750 = vst [vmem:[#allocation33_spill] sm:$0xff] %v7489_v51  ;;  %v9753_v6 = vrot.slane %v9752_v63, 2  ;;  %v9754_v11 = vld [vmem:[#allocation12_spill] sm:$0xff]  ;;  %4992 = vmatmul.msk.f32.gmra.mxu2 %vm652_vm2, %v7489_v51 }
 0x27a   : > { %v4509_v41 = vadd.f32 %v4477_v48, %v3938_v5  ;;  %v2079_v48 = vadd.f32 %v7348_v36, %v1919_v9  ;;  %v3841_v18 = vadd.f32 %v3809_v28, %v3743_v35  ;;  %v7493_v4 = vadd.f32 %v2888_v39, %v9751_v49  ;;  %v7505_v36 = vld [vmem:[%s9405_s10] ss:$0 sm:$0xff]  ;;  %v1698_v28 = vpop.f32.mrf.mxu1 }
 0x27b   : > { %v9755_v5 = vrot.slane %v9754_v11, 2  ;;  %9756 = vst [vmem:[#allocation11_spill] sm:$0xff] %v7505_v36  ;;  %v4054_v53 = vmul.f32 %v7505_v36, %v7378_v31  ;;  %v2080_v47 = vadd.f32 %v2008_v44, %v1920_v22  ;;  %v1921_v35 = vadd.f32 %v1851_v57, %v1765_v42  ;;  %v2170_v31 = vpop.f32.mrf.mxu0  ;;  %v3058_v42 = vld [vmem:[#allocation2 + $0xa9] sm:$0xff] }
 0x27c   : > { %v4545_v21 = vmul.f32 %v7104_v52, %v4509_v41  ;;  %v2238_v9 = vadd.f32 %v7362_v17, %v2079_v48  ;;  %v7512_v41 = vld [vmem:[%s5471_s18 + $0x1a0] sm:$0xff]  ;;  %v2532_v39 = vadd.f32 %v7354_v38, %v7405_v61  ;;  %v3939_v59 = vadd.f32 %v3907_v30, %v3841_v18  ;;  %3446 = vst [vmem:[#allocation3 + $0x4a] sm:$0xff] %v7493_v4 }
 0x27d   : > { %v1627_v50 = vsel %vm1014_vm3, %v9755_v5, %v9753_v6  ;;  %v4055_v49 = vmul.f32 %v7505_v36, %v7413_v58  ;;  %v7523_v17 = vld [vmem:[%s9404_s9] ss:$0 sm:$0xff]  ;;  %v2239_v57 = vadd.f32 %v2167_v3, %v2080_v47  ;;  %v2081_v30 = vadd.f32 %v2011_v37, %v1921_v35 }
 0x27e   : > { %5058 = vmatmul.msk.f32.gmra.mxu0 %vm652_vm2, %v1627_v50  ;;  %v4581_v6 = vadd.f32 %v7124_v33, %v4545_v21  ;;  %v3026_v44 = vadd.f32 %v7523_v17, %v2990_v15  ;;  %v2274_v61 = vmul.f32 %v7374_v24, %v2238_v9  ;;  %4958 = vmatmul.msk.f32.gmra.mxu1 %vm652_vm2, %v1627_v50  ;;  %v1941_v22 = vrot.slane %v7489_v51, 1  ;;  %v7533_v21 = vld [vmem:[%s9406_s11] ss:$0 sm:$0xff]  ;;  %v7545_v50 = vld [vmem:[%s9403_s8 + $0x1] ss:$0 sm:$0xff] }
 0x27f   : > { %v4510_v58 = vadd.f32 %v4478_v8, %v3939_v59  ;;  %v9507_v18 = vrot.slane %v7512_v41, 1  ;;  %9757 = vst [vmem:[#allocation24_spill] sm:$0xff] %v7533_v21  ;;  %v7536_v15 = vadd.f32 %v7533_v21, %v4054_v53  ;;  %v2275_v11 = vmul.f32 %v7374_v24, %v2239_v57  ;;  %v5181_v9 = vld [vmem:[%s5471_s18 + $0x190] sm:$0x3]  ;;  %v1854_v57 = vpop.f32.mrf.mxu2 }
 0x280   : > { %v4613_v48 = vmax.f32 %v4581_v6, 0.0  ;;  %v2310_v3 = vadd.f32 %v7388_v0, %v2274_v61  ;;  %v2240_v5 = vadd.f32 %v2170_v31, %v2081_v30  ;;  %v3092_v37 = vmul.f32 %v7545_v50, %v3058_v42  ;;  %v9758_v31 = vld [vmem:[#allocation30_spill] sm:$0xff] }
 0x281   : > { %v4546_v8 = vmul.f32 %v7104_v52, %v4510_v58  ;;  %v1943_v53 = vsel %vm569_vm1, %v1941_v22, %v9507_v18  ;;  %v1628_v47 = vrot.slane %v5181_v9, 2  ;;  %v7553_v35 = vadd.f32 %v7533_v21, %v4055_v49  ;;  %4993 = vmatmul.msk.f32.gmra.mxu2 %vm652_vm2, %v7512_v41  ;;  %v7576_v9 = vld [vmem:[%s9403_s8 + $0x2] ss:$0 sm:$0xff]  ;;  %v2014_v18 = vpop.f32.mrf.mxu3 }
 0x282   : > { %4645 = vst [vmem:[%s7170_s21 + $0x20] sm:$0xff] %v4613_v48  ;;  %v2497_v59 = vmul.f32 %v7333_v20, %v7411_v12  ;;  %v2342_v6 = vmax.f32 %v2310_v3, 0.0  ;;  %v1766_v61 = vadd.f32 %v1698_v28, %v9758_v31  ;;  %5026 = vmatmul.msk.f32.gmra.mxu3 %vm652_vm2, %v1943_v53  ;;  %v3124_v30 = vadd.f32 %v3092_v37, %v3026_v44 }
 0x283   : > { %v4582_v42 = vadd.f32 %v7124_v33, %v4546_v8  ;;  %v2311_v58 = vadd.f32 %v7388_v0, %v2275_v11  ;;  %v9759_v48 = vrot.slane %v9752_v63, 2  ;;  %v3478_v53 = vld [vmem:[#allocation3 + $0x48] sm:$0xff]  ;;  %v2276_v44 = vmul.f32 %v7374_v24, %v2240_v5 }
 0x284   : > { %2428 = vst [vmem:[#allocation2 + $0xb2] sm:$0xff] %v2342_v6  ;;  %v2599_v49 = vmul.f32 %v9743_v25, %v2342_v6  ;;  %v2695_v28 = vmul.f32 %v9744_v10, %v2342_v6  ;;  %v2792_v3 = vmul.f32 %v7440_v16, %v2342_v6  ;;  %v2889_v11 = vmul.f32 %v7475_v43, %v2342_v6 }
 0x285   : > { %v1629_v22 = vsel %vm1014_vm3, %v9759_v48, %v1628_v47  ;;  %v4614_v8 = vmax.f32 %v4582_v42, 0.0  ;;  %v3512_v63 = vmul.f32 %v6996_v1, %v3478_v53  ;;  %v1922_v37 = vadd.f32 %v1854_v57, %v1766_v61  ;;  %v3580_v48 = vld [vmem:[#allocation3 + $0x49] sm:$0xff]  ;;  %v1701_v53 = vpop.f32.mrf.mxu1 }
 0x286   : > { %5059 = vmatmul.msk.f32.gmra.mxu0 %vm652_vm2, %v1629_v22  ;;  %v3158_v47 = vmul.f32 %v7576_v9, %v7411_v12  ;;  %v7580_v31 = vadd.f32 %v2599_v49, %v2532_v39  ;;  %v7583_v5 = vadd.f32 %v2695_v28, %v7302_v55  ;;  %v7586_v42 = vadd.f32 %v2792_v3, %v7305_v62 }
 0x287   : > { %4959 = vmatmul.msk.f32.gmra.mxu1 %vm652_vm2, %v1629_v22  ;;  %4646 = vst [vmem:[%s7170_s21 + $0x28] sm:$0xff] %v4614_v8  ;;  %v2533_v61 = vadd.f32 %v7354_v38, %v2497_v59  ;;  %v2921_v57 = vadd.f32 %v2889_v11, %v7342_v27  ;;  %v3548_v12 = vadd.f32 %v7021_v40, %v3512_v63  ;;  %v7593_v39 = vmax.f32 %v2311_v58, 0.0  ;;  %v9760_v27 = vld [vmem:[#allocation35_spill] sm:$0xff]  ;;  %v2173_v11 = vpop.f32.mrf.mxu0  ;;  %v7626_v8 = vld [vmem:[%s9403_s8 + $0x3] ss:$0 sm:$0xff] }
 0x288   : > { %v3190_v55 = vadd.f32 %v3158_v47, %v3124_v30  ;;  %v2498_v49 = vmul.f32 %v7333_v20, %v2342_v6  ;;  %v3712_v62 = vmul.f32 %v7001_v2, %v7493_v4  ;;  %v2312_v28 = vadd.f32 %v7388_v0, %v2276_v44  ;;  %v7614_v63 = vld [vmem:[%s5471_s18 + $0x1a8] sm:$0x3]  ;;  %s4685_s18 = scalar_lea.hbm %s9409_s14, %s5067_s15 }
 0x289   : > { %3447 = vst [vmem:[#allocation3 + $0x52] sm:$0xff] %v2921_v57  ;;  %v3614_v22 = vmul.f32 %v7012_v54, %v3580_v48  ;;  %v2600_v59 = vmul.f32 %v9743_v25, %v7593_v39  ;;  %v7603_v3 = vadd.f32 %v1701_v53, %v9760_v27  ;;  %v2082_v58 = vadd.f32 %v2014_v18, %v1922_v37  ;;  %s4688_s26 = sshll.u32 %s4685_s18, 4  ;;  %s5273_s18 = scalar_lea.hbm %s9409_s14, 512  ;;  %s4689_s26 = int_to_ptr.hbm [resolvable:$true] %s4688_s26 }
 0x28a   : > { %2429 = vst [vmem:[#allocation2 + $0xc2] sm:$0xff] %v7593_v39  ;;  %v2696_v30 = vmul.f32 %v9744_v10, %v7593_v39  ;;  %v2793_v4 = vmul.f32 %v7440_v16, %v7593_v39  ;;  %v2890_v44 = vmul.f32 %v7475_v43, %v7593_v39  ;;  %v3159_v18 = vmul.f32 %v7576_v9, %v2342_v6  ;;  %s5267_s28 = sshra.s32 %s4689_s26, 4  ;;  %s5268_s28 = int_to_ptr.hbm [resolvable:$true] %s5267_s28 }
 0x28b   : > { %9761 = vst [vmem:[#allocation39_spill] sm:$0xff] %v7603_v3  ;;  %v2957_v47 = vld [vmem:[#allocation2 + $0xb0] sm:$0xff]  ;;  %v3646_v53 = vadd.f32 %v3614_v22, %v3548_v12  ;;  %v7617_v27 = vadd.f32 %v2600_v59, %v2533_v61  ;;  %v7619_v0 = vmax.f32 %v2312_v28, 0.0  ;;  %v2534_v3 = vadd.f32 %v7354_v38, %v2498_v49  ;;  %s5269_s15 = scalar_lea.hbm %s5268_s28, 256  ;;  %p5274_p0 = scmp.lt.s32.totalorder %s5268_s28, %s9409_s14 }
 0x28c   : > { %v3059_v48 = vld [vmem:[#allocation2 + $0xb1] sm:$0xff]  ;;  %v2991_v24 = vmul.f32 %v7483_v29, %v2957_v47  ;;  %v7630_v6 = vadd.f32 %v2696_v30, %v7459_v7  ;;  %v7634_v22 = vadd.f32 %v2793_v4, %v7466_v45  ;;  %v7637_v49 = vadd.f32 %v2173_v11, %v2082_v58  ;;  %v7644_v7 = vld [vmem:[%s9403_s8 + $0x4] ss:$0 sm:$0xff]  ;;  %p5270_p11 = scmp.ne.s32.totalorder %s5268_s28, %s5269_s15  ;;  %p5275_p1 = scmp.lt.s32.totalorder %s5273_s18, %s5269_s15 }
 0x28d   : > { %v3222_v37 = vld [vmem:[#allocation2 + $0xab] sm:$0xff]  ;;  %9762 = vst [vmem:[#allocation21_spill] sm:$0xff] %v7617_v27  ;;  %v3093_v61 = vmul.f32 %v7545_v50, %v3059_v48  ;;  %v3223_v12 = vld [vmem:[#allocation2 + $0xb3] sm:$0xff]  ;;  %v7648_v48 = vadd.f32 %v2890_v44, %v7469_v14  ;;  %v3713_v45 = vmul.f32 %v7001_v2, %v2921_v57  ;;  %v3744_v4 = vadd.f32 %v3712_v62, %v3646_v53 }
 0x28e   : > { %v3256_v51 = vmul.f32 %v7626_v8, %v3222_v37  ;;  %v3320_v21 = vld [vmem:[#allocation2 + $0xac] sm:$0xff]  ;;  %9763 = vst [vmem:[#allocation32_spill] sm:$0xff] %v7630_v6  ;;  %v3321_v28 = vld [vmem:[#allocation2 + $0xb4] sm:$0xff]  ;;  %v3027_v47 = vadd.f32 %v7523_v17, %v2991_v24  ;;  %v2601_v58 = vmul.f32 %v9743_v25, %v7619_v0  ;;  %v2697_v44 = vmul.f32 %v9744_v10, %v7619_v0  ;;  %p5271_p12 = pnand %p5270_p11, %p5433_p5  ;;  %p5276_p2 = por %p5275_p1, %p5274_p0 }
 0x28f   : > { %9764 = vst [vmem:[#allocation25_spill] sm:$0xff] %v7634_v22  ;;  %v3354_v30 = vmul.f32 %v7644_v7, %v3320_v21 }
 0x290   : > { %2430 = vst [vmem:[#allocation2 + $0xca] sm:$0xff] %v7619_v0  ;;  %v3288_v37 = vadd.f32 %v3256_v51, %v3190_v55  ;;  %v3125_v24 = vadd.f32 %v3093_v61, %v3027_v47  ;;  %v3257_v51 = vmul.f32 %v7626_v8, %v3223_v12  ;;  %v3355_v55 = vmul.f32 %v7644_v7, %v3321_v28  ;;  %v3479_v22 = vld [vmem:[#allocation3 + $0x50] sm:$0xff]  ;;  %p5272_p13 = pneg %p5271_p12 }
 0x291   : > { %v3581_v6 = vld [vmem:[#allocation3 + $0x51] sm:$0xff]  ;;  %3448 = vst [vmem:[#allocation3 + $0x62] sm:$0xff] %v7648_v48  ;;  %v3513_v14 = vmul.f32 %v6996_v1, %v3479_v22  ;;  %v7659_v62 = vadd.f32 %v2601_v58, %v2534_v3  ;;  %v2794_v28 = vmul.f32 %v7440_v16, %v7619_v0  ;;  %v2891_v47 = vmul.f32 %v7475_v43, %v7619_v0  ;;  %v7673_v3 = vld [vmem:[%s9405_s10 + $0x1] ss:$0 sm:$0xff] }
 0x292   : > { %v3386_v59 = vadd.f32 %v3354_v30, %v3288_v37  ;;  %v3776_v21 = vld [vmem:[#allocation3 + $0x4b] sm:$0xff]  ;;  %v3191_v53 = vadd.f32 %v3159_v18, %v3125_v24  ;;  %v3615_v61 = vmul.f32 %v7012_v54, %v3581_v6  ;;  %v3777_v12 = vld [vmem:[#allocation3 + $0x53] sm:$0xff]  ;;  %v7679_v30 = vld [vmem:[%s9405_s10 + $0x2] ss:$0 sm:$0xff]  ;;  %p5277_p3 = pnand %p5276_p2, %p5272_p13 }
 0x293   : > { %v3810_v2 = vmul.f32 %v7034_v23, %v3776_v21  ;;  %v3874_v57 = vld [vmem:[#allocation3 + $0x4c] sm:$0xff]  ;;  %9765 = vst [vmem:[#allocation38_spill] sm:$0xff] %v7659_v62  ;;  %v3549_v1 = vadd.f32 %v7021_v40, %v3513_v14  ;;  %v3875_v6 = vld [vmem:[#allocation3 + $0x54] sm:$0xff]  ;;  %v7685_v40 = vld [vmem:[%s9405_s10 + $0x3] ss:$0 sm:$0xff] }
 0x294   : > { %v3908_v37 = vmul.f32 %v7050_v60, %v3874_v57  ;;  %v4157_v18 = vmul.f32 %v7673_v3, %v3386_v59  ;;  %v3289_v54 = vadd.f32 %v3257_v51, %v3191_v53  ;;  %v4253_v58 = vmul.f32 %v7679_v30, %v3386_v59  ;;  %v2958_v21 = vld [vmem:[#allocation2 + $0xc0] sm:$0xff] }
 0x295   : > { %v3842_v22 = vadd.f32 %v3810_v2, %v3744_v4  ;;  %v4350_v4 = vmul.f32 %v7685_v40, %v3386_v59  ;;  %v4447_v24 = vmul.f32 %v7063_v46, %v3386_v59  ;;  %v3647_v14 = vadd.f32 %v3615_v61, %v3549_v1  ;;  %v3060_v53 = vld [vmem:[#allocation2 + $0xc1] sm:$0xff] }
 0x296   : > { %v3811_v51 = vmul.f32 %v7034_v23, %v3777_v12  ;;  %v7691_v57 = vadd.f32 %v4157_v18, %v7536_v15  ;;  %v3387_v11 = vadd.f32 %v3355_v55, %v3289_v54  ;;  %v7694_v62 = vadd.f32 %v4253_v58, %v7409_v56 }
 0x297   : > { %v3940_v2 = vadd.f32 %v3908_v37, %v3842_v22  ;;  %v7697_v27 = vadd.f32 %v4350_v4, %v7416_v13  ;;  %v4479_v43 = vadd.f32 %v4447_v24, %v7419_v19  ;;  %v3745_v16 = vadd.f32 %v3713_v45, %v3647_v14  ;;  %v3224_v18 = vld [vmem:[#allocation2 + $0xc3] sm:$0xff] }
 0x298   : > { %v3909_v10 = vmul.f32 %v7050_v60, %v3875_v6  ;;  %v2992_v61 = vmul.f32 %v7483_v29, %v2958_v21  ;;  %v7703_v23 = vadd.f32 %v2697_v44, %v7580_v31  ;;  %v4158_v15 = vmul.f32 %v7673_v3, %v3387_v11  ;;  %v2959_v60 = vld [vmem:[#allocation2 + $0xc8] sm:$0xff]  ;;  %v3480_v21 = vld [vmem:[#allocation3 + $0x60] sm:$0xff] }
 0x299   : > { %v4254_v55 = vmul.f32 %v7679_v30, %v3387_v11  ;;  %v4351_v56 = vmul.f32 %v7685_v40, %v3387_v11  ;;  %v3094_v12 = vmul.f32 %v7545_v50, %v3060_v53  ;;  %v3843_v13 = vadd.f32 %v3811_v51, %v3745_v16  ;;  %v3061_v6 = vld [vmem:[#allocation2 + $0xc9] sm:$0xff] }
 0x29a   : > { %v4448_v1 = vmul.f32 %v7063_v46, %v3387_v11  ;;  %v4511_v19 = vadd.f32 %v4479_v43, %v3940_v2  ;;  %v3028_v45 = vadd.f32 %v7523_v17, %v2992_v61  ;;  %v7712_v22 = vadd.f32 %v4158_v15, %v7553_v35  ;;  %v3322_v58 = vld [vmem:[#allocation2 + $0xc4] sm:$0xff]  ;;  %v1857_v35 = vpop.f32.mrf.mxu2  ;;  %v7734_v2 = vpop.f32.mrf.mxu3 }
 0x29b   : > { %v7715_v31 = vadd.f32 %v4254_v55, %v7448_v26  ;;  %v7718_v44 = vadd.f32 %v4351_v56, %v7456_v32  ;;  %v3160_v37 = vmul.f32 %v7576_v9, %v7593_v39  ;;  %v3941_v16 = vadd.f32 %v3909_v10, %v3843_v13  ;;  %v3225_v15 = vld [vmem:[#allocation2 + $0xcb] sm:$0xff] }
 0x29c   : > { %v4480_v46 = vadd.f32 %v4448_v1, %v7462_v34  ;;  %v4547_v43 = vmul.f32 %v7104_v52, %v4511_v19  ;;  %v3126_v54 = vadd.f32 %v3094_v12, %v3028_v45  ;;  %v4056_v4 = vmul.f32 %v7505_v36, %v3386_v59  ;;  %v9766_v13 = vld [vmem:[#allocation24_spill] sm:$0xff] }
 0x29d   : > { %v7726_v26 = vadd.f32 %v2794_v28, %v7583_v5  ;;  %v7729_v32 = vadd.f32 %v2891_v47, %v7586_v42  ;;  %v2993_v24 = vmul.f32 %v7483_v29, %v2959_v60  ;;  %v3258_v51 = vmul.f32 %v7626_v8, %v3224_v18  ;;  %v3582_v47 = vld [vmem:[#allocation3 + $0x61] sm:$0xff]  ;;  %v3323_v60 = vld [vmem:[#allocation2 + $0xcc] sm:$0xff]  ;;  %v7762_v18 = vld [vmem:[%s9402_s7] ss:$0 sm:$0xff] }
 0x29e   : > { %v4512_v10 = vadd.f32 %v4480_v46, %v3941_v16  ;;  %v4583_v34 = vadd.f32 %v7124_v33, %v4547_v43  ;;  %v3192_v14 = vadd.f32 %v3160_v37, %v3126_v54  ;;  %v7738_v59 = vmul.f32 %v7333_v20, %v7593_v39  ;;  %v7748_v39 = vld [vmem:[%s9401_s6] ss:$0 sm:$0xff]  ;;  %v7771_v43 = vpop.f32.mrf.mxu0 }
 0x29f   : > { %v3029_v5 = vadd.f32 %v7523_v17, %v2993_v24  ;;  %v3095_v42 = vmul.f32 %v7545_v50, %v3061_v6  ;;  %v3356_v28 = vmul.f32 %v7644_v7, %v3322_v58  ;;  %3449 = vst [vmem:[#allocation3 + $0x6a] sm:$0xff] %v7729_v32  ;;  %v3514_v56 = vmul.f32 %v7748_v39, %v3480_v21  ;;  %v9770_v21 = vld [vmem:[#allocation33_spill] sm:$0xff] }
 0x2a0   : > { %v4548_v53 = vmul.f32 %v7104_v52, %v4512_v10  ;;  %v4615_v61 = vmax.f32 %v4583_v34, 0.0  ;;  %v3290_v55 = vadd.f32 %v3258_v51, %v3192_v14  ;;  %v4057_v12 = vmul.f32 %v7505_v36, %v3387_v11  ;;  %v7768_v11 = vld [vmem:[%s9401_s6 + $0x1] ss:$0 sm:$0xff] }
 0x2a1   : > { %v4092_v1 = vadd.f32 %v9766_v13, %v4056_v4  ;;  %v3127_v19 = vadd.f32 %v3095_v42, %v3029_v5  ;;  %v3161_v45 = vmul.f32 %v7576_v9, %v7619_v0  ;;  %v3550_v16 = vadd.f32 %v7762_v18, %v3514_v56  ;;  %v9772_v42 = vld [vmem:[#allocation29_spill] sm:$0xff] }
 0x2a2   : > { %v4584_v52 = vadd.f32 %v7124_v33, %v4548_v53  ;;  %4647 = vst [vmem:[%s7170_s21 + $0x30] sm:$0xff] %v4615_v61  ;;  %v7757_v37 = vadd.f32 %v3356_v28, %v3290_v55  ;;  %v3616_v46 = vmul.f32 %v7768_v11, %v3582_v47  ;;  %v3259_v54 = vmul.f32 %v7626_v8, %v3225_v15  ;;  %v7790_v47 = vpop.f32.mrf.mxu1  ;;  %v7796_v15 = vld [vmem:[%s9401_s6 + $0x2] ss:$0 sm:$0xff] }
 0x2a3   : > { %v3193_v33 = vadd.f32 %v3161_v45, %v3127_v19  ;;  %v9767_v6 = vrot.slane %v7614_v63, 1  ;;  %v9768_v58 = vrot.slane %v7512_v41, 1  ;;  %v9769_v24 = vrot.slane %v7512_v41, 2 }
 0x2a4   : > { %v9771_v10 = vrot.slane %v9770_v21, 2  ;;  %v4616_v14 = vmax.f32 %v4584_v52, 0.0  ;;  %v3648_v51 = vadd.f32 %v3616_v46, %v3550_v16  ;;  %v4159_v5 = vmul.f32 %v7673_v3, %v7757_v37  ;;  %v9774_v46 = vld [vmem:[#allocation39_spill] sm:$0xff] }
 0x2a5   : > { %v1945_v4 = vsel %vm569_vm1, %v9768_v58, %v9767_v6  ;;  %v2277_v28 = vmul.f32 %v9772_v42, %v7637_v49  ;;  %v3291_v53 = vadd.f32 %v3259_v54, %v3193_v33  ;;  %v3357_v61 = vmul.f32 %v7644_v7, %v3323_v60  ;;  %v7809_v54 = vpop.f32.mrf.mxu2 }
 0x2a6   : > { %v2102_v34 = vsel %vm1014_vm3, %v9771_v10, %v9769_v24  ;;  %5027 = vmatmul.msk.f32.gmra.mxu3 %vm652_vm2, %v1945_v4  ;;  %v3714_v55 = vmul.f32 %v7796_v15, %v7648_v48  ;;  %v4255_v49 = vmul.f32 %v7679_v30, %v7757_v37  ;;  %v4093_v56 = vadd.f32 %v9766_v13, %v4057_v12  ;;  %v3481_v19 = vld [vmem:[#allocation3 + $0x68] sm:$0xff]  ;;  %v7817_v12 = vld [vmem:[%s9401_s6 + $0x3] ss:$0 sm:$0xff] }
 0x2a7   : > { %5060 = vmatmul.msk.f32.gmra.mxu0 %vm652_vm2, %v2102_v34  ;;  %4648 = vst [vmem:[%s7170_s21 + $0x38] sm:$0xff] %v4616_v14  ;;  %v3583_v45 = vld [vmem:[#allocation3 + $0x69] sm:$0xff]  ;;  %v7804_v16 = vadd.f32 %v4159_v5, %v4092_v1  ;;  %v4352_v60 = vmul.f32 %v7685_v40, %v7757_v37  ;;  %v1923_v33 = vadd.f32 %v1857_v35, %v9774_v46  ;;  %v7827_v35 = vld [vmem:[%s9405_s10 + $0x4] ss:$0 sm:$0xff] }
 0x2a8   : > { %v3778_v52 = vld [vmem:[#allocation3 + $0x63] sm:$0xff]  ;;  %v7811_v6 = vadd.f32 %v3357_v61, %v3291_v53  ;;  %v3515_v48 = vmul.f32 %v7748_v39, %v3481_v19  ;;  %v3746_v58 = vadd.f32 %v3714_v55, %v3648_v51  ;;  %v3617_v24 = vmul.f32 %v7768_v11, %v3583_v45  ;;  %9776 = vst [vmem:[#allocation18_spill] sm:$0xff] %v7827_v35  ;;  %v2020_v51 = vpop.f32.mrf.mxu3 }
 0x2a9   : > { %9773 = vst [vmem:[#allocation41_spill] sm:$0xff] %v7804_v16  ;;  %v3812_v1 = vmul.f32 %v7817_v12, %v3778_v52  ;;  %v3876_v4 = vld [vmem:[#allocation3 + $0x64] sm:$0xff]  ;;  %v7822_v21 = vadd.f32 %v4255_v49, %v7691_v57  ;;  %v4449_v10 = vmul.f32 %v7827_v35, %v7757_v37  ;;  %v7846_v45 = vadd.f32 %v4352_v60, %v7694_v62 }
 0x2aa   : > { %v9777_v34 = vld [vmem:[#allocation10_spill] sm:$0xff]  ;;  %v3551_v5 = vadd.f32 %v7762_v18, %v3515_v48  ;;  %v4160_v55 = vmul.f32 %v7673_v3, %v7811_v6  ;;  %v3779_v49 = vld [vmem:[#allocation3 + $0x6b] sm:$0xff]  ;;  %v4256_v19 = vmul.f32 %v7679_v30, %v7811_v6  ;;  %v4450_v52 = vmul.f32 %v7827_v35, %v7811_v6 }
 0x2ab   : > { %9775 = vst [vmem:[#allocation13_spill] sm:$0xff] %v7822_v21  ;;  %v2313_v14 = vadd.f32 %v9777_v34, %v2277_v28  ;;  %v3844_v53 = vadd.f32 %v3812_v1, %v3746_v58  ;;  %v7836_v61 = vld [vmem:[%s9401_s6 + $0x4] ss:$0 sm:$0xff]  ;;  %v4353_v28 = vmul.f32 %v7685_v40, %v7811_v6  ;;  %v3715_v48 = vmul.f32 %v7796_v15, %v7729_v32  ;;  %v3877_v58 = vld [vmem:[#allocation3 + $0x6c] sm:$0xff] }
 0x2ac   : > { %v3910_v57 = vmul.f32 %v7836_v61, %v3876_v4  ;;  %9778 = vst [vmem:[#allocation28_spill] sm:$0xff] %v7846_v45  ;;  %v3649_v46 = vadd.f32 %v3617_v24, %v3551_v5  ;;  %v7852_v4 = vadd.f32 %v4160_v55, %v4093_v56  ;;  %v7855_v21 = vadd.f32 %v4256_v19, %v7712_v22  ;;  %v2179_v45 = vpop.f32.mrf.mxu0  ;;  %v9784_v19 = vld [vmem:[#allocation63_spill] sm:$0xff] }
 0x2ad   : > { %v7858_v16 = vadd.f32 %v4353_v28, %v7715_v31  ;;  %v4481_v62 = vadd.f32 %v4449_v10, %v7697_v27  ;;  %v4482_v60 = vadd.f32 %v4450_v52, %v7718_v44  ;;  %v3813_v24 = vmul.f32 %v7817_v12, %v3779_v49  ;;  %v1707_v31 = vpop.f32.mrf.mxu1  ;;  %v9781_v44 = vld [vmem:[#allocation62_spill] sm:$0xff]  ;;  %v1863_v52 = vpop.f32.mrf.mxu2 }
 0x2ae   : > { %v3942_v1 = vadd.f32 %v3910_v57, %v3844_v53  ;;  %9779 = vst [vmem:[#allocation50_spill] sm:$0xff] %v7855_v21  ;;  %v3747_v35 = vadd.f32 %v3715_v48, %v3649_v46  ;;  %v7863_v5 = vmax.f32 %v2313_v14, 0.0  ;;  %v2535_v32 = vadd.f32 %v7354_v38, %v7738_v59  ;;  %v7878_v59 = vld [vmem:[%s9407_s12] ss:$0 sm:$0xff] }
 0x2af   : > { %9780 = vst [vmem:[#allocation31_spill] sm:$0xff] %v7858_v16  ;;  %v3911_v56 = vmul.f32 %v7836_v61, %v3877_v58  ;;  %v2083_v53 = vadd.f32 %v7734_v2, %v1923_v33  ;;  %v2103_v14 = vrot.slane %v7614_v63, 2  ;;  %v9782_v2 = vld [vmem:[#allocation37_spill] sm:$0xff]  ;;  %v1768_v28 = vadd.f32 %v7790_v47, %v9784_v19  ;;  %v9787_v16 = vld [vmem:[#allocation32_spill] sm:$0xff] }
 0x2b0   : > { %v4513_v22 = vadd.f32 %v4481_v62, %v3942_v1  ;;  %v3845_v57 = vadd.f32 %v3813_v24, %v3747_v35  ;;  %2431 = vst [vmem:[#allocation2 + $0xda] sm:$0xff] %v7863_v5  ;;  %v2602_v27 = vmul.f32 %v9743_v25, %v7863_v5  ;;  %v2698_v10 = vmul.f32 %v9781_v44, %v7863_v5  ;;  %v9783_v35 = vld [vmem:[#allocation17_spill] sm:$0xff]  ;;  %v9786_v1 = vld [vmem:[#allocation64_spill] sm:$0xff]  ;;  %v7896_v24 = vld [vmem:[%s9408_s13] ss:$0 sm:$0xff] }
 0x2b1   : > { %v2795_v33 = vmul.f32 %v9782_v2, %v7863_v5  ;;  %v2892_v49 = vmul.f32 %v9783_v35, %v7863_v5  ;;  %v9785_v63 = vld [vmem:[#allocation21_spill] sm:$0xff]  ;;  %v1769_v62 = vadd.f32 %v1707_v31, %v9786_v1  ;;  %v1924_v19 = vadd.f32 %v7809_v54, %v1768_v28 }
 0x2b2   : > { %v4549_v55 = vmul.f32 %v7878_v59, %v4513_v22  ;;  %v3943_v46 = vadd.f32 %v3911_v56, %v3845_v57  ;;  %v7887_v48 = vadd.f32 %v2602_v27, %v2535_v32  ;;  %v7890_v58 = vadd.f32 %v2698_v10, %v9785_v63  ;;  %v9788_v47 = vld [vmem:[#allocation25_spill] sm:$0xff]  ;;  %v2023_v57 = vpop.f32.mrf.mxu3 }
 0x2b3   : > { %v7900_v21 = vadd.f32 %v2795_v33, %v9787_v16  ;;  %v2924_v56 = vadd.f32 %v2892_v49, %v9788_v47  ;;  %v2242_v32 = vadd.f32 %v7771_v43, %v2083_v53  ;;  %v9789_v10 = vrot.slane %v7512_v41, 2 }
 0x2b4   : > { %v4585_v22 = vadd.f32 %v7896_v24, %v4549_v55  ;;  %v4514_v27 = vadd.f32 %v4482_v60, %v3943_v46  ;;  %v1925_v63 = vadd.f32 %v1863_v52, %v1769_v62  ;;  %v2500_v55 = vmul.f32 %v7333_v20, %v7619_v0  ;;  %v2182_v33 = vpop.f32.mrf.mxu0 }
 0x2b5   : > { %v2104_v31 = vsel %vm1014_vm3, %v9789_v10, %v2103_v14  ;;  %3450 = vst [vmem:[#allocation3 + $0x7a] sm:$0xff] %v2924_v56  ;;  %v2278_v16 = vmul.f32 %v9772_v42, %v2242_v32  ;;  %v2084_v53 = vadd.f32 %v2020_v51, %v1924_v19  ;;  %v4058_v52 = vmul.f32 %v7505_v36, %v7757_v37  ;;  %v1710_v32 = vpop.f32.mrf.mxu1 }
 0x2b6   : > { %v4617_v1 = vmax.f32 %v4585_v22, 0.0  ;;  %5061 = vmatmul.msk.f32.gmra.mxu0 %vm652_vm2, %v2104_v31  ;;  %v4550_v43 = vmul.f32 %v7878_v59, %v4514_v27  ;;  %v2085_v60 = vadd.f32 %v2023_v57, %v1925_v63  ;;  %v2536_v28 = vadd.f32 %v7354_v38, %v2500_v55 }
 0x2b7   : > { %v2960_v41 = vld [vmem:[#allocation2 + $0xd8] sm:$0xff]  ;;  %v2314_v14 = vadd.f32 %v9777_v34, %v2278_v16  ;;  %v2243_v0 = vadd.f32 %v2179_v45, %v2084_v53  ;;  %v4059_v51 = vmul.f32 %v7505_v36, %v7811_v6  ;;  %v2501_v37 = vmul.f32 %v7333_v20, %v7863_v5  ;;  %v9790_v16 = vld [vmem:[#allocation38_spill] sm:$0xff] }
 0x2b8   : > { %4649 = vst [vmem:[%s7170_s21 + $0x40] sm:$0xff] %v4617_v1  ;;  %v4586_v54 = vadd.f32 %v7896_v24, %v4550_v43  ;;  %v2994_v49 = vmul.f32 %v7483_v29, %v2960_v41  ;;  %v3062_v22 = vld [vmem:[#allocation2 + $0xd9] sm:$0xff]  ;;  %v2244_v57 = vadd.f32 %v2182_v33, %v2085_v60  ;;  %v7942_v60 = vadd.f32 %v9766_v13, %v4058_v52 }
 0x2b9   : > { %v2346_v46 = vmax.f32 %v2314_v14, 0.0  ;;  %v2279_v47 = vmul.f32 %v9772_v42, %v2243_v0  ;;  %v3096_v55 = vmul.f32 %v7545_v50, %v3062_v22  ;;  %v7947_v33 = vadd.f32 %v9766_v13, %v4059_v51 }
 0x2ba   : > { %v4618_v62 = vmax.f32 %v4586_v54, 0.0  ;;  %v3030_v27 = vadd.f32 %v7523_v17, %v2994_v49 }
 0x2bb   : > { %2432 = vst [vmem:[#allocation2 + $0xe2] sm:$0xff] %v2346_v46  ;;  %v2603_v45 = vmul.f32 %v9743_v25, %v2346_v46  ;;  %v2699_v10 = vmul.f32 %v9781_v44, %v2346_v46  ;;  %v2796_v31 = vmul.f32 %v9782_v2, %v2346_v46  ;;  %v2893_v6 = vmul.f32 %v9783_v35, %v2346_v46 }
 0x2bc   : > { %4650 = vst [vmem:[%s7170_s21 + $0x48] sm:$0xff] %v4618_v62  ;;  %v3482_v19 = vld [vmem:[#allocation3 + $0x78] sm:$0xff]  ;;  %v2315_v63 = vadd.f32 %v9777_v34, %v2279_v47  ;;  %v3128_v54 = vadd.f32 %v3096_v55, %v3030_v27  ;;  %v2537_v62 = vadd.f32 %v7354_v38, %v2501_v37  ;;  %v1866_v47 = vpop.f32.mrf.mxu2  ;;  %v2502_v51 = vmul.f32 %v7333_v20, %v2346_v46 }
 0x2bd   : > { %v7933_v1 = vadd.f32 %v2603_v45, %v2536_v28  ;;  %v7936_v43 = vadd.f32 %v2699_v10, %v9790_v16  ;;  %v7939_v53 = vadd.f32 %v2796_v31, %v7703_v23  ;;  %v2925_v41 = vadd.f32 %v2893_v6, %v7726_v26  ;;  %v3584_v49 = vld [vmem:[#allocation3 + $0x79] sm:$0xff] }
 0x2be   : > { %v3516_v14 = vmul.f32 %v7748_v39, %v3482_v19  ;;  %v7949_v0 = vmax.f32 %v2315_v63, 0.0  ;;  %v2280_v28 = vmul.f32 %v9772_v42, %v2244_v57  ;;  %v3162_v23 = vmul.f32 %v7576_v9, %v7863_v5  ;;  %v9791_v26 = vld [vmem:[#allocation65_spill] sm:$0xff] }
 0x2bf   : > { %3451 = vst [vmem:[#allocation3 + $0x82] sm:$0xff] %v2925_v41  ;;  %v1770_v22 = vadd.f32 %v1710_v32, %v9791_v26  ;;  %v3716_v27 = vmul.f32 %v7796_v15, %v2924_v56  ;;  %v3618_v31 = vmul.f32 %v7768_v11, %v3584_v49  ;;  %v3163_v55 = vmul.f32 %v7576_v9, %v2346_v46  ;;  %v1713_v49 = vpop.f32.mrf.mxu1  ;;  %v2026_v26 = vpop.f32.mrf.mxu3 }
 0x2c0   : > { %v3552_v52 = vadd.f32 %v7762_v18, %v3516_v14  ;;  %2433 = vst [vmem:[#allocation2 + $0xf2] sm:$0xff] %v7949_v0  ;;  %v2604_v42 = vmul.f32 %v9743_v25, %v7949_v0  ;;  %v2700_v57 = vmul.f32 %v9781_v44, %v7949_v0  ;;  %v2797_v32 = vmul.f32 %v9782_v2, %v7949_v0 }
 0x2c1   : > { %v2894_v20 = vmul.f32 %v9783_v35, %v7949_v0  ;;  %v2316_v56 = vadd.f32 %v9777_v34, %v2280_v28  ;;  %v3194_v37 = vadd.f32 %v3162_v23, %v3128_v54  ;;  %v1926_v44 = vadd.f32 %v1866_v47, %v1770_v22 }
 0x2c2   : > { %v2961_v45 = vld [vmem:[#allocation2 + $0xe0] sm:$0xff]  ;;  %v3650_v14 = vadd.f32 %v3618_v31, %v3552_v52  ;;  %v7976_v34 = vadd.f32 %v2604_v42, %v2537_v62  ;;  %v7979_v54 = vadd.f32 %v2700_v57, %v7887_v48  ;;  %v7982_v28 = vadd.f32 %v7354_v38, %v2502_v51 }
 0x2c3   : > { %v3063_v5 = vld [vmem:[#allocation2 + $0xe1] sm:$0xff]  ;;  %v2995_v6 = vmul.f32 %v7483_v29, %v2961_v45  ;;  %v7985_v46 = vadd.f32 %v2797_v32, %v7890_v58  ;;  %v7988_v52 = vadd.f32 %v2894_v20, %v7900_v21  ;;  %v7990_v47 = vmax.f32 %v2316_v56, 0.0 }
 0x2c4   : > { %v3226_v10 = vld [vmem:[#allocation2 + $0xdb] sm:$0xff]  ;;  %v3097_v63 = vmul.f32 %v7545_v50, %v3063_v5  ;;  %v3227_v23 = vld [vmem:[#allocation2 + $0xe3] sm:$0xff]  ;;  %v7997_v38 = vadd.f32 %v2026_v26, %v1926_v44  ;;  %v3717_v58 = vmul.f32 %v7796_v15, %v2925_v41  ;;  %v3748_v31 = vadd.f32 %v3716_v27, %v3650_v14 }
 0x2c5   : > { %v3260_v25 = vmul.f32 %v7626_v8, %v3226_v10  ;;  %v3324_v19 = vld [vmem:[#allocation2 + $0xdc] sm:$0xff]  ;;  %v3031_v13 = vadd.f32 %v7523_v17, %v2995_v6  ;;  %v3325_v22 = vld [vmem:[#allocation2 + $0xe4] sm:$0xff]  ;;  %3452 = vst [vmem:[#allocation3 + $0x92] sm:$0xff] %v7988_v52 }
 0x2c6   : > { %v3358_v16 = vmul.f32 %v7644_v7, %v3324_v19  ;;  %v3483_v62 = vld [vmem:[#allocation3 + $0x80] sm:$0xff]  ;;  %v3359_v20 = vmul.f32 %v7644_v7, %v3325_v22  ;;  %2434 = vst [vmem:[#allocation2 + $0xfa] sm:$0xff] %v7990_v47 }
 0x2c7   : > { %v3292_v36 = vadd.f32 %v3260_v25, %v3194_v37  ;;  %v3129_v45 = vadd.f32 %v3097_v63, %v3031_v13  ;;  %v3585_v42 = vld [vmem:[#allocation3 + $0x81] sm:$0xff]  ;;  %v3517_v51 = vmul.f32 %v7748_v39, %v3483_v62  ;;  %v3261_v13 = vmul.f32 %v7626_v8, %v3227_v23 }
 0x2c8   : > { %v3780_v48 = vld [vmem:[#allocation3 + $0x7b] sm:$0xff]  ;;  %v3619_v56 = vmul.f32 %v7768_v11, %v3585_v42  ;;  %v3781_v19 = vld [vmem:[#allocation3 + $0x83] sm:$0xff]  ;;  %v3064_v42 = vld [vmem:[#allocation2 + $0xf1] sm:$0xff] }
 0x2c9   : > { %v7992_v5 = vadd.f32 %v3358_v16, %v3292_v36  ;;  %v9792_v57 = vld [vmem:[#allocation66_spill] sm:$0xff]  ;;  %v3814_v21 = vmul.f32 %v7817_v12, %v3780_v48  ;;  %v3195_v36 = vadd.f32 %v3163_v55, %v3129_v45  ;;  %v3553_v37 = vadd.f32 %v7762_v18, %v3517_v51 }
 0x2ca   : > { %v7995_v10 = vadd.f32 %v1713_v49, %v9792_v57  ;;  %v3878_v32 = vld [vmem:[#allocation3 + $0x7c] sm:$0xff]  ;;  %v3879_v44 = vld [vmem:[#allocation3 + $0x84] sm:$0xff]  ;;  %v2962_v49 = vld [vmem:[#allocation2 + $0xf0] sm:$0xff] }
 0x2cb   : > { %v3846_v6 = vadd.f32 %v3814_v21, %v3748_v31  ;;  %v3912_v41 = vmul.f32 %v7836_v61, %v3878_v32  ;;  %v4161_v27 = vmul.f32 %v7673_v3, %v7992_v5  ;;  %v3293_v25 = vadd.f32 %v3261_v13, %v3195_v36  ;;  %v9793_v16 = vld [vmem:[#allocation18_spill] sm:$0xff]  ;;  %v9794_v57 = vld [vmem:[#allocation41_spill] sm:$0xff]  ;;  %v9796_v32 = vld [vmem:[#allocation28_spill] sm:$0xff] }
 0x2cc   : > { %v4257_v63 = vmul.f32 %v7679_v30, %v7992_v5  ;;  %v4354_v55 = vmul.f32 %v7685_v40, %v7992_v5  ;;  %v4451_v14 = vmul.f32 %v9793_v16, %v7992_v5  ;;  %v3651_v26 = vadd.f32 %v3619_v56, %v3553_v37  ;;  %v8023_v45 = vld [vmem:[%s9399_s4] ss:$0 sm:$0xff]  ;;  %v9795_v31 = vld [vmem:[#allocation13_spill] sm:$0xff] }
 0x2cd   : > { %v3944_v23 = vadd.f32 %v3912_v41, %v3846_v6  ;;  %v8018_v22 = vadd.f32 %v4161_v27, %v7942_v60  ;;  %v8027_v62 = vmul.f32 %v8023_v45, %v7949_v0  ;;  %v3391_v48 = vadd.f32 %v3359_v20, %v3293_v25 }
 0x2ce   : > { %v8030_v51 = vadd.f32 %v4257_v63, %v9794_v57  ;;  %v8033_v21 = vadd.f32 %v4354_v55, %v9795_v31  ;;  %v4483_v60 = vadd.f32 %v4451_v14, %v9796_v32  ;;  %v3749_v36 = vadd.f32 %v3717_v58, %v3651_v26  ;;  %v2185_v14 = vpop.f32.mrf.mxu0  ;;  %v9798_v32 = vld [vmem:[#allocation31_spill] sm:$0xff] }
 0x2cf   : > { %v3815_v13 = vmul.f32 %v7817_v12, %v3781_v19  ;;  %v3913_v56 = vmul.f32 %v7836_v61, %v3879_v44  ;;  %v2996_v37 = vmul.f32 %v7483_v29, %v2962_v49  ;;  %v4162_v6 = vmul.f32 %v7673_v3, %v3391_v48  ;;  %v9797_v49 = vld [vmem:[#allocation50_spill] sm:$0xff] }
 0x2d0   : > { %v4258_v41 = vmul.f32 %v7679_v30, %v3391_v48  ;;  %v4355_v20 = vmul.f32 %v7685_v40, %v3391_v48  ;;  %v3098_v27 = vmul.f32 %v7545_v50, %v3064_v42  ;;  %v4452_v63 = vmul.f32 %v9793_v16, %v3391_v48  ;;  %v2963_v42 = vld [vmem:[#allocation2 + $0xf8] sm:$0xff] }
 0x2d1   : > { %v3847_v25 = vadd.f32 %v3815_v13, %v3749_v36  ;;  %v4515_v55 = vadd.f32 %v4483_v60, %v3944_v23  ;;  %v3032_v58 = vadd.f32 %v7523_v17, %v2996_v37  ;;  %v8046_v19 = vadd.f32 %v4162_v6, %v7947_v33  ;;  %v8061_v33 = vld [vmem:[%s9399_s4 + $0x1] ss:$0 sm:$0xff]  ;;  %v8068_v13 = vld [vmem:[%s9399_s4 + $0x2] ss:$0 sm:$0xff]  ;;  %v3065_v6 = vld [vmem:[#allocation2 + $0xf9] sm:$0xff] }
 0x2d2   : > { %v8049_v44 = vadd.f32 %v4258_v41, %v7852_v4  ;;  %v8052_v26 = vadd.f32 %v4355_v20, %v9797_v49  ;;  %v3164_v57 = vmul.f32 %v7576_v9, %v7949_v0  ;;  %v4484_v36 = vadd.f32 %v4452_v63, %v9798_v32 }
 0x2d3   : > { %v3945_v31 = vadd.f32 %v3913_v56, %v3847_v25  ;;  %v4551_v23 = vmul.f32 %v7878_v59, %v4515_v55  ;;  %v3130_v60 = vadd.f32 %v3098_v27, %v3032_v58  ;;  %v2605_v4 = vmul.f32 %v8061_v33, %v7990_v47  ;;  %v3228_v25 = vld [vmem:[#allocation2 + $0xf3] sm:$0xff]  ;;  %v1869_v55 = vpop.f32.mrf.mxu2 }
 0x2d4   : > { %v2701_v0 = vmul.f32 %v8068_v13, %v7990_v47  ;;  %v2798_v56 = vmul.f32 %v9782_v2, %v7990_v47  ;;  %v2895_v37 = vmul.f32 %v9783_v35, %v7990_v47  ;;  %v2997_v27 = vmul.f32 %v7483_v29, %v2963_v42 }
 0x2d5   : > { %v4516_v41 = vadd.f32 %v4484_v36, %v3945_v31  ;;  %v4587_v20 = vadd.f32 %v7896_v24, %v4551_v23  ;;  %v2245_v63 = vadd.f32 %v2185_v14, %v7997_v38  ;;  %v8080_v58 = vadd.f32 %v2605_v4, %v7982_v28  ;;  %v3484_v31 = vld [vmem:[#allocation3 + $0x90] sm:$0xff]  ;;  %v3229_v14 = vld [vmem:[#allocation2 + $0xfb] sm:$0xff]  ;;  %v2029_v23 = vpop.f32.mrf.mxu3 }
 0x2d6   : > { %v8083_v49 = vadd.f32 %v2701_v0, %v7933_v1  ;;  %v8086_v2 = vadd.f32 %v2798_v56, %v7936_v43  ;;  %v2927_v35 = vadd.f32 %v2895_v37, %v7939_v53  ;;  %v3033_v42 = vadd.f32 %v7523_v17, %v2997_v27  ;;  %v3326_v28 = vld [vmem:[#allocation2 + $0xf4] sm:$0xff]  ;;  %v9799_v1 = vld [vmem:[#allocation11_spill] sm:$0xff] }
 0x2d7   : > { %v4552_v32 = vmul.f32 %v7878_v59, %v4516_v41  ;;  %v4619_v29 = vmax.f32 %v4587_v20, 0.0  ;;  %v3099_v38 = vmul.f32 %v7545_v50, %v3065_v6  ;;  %v3586_v36 = vld [vmem:[#allocation3 + $0x91] sm:$0xff]  ;;  %v4060_v4 = vmul.f32 %v9799_v1, %v7992_v5  ;;  %v1716_v6 = vpop.f32.mrf.mxu1  ;;  %v3327_v20 = vld [vmem:[#allocation2 + $0xfc] sm:$0xff] }
 0x2d8   : > { %v4061_v43 = vmul.f32 %v9799_v1, %v3391_v48  ;;  %v3196_v0 = vadd.f32 %v3164_v57, %v3130_v60  ;;  %v3262_v53 = vmul.f32 %v7626_v8, %v3228_v25  ;;  %3453 = vst [vmem:[#allocation3 + $0x9a] sm:$0xff] %v2927_v35  ;;  %v3165_v17 = vmul.f32 %v7576_v9, %v7990_v47  ;;  %v8108_v9 = vld [vmem:[%s9397_s2] ss:$0 sm:$0xff] }
 0x2d9   : > { %v4588_v56 = vadd.f32 %v7896_v24, %v4552_v32  ;;  %4651 = vst [vmem:[%s7170_s21 + $0x50] sm:$0xff] %v4619_v29  ;;  %v3131_v37 = vadd.f32 %v3099_v38, %v3033_v42  ;;  %v3518_v50 = vmul.f32 %v7748_v39, %v3484_v31  ;;  %v3263_v41 = vmul.f32 %v7626_v8, %v3229_v14  ;;  %v8111_v32 = vpop.f32.mrf.mxu0  ;;  %v8116_v8 = vld [vmem:[%s9400_s5] ss:$0 sm:$0xff] }
 0x2da   : > { %v3294_v5 = vadd.f32 %v3262_v53, %v3196_v0  ;;  %v3360_v48 = vmul.f32 %v7644_v7, %v3326_v28  ;;  %v3620_v57 = vmul.f32 %v7768_v11, %v3586_v36  ;;  %9800 = vst [vmem:[#allocation36_spill] sm:$0xff] %v8108_v9  ;;  %v2281_v31 = vmul.f32 %v8108_v9, %v2245_v63  ;;  %v9802_v14 = vld [vmem:[#allocation42_spill] sm:$0xff] }
 0x2db   : > { %v4620_v60 = vmax.f32 %v4588_v56, 0.0  ;;  %v3197_v27 = vadd.f32 %v3165_v17, %v3131_v37  ;;  %v3554_v25 = vadd.f32 %v7762_v18, %v3518_v50  ;;  %9801 = vst [vmem:[#allocation47_spill] sm:$0xff] %v8116_v8  ;;  %v8120_v29 = vadd.f32 %v8116_v8, %v8027_v62  ;;  %v8131_v0 = vld [vmem:[%s9398_s3] ss:$0 sm:$0xff]  ;;  %v9804_v62 = vld [vmem:[#allocation24_spill] sm:$0xff] }
 0x2dc   : > { %v8122_v42 = vadd.f32 %v3360_v48, %v3294_v5  ;;  %v1927_v38 = vadd.f32 %v1869_v55, %v7995_v10  ;;  %v1772_v28 = vadd.f32 %v1716_v6, %v9802_v14  ;;  %v3361_v63 = vmul.f32 %v7644_v7, %v3327_v20  ;;  %9803 = vst [vmem:[#allocation55_spill] sm:$0xff] %v8131_v0 }
 0x2dd   : > { %4652 = vst [vmem:[%s7170_s21 + $0x58] sm:$0xff] %v4620_v60  ;;  %v3295_v36 = vadd.f32 %v3263_v41, %v3197_v27  ;;  %v3652_v1 = vadd.f32 %v3620_v57, %v3554_v25  ;;  %v2317_v53 = vadd.f32 %v8131_v0, %v2281_v31  ;;  %v4096_v56 = vadd.f32 %v9804_v62, %v4060_v4  ;;  %v1872_v4 = vpop.f32.mrf.mxu2  ;;  %v2032_v14 = vpop.f32.mrf.mxu3 }
 0x2de   : > { %v4097_v37 = vadd.f32 %v9804_v62, %v4061_v43  ;;  %v3718_v10 = vmul.f32 %v7796_v15, %v7988_v52  ;;  %v4163_v55 = vmul.f32 %v7673_v3, %v8122_v42  ;;  %v3719_v6 = vmul.f32 %v7796_v15, %v2927_v35 }
 0x2df   : > { %v8140_v17 = vadd.f32 %v3361_v63, %v3295_v36  ;;  %v3485_v7 = vld [vmem:[#allocation3 + $0x98] sm:$0xff]  ;;  %v4259_v5 = vmul.f32 %v7679_v30, %v8122_v42  ;;  %v8145_v20 = vmax.f32 %v2317_v53, 0.0  ;;  %v4356_v60 = vmul.f32 %v7685_v40, %v8122_v42 }
 0x2e0   : > { %v3587_v50 = vld [vmem:[#allocation3 + $0x99] sm:$0xff]  ;;  %v3519_v43 = vmul.f32 %v7748_v39, %v3485_v7  ;;  %v3750_v48 = vadd.f32 %v3718_v10, %v3652_v1  ;;  %v4453_v25 = vmul.f32 %v9793_v16, %v8122_v42  ;;  %v2087_v31 = vadd.f32 %v2029_v23, %v1927_v38  ;;  %v1719_v38 = vpop.f32.mrf.mxu1 }
 0x2e1   : > { %v3782_v41 = vld [vmem:[#allocation3 + $0x93] sm:$0xff]  ;;  %v3621_v27 = vmul.f32 %v7768_v11, %v3587_v50  ;;  %2435 = vst [vmem:[#allocation2 + $0x10a] sm:$0xff] %v8145_v20  ;;  %v4164_v1 = vmul.f32 %v7673_v3, %v8140_v17  ;;  %v8159_v53 = vadd.f32 %v4163_v55, %v4096_v56  ;;  %v3783_v62 = vld [vmem:[#allocation3 + $0x9b] sm:$0xff]  ;;  %v4260_v10 = vmul.f32 %v7679_v30, %v8140_v17 }
 0x2e2   : > { %v3816_v52 = vmul.f32 %v7817_v12, %v3782_v41  ;;  %v3880_v57 = vld [vmem:[#allocation3 + $0x94] sm:$0xff]  ;;  %v3555_v36 = vadd.f32 %v7762_v18, %v3519_v43  ;;  %v8164_v7 = vadd.f32 %v4259_v5, %v8018_v22  ;;  %v4357_v50 = vmul.f32 %v7685_v40, %v8140_v17  ;;  %v3881_v56 = vld [vmem:[#allocation3 + $0x9c] sm:$0xff] }
 0x2e3   : > { %v3914_v35 = vmul.f32 %v7836_v61, %v3880_v57  ;;  %v1928_v23 = vadd.f32 %v1872_v4, %v1772_v28  ;;  %v8171_v3 = vadd.f32 %v4356_v60, %v8030_v51  ;;  %v8174_v55 = vadd.f32 %v4260_v10, %v8046_v19  ;;  %v2191_v28 = vpop.f32.mrf.mxu0 }
 0x2e4   : > { %v3848_v63 = vadd.f32 %v3816_v52, %v3750_v48  ;;  %v3653_v41 = vadd.f32 %v3621_v27, %v3555_v36  ;;  %v8168_v48 = vadd.f32 %v4164_v1, %v4097_v37  ;;  %v8177_v30 = vadd.f32 %v4357_v50, %v8049_v44  ;;  %v8191_v44 = vld [vmem:[%s9399_s4 + $0x3] ss:$0 sm:$0xff] }
 0x2e5   : > { %v4454_v22 = vmul.f32 %v9793_v16, %v8140_v17  ;;  %v4485_v40 = vadd.f32 %v4453_v25, %v8033_v21  ;;  %v3817_v37 = vmul.f32 %v7817_v12, %v3783_v62  ;;  %v2606_v51 = vmul.f32 %v8061_v33, %v8145_v20  ;;  %v1875_v62 = vpop.f32.mrf.mxu2 }
 0x2e6   : > { %v3946_v43 = vadd.f32 %v3914_v35, %v3848_v63  ;;  %v3751_v5 = vadd.f32 %v3719_v6, %v3653_v41  ;;  %v2702_v4 = vmul.f32 %v8068_v13, %v8145_v20  ;;  %v2799_v21 = vmul.f32 %v8191_v44, %v8145_v20  ;;  %v8198_v6 = vld [vmem:[%s9399_s4 + $0x4] ss:$0 sm:$0xff]  ;;  %v9805_v41 = vld [vmem:[#allocation15_spill] sm:$0xff] }
 0x2e7   : > { %v4486_v19 = vadd.f32 %v4454_v22, %v8052_v26  ;;  %v2896_v57 = vmul.f32 %v8198_v6, %v8145_v20  ;;  %v3915_v26 = vmul.f32 %v7836_v61, %v3881_v56  ;;  %v8204_v27 = vadd.f32 %v2606_v51, %v8120_v29  ;;  %v8224_v56 = vld [vmem:[%s9403_s8] ss:$0 sm:$0xff]  ;;  %v2035_v22 = vpop.f32.mrf.mxu3 }
 0x2e8   : > { %v4517_v52 = vadd.f32 %v4485_v40, %v3946_v43  ;;  %v3849_v60 = vadd.f32 %v3817_v37, %v3751_v5  ;;  %v8207_v35 = vadd.f32 %v2702_v4, %v7976_v34  ;;  %v2964_v25 = vld [vmem:[#allocation2 + $0x108] sm:$0xff]  ;;  %v8211_v63 = vadd.f32 %v2799_v21, %v7979_v54  ;;  %v1722_v5 = vpop.f32.mrf.mxu1 }
 0x2e9   : > { %v8214_v1 = vadd.f32 %v2896_v57, %v7985_v46  ;;  %v2246_v50 = vadd.f32 %v8111_v32, %v2087_v31  ;;  %v1773_v43 = vadd.f32 %v1719_v38, %v9805_v41  ;;  %v2504_v29 = vmul.f32 %v8023_v45, %v7990_v47  ;;  %v3066_v51 = vld [vmem:[#allocation2 + $0x109] sm:$0xff]  ;;  %v8243_v57 = vld [vmem:[%s9405_s10] ss:$0 sm:$0xff]  ;;  %v8256_v41 = vld [vmem:[%s9403_s8 + $0x1] ss:$0 sm:$0xff] }
 0x2ea   : > { %v4553_v36 = vmul.f32 %v7878_v59, %v4517_v52  ;;  %v3947_v10 = vadd.f32 %v3915_v26, %v3849_v60  ;;  %v2998_v54 = vmul.f32 %v8224_v56, %v2964_v25  ;;  %v2088_v46 = vadd.f32 %v2032_v14, %v1928_v23  ;;  %v8236_v14 = vld [vmem:[%s9404_s9] ss:$0 sm:$0xff] }
 0x2eb   : > { %3454 = vst [vmem:[#allocation3 + $0xaa] sm:$0xff] %v8214_v1  ;;  %v2282_v31 = vmul.f32 %v8108_v9, %v2246_v50  ;;  %v1929_v38 = vadd.f32 %v1875_v62, %v1773_v43  ;;  %v2540_v21 = vadd.f32 %v8116_v8, %v2504_v29  ;;  %v4062_v60 = vmul.f32 %v8243_v57, %v8122_v42 }
 0x2ec   : > { %v4589_v34 = vadd.f32 %v7896_v24, %v4553_v36  ;;  %v4518_v32 = vadd.f32 %v4486_v19, %v3947_v10  ;;  %v2247_v47 = vadd.f32 %v2191_v28, %v2088_v46  ;;  %v3034_v23 = vadd.f32 %v8236_v14, %v2998_v54  ;;  %v2194_v28 = vpop.f32.mrf.mxu0  ;;  %v9806_v36 = vld [vmem:[#allocation53_spill] sm:$0xff] }
 0x2ed   : > { %v2318_v4 = vadd.f32 %v8131_v0, %v2282_v31  ;;  %v2089_v52 = vadd.f32 %v2035_v22, %v1929_v38  ;;  %v1774_v62 = vadd.f32 %v1722_v5, %v9806_v36  ;;  %v4063_v10 = vmul.f32 %v8243_v57, %v8140_v17  ;;  %v8277_v5 = vld [vmem:[%s9403_s8 + $0x2] ss:$0 sm:$0xff] }
 0x2ee   : > { %v4621_v40 = vmax.f32 %v4589_v34, 0.0  ;;  %v4554_v37 = vmul.f32 %v7878_v59, %v4518_v32  ;;  %v2283_v19 = vmul.f32 %v8108_v9, %v2247_v47  ;;  %v2505_v50 = vmul.f32 %v8023_v45, %v8145_v20 }
 0x2ef   : > { %v2350_v25 = vmax.f32 %v2318_v4, 0.0  ;;  %v3100_v43 = vmul.f32 %v8256_v41, %v3066_v51  ;;  %v2248_v46 = vadd.f32 %v2194_v28, %v2089_v52 }
 0x2f0   : > { %4653 = vst [vmem:[%s7170_s21 + $0x60] sm:$0xff] %v4621_v40  ;;  %v4590_v26 = vadd.f32 %v7896_v24, %v4554_v37  ;;  %v2319_v42 = vadd.f32 %v8131_v0, %v2283_v19  ;;  %v8268_v40 = vld [vmem:[%s9406_s11] ss:$0 sm:$0xff]  ;;  %v3166_v37 = vmul.f32 %v8277_v5, %v8145_v20  ;;  %v2541_v20 = vadd.f32 %v8116_v8, %v2505_v50 }
 0x2f1   : > { %2436 = vst [vmem:[#allocation2 + $0x112] sm:$0xff] %v2350_v25  ;;  %v2607_v34 = vmul.f32 %v8061_v33, %v2350_v25  ;;  %v2703_v54 = vmul.f32 %v8068_v13, %v2350_v25  ;;  %v3132_v22 = vadd.f32 %v3100_v43, %v3034_v23  ;;  %v2800_v32 = vmul.f32 %v8191_v44, %v2350_v25  ;;  %v1878_v23 = vpop.f32.mrf.mxu2 }
 0x2f2   : > { %v4622_v29 = vmax.f32 %v4590_v26, 0.0  ;;  %v3486_v17 = vld [vmem:[#allocation3 + $0xa8] sm:$0xff]  ;;  %v2897_v31 = vmul.f32 %v8198_v6, %v2350_v25  ;;  %9807 = vst [vmem:[#allocation52_spill] sm:$0xff] %v8268_v40  ;;  %v8271_v47 = vadd.f32 %v8268_v40, %v4062_v60  ;;  %v2351_v26 = vmax.f32 %v2319_v42, 0.0 }
 0x2f3   : > { %v3520_v38 = vmul.f32 %v7748_v39, %v3486_v17  ;;  %v8281_v51 = vadd.f32 %v2607_v34, %v2540_v21  ;;  %v8284_v4 = vadd.f32 %v2703_v54, %v8080_v58  ;;  %v3588_v52 = vld [vmem:[#allocation3 + $0xa9] sm:$0xff]  ;;  %v8287_v19 = vadd.f32 %v2800_v32, %v8083_v49  ;;  %v2038_v54 = vpop.f32.mrf.mxu3 }
 0x2f4   : > { %4654 = vst [vmem:[%s7170_s21 + $0x68] sm:$0xff] %v4622_v29  ;;  %v2929_v28 = vadd.f32 %v2897_v31, %v8086_v2  ;;  %v8292_v36 = vadd.f32 %v8268_v40, %v4063_v10  ;;  %v3720_v21 = vmul.f32 %v7796_v15, %v8214_v1  ;;  %v2284_v58 = vmul.f32 %v8108_v9, %v2248_v46 }
 0x2f5   : > { %v3556_v60 = vadd.f32 %v7762_v18, %v3520_v38  ;;  %v3198_v43 = vadd.f32 %v3166_v37, %v3132_v22  ;;  %v3622_v49 = vmul.f32 %v7768_v11, %v3588_v52  ;;  %v2608_v29 = vmul.f32 %v8061_v33, %v2351_v26  ;;  %2437 = vst [vmem:[#allocation2 + $0x122] sm:$0xff] %v2351_v26  ;;  %v8312_v37 = vld [vmem:[%s9403_s8 + $0x3] ss:$0 sm:$0xff] }
 0x2f6   : > { %3455 = vst [vmem:[#allocation3 + $0xb2] sm:$0xff] %v2929_v28  ;;  %v1930_v2 = vadd.f32 %v1878_v23, %v1774_v62  ;;  %v2506_v34 = vmul.f32 %v8023_v45, %v2350_v25  ;;  %v2704_v10 = vmul.f32 %v8068_v13, %v2351_v26  ;;  %v2801_v42 = vmul.f32 %v8191_v44, %v2351_v26 }
 0x2f7   : > { %v2898_v50 = vmul.f32 %v8198_v6, %v2351_v26  ;;  %v3167_v46 = vmul.f32 %v8277_v5, %v2350_v25  ;;  %v3654_v32 = vadd.f32 %v3622_v49, %v3556_v60  ;;  %v8305_v31 = vadd.f32 %v2608_v29, %v2541_v20  ;;  %v1725_v60 = vpop.f32.mrf.mxu1 }
 0x2f8   : > { %v2965_v1 = vld [vmem:[#allocation2 + $0x110] sm:$0xff]  ;;  %v2320_v62 = vadd.f32 %v8131_v0, %v2284_v58  ;;  %v2507_v40 = vmul.f32 %v8023_v45, %v2351_v26  ;;  %v8317_v25 = vadd.f32 %v2704_v10, %v8204_v27  ;;  %v8323_v58 = vld [vmem:[%s9403_s8 + $0x4] ss:$0 sm:$0xff]  ;;  %v8327_v29 = vadd.f32 %v2801_v42, %v8207_v35  ;;  %v2197_v42 = vpop.f32.mrf.mxu0 }
 0x2f9   : > { %v3067_v17 = vld [vmem:[#allocation2 + $0x111] sm:$0xff]  ;;  %9808 = vst [vmem:[#allocation14_spill] sm:$0xff] %v8305_v31  ;;  %v2999_v38 = vmul.f32 %v8224_v56, %v2965_v1  ;;  %v2090_v1 = vadd.f32 %v2038_v54, %v1930_v2  ;;  %v8331_v10 = vadd.f32 %v2898_v50, %v8211_v63  ;;  %v3721_v9 = vmul.f32 %v7796_v15, %v2929_v28 }
 0x2fa   : > { %v3230_v22 = vld [vmem:[#allocation2 + $0x10b] sm:$0xff]  ;;  %9809 = vst [vmem:[#allocation34_spill] sm:$0xff] %v8317_v25  ;;  %v3101_v20 = vmul.f32 %v8256_v41, %v3067_v17  ;;  %v3231_v31 = vld [vmem:[#allocation2 + $0x113] sm:$0xff]  ;;  %v8333_v17 = vmax.f32 %v2320_v62, 0.0  ;;  %v8336_v25 = vadd.f32 %v8116_v8, %v2506_v34  ;;  %v3752_v63 = vadd.f32 %v3720_v21, %v3654_v32 }
 0x2fb   : > { %v3264_v52 = vmul.f32 %v8312_v37, %v3230_v22  ;;  %v3328_v23 = vld [vmem:[#allocation2 + $0x10c] sm:$0xff]  ;;  %9810 = vst [vmem:[#allocation40_spill] sm:$0xff] %v8323_v58  ;;  %v3035_v22 = vadd.f32 %v8236_v14, %v2999_v38  ;;  %v3329_v27 = vld [vmem:[#allocation2 + $0x114] sm:$0xff]  ;;  %v8346_v62 = vadd.f32 %v8116_v8, %v2507_v40  ;;  %v3265_v15 = vmul.f32 %v8312_v37, %v3231_v31 }
 0x2fc   : > { %v3362_v49 = vmul.f32 %v8323_v58, %v3328_v23  ;;  %9811 = vst [vmem:[#allocation19_spill] sm:$0xff] %v8327_v29  ;;  %v8340_v23 = vmul.f32 %v8277_v5, %v2351_v26  ;;  %v9812_v35 = vld [vmem:[#allocation44_spill] sm:$0xff]  ;;  %v3363_v28 = vmul.f32 %v8323_v58, %v3329_v27  ;;  %v2609_v40 = vmul.f32 %v8061_v33, %v8333_v17  ;;  %v1881_v29 = vpop.f32.mrf.mxu2 }
 0x2fd   : > { %v3296_v0 = vadd.f32 %v3264_v52, %v3198_v43  ;;  %v1775_v2 = vadd.f32 %v1725_v60, %v9812_v35  ;;  %v3133_v54 = vadd.f32 %v3101_v20, %v3035_v22  ;;  %v3487_v43 = vld [vmem:[#allocation3 + $0xb0] sm:$0xff]  ;;  %9813 = vst [vmem:[#allocation49_spill] sm:$0xff] %v8346_v62  ;;  %v8357_v32 = vadd.f32 %v2197_v42, %v2090_v1  ;;  %v8371_v1 = vld [vmem:[%s9405_s10 + $0x2] ss:$0 sm:$0xff]  ;;  %v8378_v35 = vld [vmem:[%s9405_s10 + $0x3] ss:$0 sm:$0xff] }
 0x2fe   : > { %v3589_v52 = vld [vmem:[#allocation3 + $0xb1] sm:$0xff]  ;;  %3456 = vst [vmem:[#allocation3 + $0xc2] sm:$0xff] %v8331_v10  ;;  %v3521_v26 = vmul.f32 %v7748_v39, %v3487_v43  ;;  %v8364_v39 = vld [vmem:[%s9405_s10 + $0x1] ss:$0 sm:$0xff] }
 0x2ff   : > { %v8343_v38 = vadd.f32 %v3362_v49, %v3296_v0  ;;  %v3784_v50 = vld [vmem:[#allocation3 + $0xab] sm:$0xff]  ;;  %2438 = vst [vmem:[#allocation2 + $0x12a] sm:$0xff] %v8333_v17  ;;  %v3199_v0 = vadd.f32 %v3167_v46, %v3133_v54  ;;  %v3623_v21 = vmul.f32 %v7768_v11, %v3589_v52  ;;  %v3785_v11 = vld [vmem:[#allocation3 + $0xb3] sm:$0xff]  ;;  %v2966_v43 = vld [vmem:[#allocation2 + $0x120] sm:$0xff] }
 0x300   : > { %v3818_v34 = vmul.f32 %v7817_v12, %v3784_v50  ;;  %v3882_v60 = vld [vmem:[#allocation3 + $0xac] sm:$0xff]  ;;  %v3557_v20 = vadd.f32 %v7762_v18, %v3521_v26  ;;  %v3883_v27 = vld [vmem:[#allocation3 + $0xb4] sm:$0xff]  ;;  %9814 = vst [vmem:[#allocation58_spill] sm:$0xff] %v8371_v1  ;;  %v2705_v26 = vmul.f32 %v8068_v13, %v8333_v17 }
 0x301   : > { %v3916_v49 = vmul.f32 %v7836_v61, %v3882_v60  ;;  %v4165_v46 = vmul.f32 %v8364_v39, %v8343_v38  ;;  %v3297_v22 = vadd.f32 %v3265_v15, %v3199_v0  ;;  %v4261_v18 = vmul.f32 %v8371_v1, %v8343_v38  ;;  %v3068_v15 = vld [vmem:[#allocation2 + $0x121] sm:$0xff] }
 0x302   : > { %v3850_v31 = vadd.f32 %v3818_v34, %v3752_v63  ;;  %v4358_v42 = vmul.f32 %v8378_v35, %v8343_v38  ;;  %v4455_v54 = vmul.f32 %v9793_v16, %v8343_v38  ;;  %v3655_v52 = vadd.f32 %v3623_v21, %v3557_v20 }
 0x303   : > { %v8385_v50 = vadd.f32 %v4165_v46, %v8271_v47  ;;  %v3395_v34 = vadd.f32 %v3363_v28, %v3297_v22  ;;  %v8390_v60 = vadd.f32 %v4261_v18, %v8159_v53  ;;  %v3819_v21 = vmul.f32 %v7817_v12, %v3785_v11 }
 0x304   : > { %v3948_v63 = vadd.f32 %v3916_v49, %v3850_v31  ;;  %v8393_v0 = vadd.f32 %v4358_v42, %v8164_v7  ;;  %v4487_v8 = vadd.f32 %v4455_v54, %v8171_v3  ;;  %v3753_v62 = vadd.f32 %v3721_v9, %v3655_v52  ;;  %v1728_v7 = vpop.f32.mrf.mxu1  ;;  %v8416_v42 = vpop.f32.mrf.mxu3 }
 0x305   : > { %v3917_v47 = vmul.f32 %v7836_v61, %v3883_v27  ;;  %v3000_v20 = vmul.f32 %v8224_v56, %v2966_v43  ;;  %v4166_v31 = vmul.f32 %v8364_v39, %v3395_v34  ;;  %v4262_v28 = vmul.f32 %v8371_v1, %v3395_v34 }
 0x306   : > { %v4359_v53 = vmul.f32 %v8378_v35, %v3395_v34  ;;  %v3102_v49 = vmul.f32 %v8256_v41, %v3068_v15  ;;  %v3851_v46 = vadd.f32 %v3819_v21, %v3753_v62  ;;  %v4456_v3 = vmul.f32 %v9793_v16, %v3395_v34  ;;  %v2967_v27 = vld [vmem:[#allocation2 + $0x128] sm:$0xff]  ;;  %v3488_v15 = vld [vmem:[#allocation3 + $0xc0] sm:$0xff]  ;;  %v9815_v21 = vld [vmem:[#allocation20_spill] sm:$0xff] }
 0x307   : > { %v4519_v22 = vadd.f32 %v4487_v8, %v3948_v63  ;;  %v3036_v9 = vadd.f32 %v8236_v14, %v3000_v20  ;;  %v8406_v12 = vadd.f32 %v4166_v31, %v8292_v36  ;;  %v8409_v61 = vadd.f32 %v4262_v28, %v8168_v48  ;;  %v3069_v43 = vld [vmem:[#allocation2 + $0x129] sm:$0xff] }
 0x308   : > { %v8412_v11 = vadd.f32 %v4359_v53, %v8174_v55  ;;  %v8414_v18 = vadd.f32 %v1881_v29, %v1775_v2  ;;  %v3949_v62 = vadd.f32 %v3917_v47, %v3851_v46  ;;  %v4488_v16 = vadd.f32 %v4456_v3, %v8177_v30  ;;  %v3232_v2 = vld [vmem:[#allocation2 + $0x123] sm:$0xff]  ;;  %v8444_v46 = vpop.f32.mrf.mxu0  ;;  %v3233_v3 = vld [vmem:[#allocation2 + $0x12b] sm:$0xff] }
 0x309   : > { %v4555_v8 = vmul.f32 %v7878_v59, %v4519_v22  ;;  %v3134_v54 = vadd.f32 %v3102_v49, %v3036_v9  ;;  %v8421_v36 = vadd.f32 %v2609_v40, %v8336_v25  ;;  %v8424_v48 = vadd.f32 %v2705_v26, %v8281_v51  ;;  %v3330_v20 = vld [vmem:[#allocation2 + $0x124] sm:$0xff]  ;;  %v1884_v9 = vpop.f32.mrf.mxu2 }
 0x30a   : > { %v2802_v55 = vmul.f32 %v8191_v44, %v8333_v17  ;;  %v2899_v29 = vmul.f32 %v8198_v6, %v8333_v17  ;;  %v4520_v52 = vadd.f32 %v4488_v16, %v3949_v62  ;;  %v3001_v63 = vmul.f32 %v8224_v56, %v2967_v27 }
 0x30b   : > { %v4591_v30 = vadd.f32 %v7896_v24, %v4555_v8  ;;  %v8433_v47 = vadd.f32 %v1728_v7, %v9815_v21  ;;  %v3200_v25 = vadd.f32 %v8340_v23, %v3134_v54  ;;  %v3103_v26 = vmul.f32 %v8256_v41, %v3069_v43  ;;  %v3590_v7 = vld [vmem:[#allocation3 + $0xc1] sm:$0xff]  ;;  %v3331_v8 = vld [vmem:[#allocation2 + $0x12c] sm:$0xff]  ;;  %v8467_v54 = vld [vmem:[%s9402_s7] ss:$0 sm:$0xff] }
 0x30c   : > { %v8437_v51 = vadd.f32 %v2802_v55, %v8284_v4  ;;  %v2931_v40 = vadd.f32 %v2899_v29, %v8287_v19  ;;  %v4556_v31 = vmul.f32 %v7878_v59, %v4520_v52  ;;  %v3037_v53 = vadd.f32 %v8236_v14, %v3001_v63  ;;  %v8454_v59 = vld [vmem:[%s9401_s6] ss:$0 sm:$0xff]  ;;  %v9816_v29 = vld [vmem:[#allocation36_spill] sm:$0xff] }
 0x30d   : > { %v4623_v28 = vmax.f32 %v4591_v30, 0.0  ;;  %v3266_v49 = vmul.f32 %v8312_v37, %v3232_v2  ;;  %v4064_v4 = vmul.f32 %v8243_v57, %v8343_v38  ;;  %v4065_v23 = vmul.f32 %v8243_v57, %v3395_v34  ;;  %v1731_v2 = vpop.f32.mrf.mxu1  ;;  %v9817_v21 = vld [vmem:[#allocation52_spill] sm:$0xff] }
 0x30e   : > { %v3169_v19 = vmul.f32 %v8277_v5, %v8333_v17  ;;  %3457 = vst [vmem:[#allocation3 + $0xca] sm:$0xff] %v2931_v40  ;;  %v3522_v22 = vmul.f32 %v8454_v59, %v3488_v15  ;;  %v4592_v27 = vadd.f32 %v7896_v24, %v4556_v31  ;;  %v3135_v62 = vadd.f32 %v3103_v26, %v3037_v53  ;;  %v8473_v24 = vld [vmem:[%s9401_s6 + $0x1] ss:$0 sm:$0xff]  ;;  %v9818_v31 = vld [vmem:[#allocation55_spill] sm:$0xff]  ;;  %v8484_v53 = vpop.f32.mrf.mxu3 }
 0x30f   : > { %4655 = vst [vmem:[%s7170_s21 + $0x70] sm:$0xff] %v4623_v28  ;;  %v3298_v38 = vadd.f32 %v3266_v49, %v3200_v25  ;;  %v3364_v34 = vmul.f32 %v8323_v58, %v3330_v20  ;;  %v8462_v16 = vmul.f32 %v8023_v45, %v8333_v17  ;;  %v3624_v55 = vmul.f32 %v8473_v24, %v3590_v7 }
 0x310   : > { %v3558_v43 = vadd.f32 %v8467_v54, %v3522_v22  ;;  %v2285_v17 = vmul.f32 %v9816_v29, %v8357_v32  ;;  %v4624_v52 = vmax.f32 %v4592_v27, 0.0  ;;  %v3201_v30 = vadd.f32 %v3169_v19, %v3135_v62 }
 0x311   : > { %v3267_v63 = vmul.f32 %v8312_v37, %v3233_v3  ;;  %v8479_v15 = vadd.f32 %v3364_v34, %v3298_v38  ;;  %v4100_v25 = vadd.f32 %v9817_v21, %v4064_v4  ;;  %v4101_v26 = vadd.f32 %v9817_v21, %v4065_v23  ;;  %v8495_v4 = vld [vmem:[%s9401_s6 + $0x2] ss:$0 sm:$0xff] }
 0x312   : > { %v3656_v20 = vadd.f32 %v3624_v55, %v3558_v43  ;;  %v2321_v28 = vadd.f32 %v9818_v31, %v2285_v17  ;;  %4656 = vst [vmem:[%s7170_s21 + $0x78] sm:$0xff] %v4624_v52  ;;  %v3365_v32 = vmul.f32 %v8323_v58, %v3331_v8  ;;  %v3722_v23 = vmul.f32 %v8495_v4, %v8331_v10  ;;  %v8512_v10 = vld [vmem:[%s9405_s10 + $0x4] ss:$0 sm:$0xff] }
 0x313   : > { %v3299_v49 = vadd.f32 %v3267_v63, %v3201_v30  ;;  %v4167_v7 = vmul.f32 %v8364_v39, %v8479_v15  ;;  %v4263_v19 = vmul.f32 %v8371_v1, %v8479_v15  ;;  %v3723_v3 = vmul.f32 %v8495_v4, %v2931_v40  ;;  %9821 = vst [vmem:[#allocation22_spill] sm:$0xff] %v8512_v10  ;;  %v8520_v30 = vld [vmem:[%s9401_s6 + $0x3] ss:$0 sm:$0xff] }
 0x314   : > { %v4360_v22 = vmul.f32 %v8378_v35, %v8479_v15  ;;  %v8502_v27 = vmax.f32 %v2321_v28, 0.0  ;;  %v4457_v40 = vmul.f32 %v8512_v10, %v8479_v15  ;;  %v3754_v52 = vadd.f32 %v3722_v23, %v3656_v20  ;;  %9822 = vst [vmem:[#allocation60_spill] sm:$0xff] %v8520_v30 }
 0x315   : > { %v3397_v62 = vadd.f32 %v3365_v32, %v3299_v49  ;;  %v3489_v38 = vld [vmem:[#allocation3 + $0xc8] sm:$0xff]  ;;  %v8504_v43 = vadd.f32 %v4167_v7, %v4100_v25  ;;  %v8507_v55 = vadd.f32 %v4263_v19, %v8385_v50  ;;  %v8531_v49 = vld [vmem:[%s9401_s6 + $0x4] ss:$0 sm:$0xff]  ;;  %v2091_v32 = vadd.f32 %v8416_v42, %v8414_v18  ;;  %v2203_v19 = vpop.f32.mrf.mxu0 }
 0x316   : > { %v3591_v34 = vld [vmem:[#allocation3 + $0xc9] sm:$0xff]  ;;  %v3523_v17 = vmul.f32 %v8454_v59, %v3489_v38  ;;  %v8524_v25 = vadd.f32 %v4360_v22, %v8390_v60  ;;  %2439 = vst [vmem:[#allocation2 + $0x13a] sm:$0xff] %v8502_v27  ;;  %v1932_v7 = vadd.f32 %v1884_v9, %v8433_v47 }
 0x317   : > { %v3786_v8 = vld [vmem:[#allocation3 + $0xc3] sm:$0xff]  ;;  %9819 = vst [vmem:[#allocation45_spill] sm:$0xff] %v8504_v43  ;;  %v3625_v28 = vmul.f32 %v8473_v24, %v3591_v34  ;;  %v3787_v23 = vld [vmem:[#allocation3 + $0xcb] sm:$0xff]  ;;  %v4168_v38 = vmul.f32 %v8364_v39, %v3397_v62  ;;  %v4264_v34 = vmul.f32 %v8371_v1, %v3397_v62 }
 0x318   : > { %9820 = vst [vmem:[#allocation57_spill] sm:$0xff] %v8507_v55  ;;  %v3820_v63 = vmul.f32 %v8520_v30, %v3786_v8  ;;  %v3884_v50 = vld [vmem:[#allocation3 + $0xc4] sm:$0xff]  ;;  %v3559_v60 = vadd.f32 %v8467_v54, %v3523_v17  ;;  %v1887_v8 = vpop.f32.mrf.mxu2  ;;  %v4458_v55 = vmul.f32 %v8512_v10, %v3397_v62  ;;  %v9824_v43 = vld [vmem:[#allocation56_spill] sm:$0xff] }
 0x319   : > { %9823 = vst [vmem:[#allocation26_spill] sm:$0xff] %v8524_v25  ;;  %v3918_v20 = vmul.f32 %v8531_v49, %v3884_v50  ;;  %v4361_v25 = vmul.f32 %v8378_v35, %v3397_v62  ;;  %v4489_v50 = vadd.f32 %v4457_v40, %v8393_v0  ;;  %v1777_v18 = vadd.f32 %v1731_v2, %v9824_v43  ;;  %v3885_v47 = vld [vmem:[#allocation3 + $0xcc] sm:$0xff]  ;;  %v2047_v40 = vpop.f32.mrf.mxu3 }
 0x31a   : > { %v3852_v22 = vadd.f32 %v3820_v63, %v3754_v52  ;;  %v3657_v42 = vadd.f32 %v3625_v28, %v3559_v60  ;;  %v8544_v58 = vadd.f32 %v4168_v38, %v4101_v26  ;;  %v8547_v17 = vadd.f32 %v4264_v34, %v8406_v12  ;;  %v1734_v52 = vpop.f32.mrf.mxu1  ;;  %v8571_v60 = vld [vmem:[%s9407_s12] ss:$0 sm:$0xff] }
 0x31b   : > { %v3821_v63 = vmul.f32 %v8520_v30, %v3787_v23  ;;  %v8551_v1 = vadd.f32 %v4361_v25, %v8409_v61  ;;  %v4490_v10 = vadd.f32 %v4458_v55, %v8412_v11  ;;  %v2610_v0 = vmul.f32 %v8061_v33, %v8502_v27  ;;  %v9825_v25 = vld [vmem:[#allocation49_spill] sm:$0xff]  ;;  %v9827_v34 = vld [vmem:[#allocation34_spill] sm:$0xff] }
 0x31c   : > { %v3950_v9 = vadd.f32 %v3918_v20, %v3852_v22  ;;  %v3755_v2 = vadd.f32 %v3723_v3, %v3657_v42  ;;  %v2706_v26 = vmul.f32 %v8068_v13, %v8502_v27  ;;  %v2803_v12 = vmul.f32 %v8191_v44, %v8502_v27  ;;  %v9826_v22 = vld [vmem:[#allocation14_spill] sm:$0xff] }
 0x31d   : > { %v3919_v28 = vmul.f32 %v8531_v49, %v3885_v47  ;;  %v4066_v61 = vmul.f32 %v8243_v57, %v8479_v15  ;;  %v8564_v20 = vadd.f32 %v2610_v0, %v9825_v25  ;;  %v2900_v11 = vmul.f32 %v8198_v6, %v8502_v27  ;;  %v2968_v3 = vld [vmem:[#allocation2 + $0x138] sm:$0xff]  ;;  %v9828_v47 = vld [vmem:[#allocation19_spill] sm:$0xff] }
 0x31e   : > { %v4521_v43 = vadd.f32 %v4489_v50, %v3950_v9  ;;  %v3853_v55 = vadd.f32 %v3821_v63, %v3755_v2  ;;  %v8575_v38 = vadd.f32 %v2706_v26, %v9826_v22  ;;  %v8578_v15 = vadd.f32 %v2803_v12, %v9827_v34  ;;  %v3070_v50 = vld [vmem:[#allocation2 + $0x139] sm:$0xff] }
 0x31f   : > { %v4067_v42 = vmul.f32 %v8243_v57, %v3397_v62  ;;  %v2932_v9 = vadd.f32 %v2900_v11, %v9828_v47  ;;  %v3002_v63 = vmul.f32 %v8224_v56, %v2968_v3  ;;  %v2250_v0 = vadd.f32 %v8444_v46, %v2091_v32  ;;  %v2206_v32 = vpop.f32.mrf.mxu0  ;;  %v9830_v47 = vld [vmem:[#allocation46_spill] sm:$0xff] }
 0x320   : > { %v4557_v23 = vmul.f32 %v8571_v60, %v4521_v43  ;;  %v3951_v2 = vadd.f32 %v3919_v28, %v3853_v55  ;;  %v8587_v43 = vld [vmem:[%s9408_s13] ss:$0 sm:$0xff]  ;;  %v2092_v12 = vadd.f32 %v8484_v53, %v1932_v7  ;;  %v1933_v25 = vadd.f32 %v1887_v8, %v1777_v18  ;;  %v9829_v53 = vld [vmem:[#allocation47_spill] sm:$0xff] }
 0x321   : > { %v2509_v62 = vmul.f32 %v8023_v45, %v8502_v27  ;;  %v3038_v11 = vadd.f32 %v8236_v14, %v3002_v63  ;;  %v3104_v3 = vmul.f32 %v8256_v41, %v3070_v50  ;;  %3458 = vst [vmem:[#allocation3 + $0xda] sm:$0xff] %v2932_v9  ;;  %v2286_v46 = vmul.f32 %v9816_v29, %v2250_v0 }
 0x322   : > { %v4593_v26 = vadd.f32 %v8587_v43, %v4557_v23  ;;  %v4522_v28 = vadd.f32 %v4490_v10, %v3951_v2  ;;  %v2251_v22 = vadd.f32 %v2203_v19, %v2092_v12  ;;  %v2093_v34 = vadd.f32 %v2047_v40, %v1933_v25  ;;  %v1890_v23 = vpop.f32.mrf.mxu2  ;;  %v1737_v40 = vpop.f32.mrf.mxu1 }
 0x323   : > { %v2544_v7 = vadd.f32 %v9829_v53, %v8462_v16  ;;  %v8599_v8 = vadd.f32 %v9817_v21, %v4066_v61  ;;  %v2322_v18 = vadd.f32 %v9818_v31, %v2286_v46  ;;  %v1778_v63 = vadd.f32 %v1734_v52, %v9830_v47  ;;  %v2050_v25 = vpop.f32.mrf.mxu3 }
 0x324   : > { %v4625_v55 = vmax.f32 %v4593_v26, 0.0  ;;  %v8604_v50 = vadd.f32 %v9817_v21, %v4067_v42  ;;  %v4558_v0 = vmul.f32 %v8571_v60, %v4522_v28  ;;  %v3136_v10 = vadd.f32 %v3104_v3, %v3038_v11 }
 0x325   : > { %v2287_v19 = vmul.f32 %v9816_v29, %v2251_v22  ;;  %v2545_v2 = vadd.f32 %v9829_v53, %v2509_v62  ;;  %v3170_v16 = vmul.f32 %v8277_v5, %v8502_v27  ;;  %v2354_v61 = vmax.f32 %v2322_v18, 0.0  ;;  %v9831_v27 = vld [vmem:[#allocation23_spill] sm:$0xff] }
 0x326   : > { %4657 = vst [vmem:[%s7170_s21 + $0x80] sm:$0xff] %v4625_v55  ;;  %v1934_v26 = vadd.f32 %v1890_v23, %v1778_v63  ;;  %v4594_v12 = vadd.f32 %v8587_v43, %v4558_v0  ;;  %v8614_v52 = vmul.f32 %v8495_v4, %v2932_v9  ;;  %v2252_v42 = vadd.f32 %v2206_v32, %v2093_v34 }
 0x327   : > { %v2323_v21 = vadd.f32 %v9818_v31, %v2287_v19  ;;  %2440 = vst [vmem:[#allocation2 + $0x142] sm:$0xff] %v2354_v61  ;;  %v2611_v11 = vmul.f32 %v8061_v33, %v2354_v61  ;;  %v2707_v62 = vmul.f32 %v8068_v13, %v2354_v61  ;;  %v2804_v3 = vmul.f32 %v8191_v44, %v2354_v61 }
 0x328   : > { %v1779_v46 = vadd.f32 %v1737_v40, %v9831_v27  ;;  %v4626_v28 = vmax.f32 %v4594_v12, 0.0  ;;  %v3202_v55 = vadd.f32 %v3170_v16, %v3136_v10  ;;  %v2901_v22 = vmul.f32 %v8198_v6, %v2354_v61  ;;  %v3490_v9 = vld [vmem:[#allocation3 + $0xd8] sm:$0xff]  ;;  %v2209_v12 = vpop.f32.mrf.mxu0 }
 0x329   : > { %v2355_v23 = vmax.f32 %v2323_v21, 0.0  ;;  %v8622_v18 = vadd.f32 %v2611_v11, %v2544_v7  ;;  %v8625_v32 = vadd.f32 %v2707_v62, %v8421_v36  ;;  %v8628_v34 = vadd.f32 %v2804_v3, %v8424_v48  ;;  %v3592_v47 = vld [vmem:[#allocation3 + $0xd9] sm:$0xff] }
 0x32a   : > { %v2094_v63 = vadd.f32 %v2050_v25, %v1934_v26  ;;  %4658 = vst [vmem:[%s7170_s21 + $0x88] sm:$0xff] %v4626_v28  ;;  %v2510_v0 = vmul.f32 %v8023_v45, %v2354_v61  ;;  %v2933_v19 = vadd.f32 %v2901_v22, %v8437_v51  ;;  %v3524_v10 = vmul.f32 %v8454_v59, %v3490_v9 }
 0x32b   : > { %v2288_v40 = vmul.f32 %v9816_v29, %v2252_v42  ;;  %2441 = vst [vmem:[#allocation2 + $0x152] sm:$0xff] %v2355_v23  ;;  %v2612_v7 = vmul.f32 %v8061_v33, %v2355_v23  ;;  %v2708_v36 = vmul.f32 %v8068_v13, %v2355_v23  ;;  %v2805_v16 = vmul.f32 %v8191_v44, %v2355_v23  ;;  %v1893_v42 = vpop.f32.mrf.mxu2 }
 0x32c   : > { %v2902_v48 = vmul.f32 %v8198_v6, %v2355_v23  ;;  %v3171_v26 = vmul.f32 %v8277_v5, %v2354_v61  ;;  %3459 = vst [vmem:[#allocation3 + $0xe2] sm:$0xff] %v2933_v19  ;;  %v3560_v21 = vadd.f32 %v8467_v54, %v3524_v10  ;;  %v3626_v51 = vmul.f32 %v8473_v24, %v3592_v47 }
 0x32d   : > { %v2511_v25 = vmul.f32 %v8023_v45, %v2355_v23  ;;  %v8643_v11 = vadd.f32 %v2612_v7, %v2545_v2  ;;  %v8646_v33 = vadd.f32 %v2708_v36, %v8564_v20  ;;  %v8649_v13 = vadd.f32 %v2805_v16, %v8575_v38 }
 0x32e   : > { %v2934_v62 = vadd.f32 %v2902_v48, %v8578_v15  ;;  %v8653_v61 = vadd.f32 %v9829_v53, %v2510_v0  ;;  %v2969_v3 = vld [vmem:[#allocation2 + $0x140] sm:$0xff]  ;;  %v3658_v22 = vadd.f32 %v3626_v51, %v3560_v21  ;;  %v2324_v45 = vadd.f32 %v9818_v31, %v2288_v40  ;;  %v2053_v40 = vpop.f32.mrf.mxu3  ;;  %v9837_v21 = vld [vmem:[#allocation40_spill] sm:$0xff] }
 0x32f   : > { %9832 = vst [vmem:[#allocation61_spill] sm:$0xff] %v8643_v11  ;;  %v3071_v27 = vld [vmem:[#allocation2 + $0x141] sm:$0xff]  ;;  %v2253_v9 = vadd.f32 %v2209_v12, %v2094_v63  ;;  %v3003_v2 = vmul.f32 %v8224_v56, %v2969_v3  ;;  %v3725_v7 = vmul.f32 %v8495_v4, %v2933_v19  ;;  %v1935_v15 = vadd.f32 %v1893_v42, %v1779_v46  ;;  %v1740_v63 = vpop.f32.mrf.mxu1 }
 0x330   : > { %9833 = vst [vmem:[#allocation16_spill] sm:$0xff] %v8646_v33  ;;  %v3234_v28 = vld [vmem:[#allocation2 + $0x13b] sm:$0xff]  ;;  %v3235_v47 = vld [vmem:[#allocation2 + $0x143] sm:$0xff]  ;;  %v3105_v0 = vmul.f32 %v8256_v41, %v3071_v27  ;;  %v8661_v36 = vadd.f32 %v9829_v53, %v2511_v25  ;;  %v8664_v16 = vmul.f32 %v8277_v5, %v2355_v23  ;;  %v8667_v31 = vmul.f32 %v8495_v4, %v2934_v62 }
 0x331   : > { %9834 = vst [vmem:[#allocation54_spill] sm:$0xff] %v8649_v13  ;;  %v3268_v20 = vmul.f32 %v8312_v37, %v3234_v28  ;;  %v3332_v10 = vld [vmem:[#allocation2 + $0x13c] sm:$0xff]  ;;  %v3333_v38 = vld [vmem:[#allocation2 + $0x144] sm:$0xff]  ;;  %v3039_v48 = vadd.f32 %v8236_v14, %v3003_v2  ;;  %v8671_v51 = vmax.f32 %v2324_v45, 0.0  ;;  %v3269_v46 = vmul.f32 %v8312_v37, %v3235_v47 }
 0x332   : > { %3460 = vst [vmem:[#allocation3 + $0xf2] sm:$0xff] %v2934_v62  ;;  %v3366_v19 = vmul.f32 %v9837_v21, %v3332_v10  ;;  %v3367_v25 = vmul.f32 %v9837_v21, %v3333_v38  ;;  %v3756_v42 = vadd.f32 %v8614_v52, %v3658_v22  ;;  %v2970_v23 = vld [vmem:[#allocation2 + $0x150] sm:$0xff]  ;;  %v8677_v62 = vmul.f32 %v9816_v29, %v2253_v9  ;;  %v9838_v45 = vld [vmem:[#allocation59_spill] sm:$0xff] }
 0x333   : > { %9835 = vst [vmem:[#allocation51_spill] sm:$0xff] %v8661_v36  ;;  %v3300_v12 = vadd.f32 %v3268_v20, %v3202_v55  ;;  %v3072_v3 = vld [vmem:[#allocation2 + $0x151] sm:$0xff]  ;;  %v3137_v27 = vadd.f32 %v3105_v0, %v3039_v48  ;;  %v3491_v13 = vld [vmem:[#allocation3 + $0xe0] sm:$0xff]  ;;  %v8681_v20 = vadd.f32 %v1740_v63, %v9838_v45  ;;  %v8683_v47 = vadd.f32 %v2053_v40, %v1935_v15 }
 0x334   : > { %9836 = vst [vmem:[#allocation12_spill] sm:$0xff] %v8667_v31  ;;  %v3593_v2 = vld [vmem:[#allocation3 + $0xe1] sm:$0xff]  ;;  %v3525_v10 = vmul.f32 %v8454_v59, %v3491_v13  ;;  %v3004_v29 = vmul.f32 %v8224_v56, %v2970_v23  ;;  %v3106_v9 = vmul.f32 %v8256_v41, %v3072_v3  ;;  %v8694_v15 = vld [vmem:[%s9399_s4] ss:$0 sm:$0xff] }
 0x335   : > { %v3398_v28 = vadd.f32 %v3366_v19, %v3300_v12  ;;  %v3788_v55 = vld [vmem:[#allocation3 + $0xdb] sm:$0xff]  ;;  %2442 = vst [vmem:[#allocation2 + $0x15a] sm:$0xff] %v8671_v51  ;;  %v3789_v52 = vld [vmem:[#allocation3 + $0xe3] sm:$0xff]  ;;  %v3203_v0 = vadd.f32 %v3171_v26, %v3137_v27  ;;  %v3627_v48 = vmul.f32 %v8473_v24, %v3593_v2  ;;  %v2512_v13 = vmul.f32 %v8694_v15, %v8671_v51 }
 0x336   : > { %9839 = vst [vmem:[#allocation30_spill] sm:$0xff] %v8681_v20  ;;  %v3822_v22 = vmul.f32 %v8520_v30, %v3788_v55  ;;  %v3886_v38 = vld [vmem:[#allocation3 + $0xdc] sm:$0xff]  ;;  %v3823_v12 = vmul.f32 %v8520_v30, %v3789_v52  ;;  %v3561_v63 = vadd.f32 %v8467_v54, %v3525_v10  ;;  %v3887_v3 = vld [vmem:[#allocation3 + $0xe4] sm:$0xff]  ;;  %v3040_v10 = vadd.f32 %v8236_v14, %v3004_v29 }
 0x337   : > { %9840 = vst [vmem:[#allocation35_spill] sm:$0xff] %v8694_v15  ;;  %v3920_v19 = vmul.f32 %v8531_v49, %v3886_v38  ;;  %v4169_v23 = vmul.f32 %v8364_v39, %v3398_v28  ;;  %v3301_v26 = vadd.f32 %v3269_v46, %v3203_v0  ;;  %v9841_v27 = vld [vmem:[#allocation58_spill] sm:$0xff]  ;;  %v4362_v55 = vmul.f32 %v8378_v35, %v3398_v28  ;;  %v9844_v30 = vld [vmem:[#allocation57_spill] sm:$0xff] }
 0x338   : > { %v3854_v40 = vadd.f32 %v3822_v22, %v3756_v42  ;;  %v4265_v2 = vmul.f32 %v9841_v27, %v3398_v28  ;;  %v9842_v45 = vld [vmem:[#allocation22_spill] sm:$0xff]  ;;  %v3659_v33 = vadd.f32 %v3627_v48, %v3561_v63  ;;  %v9843_v22 = vld [vmem:[#allocation45_spill] sm:$0xff]  ;;  %v3921_v20 = vmul.f32 %v8531_v49, %v3887_v3 }
 0x339   : > { %v4459_v52 = vmul.f32 %v9842_v45, %v3398_v28  ;;  %v8705_v36 = vadd.f32 %v4169_v23, %v8599_v8  ;;  %v3399_v42 = vadd.f32 %v3367_v25, %v3301_v26  ;;  %v8712_v46 = vadd.f32 %v4362_v55, %v9844_v30  ;;  %v9845_v0 = vld [vmem:[#allocation26_spill] sm:$0xff]  ;;  %v1896_v26 = vpop.f32.mrf.mxu2 }
 0x33a   : > { %v3952_v11 = vadd.f32 %v3920_v19, %v3854_v40  ;;  %v8709_v38 = vadd.f32 %v4265_v2, %v9843_v22  ;;  %v3757_v15 = vadd.f32 %v3725_v7, %v3659_v33  ;;  %v8717_v48 = vmul.f32 %v8243_v57, %v3398_v28  ;;  %v8722_v8 = vld [vmem:[%s9399_s4 + $0x1] ss:$0 sm:$0xff] }
 0x33b   : > { %v4491_v31 = vadd.f32 %v4459_v52, %v9845_v0  ;;  %v2613_v25 = vmul.f32 %v8722_v8, %v8671_v51  ;;  %v4170_v29 = vmul.f32 %v8364_v39, %v3399_v42  ;;  %v4266_v30 = vmul.f32 %v9841_v27, %v3399_v42 }
 0x33c   : > { %v4363_v63 = vmul.f32 %v8378_v35, %v3399_v42  ;;  %v3138_v33 = vadd.f32 %v3106_v9, %v3040_v10  ;;  %v3855_v7 = vadd.f32 %v3823_v12, %v3757_v15  ;;  %v4460_v40 = vmul.f32 %v9842_v45, %v3399_v42  ;;  %v2971_v23 = vld [vmem:[#allocation2 + $0x158] sm:$0xff] }
 0x33d   : > { %v4523_v28 = vadd.f32 %v4491_v31, %v3952_v11  ;;  %v8731_v19 = vadd.f32 %v9829_v53, %v2512_v13  ;;  %v8734_v3 = vadd.f32 %v4170_v29, %v8604_v50  ;;  %v8737_v2 = vadd.f32 %v4266_v30, %v8544_v58  ;;  %v3073_v12 = vld [vmem:[#allocation2 + $0x159] sm:$0xff]  ;;  %v8750_v50 = vld [vmem:[%s9399_s4 + $0x2] ss:$0 sm:$0xff] }
 0x33e   : > { %v8740_v55 = vadd.f32 %v4363_v63, %v8547_v17  ;;  %v8743_v9 = vadd.f32 %v2613_v25, %v8653_v61  ;;  %v3953_v15 = vadd.f32 %v3921_v20, %v3855_v7  ;;  %v4492_v11 = vadd.f32 %v4460_v40, %v8551_v1  ;;  %v3236_v31 = vld [vmem:[#allocation2 + $0x153] sm:$0xff]  ;;  %v3335_v63 = vld [vmem:[#allocation2 + $0x15c] sm:$0xff] }
 0x33f   : > { %v4559_v53 = vmul.f32 %v8571_v60, %v4523_v28  ;;  %v2709_v58 = vmul.f32 %v8750_v50, %v8671_v51  ;;  %v3204_v17 = vadd.f32 %v8664_v16, %v3138_v33  ;;  %v2806_v61 = vmul.f32 %v8191_v44, %v8671_v51  ;;  %v3334_v0 = vld [vmem:[#allocation2 + $0x154] sm:$0xff] }
 0x340   : > { %v2903_v20 = vmul.f32 %v8198_v6, %v8671_v51  ;;  %v3005_v1 = vmul.f32 %v8224_v56, %v2971_v23  ;;  %v4524_v13 = vadd.f32 %v4492_v11, %v3953_v15  ;;  %v3107_v22 = vmul.f32 %v8256_v41, %v3073_v12  ;;  %v3492_v25 = vld [vmem:[#allocation3 + $0xf0] sm:$0xff]  ;;  %v3237_v6 = vld [vmem:[#allocation2 + $0x15b] sm:$0xff]  ;;  %v2212_v12 = vpop.f32.mrf.mxu0 }
 0x341   : > { %v4595_v52 = vadd.f32 %v8587_v43, %v4559_v53  ;;  %v8762_v10 = vadd.f32 %v2709_v58, %v8622_v18  ;;  %v8766_v16 = vadd.f32 %v2806_v61, %v8625_v32  ;;  %v3270_v56 = vmul.f32 %v8312_v37, %v3236_v31  ;;  %v3594_v32 = vld [vmem:[#allocation3 + $0xf1] sm:$0xff]  ;;  %v1743_v58 = vpop.f32.mrf.mxu1 }
 0x342   : > { %v2935_v29 = vadd.f32 %v2903_v20, %v8628_v34  ;;  %v3041_v30 = vadd.f32 %v8236_v14, %v3005_v1  ;;  %v8772_v33 = vmul.f32 %v8243_v57, %v3399_v42  ;;  %v4560_v18 = vmul.f32 %v8571_v60, %v4524_v13 }
 0x343   : > { %v4627_v7 = vmax.f32 %v4595_v52, 0.0  ;;  %v3173_v40 = vmul.f32 %v8277_v5, %v8671_v51  ;;  %v3302_v23 = vadd.f32 %v3270_v56, %v3204_v17  ;;  %v3368_v34 = vmul.f32 %v9837_v21, %v3334_v0  ;;  %v8786_v51 = vld [vmem:[%s9398_s3] ss:$0 sm:$0xff]  ;;  %v2056_v52 = vpop.f32.mrf.mxu3 }
 0x344   : > { %9846 = vst [vmem:[#allocation33_spill] sm:$0xff] %v8772_v33  ;;  %v3139_v28 = vadd.f32 %v3107_v22, %v3041_v30  ;;  %v3526_v14 = vmul.f32 %v8454_v59, %v3492_v25  ;;  %v4596_v15 = vadd.f32 %v8587_v43, %v4560_v18  ;;  %v3271_v42 = vmul.f32 %v8312_v37, %v3237_v6  ;;  %v8796_v22 = vpop.f32.mrf.mxu2  ;;  %v9847_v25 = vld [vmem:[#allocation30_spill] sm:$0xff]  ;;  %v9848_v6 = vld [vmem:[#allocation48_spill] sm:$0xff] }
 0x345   : > { %3461 = vst [vmem:[#allocation3 + $0xfa] sm:$0xff] %v2935_v29  ;;  %v3369_v11 = vmul.f32 %v9837_v21, %v3335_v63  ;;  %v2325_v53 = vadd.f32 %v8786_v51, %v8677_v62  ;;  %v3400_v17 = vadd.f32 %v3368_v34, %v3302_v23  ;;  %v3628_v20 = vmul.f32 %v8473_v24, %v3594_v32 }
 0x346   : > { %4659 = vst [vmem:[%s7170_s21 + $0x90] sm:$0xff] %v4627_v7  ;;  %v3205_v31 = vadd.f32 %v3173_v40, %v3139_v28  ;;  %v3562_v61 = vadd.f32 %v8467_v54, %v3526_v14  ;;  %v4628_v1 = vmax.f32 %v4596_v15, 0.0  ;;  %v3727_v37 = vmul.f32 %v8495_v4, %v2935_v29  ;;  %v9850_v7 = vld [vmem:[#allocation35_spill] sm:$0xff] }
 0x347   : > { %v8793_v21 = vmax.f32 %v2325_v53, 0.0  ;;  %v2254_v13 = vadd.f32 %v2212_v12, %v8683_v47  ;;  %v1936_v30 = vadd.f32 %v1896_v26, %v9847_v25  ;;  %v1781_v56 = vadd.f32 %v1743_v58, %v9848_v6  ;;  %v9852_v58 = vld [vmem:[#allocation12_spill] sm:$0xff] }
 0x348   : > { %v3303_v0 = vadd.f32 %v3271_v42, %v3205_v31  ;;  %v3660_v62 = vadd.f32 %v3628_v20, %v3562_v61  ;;  %4660 = vst [vmem:[%s7170_s21 + $0x98] sm:$0xff] %v4628_v1  ;;  %v8802_v63 = vmul.f32 %v8243_v57, %v3400_v17  ;;  %v4364_v18 = vmul.f32 %v8378_v35, %v3400_v17  ;;  %v9853_v61 = vld [vmem:[#allocation60_spill] sm:$0xff] }
 0x349   : > { %v4461_v29 = vmul.f32 %v9842_v45, %v3400_v17  ;;  %v2513_v47 = vmul.f32 %v9850_v7, %v8793_v21  ;;  %v8809_v32 = vmul.f32 %v8364_v39, %v3400_v17  ;;  %v8812_v28 = vmul.f32 %v9841_v27, %v3400_v17  ;;  %2443 = vst [vmem:[#allocation2 + $0x16a] sm:$0xff] %v8793_v21 }
 0x34a   : > { %9849 = vst [vmem:[#allocation29_spill] sm:$0xff] %v8802_v63  ;;  %v3401_v40 = vadd.f32 %v3369_v11, %v3303_v0  ;;  %v2614_v26 = vmul.f32 %v8722_v8, %v8793_v21  ;;  %v8818_v12 = vadd.f32 %v4364_v18, %v8709_v38  ;;  %v2710_v42 = vmul.f32 %v8750_v50, %v8793_v21  ;;  %v8831_v38 = vld [vmem:[%s9400_s5] ss:$0 sm:$0xff] }
 0x34b   : > { %9851 = vst [vmem:[#allocation39_spill] sm:$0xff] %v8809_v32  ;;  %v4493_v15 = vadd.f32 %v4461_v29, %v8712_v46  ;;  %v2807_v11 = vmul.f32 %v8191_v44, %v8793_v21  ;;  %v3758_v31 = vadd.f32 %v9852_v58, %v3660_v62  ;;  %v8834_v46 = vadd.f32 %v8831_v38, %v2513_v47  ;;  %v2215_v58 = vpop.f32.mrf.mxu0  ;;  %v9855_v32 = vld [vmem:[#allocation51_spill] sm:$0xff] }
 0x34c   : > { %v3493_v23 = vld [vmem:[#allocation3 + $0xf8] sm:$0xff]  ;;  %v8840_v62 = vmul.f32 %v8243_v57, %v3401_v40  ;;  %v4462_v47 = vmul.f32 %v9842_v45, %v3401_v40  ;;  %v8847_v63 = vadd.f32 %v2614_v26, %v9855_v32  ;;  %v1746_v57 = vpop.f32.mrf.mxu1  ;;  %v8866_v26 = vmul.f32 %v8364_v39, %v3401_v40  ;;  %v8879_v39 = vld [vmem:[%s9403_s8] ss:$0 sm:$0xff] }
 0x34d   : > { %v3595_v34 = vld [vmem:[#allocation3 + $0xf9] sm:$0xff]  ;;  %v3527_v53 = vmul.f32 %v8454_v59, %v3493_v23 }
 0x34e   : > { %v3790_v14 = vld [vmem:[#allocation3 + $0xf3] sm:$0xff]  ;;  %v3791_v17 = vld [vmem:[#allocation3 + $0xfb] sm:$0xff]  ;;  %v3629_v25 = vmul.f32 %v8473_v24, %v3595_v34  ;;  %9854 = vst [vmem:[#allocation10_spill] sm:$0xff] %v8840_v62 }
 0x34f   : > { %v3824_v20 = vmul.f32 %v9853_v61, %v3790_v14  ;;  %v3888_v1 = vld [vmem:[#allocation3 + $0xf4] sm:$0xff]  ;;  %v3889_v0 = vld [vmem:[#allocation3 + $0xfc] sm:$0xff]  ;;  %v3825_v44 = vmul.f32 %v9853_v61, %v3791_v17  ;;  %v3563_v18 = vadd.f32 %v8467_v54, %v3527_v53  ;;  %v4365_v14 = vmul.f32 %v8378_v35, %v3401_v40  ;;  %v8861_v35 = vld [vmem:[%s9399_s4 + $0x4] ss:$0 sm:$0xff]  ;;  %9859 = vst [vmem:[#allocation37_spill] sm:$0xff] %v8866_v26 }
 0x350   : > { %v3922_v6 = vmul.f32 %v8531_v49, %v3888_v1  ;;  %v3923_v23 = vmul.f32 %v8531_v49, %v3889_v0  ;;  %v9856_v34 = vld [vmem:[#allocation61_spill] sm:$0xff]  ;;  %v9857_v1 = vld [vmem:[#allocation16_spill] sm:$0xff]  ;;  %v2904_v32 = vmul.f32 %v8861_v35, %v8793_v21 }
 0x351   : > { %v3856_v29 = vadd.f32 %v3824_v20, %v3758_v31  ;;  %v8850_v17 = vadd.f32 %v2710_v42, %v9856_v34  ;;  %v8853_v33 = vadd.f32 %v2807_v11, %v9857_v1  ;;  %v3661_v62 = vadd.f32 %v3629_v25, %v3563_v18  ;;  %v2972_v11 = vld [vmem:[#allocation2 + $0x168] sm:$0xff]  ;;  %v1902_v18 = vpop.f32.mrf.mxu2  ;;  %v9860_v34 = vld [vmem:[#allocation54_spill] sm:$0xff] }
 0x352   : > { %v8856_v31 = vadd.f32 %v4365_v14, %v8737_v2  ;;  %v4494_v42 = vadd.f32 %v4462_v47, %v8740_v55  ;;  %v3074_v20 = vld [vmem:[#allocation2 + $0x169] sm:$0xff]  ;;  %v8872_v2 = vld [vmem:[%s9397_s2] ss:$0 sm:$0xff]  ;;  %v2096_v25 = vadd.f32 %v2056_v52, %v1936_v30  ;;  %v2936_v1 = vadd.f32 %v2904_v32, %v9860_v34 }
 0x353   : > { %v3954_v53 = vadd.f32 %v3922_v6, %v3856_v29  ;;  %v2290_v0 = vmul.f32 %v8872_v2, %v2254_v13  ;;  %v2059_v6 = vpop.f32.mrf.mxu3  ;;  %v3759_v29 = vadd.f32 %v3727_v37, %v3661_v62  ;;  %v3006_v55 = vmul.f32 %v8879_v39, %v2972_v11  ;;  %v8889_v30 = vld [vmem:[%s9404_s9] ss:$0 sm:$0xff] }
 0x354   : > { %9858 = vst [vmem:[#allocation62_spill] sm:$0xff] %v8856_v31  ;;  %v4268_v47 = vmul.f32 %v9841_v27, %v3401_v40  ;;  %v2255_v31 = vadd.f32 %v2215_v58, %v2096_v25  ;;  %v1937_v13 = vadd.f32 %v8796_v22, %v1781_v56  ;;  %v3108_v62 = vmul.f32 %v8256_v41, %v3074_v20  ;;  %v2218_v20 = vpop.f32.mrf.mxu0 }
 0x355   : > { %v4525_v14 = vadd.f32 %v4493_v15, %v3954_v53  ;;  %v2326_v26 = vadd.f32 %v8786_v51, %v2290_v0  ;;  %v3857_v52 = vadd.f32 %v3825_v44, %v3759_v29  ;;  %v3042_v15 = vadd.f32 %v8889_v30, %v3006_v55  ;;  %3462 = vst [vmem:[#allocation3 + $0x10a] sm:$0xff] %v2936_v1 }
 0x356   : > { %v3174_v27 = vmul.f32 %v8277_v5, %v8793_v21  ;;  %v2291_v58 = vmul.f32 %v8872_v2, %v2255_v31  ;;  %v2097_v22 = vadd.f32 %v2059_v6, %v1937_v13  ;;  %v8899_v32 = vadd.f32 %v8812_v28, %v8705_v36  ;;  %v8907_v21 = vld [vmem:[%s9399_s4 + $0x3] ss:$0 sm:$0xff]  ;;  %v9861_v6 = vld [vmem:[#allocation27_spill] sm:$0xff] }
 0x357   : > { %v4561_v37 = vmul.f32 %v8571_v60, %v4525_v14  ;;  %v2358_v40 = vmax.f32 %v2326_v26, 0.0  ;;  %v3955_v56 = vadd.f32 %v3923_v23, %v3857_v52  ;;  %v3140_v53 = vadd.f32 %v3108_v62, %v3042_v15  ;;  %v1749_v14 = vpop.f32.mrf.mxu1 }
 0x358   : > { %v3728_v28 = vmul.f32 %v8495_v4, %v2936_v1  ;;  %v1782_v29 = vadd.f32 %v1746_v57, %v9861_v6  ;;  %v2327_v1 = vadd.f32 %v8786_v51, %v2291_v58  ;;  %v2256_v52 = vadd.f32 %v2218_v20, %v2097_v22  ;;  %v9862_v58 = vld [vmem:[#allocation43_spill] sm:$0xff]  ;;  %v8959_v20 = vld [vmem:[%s9403_s8 + $0x3] ss:$0 sm:$0xff] }
 0x359   : > { %v4597_v44 = vadd.f32 %v8587_v43, %v4561_v37  ;;  %2444 = vst [vmem:[#allocation2 + $0x172] sm:$0xff] %v2358_v40  ;;  %v2514_v11 = vmul.f32 %v9850_v7, %v2358_v40  ;;  %v2615_v41 = vmul.f32 %v8722_v8, %v2358_v40  ;;  %v2711_v5 = vmul.f32 %v8750_v50, %v2358_v40  ;;  %v1905_v15 = vpop.f32.mrf.mxu2 }
 0x35a   : > { %v2808_v23 = vmul.f32 %v8907_v21, %v2358_v40  ;;  %v4526_v31 = vadd.f32 %v4494_v42, %v3955_v56  ;;  %v2905_v36 = vmul.f32 %v8861_v35, %v2358_v40  ;;  %v3206_v34 = vadd.f32 %v3174_v27, %v3140_v53  ;;  %v8941_v56 = vld [vmem:[#allocation2 + $0x1b2] sm:$0xff] }
 0x35b   : > { %v4629_v26 = vmax.f32 %v4597_v44, 0.0  ;;  %v8913_v7 = vadd.f32 %v2615_v41, %v8731_v19  ;;  %v8916_v0 = vadd.f32 %v2711_v5, %v8743_v9  ;;  %v8927_v19 = vadd.f32 %v8831_v38, %v2514_v11  ;;  %v2062_v57 = vpop.f32.mrf.mxu3 }
 0x35c   : > { %v8919_v25 = vadd.f32 %v2808_v23, %v8762_v10  ;;  %v4562_v42 = vmul.f32 %v8571_v60, %v4526_v31  ;;  %v2937_v55 = vadd.f32 %v2905_v36, %v8766_v16  ;;  %v3494_v13 = vld [vmem:[#allocation3 + $0x108] sm:$0xff]  ;;  %v8930_v10 = vadd.f32 %v4268_v47, %v8734_v3  ;;  %v8936_v16 = vld [vmem:[%s9403_s8 + $0x2] ss:$0 sm:$0xff] }
 0x35d   : > { %4661 = vst [vmem:[%s7170_s21 + $0xa0] sm:$0xff] %v4629_v26  ;;  %v3596_v9 = vld [vmem:[#allocation3 + $0x109] sm:$0xff]  ;;  %v1938_v37 = vadd.f32 %v1902_v18, %v1782_v29  ;;  %v3175_v27 = vmul.f32 %v8936_v16, %v2358_v40  ;;  %v3528_v38 = vmul.f32 %v8454_v59, %v3494_v13  ;;  %v1783_v22 = vadd.f32 %v1749_v14, %v9862_v58 }
 0x35e   : > { %v4598_v62 = vadd.f32 %v8587_v43, %v4562_v42  ;;  %3463 = vst [vmem:[#allocation3 + $0x112] sm:$0xff] %v2937_v55  ;;  %v3630_v3 = vmul.f32 %v8473_v24, %v3596_v9  ;;  %v8945_v18 = vmul.f32 %v8495_v4, %v2937_v55  ;;  %v8947_v47 = vmax.f32 %v2327_v1, 0.0  ;;  %v8973_v1 = vld [vmem:[%s9403_s8 + $0x1] ss:$0 sm:$0xff]  ;;  %v8979_v9 = vld [vmem:[%s9403_s8 + $0x4] ss:$0 sm:$0xff] }
 0x35f   : > { %v2292_v44 = vmul.f32 %v8872_v2, %v2256_v52  ;;  %v3564_v5 = vadd.f32 %v8467_v54, %v3528_v38  ;;  %v8951_v23 = vadd.f32 %v2062_v57, %v1938_v37  ;;  %v8953_v31 = vadd.f32 %v1905_v15, %v1783_v22  ;;  %v8985_v57 = vld [vmem:[%s9406_s11] ss:$0 sm:$0xff] }
 0x360   : > { %v4630_v53 = vmax.f32 %v4598_v62, 0.0  ;;  %v2973_v11 = vld [vmem:[#allocation2 + $0x170] sm:$0xff]  ;;  %2445 = vst [vmem:[#allocation2 + $0x182] sm:$0xff] %v8947_v47  ;;  %v2616_v42 = vmul.f32 %v8722_v8, %v8947_v47  ;;  %v8967_v55 = vmul.f32 %v8907_v21, %v8941_v56  ;;  %v8989_v15 = vadd.f32 %v8985_v57, %v8717_v48 }
 0x361   : > { %v3075_v40 = vld [vmem:[#allocation2 + $0x171] sm:$0xff]  ;;  %v3007_v26 = vmul.f32 %v8879_v39, %v2973_v11  ;;  %v3662_v37 = vadd.f32 %v3630_v3, %v3564_v5  ;;  %9863 = vst [vmem:[#allocation17_spill] sm:$0xff] %v8985_v57  ;;  %v2712_v22 = vmul.f32 %v8750_v50, %v8947_v47 }
 0x362   : > { %v3238_v41 = vld [vmem:[#allocation2 + $0x16b] sm:$0xff]  ;;  %v3239_v36 = vld [vmem:[#allocation2 + $0x173] sm:$0xff]  ;;  %4662 = vst [vmem:[%s7170_s21 + $0xa8] sm:$0xff] %v4630_v53  ;;  %v3109_v13 = vmul.f32 %v8973_v1, %v3075_v40  ;;  %v8993_v58 = vadd.f32 %v2616_v42, %v8834_v46  ;;  %v2809_v40 = vmul.f32 %v8907_v21, %v8947_v47 }
 0x363   : > { %v3272_v6 = vmul.f32 %v8959_v20, %v3238_v41  ;;  %v3336_v29 = vld [vmem:[#allocation2 + $0x16c] sm:$0xff]  ;;  %v3337_v14 = vld [vmem:[#allocation2 + $0x174] sm:$0xff]  ;;  %9864 = vst [vmem:[#allocation63_spill] sm:$0xff] %v8989_v15  ;;  %v3043_v62 = vadd.f32 %v8889_v30, %v3007_v26  ;;  %v3273_v3 = vmul.f32 %v8959_v20, %v3239_v36  ;;  %v3760_v11 = vadd.f32 %v3728_v28, %v3662_v37 }
 0x364   : > { %v3370_v52 = vmul.f32 %v8979_v9, %v3336_v29  ;;  %v3371_v53 = vmul.f32 %v8979_v9, %v3337_v14  ;;  %v9004_v46 = vadd.f32 %v2712_v22, %v8847_v63 }
 0x365   : > { %v3304_v38 = vadd.f32 %v3272_v6, %v3206_v34  ;;  %v3141_v41 = vadd.f32 %v3109_v13, %v3043_v62  ;;  %v3495_v5 = vld [vmem:[#allocation3 + $0x110] sm:$0xff]  ;;  %v2906_v6 = vmul.f32 %v8861_v35, %v8947_v47  ;;  %v9011_v13 = vadd.f32 %v2809_v40, %v8850_v17 }
 0x366   : > { %v3597_v26 = vld [vmem:[#allocation3 + $0x111] sm:$0xff]  ;;  %v3529_v36 = vmul.f32 %v8454_v59, %v3495_v5 }
 0x367   : > { %v9001_v48 = vadd.f32 %v3370_v52, %v3304_v38  ;;  %v3792_v34 = vld [vmem:[#allocation3 + $0x10b] sm:$0xff]  ;;  %v3793_v29 = vld [vmem:[#allocation3 + $0x113] sm:$0xff]  ;;  %9865 = vst [vmem:[#allocation21_spill] sm:$0xff] %v9011_v13  ;;  %v2328_v52 = vadd.f32 %v8786_v51, %v2292_v44  ;;  %v3207_v37 = vadd.f32 %v3175_v27, %v3141_v41  ;;  %v3631_v62 = vmul.f32 %v8473_v24, %v3597_v26  ;;  %v2974_v44 = vld [vmem:[#allocation2 + $0x180] sm:$0xff] }
 0x368   : > { %v3826_v28 = vmul.f32 %v9853_v61, %v3792_v34  ;;  %v3890_v14 = vld [vmem:[#allocation3 + $0x10c] sm:$0xff]  ;;  %v3891_v42 = vld [vmem:[#allocation3 + $0x114] sm:$0xff]  ;;  %v3827_v63 = vmul.f32 %v9853_v61, %v3793_v29  ;;  %v3565_v22 = vadd.f32 %v8467_v54, %v3529_v36  ;;  %v9021_v34 = vld [vmem:[%s9405_s10 + $0x3] ss:$0 sm:$0xff]  ;;  %v2938_v26 = vadd.f32 %v2906_v6, %v8853_v33 }
 0x369   : > { %v3924_v38 = vmul.f32 %v8531_v49, %v3890_v14  ;;  %v4366_v17 = vmul.f32 %v9021_v34, %v9001_v48  ;;  %v4463_v27 = vmul.f32 %v9842_v45, %v9001_v48  ;;  %v3076_v40 = vld [vmem:[#allocation2 + $0x181] sm:$0xff]  ;;  %v3305_v41 = vadd.f32 %v3273_v3, %v3207_v37  ;;  %v2221_v14 = vpop.f32.mrf.mxu0 }
 0x36a   : > { %v3858_v5 = vadd.f32 %v3826_v28, %v3760_v11  ;;  %v3925_v61 = vmul.f32 %v8531_v49, %v3891_v42  ;;  %v3008_v54 = vmul.f32 %v8879_v39, %v2974_v44  ;;  %v3663_v11 = vadd.f32 %v3631_v62, %v3565_v22  ;;  %3464 = vst [vmem:[#allocation3 + $0x122] sm:$0xff] %v2938_v26  ;;  %v2780_v44 = vld [vmem:[#allocation2 + $0x1ba] sm:$0xff] }
 0x36b   : > { %v4495_v29 = vadd.f32 %v4463_v27, %v8818_v12  ;;  %v2360_v28 = vmax.f32 %v2328_v52, 0.0  ;;  %v9031_v15 = vadd.f32 %v3371_v53, %v3305_v41  ;;  %v3110_v13 = vmul.f32 %v8973_v1, %v3076_v40 }
 0x36c   : > { %v3956_v36 = vadd.f32 %v3924_v38, %v3858_v5  ;;  %v3044_v57 = vadd.f32 %v8889_v30, %v3008_v54  ;;  %v9036_v3 = vadd.f32 %v4366_v17, %v8899_v32  ;;  %v3761_v49 = vadd.f32 %v8945_v18, %v3663_v11 }
 0x36d   : > { %2446 = vst [vmem:[#allocation2 + $0x18a] sm:$0xff] %v2360_v28  ;;  %v2617_v6 = vmul.f32 %v8722_v8, %v2360_v28  ;;  %v2713_v12 = vmul.f32 %v8750_v50, %v2360_v28  ;;  %v4367_v53 = vmul.f32 %v9021_v34, %v9031_v15  ;;  %v4464_v42 = vmul.f32 %v9842_v45, %v9031_v15  ;;  %v9866_v8 = vld [vmem:[#allocation62_spill] sm:$0xff] }
 0x36e   : > { %v4527_v33 = vadd.f32 %v4495_v29, %v3956_v36  ;;  %v3142_v52 = vadd.f32 %v3110_v13, %v3044_v57  ;;  %v2810_v37 = vmul.f32 %v8907_v21, %v2360_v28  ;;  %v3859_v62 = vadd.f32 %v3827_v63, %v3761_v49  ;;  %v2878_v57 = vld [vmem:[#allocation2 + $0x1ca] sm:$0xff] }
 0x36f   : > { %v9048_v18 = vadd.f32 %v2617_v6, %v8927_v19  ;;  %v9051_v38 = vadd.f32 %v2713_v12, %v8913_v7  ;;  %v4496_v22 = vadd.f32 %v4464_v42, %v9866_v8  ;;  %v3176_v5 = vmul.f32 %v8936_v16, %v8947_v47  ;;  %v2065_v7 = vpop.f32.mrf.mxu3 }
 0x370   : > { %v4563_v32 = vmul.f32 %v8571_v60, %v4527_v33  ;;  %v9057_v17 = vadd.f32 %v2810_v37, %v8916_v0  ;;  %v2907_v45 = vmul.f32 %v8861_v35, %v2360_v28  ;;  %v3957_v13 = vadd.f32 %v3925_v61, %v3859_v62 }
 0x371   : > { %v3730_v19 = vmul.f32 %v8495_v4, %v2938_v26  ;;  %v9063_v27 = vadd.f32 %v4367_v53, %v8930_v10  ;;  %v3208_v40 = vadd.f32 %v3176_v5, %v3142_v52  ;;  %v3177_v47 = vmul.f32 %v8936_v16, %v2360_v28  ;;  %v3496_v61 = vld [vmem:[#allocation3 + $0x120] sm:$0xff] }
 0x372   : > { %v4599_v63 = vadd.f32 %v8587_v43, %v4563_v32  ;;  %v2939_v41 = vadd.f32 %v2907_v45, %v8919_v25  ;;  %v2257_v0 = vadd.f32 %v2221_v14, %v8951_v23  ;;  %v4528_v54 = vadd.f32 %v4496_v22, %v3957_v13  ;;  %v3598_v36 = vld [vmem:[#allocation3 + $0x121] sm:$0xff]  ;;  %v9091_v32 = vld [vmem:[%s9402_s7] ss:$0 sm:$0xff]  ;;  %v2879_v13 = vld [vmem:[#allocation2 + $0x1d2] sm:$0xff] }
 0x373   : > { %v9070_v26 = vmul.f32 %v8861_v35, %v8941_v56  ;;  %v9073_v10 = vmul.f32 %v8861_v35, %v2878_v57  ;;  %v3530_v25 = vmul.f32 %v8454_v59, %v3496_v61  ;;  %v2099_v28 = vadd.f32 %v2065_v7, %v8953_v31  ;;  %v2224_v59 = vpop.f32.mrf.mxu0 }
 0x374   : > { %v4631_v11 = vmax.f32 %v4599_v63, 0.0  ;;  %v2975_v29 = vld [vmem:[#allocation2 + $0x188] sm:$0xff]  ;;  %3465 = vst [vmem:[#allocation3 + $0x12a] sm:$0xff] %v2939_v41  ;;  %v2293_v23 = vmul.f32 %v8872_v2, %v2257_v0  ;;  %v9079_v14 = vmul.f32 %v8907_v21, %v2780_v44  ;;  %v4564_v6 = vmul.f32 %v8571_v60, %v4528_v54 }
 0x375   : > { %v3077_v49 = vld [vmem:[#allocation2 + $0x189] sm:$0xff]  ;;  %v3009_v56 = vmul.f32 %v8879_v39, %v2975_v29  ;;  %v3632_v37 = vmul.f32 %v8473_v24, %v3598_v36  ;;  %v3566_v8 = vadd.f32 %v9091_v32, %v3530_v25  ;;  %v3731_v22 = vmul.f32 %v8495_v4, %v2939_v41 }
 0x376   : > { %v3240_v33 = vld [vmem:[#allocation2 + $0x183] sm:$0xff]  ;;  %4663 = vst [vmem:[%s7170_s21 + $0xb0] sm:$0xff] %v4631_v11  ;;  %v3241_v12 = vld [vmem:[#allocation2 + $0x18b] sm:$0xff]  ;;  %v3111_v62 = vmul.f32 %v8973_v1, %v3077_v49  ;;  %v4600_v5 = vadd.f32 %v8587_v43, %v4564_v6  ;;  %v2329_v57 = vadd.f32 %v8786_v51, %v2293_v23  ;;  %v2258_v54 = vadd.f32 %v2224_v59, %v2099_v28  ;;  %v9111_v28 = vld [vmem:[%s9405_s10 + $0x1] ss:$0 sm:$0xff] }
 0x377   : > { %v3274_v53 = vmul.f32 %v8959_v20, %v3240_v33  ;;  %v3338_v42 = vld [vmem:[#allocation2 + $0x184] sm:$0xff]  ;;  %v3339_v52 = vld [vmem:[#allocation2 + $0x18c] sm:$0xff]  ;;  %v3045_v45 = vadd.f32 %v8889_v30, %v3009_v56  ;;  %v3275_v63 = vmul.f32 %v8959_v20, %v3241_v12  ;;  %v3664_v0 = vadd.f32 %v3632_v37, %v3566_v8  ;;  %v9128_v56 = vld [vmem:[%s9401_s6] ss:$0 sm:$0xff] }
 0x378   : > { %v3372_v31 = vmul.f32 %v8979_v9, %v3338_v42  ;;  %v3373_v7 = vmul.f32 %v8979_v9, %v3339_v52  ;;  %v4632_v11 = vmax.f32 %v4600_v5, 0.0  ;;  %v2361_v29 = vmax.f32 %v2329_v57, 0.0  ;;  %v9134_v42 = vld [vmem:[%s9401_s6 + $0x3] ss:$0 sm:$0xff]  ;;  %v9140_v59 = vld [vmem:[%s9405_s10 + $0x2] ss:$0 sm:$0xff] }
 0x379   : > { %v3306_v24 = vadd.f32 %v3274_v53, %v3208_v40  ;;  %v3143_v61 = vadd.f32 %v3111_v62, %v3045_v45  ;;  %v3762_v4 = vadd.f32 %v3730_v19, %v3664_v0  ;;  %v2294_v41 = vmul.f32 %v8872_v2, %v2258_v54  ;;  %v5243_v2 = vld [vmem:[%s9405_s10] ss:$0 sm:$0xff]  ;;  %v9154_v45 = vld [vmem:[%s9401_s6 + $0x1] ss:$0 sm:$0xff]  ;;  %v9160_v57 = vld [vmem:[%s9401_s6 + $0x4] ss:$0 sm:$0xff] }
 0x37a   : > { %v9102_v49 = vmul.f32 %v8861_v35, %v2780_v44  ;;  %v9105_v40 = vmul.f32 %v8861_v35, %v2879_v13  ;;  %4664 = vst [vmem:[%s7170_s21 + $0xb8] sm:$0xff] %v4632_v11  ;;  %v9120_v44 = vmul.f32 %v5243_v2, %v9001_v48 }
 0x37b   : > { %v3404_v36 = vadd.f32 %v3372_v31, %v3306_v24  ;;  %v3209_v33 = vadd.f32 %v3177_v47, %v3143_v61  ;;  %v3497_v25 = vld [vmem:[#allocation3 + $0x128] sm:$0xff]  ;;  %v9123_v47 = vmul.f32 %v5243_v2, %v9031_v15  ;;  %v9148_v31 = vld [vmem:[%s9405_s10 + $0x4] ss:$0 sm:$0xff]  ;;  %2447 = vst [vmem:[#allocation2 + $0x19a] sm:$0xff] %v2361_v29  ;;  %v2908_v2 = vmul.f32 %v8861_v35, %v2361_v29 }
 0x37c   : > { %v3599_v23 = vld [vmem:[#allocation3 + $0x129] sm:$0xff]  ;;  %v3531_v12 = vmul.f32 %v9128_v56, %v3497_v25 }
 0x37d   : > { %v3794_v6 = vld [vmem:[#allocation3 + $0x123] sm:$0xff]  ;;  %v9114_v19 = vmul.f32 %v9111_v28, %v3404_v36  ;;  %v3795_v53 = vld [vmem:[#allocation3 + $0x12b] sm:$0xff]  ;;  %v9143_v62 = vmul.f32 %v9140_v59, %v3404_v36  ;;  %v4465_v8 = vmul.f32 %v9148_v31, %v3404_v36  ;;  %v3307_v5 = vadd.f32 %v3275_v63, %v3209_v33 }
 0x37e   : > { %v3828_v52 = vmul.f32 %v9134_v42, %v3794_v6  ;;  %v3892_v37 = vld [vmem:[#allocation3 + $0x124] sm:$0xff]  ;;  %v3633_v24 = vmul.f32 %v9154_v45, %v3599_v23  ;;  %v9164_v0 = vmul.f32 %v9021_v34, %v3404_v36  ;;  %v3567_v54 = vadd.f32 %v9091_v32, %v3531_v12  ;;  %v3893_v11 = vld [vmem:[#allocation3 + $0x12c] sm:$0xff] }
 0x37f   : > { %9867 = vst [vmem:[#allocation64_spill] sm:$0xff] %v9143_v62  ;;  %v3926_v13 = vmul.f32 %v9160_v57, %v3892_v37  ;;  %v4497_v61 = vadd.f32 %v4465_v8, %v9036_v3  ;;  %v2714_v33 = vmul.f32 %v8750_v50, %v2361_v29  ;;  %v3405_v25 = vadd.f32 %v3373_v7, %v3307_v5 }
 0x380   : > { %9868 = vst [vmem:[#allocation32_spill] sm:$0xff] %v9164_v0  ;;  %v3860_v63 = vadd.f32 %v3828_v52, %v3762_v4  ;;  %v3829_v23 = vmul.f32 %v9134_v42, %v3795_v53  ;;  %v2811_v6 = vmul.f32 %v8907_v21, %v2361_v29  ;;  %v3665_v62 = vadd.f32 %v3633_v24, %v3567_v54 }
 0x381   : > { %v2746_v36 = vadd.f32 %v2714_v33, %v8993_v58  ;;  %v2330_v0 = vadd.f32 %v8786_v51, %v2294_v41  ;;  %v3927_v4 = vmul.f32 %v9160_v57, %v3893_v11  ;;  %v9176_v12 = vmul.f32 %v9111_v28, %v3405_v25  ;;  %v9869_v58 = vld [vmem:[#allocation21_spill] sm:$0xff] }
 0x382   : > { %v3958_v37 = vadd.f32 %v3926_v13, %v3860_v63  ;;  %v4466_v3 = vmul.f32 %v9148_v31, %v3405_v25  ;;  %v3178_v7 = vmul.f32 %v8936_v16, %v2361_v29  ;;  %v3763_v53 = vadd.f32 %v3731_v22, %v3665_v62  ;;  %v2976_v13 = vld [vmem:[#allocation2 + $0x198] sm:$0xff] }
 0x383   : > { %v2843_v8 = vadd.f32 %v2811_v6, %v9004_v46  ;;  %v2845_v5 = vadd.f32 %v8967_v55, %v2746_v36  ;;  %v9183_v24 = vmul.f32 %v9140_v59, %v3405_v25  ;;  %v2940_v41 = vadd.f32 %v2908_v2, %v9869_v58  ;;  %v3078_v62 = vld [vmem:[#allocation2 + $0x199] sm:$0xff] }
 0x384   : > { %v4529_v52 = vadd.f32 %v4497_v61, %v3958_v37  ;;  %v4498_v51 = vadd.f32 %v4466_v3, %v9063_v27  ;;  %v2362_v54 = vmax.f32 %v2330_v0, 0.0  ;;  %v3861_v63 = vadd.f32 %v3829_v23, %v3763_v53  ;;  %v9871_v23 = vld [vmem:[#allocation17_spill] sm:$0xff]  ;;  %v5250_v53 = vld [vmem:[%s9401_s6 + $0x2] ss:$0 sm:$0xff] }
 0x385   : > { %v2942_v29 = vadd.f32 %v9070_v26, %v2843_v8  ;;  %v2944_v22 = vadd.f32 %v9073_v10, %v2845_v5  ;;  %v9191_v46 = vmul.f32 %v9021_v34, %v3405_v25  ;;  %v3010_v55 = vmul.f32 %v8879_v39, %v2976_v13  ;;  %3466 = vst [vmem:[#allocation3 + $0x13a] sm:$0xff] %v2940_v41  ;;  %v9870_v26 = vld [vmem:[#allocation33_spill] sm:$0xff]  ;;  %v9873_v58 = vld [vmem:[#allocation10_spill] sm:$0xff] }
 0x386   : > { %v4565_v11 = vmul.f32 %v8571_v60, %v4529_v52  ;;  %v2715_v27 = vmul.f32 %v8750_v50, %v2362_v54  ;;  %v2812_v61 = vmul.f32 %v8907_v21, %v2362_v54  ;;  %v3959_v33 = vadd.f32 %v3927_v4, %v3861_v63  ;;  %2448 = vst [vmem:[#allocation2 + $0x1a2] sm:$0xff] %v2362_v54  ;;  %v9872_v5 = vld [vmem:[#allocation29_spill] sm:$0xff]  ;;  %v9238_v13 = vld [vmem:[%s9408_s13] ss:$0 sm:$0xff] }
 0x387   : > { %3468 = vst [vmem:[#allocation3 + $0x152] sm:$0xff] %v2942_v29  ;;  %v2909_v60 = vmul.f32 %v8861_v35, %v2362_v54  ;;  %v4105_v10 = vadd.f32 %v9871_v23, %v9870_v26  ;;  %v3046_v6 = vadd.f32 %v8889_v30, %v3010_v55  ;;  %v3112_v25 = vmul.f32 %v8973_v1, %v3078_v62 }
 0x388   : > { %v4601_v0 = vadd.f32 %v8587_v43, %v4565_v11  ;;  %3470 = vst [vmem:[#allocation3 + $0x16a] sm:$0xff] %v2944_v22  ;;  %v2747_v2 = vadd.f32 %v2715_v27, %v9048_v18  ;;  %v2844_v50 = vadd.f32 %v2812_v61, %v9051_v38  ;;  %v4530_v21 = vadd.f32 %v4498_v51, %v3959_v33  ;;  %v9218_v38 = vld [vmem:[%s9407_s12] ss:$0 sm:$0xff]  ;;  %v9874_v33 = vld [vmem:[#allocation63_spill] sm:$0xff] }
 0x389   : > { %v2941_v43 = vadd.f32 %v2909_v60, %v9057_v17  ;;  %v9206_v35 = vmul.f32 %v8936_v16, %v2362_v54  ;;  %v3144_v36 = vadd.f32 %v3112_v25, %v3046_v6  ;;  %v9213_v18 = vmul.f32 %v5250_v53, %v2940_v41 }
 0x38a   : > { %v4633_v37 = vmax.f32 %v4601_v0, 0.0  ;;  %v2846_v4 = vadd.f32 %v9079_v14, %v2747_v2  ;;  %v2943_v3 = vadd.f32 %v9102_v49, %v2844_v50  ;;  %v4566_v17 = vmul.f32 %v9218_v38, %v4530_v21  ;;  %v9876_v50 = vld [vmem:[#allocation37_spill] sm:$0xff] }
 0x38b   : > { %v9222_v16 = vmul.f32 %v5250_v53, %v2941_v43  ;;  %v9224_v52 = vmul.f32 %v5250_v53, %v2942_v29  ;;  %v9226_v14 = vmul.f32 %v5250_v53, %v2944_v22  ;;  %v3210_v49 = vadd.f32 %v3178_v7, %v3144_v36  ;;  %3467 = vst [vmem:[#allocation3 + $0x142] sm:$0xff] %v2941_v43 }
 0x38c   : > { %4665 = vst [vmem:[%s7170_s21 + $0xc0] sm:$0xff] %v4633_v37  ;;  %v2945_v8 = vadd.f32 %v9105_v40, %v2846_v4  ;;  %v4106_v51 = vadd.f32 %v9871_v23, %v9872_v5  ;;  %v9233_v41 = vadd.f32 %v9871_v23, %v9873_v58  ;;  %v4602_v54 = vadd.f32 %v9238_v13, %v4566_v17  ;;  %v3498_v63 = vld [vmem:[#allocation3 + $0x138] sm:$0xff] }
 0x38d   : > { %3469 = vst [vmem:[#allocation3 + $0x15a] sm:$0xff] %v2943_v3  ;;  %v3600_v7 = vld [vmem:[#allocation3 + $0x139] sm:$0xff]  ;;  %v9241_v11 = vmul.f32 %v5250_v53, %v2943_v3  ;;  %v9245_v40 = vadd.f32 %v9871_v23, %v9120_v44  ;;  %v4173_v29 = vmul.f32 %v9111_v28, %v9001_v48  ;;  %v3532_v62 = vmul.f32 %v9128_v56, %v3498_v63  ;;  %v9875_v44 = vld [vmem:[#allocation39_spill] sm:$0xff] }
 0x38e   : > { %3471 = vst [vmem:[#allocation3 + $0x172] sm:$0xff] %v2945_v8  ;;  %v3500_v22 = vld [vmem:[#allocation3 + $0x150] sm:$0xff]  ;;  %v9252_v27 = vadd.f32 %v9871_v23, %v9123_v47  ;;  %v9256_v61 = vmul.f32 %v9111_v28, %v9031_v15  ;;  %v9260_v0 = vadd.f32 %v9875_v44, %v9874_v33  ;;  %v4634_v60 = vmax.f32 %v4602_v54, 0.0  ;;  %v2977_v47 = vld [vmem:[#allocation2 + $0x1a0] sm:$0xff] }
 0x38f   : > { %v3602_v55 = vld [vmem:[#allocation3 + $0x151] sm:$0xff]  ;;  %v3502_v26 = vld [vmem:[#allocation3 + $0x168] sm:$0xff]  ;;  %v3534_v6 = vmul.f32 %v9128_v56, %v3500_v22  ;;  %v3634_v2 = vmul.f32 %v9154_v45, %v3600_v7  ;;  %v9265_v21 = vadd.f32 %v9876_v50, %v4105_v10  ;;  %v3242_v37 = vld [vmem:[#allocation2 + $0x19b] sm:$0xff]  ;;  %v3568_v43 = vadd.f32 %v9091_v32, %v3532_v62 }
 0x390   : > { %v3604_v25 = vld [vmem:[#allocation3 + $0x169] sm:$0xff]  ;;  %v3079_v23 = vld [vmem:[#allocation2 + $0x1a1] sm:$0xff]  ;;  %v3536_v28 = vmul.f32 %v9128_v56, %v3502_v26  ;;  %v9269_v36 = vmul.f32 %v5250_v53, %v2945_v8  ;;  %v9271_v4 = vadd.f32 %v4173_v29, %v4106_v51  ;;  %4666 = vst [vmem:[%s7170_s21 + $0xc8] sm:$0xff] %v4634_v60  ;;  %v3011_v3 = vmul.f32 %v8879_v39, %v2977_v47 }
 0x391   : > { %v3243_v17 = vld [vmem:[#allocation2 + $0x1a3] sm:$0xff]  ;;  %v3276_v5 = vmul.f32 %v8959_v20, %v3242_v37  ;;  %v3570_v54 = vadd.f32 %v9091_v32, %v3534_v6  ;;  %v3636_v63 = vmul.f32 %v9154_v45, %v3602_v55  ;;  %v3113_v7 = vmul.f32 %v8973_v1, %v3079_v23 }
 0x392   : > { %v3340_v58 = vld [vmem:[#allocation2 + $0x19c] sm:$0xff]  ;;  %v3341_v10 = vld [vmem:[#allocation2 + $0x1a4] sm:$0xff]  ;;  %v3277_v22 = vmul.f32 %v8959_v20, %v3243_v17  ;;  %v3572_v53 = vadd.f32 %v9091_v32, %v3536_v28  ;;  %v3638_v8 = vmul.f32 %v9154_v45, %v3604_v25  ;;  %v3047_v51 = vadd.f32 %v8889_v30, %v3011_v3 }
 0x393   : > { %v3308_v39 = vadd.f32 %v3276_v5, %v3210_v49  ;;  %v3374_v29 = vmul.f32 %v8979_v9, %v3340_v58  ;;  %v3499_v62 = vld [vmem:[#allocation3 + $0x140] sm:$0xff]  ;;  %v3666_v44 = vadd.f32 %v3634_v2, %v3568_v43  ;;  %v3375_v26 = vmul.f32 %v8979_v9, %v3341_v10 }
 0x394   : > { %v3601_v33 = vld [vmem:[#allocation3 + $0x141] sm:$0xff]  ;;  %v3501_v55 = vld [vmem:[#allocation3 + $0x158] sm:$0xff]  ;;  %v3533_v1 = vmul.f32 %v9128_v56, %v3499_v62  ;;  %v3668_v50 = vadd.f32 %v3636_v63, %v3570_v54  ;;  %v3145_v47 = vadd.f32 %v3113_v7, %v3047_v51  ;;  %v3670_v23 = vadd.f32 %v3638_v8, %v3572_v53 }
 0x395   : > { %v3796_v60 = vld [vmem:[#allocation3 + $0x13b] sm:$0xff]  ;;  %v3635_v20 = vmul.f32 %v9154_v45, %v3601_v33  ;;  %v3503_v25 = vld [vmem:[#allocation3 + $0x170] sm:$0xff]  ;;  %v3535_v30 = vmul.f32 %v9128_v56, %v3501_v55  ;;  %v9289_v2 = vadd.f32 %v3374_v29, %v3308_v39  ;;  %v3764_v54 = vadd.f32 %v9213_v18, %v3666_v44  ;;  %v3797_v63 = vld [vmem:[#allocation3 + $0x143] sm:$0xff] }
 0x396   : > { %v3603_v6 = vld [vmem:[#allocation3 + $0x159] sm:$0xff]  ;;  %v3605_v49 = vld [vmem:[#allocation3 + $0x171] sm:$0xff]  ;;  %v3830_v28 = vmul.f32 %v9134_v42, %v3796_v60  ;;  %v3537_v9 = vmul.f32 %v9128_v56, %v3503_v25  ;;  %v3569_v43 = vadd.f32 %v9091_v32, %v3533_v1  ;;  %v3211_v5 = vadd.f32 %v9206_v35, %v3145_v47  ;;  %v3895_v55 = vld [vmem:[#allocation3 + $0x144] sm:$0xff] }
 0x397   : > { %v3798_v37 = vld [vmem:[#allocation3 + $0x153] sm:$0xff]  ;;  %v3637_v3 = vmul.f32 %v9154_v45, %v3603_v6  ;;  %v3800_v17 = vld [vmem:[#allocation3 + $0x16b] sm:$0xff]  ;;  %v3571_v58 = vadd.f32 %v9091_v32, %v3535_v30  ;;  %v3639_v10 = vmul.f32 %v9154_v45, %v3605_v49  ;;  %v3799_v7 = vld [vmem:[#allocation3 + $0x15b] sm:$0xff]  ;;  %v3766_v56 = vadd.f32 %v9224_v52, %v3668_v50 }
 0x398   : > { %v3573_v53 = vadd.f32 %v9091_v32, %v3537_v9  ;;  %v3667_v8 = vadd.f32 %v3635_v20, %v3569_v43  ;;  %v3801_v51 = vld [vmem:[#allocation3 + $0x173] sm:$0xff]  ;;  %v3832_v39 = vmul.f32 %v9134_v42, %v3798_v37  ;;  %v3309_v29 = vadd.f32 %v3277_v22, %v3211_v5  ;;  %v3894_v32 = vld [vmem:[#allocation3 + $0x13c] sm:$0xff] }
 0x399   : > { %v3669_v62 = vadd.f32 %v3637_v3, %v3571_v58  ;;  %v3768_v35 = vadd.f32 %v9226_v14, %v3670_v23  ;;  %v3834_v33 = vmul.f32 %v9134_v42, %v3800_v17  ;;  %v3831_v18 = vmul.f32 %v9134_v42, %v3797_v63  ;;  %v3896_v1 = vld [vmem:[#allocation3 + $0x154] sm:$0xff]  ;;  %v3897_v50 = vld [vmem:[#allocation3 + $0x15c] sm:$0xff]  ;;  %v3898_v14 = vld [vmem:[#allocation3 + $0x16c] sm:$0xff] }
 0x39a   : > { %v3671_v60 = vadd.f32 %v3639_v10, %v3573_v53  ;;  %v3765_v45 = vadd.f32 %v9222_v16, %v3667_v8  ;;  %v3833_v44 = vmul.f32 %v9134_v42, %v3799_v7  ;;  %v3835_v6 = vmul.f32 %v9134_v42, %v3801_v51  ;;  %v3899_v47 = vld [vmem:[#allocation3 + $0x174] sm:$0xff] }
 0x39b   : > { %v3767_v52 = vadd.f32 %v9241_v11, %v3669_v62  ;;  %v3862_v22 = vadd.f32 %v3830_v28, %v3764_v54  ;;  %v3864_v20 = vadd.f32 %v3832_v39, %v3766_v56  ;;  %v3407_v25 = vadd.f32 %v3375_v26, %v3309_v29  ;;  %v9878_v51 = vld [vmem:[#allocation32_spill] sm:$0xff] }
 0x39c   : > { %v3769_v30 = vadd.f32 %v9269_v36, %v3671_v60  ;;  %v3863_v16 = vadd.f32 %v3831_v18, %v3765_v45  ;;  %v3866_v49 = vadd.f32 %v3834_v33, %v3768_v35  ;;  %v3928_v37 = vmul.f32 %v9160_v57, %v3894_v32 }
 0x39d   : > { %v3865_v23 = vadd.f32 %v3833_v44, %v3767_v52  ;;  %v3929_v9 = vmul.f32 %v9160_v57, %v3895_v55  ;;  %v3930_v43 = vmul.f32 %v9160_v57, %v3896_v1  ;;  %v3931_v42 = vmul.f32 %v9160_v57, %v3897_v50 }
 0x39e   : > { %v3867_v11 = vadd.f32 %v3835_v6, %v3769_v30  ;;  %v3932_v28 = vmul.f32 %v9160_v57, %v3898_v14  ;;  %v3933_v3 = vmul.f32 %v9160_v57, %v3899_v47  ;;  %v3960_v17 = vadd.f32 %v3928_v37, %v3862_v22 }
 0x39f   : > { %v3961_v26 = vadd.f32 %v3929_v9, %v3863_v16  ;;  %v3962_v5 = vadd.f32 %v3930_v43, %v3864_v20  ;;  %v4206_v36 = vadd.f32 %v9256_v61, %v9233_v41  ;;  %v3963_v58 = vadd.f32 %v3931_v42, %v3865_v23  ;;  %v9877_v41 = vld [vmem:[#allocation64_spill] sm:$0xff] }
 0x3a0   : > { %v4207_v10 = vadd.f32 %v9114_v19, %v9245_v40  ;;  %v4208_v54 = vadd.f32 %v9176_v12, %v9252_v27  ;;  %v4269_v63 = vmul.f32 %v9140_v59, %v9001_v48  ;;  %v4270_v7 = vmul.f32 %v9140_v59, %v9031_v15 }
 0x3a1   : > { %v4273_v57 = vmul.f32 %v9140_v59, %v9289_v2  ;;  %v4274_v53 = vmul.f32 %v9140_v59, %v3407_v25  ;;  %v4303_v61 = vadd.f32 %v9877_v41, %v9271_v4  ;;  %v4304_v19 = vadd.f32 %v9183_v24, %v4206_v36 }
 0x3a2   : > { %v4301_v8 = vadd.f32 %v4269_v63, %v9260_v0  ;;  %v4370_v12 = vmul.f32 %v9021_v34, %v9289_v2  ;;  %v4371_v48 = vmul.f32 %v9021_v34, %v3407_v25  ;;  %v4302_v40 = vadd.f32 %v4270_v7, %v9265_v21 }
 0x3a3   : > { %v4305_v15 = vadd.f32 %v4273_v57, %v4207_v10  ;;  %v4306_v27 = vadd.f32 %v4274_v53, %v4208_v54  ;;  %v4372_v56 = vmul.f32 0.0, %v9021_v34  ;;  %v4467_v0 = vmul.f32 %v9148_v31, %v9289_v2 }
 0x3a4   : > { %v4400_v59 = vadd.f32 %v9878_v51, %v4301_v8  ;;  %v4402_v39 = vadd.f32 %v4370_v12, %v4303_v61  ;;  %v4403_v29 = vadd.f32 %v4371_v48, %v4304_v19  ;;  %v4401_v24 = vadd.f32 %v9191_v46, %v4302_v40 }
 0x3a5   : > { %v4404_v4 = vadd.f32 %v4372_v56, %v4305_v15  ;;  %v4405_v62 = vadd.f32 %v4372_v56, %v4306_v27  ;;  %v4468_v35 = vmul.f32 %v9148_v31, %v3407_v25  ;;  %v3964_v33 = vadd.f32 %v3932_v28, %v3866_v49 }
 0x3a6   : > { %v3965_v21 = vadd.f32 %v3933_v3, %v3867_v11  ;;  %v4469_v60 = vmul.f32 0.0, %v9148_v31  ;;  %v4499_v45 = vadd.f32 %v4467_v0, %v4400_v59 }
 0x3a7   : > { %v4500_v34 = vadd.f32 %v4468_v35, %v4401_v24 }
 0x3a8   : > { %v4501_v18 = vadd.f32 %v4469_v60, %v4402_v39  ;;  %v4502_v44 = vadd.f32 %v4469_v60, %v4403_v29  ;;  %v4503_v32 = vadd.f32 %v4469_v60, %v4404_v4  ;;  %v4504_v55 = vadd.f32 %v4469_v60, %v4405_v62 }
 0x3a9   : > { %v4531_v1 = vadd.f32 %v4499_v45, %v3960_v17  ;;  %v4532_v52 = vadd.f32 %v4500_v34, %v3961_v26 }
 0x3aa   : > { %v4533_v2 = vadd.f32 %v4501_v18, %v3962_v5  ;;  %v4534_v6 = vadd.f32 %v4502_v44, %v3963_v58  ;;  %v4535_v46 = vadd.f32 %v4503_v32, %v3964_v33  ;;  %v4536_v22 = vadd.f32 %v4504_v55, %v3965_v21 }
 0x3ab   : > { %v4567_v20 = vmul.f32 %v9218_v38, %v4531_v1  ;;  %v4568_v50 = vmul.f32 %v9218_v38, %v4532_v52 }
 0x3ac   : > { %v4569_v31 = vmul.f32 %v9218_v38, %v4533_v2  ;;  %v4570_v14 = vmul.f32 %v9218_v38, %v4534_v6  ;;  %v4571_v47 = vmul.f32 %v9218_v38, %v4535_v46  ;;  %v4572_v25 = vmul.f32 %v9218_v38, %v4536_v22 }
 0x3ad   : > { %v4603_v30 = vadd.f32 %v9238_v13, %v4567_v20  ;;  %v4604_v16 = vadd.f32 %v9238_v13, %v4568_v50 }
 0x3ae   : > { %v4605_v49 = vadd.f32 %v9238_v13, %v4569_v31  ;;  %v4606_v23 = vadd.f32 %v9238_v13, %v4570_v14  ;;  %v4607_v37 = vadd.f32 %v9238_v13, %v4571_v47  ;;  %v4608_v38 = vadd.f32 %v9238_v13, %v4572_v25 }
 0x3af   : > { %v4635_v9 = vmax.f32 %v4603_v30, 0.0  ;;  %v4636_v43 = vmax.f32 %v4604_v16, 0.0 }
 0x3b0   : > { %v4637_v11 = vmax.f32 %v4605_v49, 0.0  ;;  %v4638_v42 = vmax.f32 %v4606_v23, 0.0  ;;  %v4639_v28 = vmax.f32 %v4607_v37, 0.0  ;;  %v4640_v3 = vmax.f32 %v4608_v38, 0.0 }
 0x3b1   : > { %4667 = vst [vmem:[%s7170_s21 + $0xd0] sm:$0xff] %v4635_v9 }
 0x3b2   : > { %4668 = vst [vmem:[%s7170_s21 + $0xd8] sm:$0xff] %v4636_v43 }
 0x3b3   : > { %4669 = vst [vmem:[%s7170_s21 + $0xe0] sm:$0xff] %v4637_v11 }
 0x3b4   : > { %4670 = vst [vmem:[%s7170_s21 + $0xe8] sm:$0xff] %v4638_v42 }
 0x3b5   : > { %4671 = vst [vmem:[%s7170_s21 + $0xf0] sm:$0xff] %v4639_v28 }
 0x3b6   : > { %4672 = vst [vmem:[%s7170_s21 + $0xf8] sm:$0xff] %v4640_v3 }
 0x3b7   : > { %5280 = shalt.err (!%p5277_p3)
}
 0x3b8   : > { %s5318_s22 = smov 128   ;;  %s5319_s21 = smov 8  }
 0x3b9   : > { %5072 = dma.vmem_to_hbm [thread:$0]  (%p5433_p5), %s4687_s25, 4096, %s4689_s26, %s4674_s27, %s5318_s22, %s5318_s22, %s5319_s21  }
 0x3ba PF: > { %p5078_p4 = scmp.ge.s32.totalorder %s5315_s16, 2  ;;  %s4703_s17 = sand.u32 1, %s5303_s29  }
 0x3bb   : > { %s4704_s0 = scalar_lea.sflag [#allocation6], %s4703_s17 }
 0x3bc   : > { %p5075_p7 = pnand %p5078_p4, %p5437_p6 }
 0x3be   : > { %p5076_p8 = pneg %p5075_p7 }
 0x3c0   : > { %5298 = dma.done.wait (%p5076_p8), %s4704_s0, 4096  }
 0x3c1   : > { %5300 = vsyncadd (%p5076_p8), %s4704_s0, 4294963200  ;;  %s9879_s1 = sld [smem:[#allocation8_spill]]  ;;  %p24_p9 = scmp.ge.s32.totalorder %s5420_s19, 4  }
 0x3c2   : > { %s9880_s15 = sld [smem:[#allocation9_spill]]  ;;  %s9881_s29 = smov %s5307_s30 }
 0x3c3   : > { %s9883_s16 = smov %s5420_s19  ;;  %26 = sbr.rel (!%p24_p9) target bundleno = 6 (0x6), region = 129 }
 0x3c7   : > { %s9882_s30 = smov %s9879_s1 }
 0x3c8   :  { %4710 = vsyncpa [#allocation6], 1 }
 0x3c9   :  { %4712 = vsyncpa [#allocation6 + $0x1], 1 }

</bundles_post_ra>
